<compile_context>
chip_gen: v7x
topology: tpu7x:2x2x1
jax: 0.10.0
libtpu: 0.0.40
codegen_flags: <defaults>
</compile_context>

<pallas_src>
import functools

import jax
import jax.numpy as jnp
from jax.experimental import pallas as pl
from jax.experimental.pallas import tpu as pltpu

C = 256                                    # hard-coded by the module (.view(256, N))
CSPLIT = 2                                 # channel halves -> lane-dense 128-wide blocks
CB = C // CSPLIT

# pyramid levels (oh, ow) and their row offsets in the [401, 256] output
OH1, OW1 = 4, 5
OH2, OW2 = 8, 10
OH3, OW3 = 15, 20
OFF0 = 0                                   # (1, 1)   -> row 0
OFF1 = 1                                   # (4, 5)   -> rows 1..20
OFF2 = OFF1 + OH1 * OW1                    # (8, 10)  -> rows 21..100
OFF3 = OFF2 + OH2 * OW2                    # (15, 20) -> rows 101..400
TOTAL_ROWS = OFF3 + OH3 * OW3              # 401
LEVELS = ((1, 1), (OH1, OW1), (OH2, OW2), (OH3, OW3))

NEG = float("-inf")


def _bin_bounds(in_size, out_size, idx):
    """PyTorch adaptive pooling bin boundaries (static Python ints)."""
    start = (idx * in_size) // out_size
    end = -((-(idx + 1) * in_size) // out_size)      # ceil((idx+1)*in/out)
    return start, end


def _attention_feature_kernel(x_ref, o_ref, xw_ref, acc_ref, *, H):
    """x_ref: [TH, W, CB] input tile, o_ref: [401, CB] output block.

    xw_ref : [OW3 + OW2, TH, CB] f32 scratch with the width-pooled columns
    acc_ref: [401, CB]           f32 max-accumulator, laid out like the output
    """
    TH = x_ref.shape[0]
    W = x_ref.shape[1]
    t = pl.program_id(1)
    num_t = pl.num_programs(1)

    @pl.when(t == 0)
    def _():
        acc_ref[...] = jnp.full(acc_ref.shape, NEG, dtype=acc_ref.dtype)

    # ---- single pass over the input tile: adaptive W-max at the finest level (ow=20)
    for j in range(OW3):
        w0, w1 = _bin_bounds(W, OW3, j)
        xw_ref[j, :, :] = jnp.max(x_ref[:, w0:w1, :], axis=1).astype(jnp.float32)

    # ---- ow=10 columns are pairwise maxima of the ow=20 columns (bins nest exactly)
    for j in range(OW2):
        xw_ref[OW3 + j, :, :] = jnp.maximum(xw_ref[2 * j, :, :],
                                            xw_ref[2 * j + 1, :, :])

    # Global row index of every tile row.  Rows >= H (padded partial last tile)
    # are automatically excluded because every adaptive H-bin ends at <= H.
    grow = t * TH + jax.lax.broadcasted_iota(jnp.int32, (TH, 1), 0)       # [TH, 1]
    tile_lo = t * TH

    # ---- level (15, 20): adaptive H-max over the ow=20 columns, max-accumulated
    for i in range(OH3):
        h0, h1 = _bin_bounds(H, OH3, i)
        hit = jnp.logical_and(h1 > tile_lo, h0 < tile_lo + TH)

        @pl.when(hit)
        def _(i=i, h0=h0, h1=h1):
            m = jnp.logical_and(grow >= h0, grow < h1)                    # [TH, 1]
            data = xw_ref[0:OW3, :, :]                                    # [20, TH, CB]
            contrib = jnp.max(jnp.where(m[None], data, NEG), axis=1)      # [20, CB]
            r0 = OFF3 + i * OW3
            acc_ref[r0:r0 + OW3, :] = jnp.maximum(acc_ref[r0:r0 + OW3, :], contrib)

    # ---- level (8, 10): adaptive H-max over the derived ow=10 columns
    for i in range(OH2):
        h0, h1 = _bin_bounds(H, OH2, i)
        hit = jnp.logical_and(h1 > tile_lo, h0 < tile_lo + TH)

        @pl.when(hit)
        def _(i=i, h0=h0, h1=h1):
            m = jnp.logical_and(grow >= h0, grow < h1)                    # [TH, 1]
            data = xw_ref[OW3:OW3 + OW2, :, :]                            # [10, TH, CB]
            contrib = jnp.max(jnp.where(m[None], data, NEG), axis=1)      # [10, CB]
            r0 = OFF2 + i * OW2
            acc_ref[r0:r0 + OW2, :] = jnp.maximum(acc_ref[r0:r0 + OW2, :], contrib)

    # ---- last step: derive (4,5) from (8,10) and (1,1) from (4,5); one dense store
    @pl.when(t == num_t - 1)
    def _():
        for i in range(OH1):
            top = acc_ref[OFF2 + (2 * i) * OW2:OFF2 + (2 * i) * OW2 + OW2, :]
            bot = acc_ref[OFF2 + (2 * i + 1) * OW2:OFF2 + (2 * i + 1) * OW2 + OW2, :]
            hp = jnp.maximum(top, bot)                                    # [10, CB]
            for j in range(OW1):
                r = OFF1 + i * OW1 + j
                acc_ref[r:r + 1, :] = jnp.maximum(hp[2 * j:2 * j + 1, :],
                                                  hp[2 * j + 1:2 * j + 2, :])
        acc_ref[OFF0:OFF0 + 1, :] = jnp.max(acc_ref[OFF1:OFF1 + OH1 * OW1, :],
                                            axis=0, keepdims=True)
        o_ref[...] = acc_ref[...].astype(o_ref.dtype)


def attention_feature(x_nchw, *, tile_h=None):
    """x_nchw: [1, 256, H, W] -> [401, 256] (matches the PyTorch module)."""
    assert x_nchw.shape[0] == 1 and x_nchw.shape[1] == C
    H, W = int(x_nchw.shape[2]), int(x_nchw.shape[3])
    itemsize = jnp.dtype(x_nchw.dtype).itemsize

    # glue: NCHW -> HWC so channels land on the lane axis.  allow_input_fusion
    # lets XLA fuse this transpose into the pallas_call operand (no standalone
    # HBM round-trip); ideally the producer keeps the activation in HWC.
    x_hwc = jnp.transpose(x_nchw[0], (1, 2, 0))                           # [H, W, C]

    if tile_h is None:
        # keep the double-buffered input block <= ~24 MiB (safe for v7x 64 MiB VMEM)
        per_row = W * CB * itemsize
        tile_h = max(8, min(((12 << 20) // per_row) // 8 * 8, 256))
    tile_h = int(max(1, min(tile_h, H)))
    num_t = pl.cdiv(H, tile_h)

    kernel = functools.partial(_attention_feature_kernel, H=H)

    return pl.pallas_call(
        kernel,
        out_shape=jax.ShapeDtypeStruct((TOTAL_ROWS, C), x_nchw.dtype),
        grid=(CSPLIT, num_t),
        in_specs=[pl.BlockSpec((tile_h, W, CB), lambda c, t: (t, 0, c))],
        out_specs=pl.BlockSpec((TOTAL_ROWS, CB), lambda c, t: (0, c)),
        scratch_shapes=[
            pltpu.VMEM((OW3 + OW2, tile_h, CB), jnp.float32),   # width-pooled columns
            pltpu.VMEM((TOTAL_ROWS, CB), jnp.float32),          # output accumulator
        ],
        compiler_params=pltpu.CompilerParams(
            dimension_semantics=("parallel", "arbitrary"),
            vmem_limit_bytes=48 * 1024 * 1024,
            allow_input_fusion=[True],
        ),
    )(x_hwc)


def _reference(x_nchw):
    """Pure-JAX reference replicating the PyTorch forward exactly."""
    H, W = x_nchw.shape[2], x_nchw.shape[3]
    x = x_nchw[0]                                                         # [C, H, W]
    rows = []
    for (oh, ow) in LEVELS:
        for i in range(oh):
            h0, h1 = _bin_bounds(H, oh, i)
            for j in range(ow):
                w0, w1 = _bin_bounds(W, ow, j)
                rows.append(jnp.max(x[:, h0:h1, w0:w1], axis=(1, 2)))     # [C]
    return jnp.stack(rows, axis=0)                                        # [401, 256]


if __name__ == "__main__":
    key = jax.random.PRNGKey(0)
    # (H, W, tile_h): exercises multi-tile H, a partial (masked) last tile,
    # and the automatic tile-size selection.
    cases = [(16, 20, 8), (30, 40, 16), (15, 25, None)]
    for H, W, th in cases:
        key, sub = jax.random.split(key)
        x = jax.random.normal(sub, (1, C, H, W), dtype=jnp.float32)

        out = jax.block_until_ready(attention_feature(x, tile_h=th))
        ref = _reference(x)

        assert out.shape == (TOTAL_ROWS, C), out.shape
        assert jnp.allclose(out, ref, atol=1e-6, rtol=1e-6), \
            f"mismatch vs reference at H={H}, W={W}"

    print("KERNEL_OK")
</pallas_src>

<mosaic_0001>
module attributes {stable_mosaic.version = 11 : i64} {
  func.func @_attention_feature_kernel(%arg0: i32, %arg1: i32, %arg2: memref<8x20x128xf32, #tpu.memory_space<vmem>>, %arg3: memref<401x128xf32, #tpu.memory_space<vmem>>, %arg4: memref<30x8x128xf32, #tpu.memory_space<vmem>>, %arg5: memref<401x128xf32, #tpu.memory_space<vmem>>) attributes {dimension_semantics = [#tpu.dimension_semantics<parallel>, #tpu.dimension_semantics<arbitrary>], iteration_bounds = array<i64: 2, 2>, scalar_prefetch = 0 : i64, scratch_operands = 2 : i64, tpu.core_type = #tpu.core_type<tc>, window_params = [{transform_indices = @transform_0, window_bounds = array<i64: 8, 20, 128>}, {transform_indices = @transform_1, window_bounds = array<i64: 401, 128>}]} {
    %c0_i32 = arith.constant 0 : i32
    %0 = arith.cmpi eq, %arg1, %c0_i32 : i32
    %1 = arith.extui %0 : i1 to i32
    %c0_i32_0 = arith.constant 0 : i32
    %2 = arith.cmpi ne, %1, %c0_i32_0 : i32
    scf.if %2 {
      %cst_280 = arith.constant 0xFF800000 : f32
      %329 = vector.broadcast %cst_280 : f32 to vector<401x128xf32>
      %c0_281 = arith.constant 0 : index
      %c0_282 = arith.constant 0 : index
      %330 = vector.load %arg5[%c0_281, %c0_282] : memref<401x128xf32, #tpu.memory_space<vmem>>, vector<401x128xf32>
      tpu.vector_store %arg5[%c0_281, %c0_282], %329 {strides = array<i32>} : memref<401x128xf32, #tpu.memory_space<vmem>>, vector<401x128xf32>,
    } else {
    }
    %c0 = arith.constant 0 : index
    %c0_1 = arith.constant 0 : index
    %c0_2 = arith.constant 0 : index
    %3 = vector.load %arg2[%c0, %c0_1, %c0_2] : memref<8x20x128xf32, #tpu.memory_space<vmem>>, vector<8x1x128xf32>
    %cst = arith.constant dense<0xFF800000> : vector<8x128xf32>
    %4 = vector.multi_reduction <maximumf>, %3, %cst [1] : vector<8x1x128xf32> to vector<8x128xf32>
    %c0_3 = arith.constant 0 : index
    %c0_4 = arith.constant 0 : index
    %c0_5 = arith.constant 0 : index
    %5 = vector.load %arg4[%c0_3, %c0_4, %c0_5] : memref<30x8x128xf32, #tpu.memory_space<vmem>>, vector<1x8x128xf32>
    %6 = vector.shape_cast %5 : vector<1x8x128xf32> to vector<8x128xf32>
    %7 = vector.shape_cast %4 : vector<8x128xf32> to vector<1x8x128xf32>
    tpu.vector_store %arg4[%c0_3, %c0_4, %c0_5], %7 {strides = array<i32>} : memref<30x8x128xf32, #tpu.memory_space<vmem>>, vector<1x8x128xf32>,
    %c0_6 = arith.constant 0 : index
    %c1 = arith.constant 1 : index
    %c0_7 = arith.constant 0 : index
    %8 = vector.load %arg2[%c0_6, %c1, %c0_7] : memref<8x20x128xf32, #tpu.memory_space<vmem>>, vector<8x1x128xf32>
    %cst_8 = arith.constant dense<0xFF800000> : vector<8x128xf32>
    %9 = vector.multi_reduction <maximumf>, %8, %cst_8 [1] : vector<8x1x128xf32> to vector<8x128xf32>
    %c1_9 = arith.constant 1 : index
    %c0_10 = arith.constant 0 : index
    %c0_11 = arith.constant 0 : index
    %10 = vector.load %arg4[%c1_9, %c0_10, %c0_11] : memref<30x8x128xf32, #tpu.memory_space<vmem>>, vector<1x8x128xf32>
    %11 = vector.shape_cast %10 : vector<1x8x128xf32> to vector<8x128xf32>
    %12 = vector.shape_cast %9 : vector<8x128xf32> to vector<1x8x128xf32>
    tpu.vector_store %arg4[%c1_9, %c0_10, %c0_11], %12 {strides = array<i32>} : memref<30x8x128xf32, #tpu.memory_space<vmem>>, vector<1x8x128xf32>,
    %c0_12 = arith.constant 0 : index
    %c2 = arith.constant 2 : index
    %c0_13 = arith.constant 0 : index
    %13 = vector.load %arg2[%c0_12, %c2, %c0_13] : memref<8x20x128xf32, #tpu.memory_space<vmem>>, vector<8x1x128xf32>
    %cst_14 = arith.constant dense<0xFF800000> : vector<8x128xf32>
    %14 = vector.multi_reduction <maximumf>, %13, %cst_14 [1] : vector<8x1x128xf32> to vector<8x128xf32>
    %c2_15 = arith.constant 2 : index
    %c0_16 = arith.constant 0 : index
    %c0_17 = arith.constant 0 : index
    %15 = vector.load %arg4[%c2_15, %c0_16, %c0_17] : memref<30x8x128xf32, #tpu.memory_space<vmem>>, vector<1x8x128xf32>
    %16 = vector.shape_cast %15 : vector<1x8x128xf32> to vector<8x128xf32>
    %17 = vector.shape_cast %14 : vector<8x128xf32> to vector<1x8x128xf32>
    tpu.vector_store %arg4[%c2_15, %c0_16, %c0_17], %17 {strides = array<i32>} : memref<30x8x128xf32, #tpu.memory_space<vmem>>, vector<1x8x128xf32>,
    %c0_18 = arith.constant 0 : index
    %c3 = arith.constant 3 : index
    %c0_19 = arith.constant 0 : index
    %18 = vector.load %arg2[%c0_18, %c3, %c0_19] : memref<8x20x128xf32, #tpu.memory_space<vmem>>, vector<8x1x128xf32>
    %cst_20 = arith.constant dense<0xFF800000> : vector<8x128xf32>
    %19 = vector.multi_reduction <maximumf>, %18, %cst_20 [1] : vector<8x1x128xf32> to vector<8x128xf32>
    %c3_21 = arith.constant 3 : index
    %c0_22 = arith.constant 0 : index
    %c0_23 = arith.constant 0 : index
    %20 = vector.load %arg4[%c3_21, %c0_22, %c0_23] : memref<30x8x128xf32, #tpu.memory_space<vmem>>, vector<1x8x128xf32>
    %21 = vector.shape_cast %20 : vector<1x8x128xf32> to vector<8x128xf32>
    %22 = vector.shape_cast %19 : vector<8x128xf32> to vector<1x8x128xf32>
    tpu.vector_store %arg4[%c3_21, %c0_22, %c0_23], %22 {strides = array<i32>} : memref<30x8x128xf32, #tpu.memory_space<vmem>>, vector<1x8x128xf32>,
    %c0_24 = arith.constant 0 : index
    %c4 = arith.constant 4 : index
    %c0_25 = arith.constant 0 : index
    %23 = vector.load %arg2[%c0_24, %c4, %c0_25] : memref<8x20x128xf32, #tpu.memory_space<vmem>>, vector<8x1x128xf32>
    %cst_26 = arith.constant dense<0xFF800000> : vector<8x128xf32>
    %24 = vector.multi_reduction <maximumf>, %23, %cst_26 [1] : vector<8x1x128xf32> to vector<8x128xf32>
    %c4_27 = arith.constant 4 : index
    %c0_28 = arith.constant 0 : index
    %c0_29 = arith.constant 0 : index
    %25 = vector.load %arg4[%c4_27, %c0_28, %c0_29] : memref<30x8x128xf32, #tpu.memory_space<vmem>>, vector<1x8x128xf32>
    %26 = vector.shape_cast %25 : vector<1x8x128xf32> to vector<8x128xf32>
    %27 = vector.shape_cast %24 : vector<8x128xf32> to vector<1x8x128xf32>
    tpu.vector_store %arg4[%c4_27, %c0_28, %c0_29], %27 {strides = array<i32>} : memref<30x8x128xf32, #tpu.memory_space<vmem>>, vector<1x8x128xf32>,
    %c0_30 = arith.constant 0 : index
    %c5 = arith.constant 5 : index
    %c0_31 = arith.constant 0 : index
    %28 = vector.load %arg2[%c0_30, %c5, %c0_31] : memref<8x20x128xf32, #tpu.memory_space<vmem>>, vector<8x1x128xf32>
    %cst_32 = arith.constant dense<0xFF800000> : vector<8x128xf32>
    %29 = vector.multi_reduction <maximumf>, %28, %cst_32 [1] : vector<8x1x128xf32> to vector<8x128xf32>
    %c5_33 = arith.constant 5 : index
    %c0_34 = arith.constant 0 : index
    %c0_35 = arith.constant 0 : index
    %30 = vector.load %arg4[%c5_33, %c0_34, %c0_35] : memref<30x8x128xf32, #tpu.memory_space<vmem>>, vector<1x8x128xf32>
    %31 = vector.shape_cast %30 : vector<1x8x128xf32> to vector<8x128xf32>
    %32 = vector.shape_cast %29 : vector<8x128xf32> to vector<1x8x128xf32>
    tpu.vector_store %arg4[%c5_33, %c0_34, %c0_35], %32 {strides = array<i32>} : memref<30x8x128xf32, #tpu.memory_space<vmem>>, vector<1x8x128xf32>,
    %c0_36 = arith.constant 0 : index
    %c6 = arith.constant 6 : index
    %c0_37 = arith.constant 0 : index
    %33 = vector.load %arg2[%c0_36, %c6, %c0_37] : memref<8x20x128xf32, #tpu.memory_space<vmem>>, vector<8x1x128xf32>
    %cst_38 = arith.constant dense<0xFF800000> : vector<8x128xf32>
    %34 = vector.multi_reduction <maximumf>, %33, %cst_38 [1] : vector<8x1x128xf32> to vector<8x128xf32>
    %c6_39 = arith.constant 6 : index
    %c0_40 = arith.constant 0 : index
    %c0_41 = arith.constant 0 : index
    %35 = vector.load %arg4[%c6_39, %c0_40, %c0_41] : memref<30x8x128xf32, #tpu.memory_space<vmem>>, vector<1x8x128xf32>
    %36 = vector.shape_cast %35 : vector<1x8x128xf32> to vector<8x128xf32>
    %37 = vector.shape_cast %34 : vector<8x128xf32> to vector<1x8x128xf32>
    tpu.vector_store %arg4[%c6_39, %c0_40, %c0_41], %37 {strides = array<i32>} : memref<30x8x128xf32, #tpu.memory_space<vmem>>, vector<1x8x128xf32>,
    %c0_42 = arith.constant 0 : index
    %c7 = arith.constant 7 : index
    %c0_43 = arith.constant 0 : index
    %38 = vector.load %arg2[%c0_42, %c7, %c0_43] : memref<8x20x128xf32, #tpu.memory_space<vmem>>, vector<8x1x128xf32>
    %cst_44 = arith.constant dense<0xFF800000> : vector<8x128xf32>
    %39 = vector.multi_reduction <maximumf>, %38, %cst_44 [1] : vector<8x1x128xf32> to vector<8x128xf32>
    %c7_45 = arith.constant 7 : index
    %c0_46 = arith.constant 0 : index
    %c0_47 = arith.constant 0 : index
    %40 = vector.load %arg4[%c7_45, %c0_46, %c0_47] : memref<30x8x128xf32, #tpu.memory_space<vmem>>, vector<1x8x128xf32>
    %41 = vector.shape_cast %40 : vector<1x8x128xf32> to vector<8x128xf32>
    %42 = vector.shape_cast %39 : vector<8x128xf32> to vector<1x8x128xf32>
    tpu.vector_store %arg4[%c7_45, %c0_46, %c0_47], %42 {strides = array<i32>} : memref<30x8x128xf32, #tpu.memory_space<vmem>>, vector<1x8x128xf32>,
    %c0_48 = arith.constant 0 : index
    %c8 = arith.constant 8 : index
    %c0_49 = arith.constant 0 : index
    %43 = vector.load %arg2[%c0_48, %c8, %c0_49] : memref<8x20x128xf32, #tpu.memory_space<vmem>>, vector<8x1x128xf32>
    %cst_50 = arith.constant dense<0xFF800000> : vector<8x128xf32>
    %44 = vector.multi_reduction <maximumf>, %43, %cst_50 [1] : vector<8x1x128xf32> to vector<8x128xf32>
    %c8_51 = arith.constant 8 : index
    %c0_52 = arith.constant 0 : index
    %c0_53 = arith.constant 0 : index
    %45 = vector.load %arg4[%c8_51, %c0_52, %c0_53] : memref<30x8x128xf32, #tpu.memory_space<vmem>>, vector<1x8x128xf32>
    %46 = vector.shape_cast %45 : vector<1x8x128xf32> to vector<8x128xf32>
    %47 = vector.shape_cast %44 : vector<8x128xf32> to vector<1x8x128xf32>
    tpu.vector_store %arg4[%c8_51, %c0_52, %c0_53], %47 {strides = array<i32>} : memref<30x8x128xf32, #tpu.memory_space<vmem>>, vector<1x8x128xf32>,
    %c0_54 = arith.constant 0 : index
    %c9 = arith.constant 9 : index
    %c0_55 = arith.constant 0 : index
    %48 = vector.load %arg2[%c0_54, %c9, %c0_55] : memref<8x20x128xf32, #tpu.memory_space<vmem>>, vector<8x1x128xf32>
    %cst_56 = arith.constant dense<0xFF800000> : vector<8x128xf32>
    %49 = vector.multi_reduction <maximumf>, %48, %cst_56 [1] : vector<8x1x128xf32> to vector<8x128xf32>
    %c9_57 = arith.constant 9 : index
    %c0_58 = arith.constant 0 : index
    %c0_59 = arith.constant 0 : index
    %50 = vector.load %arg4[%c9_57, %c0_58, %c0_59] : memref<30x8x128xf32, #tpu.memory_space<vmem>>, vector<1x8x128xf32>
    %51 = vector.shape_cast %50 : vector<1x8x128xf32> to vector<8x128xf32>
    %52 = vector.shape_cast %49 : vector<8x128xf32> to vector<1x8x128xf32>
    tpu.vector_store %arg4[%c9_57, %c0_58, %c0_59], %52 {strides = array<i32>} : memref<30x8x128xf32, #tpu.memory_space<vmem>>, vector<1x8x128xf32>,
    %c0_60 = arith.constant 0 : index
    %c10 = arith.constant 10 : index
    %c0_61 = arith.constant 0 : index
    %53 = vector.load %arg2[%c0_60, %c10, %c0_61] : memref<8x20x128xf32, #tpu.memory_space<vmem>>, vector<8x1x128xf32>
    %cst_62 = arith.constant dense<0xFF800000> : vector<8x128xf32>
    %54 = vector.multi_reduction <maximumf>, %53, %cst_62 [1] : vector<8x1x128xf32> to vector<8x128xf32>
    %c10_63 = arith.constant 10 : index
    %c0_64 = arith.constant 0 : index
    %c0_65 = arith.constant 0 : index
    %55 = vector.load %arg4[%c10_63, %c0_64, %c0_65] : memref<30x8x128xf32, #tpu.memory_space<vmem>>, vector<1x8x128xf32>
    %56 = vector.shape_cast %55 : vector<1x8x128xf32> to vector<8x128xf32>
    %57 = vector.shape_cast %54 : vector<8x128xf32> to vector<1x8x128xf32>
    tpu.vector_store %arg4[%c10_63, %c0_64, %c0_65], %57 {strides = array<i32>} : memref<30x8x128xf32, #tpu.memory_space<vmem>>, vector<1x8x128xf32>,
    %c0_66 = arith.constant 0 : index
    %c11 = arith.constant 11 : index
    %c0_67 = arith.constant 0 : index
    %58 = vector.load %arg2[%c0_66, %c11, %c0_67] : memref<8x20x128xf32, #tpu.memory_space<vmem>>, vector<8x1x128xf32>
    %cst_68 = arith.constant dense<0xFF800000> : vector<8x128xf32>
    %59 = vector.multi_reduction <maximumf>, %58, %cst_68 [1] : vector<8x1x128xf32> to vector<8x128xf32>
    %c11_69 = arith.constant 11 : index
    %c0_70 = arith.constant 0 : index
    %c0_71 = arith.constant 0 : index
    %60 = vector.load %arg4[%c11_69, %c0_70, %c0_71] : memref<30x8x128xf32, #tpu.memory_space<vmem>>, vector<1x8x128xf32>
    %61 = vector.shape_cast %60 : vector<1x8x128xf32> to vector<8x128xf32>
    %62 = vector.shape_cast %59 : vector<8x128xf32> to vector<1x8x128xf32>
    tpu.vector_store %arg4[%c11_69, %c0_70, %c0_71], %62 {strides = array<i32>} : memref<30x8x128xf32, #tpu.memory_space<vmem>>, vector<1x8x128xf32>,
    %c0_72 = arith.constant 0 : index
    %c12 = arith.constant 12 : index
    %c0_73 = arith.constant 0 : index
    %63 = vector.load %arg2[%c0_72, %c12, %c0_73] : memref<8x20x128xf32, #tpu.memory_space<vmem>>, vector<8x1x128xf32>
    %cst_74 = arith.constant dense<0xFF800000> : vector<8x128xf32>
    %64 = vector.multi_reduction <maximumf>, %63, %cst_74 [1] : vector<8x1x128xf32> to vector<8x128xf32>
    %c12_75 = arith.constant 12 : index
    %c0_76 = arith.constant 0 : index
    %c0_77 = arith.constant 0 : index
    %65 = vector.load %arg4[%c12_75, %c0_76, %c0_77] : memref<30x8x128xf32, #tpu.memory_space<vmem>>, vector<1x8x128xf32>
    %66 = vector.shape_cast %65 : vector<1x8x128xf32> to vector<8x128xf32>
    %67 = vector.shape_cast %64 : vector<8x128xf32> to vector<1x8x128xf32>
    tpu.vector_store %arg4[%c12_75, %c0_76, %c0_77], %67 {strides = array<i32>} : memref<30x8x128xf32, #tpu.memory_space<vmem>>, vector<1x8x128xf32>,
    %c0_78 = arith.constant 0 : index
    %c13 = arith.constant 13 : index
    %c0_79 = arith.constant 0 : index
    %68 = vector.load %arg2[%c0_78, %c13, %c0_79] : memref<8x20x128xf32, #tpu.memory_space<vmem>>, vector<8x1x128xf32>
    %cst_80 = arith.constant dense<0xFF800000> : vector<8x128xf32>
    %69 = vector.multi_reduction <maximumf>, %68, %cst_80 [1] : vector<8x1x128xf32> to vector<8x128xf32>
    %c13_81 = arith.constant 13 : index
    %c0_82 = arith.constant 0 : index
    %c0_83 = arith.constant 0 : index
    %70 = vector.load %arg4[%c13_81, %c0_82, %c0_83] : memref<30x8x128xf32, #tpu.memory_space<vmem>>, vector<1x8x128xf32>
    %71 = vector.shape_cast %70 : vector<1x8x128xf32> to vector<8x128xf32>
    %72 = vector.shape_cast %69 : vector<8x128xf32> to vector<1x8x128xf32>
    tpu.vector_store %arg4[%c13_81, %c0_82, %c0_83], %72 {strides = array<i32>} : memref<30x8x128xf32, #tpu.memory_space<vmem>>, vector<1x8x128xf32>,
    %c0_84 = arith.constant 0 : index
    %c14 = arith.constant 14 : index
    %c0_85 = arith.constant 0 : index
    %73 = vector.load %arg2[%c0_84, %c14, %c0_85] : memref<8x20x128xf32, #tpu.memory_space<vmem>>, vector<8x1x128xf32>
    %cst_86 = arith.constant dense<0xFF800000> : vector<8x128xf32>
    %74 = vector.multi_reduction <maximumf>, %73, %cst_86 [1] : vector<8x1x128xf32> to vector<8x128xf32>
    %c14_87 = arith.constant 14 : index
    %c0_88 = arith.constant 0 : index
    %c0_89 = arith.constant 0 : index
    %75 = vector.load %arg4[%c14_87, %c0_88, %c0_89] : memref<30x8x128xf32, #tpu.memory_space<vmem>>, vector<1x8x128xf32>
    %76 = vector.shape_cast %75 : vector<1x8x128xf32> to vector<8x128xf32>
    %77 = vector.shape_cast %74 : vector<8x128xf32> to vector<1x8x128xf32>
    tpu.vector_store %arg4[%c14_87, %c0_88, %c0_89], %77 {strides = array<i32>} : memref<30x8x128xf32, #tpu.memory_space<vmem>>, vector<1x8x128xf32>,
    %c0_90 = arith.constant 0 : index
    %c15 = arith.constant 15 : index
    %c0_91 = arith.constant 0 : index
    %78 = vector.load %arg2[%c0_90, %c15, %c0_91] : memref<8x20x128xf32, #tpu.memory_space<vmem>>, vector<8x1x128xf32>
    %cst_92 = arith.constant dense<0xFF800000> : vector<8x128xf32>
    %79 = vector.multi_reduction <maximumf>, %78, %cst_92 [1] : vector<8x1x128xf32> to vector<8x128xf32>
    %c15_93 = arith.constant 15 : index
    %c0_94 = arith.constant 0 : index
    %c0_95 = arith.constant 0 : index
    %80 = vector.load %arg4[%c15_93, %c0_94, %c0_95] : memref<30x8x128xf32, #tpu.memory_space<vmem>>, vector<1x8x128xf32>
    %81 = vector.shape_cast %80 : vector<1x8x128xf32> to vector<8x128xf32>
    %82 = vector.shape_cast %79 : vector<8x128xf32> to vector<1x8x128xf32>
    tpu.vector_store %arg4[%c15_93, %c0_94, %c0_95], %82 {strides = array<i32>} : memref<30x8x128xf32, #tpu.memory_space<vmem>>, vector<1x8x128xf32>,
    %c0_96 = arith.constant 0 : index
    %c16 = arith.constant 16 : index
    %c0_97 = arith.constant 0 : index
    %83 = vector.load %arg2[%c0_96, %c16, %c0_97] : memref<8x20x128xf32, #tpu.memory_space<vmem>>, vector<8x1x128xf32>
    %cst_98 = arith.constant dense<0xFF800000> : vector<8x128xf32>
    %84 = vector.multi_reduction <maximumf>, %83, %cst_98 [1] : vector<8x1x128xf32> to vector<8x128xf32>
    %c16_99 = arith.constant 16 : index
    %c0_100 = arith.constant 0 : index
    %c0_101 = arith.constant 0 : index
    %85 = vector.load %arg4[%c16_99, %c0_100, %c0_101] : memref<30x8x128xf32, #tpu.memory_space<vmem>>, vector<1x8x128xf32>
    %86 = vector.shape_cast %85 : vector<1x8x128xf32> to vector<8x128xf32>
    %87 = vector.shape_cast %84 : vector<8x128xf32> to vector<1x8x128xf32>
    tpu.vector_store %arg4[%c16_99, %c0_100, %c0_101], %87 {strides = array<i32>} : memref<30x8x128xf32, #tpu.memory_space<vmem>>, vector<1x8x128xf32>,
    %c0_102 = arith.constant 0 : index
    %c17 = arith.constant 17 : index
    %c0_103 = arith.constant 0 : index
    %88 = vector.load %arg2[%c0_102, %c17, %c0_103] : memref<8x20x128xf32, #tpu.memory_space<vmem>>, vector<8x1x128xf32>
    %cst_104 = arith.constant dense<0xFF800000> : vector<8x128xf32>
    %89 = vector.multi_reduction <maximumf>, %88, %cst_104 [1] : vector<8x1x128xf32> to vector<8x128xf32>
    %c17_105 = arith.constant 17 : index
    %c0_106 = arith.constant 0 : index
    %c0_107 = arith.constant 0 : index
    %90 = vector.load %arg4[%c17_105, %c0_106, %c0_107] : memref<30x8x128xf32, #tpu.memory_space<vmem>>, vector<1x8x128xf32>
    %91 = vector.shape_cast %90 : vector<1x8x128xf32> to vector<8x128xf32>
    %92 = vector.shape_cast %89 : vector<8x128xf32> to vector<1x8x128xf32>
    tpu.vector_store %arg4[%c17_105, %c0_106, %c0_107], %92 {strides = array<i32>} : memref<30x8x128xf32, #tpu.memory_space<vmem>>, vector<1x8x128xf32>,
    %c0_108 = arith.constant 0 : index
    %c18 = arith.constant 18 : index
    %c0_109 = arith.constant 0 : index
    %93 = vector.load %arg2[%c0_108, %c18, %c0_109] : memref<8x20x128xf32, #tpu.memory_space<vmem>>, vector<8x1x128xf32>
    %cst_110 = arith.constant dense<0xFF800000> : vector<8x128xf32>
    %94 = vector.multi_reduction <maximumf>, %93, %cst_110 [1] : vector<8x1x128xf32> to vector<8x128xf32>
    %c18_111 = arith.constant 18 : index
    %c0_112 = arith.constant 0 : index
    %c0_113 = arith.constant 0 : index
    %95 = vector.load %arg4[%c18_111, %c0_112, %c0_113] : memref<30x8x128xf32, #tpu.memory_space<vmem>>, vector<1x8x128xf32>
    %96 = vector.shape_cast %95 : vector<1x8x128xf32> to vector<8x128xf32>
    %97 = vector.shape_cast %94 : vector<8x128xf32> to vector<1x8x128xf32>
    tpu.vector_store %arg4[%c18_111, %c0_112, %c0_113], %97 {strides = array<i32>} : memref<30x8x128xf32, #tpu.memory_space<vmem>>, vector<1x8x128xf32>,
    %c0_114 = arith.constant 0 : index
    %c19 = arith.constant 19 : index
    %c0_115 = arith.constant 0 : index
    %98 = vector.load %arg2[%c0_114, %c19, %c0_115] : memref<8x20x128xf32, #tpu.memory_space<vmem>>, vector<8x1x128xf32>
    %cst_116 = arith.constant dense<0xFF800000> : vector<8x128xf32>
    %99 = vector.multi_reduction <maximumf>, %98, %cst_116 [1] : vector<8x1x128xf32> to vector<8x128xf32>
    %c19_117 = arith.constant 19 : index
    %c0_118 = arith.constant 0 : index
    %c0_119 = arith.constant 0 : index
    %100 = vector.load %arg4[%c19_117, %c0_118, %c0_119] : memref<30x8x128xf32, #tpu.memory_space<vmem>>, vector<1x8x128xf32>
    %101 = vector.shape_cast %100 : vector<1x8x128xf32> to vector<8x128xf32>
    %102 = vector.shape_cast %99 : vector<8x128xf32> to vector<1x8x128xf32>
    tpu.vector_store %arg4[%c19_117, %c0_118, %c0_119], %102 {strides = array<i32>} : memref<30x8x128xf32, #tpu.memory_space<vmem>>, vector<1x8x128xf32>,
    %c0_120 = arith.constant 0 : index
    %c0_121 = arith.constant 0 : index
    %c0_122 = arith.constant 0 : index
    %103 = vector.load %arg4[%c0_120, %c0_121, %c0_122] : memref<30x8x128xf32, #tpu.memory_space<vmem>>, vector<1x8x128xf32>
    %104 = vector.shape_cast %103 : vector<1x8x128xf32> to vector<8x128xf32>
    %c1_123 = arith.constant 1 : index
    %c0_124 = arith.constant 0 : index
    %c0_125 = arith.constant 0 : index
    %105 = vector.load %arg4[%c1_123, %c0_124, %c0_125] : memref<30x8x128xf32, #tpu.memory_space<vmem>>, vector<1x8x128xf32>
    %106 = vector.shape_cast %105 : vector<1x8x128xf32> to vector<8x128xf32>
    %107 = arith.maximumf %104, %106 : vector<8x128xf32>
    %c20 = arith.constant 20 : index
    %c0_126 = arith.constant 0 : index
    %c0_127 = arith.constant 0 : index
    %108 = vector.load %arg4[%c20, %c0_126, %c0_127] : memref<30x8x128xf32, #tpu.memory_space<vmem>>, vector<1x8x128xf32>
    %109 = vector.shape_cast %108 : vector<1x8x128xf32> to vector<8x128xf32>
    %110 = vector.shape_cast %107 : vector<8x128xf32> to vector<1x8x128xf32>
    tpu.vector_store %arg4[%c20, %c0_126, %c0_127], %110 {strides = array<i32>} : memref<30x8x128xf32, #tpu.memory_space<vmem>>, vector<1x8x128xf32>,
    %c2_128 = arith.constant 2 : index
    %c0_129 = arith.constant 0 : index
    %c0_130 = arith.constant 0 : index
    %111 = vector.load %arg4[%c2_128, %c0_129, %c0_130] : memref<30x8x128xf32, #tpu.memory_space<vmem>>, vector<1x8x128xf32>
    %112 = vector.shape_cast %111 : vector<1x8x128xf32> to vector<8x128xf32>
    %c3_131 = arith.constant 3 : index
    %c0_132 = arith.constant 0 : index
    %c0_133 = arith.constant 0 : index
    %113 = vector.load %arg4[%c3_131, %c0_132, %c0_133] : memref<30x8x128xf32, #tpu.memory_space<vmem>>, vector<1x8x128xf32>
    %114 = vector.shape_cast %113 : vector<1x8x128xf32> to vector<8x128xf32>
    %115 = arith.maximumf %112, %114 : vector<8x128xf32>
    %c21 = arith.constant 21 : index
    %c0_134 = arith.constant 0 : index
    %c0_135 = arith.constant 0 : index
    %116 = vector.load %arg4[%c21, %c0_134, %c0_135] : memref<30x8x128xf32, #tpu.memory_space<vmem>>, vector<1x8x128xf32>
    %117 = vector.shape_cast %116 : vector<1x8x128xf32> to vector<8x128xf32>
    %118 = vector.shape_cast %115 : vector<8x128xf32> to vector<1x8x128xf32>
    tpu.vector_store %arg4[%c21, %c0_134, %c0_135], %118 {strides = array<i32>} : memref<30x8x128xf32, #tpu.memory_space<vmem>>, vector<1x8x128xf32>,
    %c4_136 = arith.constant 4 : index
    %c0_137 = arith.constant 0 : index
    %c0_138 = arith.constant 0 : index
    %119 = vector.load %arg4[%c4_136, %c0_137, %c0_138] : memref<30x8x128xf32, #tpu.memory_space<vmem>>, vector<1x8x128xf32>
    %120 = vector.shape_cast %119 : vector<1x8x128xf32> to vector<8x128xf32>
    %c5_139 = arith.constant 5 : index
    %c0_140 = arith.constant 0 : index
    %c0_141 = arith.constant 0 : index
    %121 = vector.load %arg4[%c5_139, %c0_140, %c0_141] : memref<30x8x128xf32, #tpu.memory_space<vmem>>, vector<1x8x128xf32>
    %122 = vector.shape_cast %121 : vector<1x8x128xf32> to vector<8x128xf32>
    %123 = arith.maximumf %120, %122 : vector<8x128xf32>
    %c22 = arith.constant 22 : index
    %c0_142 = arith.constant 0 : index
    %c0_143 = arith.constant 0 : index
    %124 = vector.load %arg4[%c22, %c0_142, %c0_143] : memref<30x8x128xf32, #tpu.memory_space<vmem>>, vector<1x8x128xf32>
    %125 = vector.shape_cast %124 : vector<1x8x128xf32> to vector<8x128xf32>
    %126 = vector.shape_cast %123 : vector<8x128xf32> to vector<1x8x128xf32>
    tpu.vector_store %arg4[%c22, %c0_142, %c0_143], %126 {strides = array<i32>} : memref<30x8x128xf32, #tpu.memory_space<vmem>>, vector<1x8x128xf32>,
    %c6_144 = arith.constant 6 : index
    %c0_145 = arith.constant 0 : index
    %c0_146 = arith.constant 0 : index
    %127 = vector.load %arg4[%c6_144, %c0_145, %c0_146] : memref<30x8x128xf32, #tpu.memory_space<vmem>>, vector<1x8x128xf32>
    %128 = vector.shape_cast %127 : vector<1x8x128xf32> to vector<8x128xf32>
    %c7_147 = arith.constant 7 : index
    %c0_148 = arith.constant 0 : index
    %c0_149 = arith.constant 0 : index
    %129 = vector.load %arg4[%c7_147, %c0_148, %c0_149] : memref<30x8x128xf32, #tpu.memory_space<vmem>>, vector<1x8x128xf32>
    %130 = vector.shape_cast %129 : vector<1x8x128xf32> to vector<8x128xf32>
    %131 = arith.maximumf %128, %130 : vector<8x128xf32>
    %c23 = arith.constant 23 : index
    %c0_150 = arith.constant 0 : index
    %c0_151 = arith.constant 0 : index
    %132 = vector.load %arg4[%c23, %c0_150, %c0_151] : memref<30x8x128xf32, #tpu.memory_space<vmem>>, vector<1x8x128xf32>
    %133 = vector.shape_cast %132 : vector<1x8x128xf32> to vector<8x128xf32>
    %134 = vector.shape_cast %131 : vector<8x128xf32> to vector<1x8x128xf32>
    tpu.vector_store %arg4[%c23, %c0_150, %c0_151], %134 {strides = array<i32>} : memref<30x8x128xf32, #tpu.memory_space<vmem>>, vector<1x8x128xf32>,
    %c8_152 = arith.constant 8 : index
    %c0_153 = arith.constant 0 : index
    %c0_154 = arith.constant 0 : index
    %135 = vector.load %arg4[%c8_152, %c0_153, %c0_154] : memref<30x8x128xf32, #tpu.memory_space<vmem>>, vector<1x8x128xf32>
    %136 = vector.shape_cast %135 : vector<1x8x128xf32> to vector<8x128xf32>
    %c9_155 = arith.constant 9 : index
    %c0_156 = arith.constant 0 : index
    %c0_157 = arith.constant 0 : index
    %137 = vector.load %arg4[%c9_155, %c0_156, %c0_157] : memref<30x8x128xf32, #tpu.memory_space<vmem>>, vector<1x8x128xf32>
    %138 = vector.shape_cast %137 : vector<1x8x128xf32> to vector<8x128xf32>
    %139 = arith.maximumf %136, %138 : vector<8x128xf32>
    %c24 = arith.constant 24 : index
    %c0_158 = arith.constant 0 : index
    %c0_159 = arith.constant 0 : index
    %140 = vector.load %arg4[%c24, %c0_158, %c0_159] : memref<30x8x128xf32, #tpu.memory_space<vmem>>, vector<1x8x128xf32>
    %141 = vector.shape_cast %140 : vector<1x8x128xf32> to vector<8x128xf32>
    %142 = vector.shape_cast %139 : vector<8x128xf32> to vector<1x8x128xf32>
    tpu.vector_store %arg4[%c24, %c0_158, %c0_159], %142 {strides = array<i32>} : memref<30x8x128xf32, #tpu.memory_space<vmem>>, vector<1x8x128xf32>,
    %c10_160 = arith.constant 10 : index
    %c0_161 = arith.constant 0 : index
    %c0_162 = arith.constant 0 : index
    %143 = vector.load %arg4[%c10_160, %c0_161, %c0_162] : memref<30x8x128xf32, #tpu.memory_space<vmem>>, vector<1x8x128xf32>
    %144 = vector.shape_cast %143 : vector<1x8x128xf32> to vector<8x128xf32>
    %c11_163 = arith.constant 11 : index
    %c0_164 = arith.constant 0 : index
    %c0_165 = arith.constant 0 : index
    %145 = vector.load %arg4[%c11_163, %c0_164, %c0_165] : memref<30x8x128xf32, #tpu.memory_space<vmem>>, vector<1x8x128xf32>
    %146 = vector.shape_cast %145 : vector<1x8x128xf32> to vector<8x128xf32>
    %147 = arith.maximumf %144, %146 : vector<8x128xf32>
    %c25 = arith.constant 25 : index
    %c0_166 = arith.constant 0 : index
    %c0_167 = arith.constant 0 : index
    %148 = vector.load %arg4[%c25, %c0_166, %c0_167] : memref<30x8x128xf32, #tpu.memory_space<vmem>>, vector<1x8x128xf32>
    %149 = vector.shape_cast %148 : vector<1x8x128xf32> to vector<8x128xf32>
    %150 = vector.shape_cast %147 : vector<8x128xf32> to vector<1x8x128xf32>
    tpu.vector_store %arg4[%c25, %c0_166, %c0_167], %150 {strides = array<i32>} : memref<30x8x128xf32, #tpu.memory_space<vmem>>, vector<1x8x128xf32>,
    %c12_168 = arith.constant 12 : index
    %c0_169 = arith.constant 0 : index
    %c0_170 = arith.constant 0 : index
    %151 = vector.load %arg4[%c12_168, %c0_169, %c0_170] : memref<30x8x128xf32, #tpu.memory_space<vmem>>, vector<1x8x128xf32>
    %152 = vector.shape_cast %151 : vector<1x8x128xf32> to vector<8x128xf32>
    %c13_171 = arith.constant 13 : index
    %c0_172 = arith.constant 0 : index
    %c0_173 = arith.constant 0 : index
    %153 = vector.load %arg4[%c13_171, %c0_172, %c0_173] : memref<30x8x128xf32, #tpu.memory_space<vmem>>, vector<1x8x128xf32>
    %154 = vector.shape_cast %153 : vector<1x8x128xf32> to vector<8x128xf32>
    %155 = arith.maximumf %152, %154 : vector<8x128xf32>
    %c26 = arith.constant 26 : index
    %c0_174 = arith.constant 0 : index
    %c0_175 = arith.constant 0 : index
    %156 = vector.load %arg4[%c26, %c0_174, %c0_175] : memref<30x8x128xf32, #tpu.memory_space<vmem>>, vector<1x8x128xf32>
    %157 = vector.shape_cast %156 : vector<1x8x128xf32> to vector<8x128xf32>
    %158 = vector.shape_cast %155 : vector<8x128xf32> to vector<1x8x128xf32>
    tpu.vector_store %arg4[%c26, %c0_174, %c0_175], %158 {strides = array<i32>} : memref<30x8x128xf32, #tpu.memory_space<vmem>>, vector<1x8x128xf32>,
    %c14_176 = arith.constant 14 : index
    %c0_177 = arith.constant 0 : index
    %c0_178 = arith.constant 0 : index
    %159 = vector.load %arg4[%c14_176, %c0_177, %c0_178] : memref<30x8x128xf32, #tpu.memory_space<vmem>>, vector<1x8x128xf32>
    %160 = vector.shape_cast %159 : vector<1x8x128xf32> to vector<8x128xf32>
    %c15_179 = arith.constant 15 : index
    %c0_180 = arith.constant 0 : index
    %c0_181 = arith.constant 0 : index
    %161 = vector.load %arg4[%c15_179, %c0_180, %c0_181] : memref<30x8x128xf32, #tpu.memory_space<vmem>>, vector<1x8x128xf32>
    %162 = vector.shape_cast %161 : vector<1x8x128xf32> to vector<8x128xf32>
    %163 = arith.maximumf %160, %162 : vector<8x128xf32>
    %c27 = arith.constant 27 : index
    %c0_182 = arith.constant 0 : index
    %c0_183 = arith.constant 0 : index
    %164 = vector.load %arg4[%c27, %c0_182, %c0_183] : memref<30x8x128xf32, #tpu.memory_space<vmem>>, vector<1x8x128xf32>
    %165 = vector.shape_cast %164 : vector<1x8x128xf32> to vector<8x128xf32>
    %166 = vector.shape_cast %163 : vector<8x128xf32> to vector<1x8x128xf32>
    tpu.vector_store %arg4[%c27, %c0_182, %c0_183], %166 {strides = array<i32>} : memref<30x8x128xf32, #tpu.memory_space<vmem>>, vector<1x8x128xf32>,
    %c16_184 = arith.constant 16 : index
    %c0_185 = arith.constant 0 : index
    %c0_186 = arith.constant 0 : index
    %167 = vector.load %arg4[%c16_184, %c0_185, %c0_186] : memref<30x8x128xf32, #tpu.memory_space<vmem>>, vector<1x8x128xf32>
    %168 = vector.shape_cast %167 : vector<1x8x128xf32> to vector<8x128xf32>
    %c17_187 = arith.constant 17 : index
    %c0_188 = arith.constant 0 : index
    %c0_189 = arith.constant 0 : index
    %169 = vector.load %arg4[%c17_187, %c0_188, %c0_189] : memref<30x8x128xf32, #tpu.memory_space<vmem>>, vector<1x8x128xf32>
    %170 = vector.shape_cast %169 : vector<1x8x128xf32> to vector<8x128xf32>
    %171 = arith.maximumf %168, %170 : vector<8x128xf32>
    %c28 = arith.constant 28 : index
    %c0_190 = arith.constant 0 : index
    %c0_191 = arith.constant 0 : index
    %172 = vector.load %arg4[%c28, %c0_190, %c0_191] : memref<30x8x128xf32, #tpu.memory_space<vmem>>, vector<1x8x128xf32>
    %173 = vector.shape_cast %172 : vector<1x8x128xf32> to vector<8x128xf32>
    %174 = vector.shape_cast %171 : vector<8x128xf32> to vector<1x8x128xf32>
    tpu.vector_store %arg4[%c28, %c0_190, %c0_191], %174 {strides = array<i32>} : memref<30x8x128xf32, #tpu.memory_space<vmem>>, vector<1x8x128xf32>,
    %c18_192 = arith.constant 18 : index
    %c0_193 = arith.constant 0 : index
    %c0_194 = arith.constant 0 : index
    %175 = vector.load %arg4[%c18_192, %c0_193, %c0_194] : memref<30x8x128xf32, #tpu.memory_space<vmem>>, vector<1x8x128xf32>
    %176 = vector.shape_cast %175 : vector<1x8x128xf32> to vector<8x128xf32>
    %c19_195 = arith.constant 19 : index
    %c0_196 = arith.constant 0 : index
    %c0_197 = arith.constant 0 : index
    %177 = vector.load %arg4[%c19_195, %c0_196, %c0_197] : memref<30x8x128xf32, #tpu.memory_space<vmem>>, vector<1x8x128xf32>
    %178 = vector.shape_cast %177 : vector<1x8x128xf32> to vector<8x128xf32>
    %179 = arith.maximumf %176, %178 : vector<8x128xf32>
    %c29 = arith.constant 29 : index
    %c0_198 = arith.constant 0 : index
    %c0_199 = arith.constant 0 : index
    %180 = vector.load %arg4[%c29, %c0_198, %c0_199] : memref<30x8x128xf32, #tpu.memory_space<vmem>>, vector<1x8x128xf32>
    %181 = vector.shape_cast %180 : vector<1x8x128xf32> to vector<8x128xf32>
    %182 = vector.shape_cast %179 : vector<8x128xf32> to vector<1x8x128xf32>
    tpu.vector_store %arg4[%c29, %c0_198, %c0_199], %182 {strides = array<i32>} : memref<30x8x128xf32, #tpu.memory_space<vmem>>, vector<1x8x128xf32>,
    %c8_i32 = arith.constant 8 : i32
    %183 = arith.muli %arg1, %c8_i32 : i32
    %184 = tpu.iota {dimensions = array<i32: 0>} : vector<8x1xi32>
    %185 = vector.broadcast %183 : i32 to vector<8x1xi32>
    %186 = arith.addi %185, %184 : vector<8x1xi32>
    %c8_i32_200 = arith.constant 8 : i32
    %187 = arith.muli %arg1, %c8_i32_200 : i32
    %c2_i32 = arith.constant 2 : i32
    %188 = arith.cmpi slt, %187, %c2_i32 : i32
    %c8_i32_201 = arith.constant 8 : i32
    %189 = arith.addi %187, %c8_i32_201 : i32
    %c0_i32_202 = arith.constant 0 : i32
    %190 = arith.cmpi sgt, %189, %c0_i32_202 : i32
    %191 = arith.andi %188, %190 : i1
    %192 = arith.extui %191 : i1 to i32
    %c0_i32_203 = arith.constant 0 : i32
    %193 = arith.cmpi ne, %192, %c0_i32_203 : i32
    scf.if %193 {
      %c0_i32_280 = arith.constant 0 : i32
      %329 = vector.broadcast %c0_i32_280 : i32 to vector<8x1xi32>
      %330 = arith.cmpi sge, %186, %329 : vector<8x1xi32>
      %c2_i32_281 = arith.constant 2 : i32
      %331 = vector.broadcast %c2_i32_281 : i32 to vector<8x1xi32>
      %332 = arith.cmpi slt, %186, %331 : vector<8x1xi32>
      %333 = arith.andi %330, %332 : vector<8x1xi1>
      %c0_282 = arith.constant 0 : index
      %c0_283 = arith.constant 0 : index
      %c0_284 = arith.constant 0 : index
      %334 = vector.load %arg4[%c0_282, %c0_283, %c0_284] : memref<30x8x128xf32, #tpu.memory_space<vmem>>, vector<20x8x128xf32>
      %335 = vector.shape_cast %333 : vector<8x1xi1> to vector<1x8x1xi1>
      %cst_285 = arith.constant 0xFF800000 : f32
      %336 = vector.shape_cast %335 : vector<1x8x1xi1> to vector<1x8x1xi1>
      %337 = vector.broadcast %336 : vector<1x8x1xi1> to vector<20x8x128xi1>
      %338 = vector.broadcast %cst_285 : f32 to vector<20x8x128xf32>
      %339 = arith.select %337, %334, %338 : vector<20x8x128xi1>, vector<20x8x128xf32>
      %cst_286 = arith.constant dense<0xFF800000> : vector<20x128xf32>
      %340 = vector.multi_reduction <maximumf>, %339, %cst_286 [1] : vector<20x8x128xf32> to vector<20x128xf32>
      %c101 = arith.constant 101 : index
      %c0_287 = arith.constant 0 : index
      %341 = vector.load %arg5[%c101, %c0_287] : memref<401x128xf32, #tpu.memory_space<vmem>>, vector<20x128xf32>
      %342 = arith.maximumf %341, %340 : vector<20x128xf32>
      %c101_288 = arith.constant 101 : index
      %c0_289 = arith.constant 0 : index
      %343 = vector.load %arg5[%c101_288, %c0_289] : memref<401x128xf32, #tpu.memory_space<vmem>>, vector<20x128xf32>
      tpu.vector_store %arg5[%c101_288, %c0_289], %342 {strides = array<i32>} : memref<401x128xf32, #tpu.memory_space<vmem>>, vector<20x128xf32>,
    } else {
    }
    %c3_i32 = arith.constant 3 : i32
    %194 = arith.cmpi slt, %187, %c3_i32 : i32
    %c8_i32_204 = arith.constant 8 : i32
    %195 = arith.addi %187, %c8_i32_204 : i32
    %c1_i32 = arith.constant 1 : i32
    %196 = arith.cmpi sgt, %195, %c1_i32 : i32
    %197 = arith.andi %194, %196 : i1
    %198 = arith.extui %197 : i1 to i32
    %c0_i32_205 = arith.constant 0 : i32
    %199 = arith.cmpi ne, %198, %c0_i32_205 : i32
    scf.if %199 {
      %c1_i32_280 = arith.constant 1 : i32
      %329 = vector.broadcast %c1_i32_280 : i32 to vector<8x1xi32>
      %330 = arith.cmpi sge, %186, %329 : vector<8x1xi32>
      %c3_i32_281 = arith.constant 3 : i32
      %331 = vector.broadcast %c3_i32_281 : i32 to vector<8x1xi32>
      %332 = arith.cmpi slt, %186, %331 : vector<8x1xi32>
      %333 = arith.andi %330, %332 : vector<8x1xi1>
      %c0_282 = arith.constant 0 : index
      %c0_283 = arith.constant 0 : index
      %c0_284 = arith.constant 0 : index
      %334 = vector.load %arg4[%c0_282, %c0_283, %c0_284] : memref<30x8x128xf32, #tpu.memory_space<vmem>>, vector<20x8x128xf32>
      %335 = vector.shape_cast %333 : vector<8x1xi1> to vector<1x8x1xi1>
      %cst_285 = arith.constant 0xFF800000 : f32
      %336 = vector.shape_cast %335 : vector<1x8x1xi1> to vector<1x8x1xi1>
      %337 = vector.broadcast %336 : vector<1x8x1xi1> to vector<20x8x128xi1>
      %338 = vector.broadcast %cst_285 : f32 to vector<20x8x128xf32>
      %339 = arith.select %337, %334, %338 : vector<20x8x128xi1>, vector<20x8x128xf32>
      %cst_286 = arith.constant dense<0xFF800000> : vector<20x128xf32>
      %340 = vector.multi_reduction <maximumf>, %339, %cst_286 [1] : vector<20x8x128xf32> to vector<20x128xf32>
      %c121 = arith.constant 121 : index
      %c0_287 = arith.constant 0 : index
      %341 = vector.load %arg5[%c121, %c0_287] : memref<401x128xf32, #tpu.memory_space<vmem>>, vector<20x128xf32>
      %342 = arith.maximumf %341, %340 : vector<20x128xf32>
      %c121_288 = arith.constant 121 : index
      %c0_289 = arith.constant 0 : index
      %343 = vector.load %arg5[%c121_288, %c0_289] : memref<401x128xf32, #tpu.memory_space<vmem>>, vector<20x128xf32>
      tpu.vector_store %arg5[%c121_288, %c0_289], %342 {strides = array<i32>} : memref<401x128xf32, #tpu.memory_space<vmem>>, vector<20x128xf32>,
    } else {
    }
    %c4_i32 = arith.constant 4 : i32
    %200 = arith.cmpi slt, %187, %c4_i32 : i32
    %c8_i32_206 = arith.constant 8 : i32
    %201 = arith.addi %187, %c8_i32_206 : i32
    %c2_i32_207 = arith.constant 2 : i32
    %202 = arith.cmpi sgt, %201, %c2_i32_207 : i32
    %203 = arith.andi %200, %202 : i1
    %204 = arith.extui %203 : i1 to i32
    %c0_i32_208 = arith.constant 0 : i32
    %205 = arith.cmpi ne, %204, %c0_i32_208 : i32
    scf.if %205 {
      %c2_i32_280 = arith.constant 2 : i32
      %329 = vector.broadcast %c2_i32_280 : i32 to vector<8x1xi32>
      %330 = arith.cmpi sge, %186, %329 : vector<8x1xi32>
      %c4_i32_281 = arith.constant 4 : i32
      %331 = vector.broadcast %c4_i32_281 : i32 to vector<8x1xi32>
      %332 = arith.cmpi slt, %186, %331 : vector<8x1xi32>
      %333 = arith.andi %330, %332 : vector<8x1xi1>
      %c0_282 = arith.constant 0 : index
      %c0_283 = arith.constant 0 : index
      %c0_284 = arith.constant 0 : index
      %334 = vector.load %arg4[%c0_282, %c0_283, %c0_284] : memref<30x8x128xf32, #tpu.memory_space<vmem>>, vector<20x8x128xf32>
      %335 = vector.shape_cast %333 : vector<8x1xi1> to vector<1x8x1xi1>
      %cst_285 = arith.constant 0xFF800000 : f32
      %336 = vector.shape_cast %335 : vector<1x8x1xi1> to vector<1x8x1xi1>
      %337 = vector.broadcast %336 : vector<1x8x1xi1> to vector<20x8x128xi1>
      %338 = vector.broadcast %cst_285 : f32 to vector<20x8x128xf32>
      %339 = arith.select %337, %334, %338 : vector<20x8x128xi1>, vector<20x8x128xf32>
      %cst_286 = arith.constant dense<0xFF800000> : vector<20x128xf32>
      %340 = vector.multi_reduction <maximumf>, %339, %cst_286 [1] : vector<20x8x128xf32> to vector<20x128xf32>
      %c141 = arith.constant 141 : index
      %c0_287 = arith.constant 0 : index
      %341 = vector.load %arg5[%c141, %c0_287] : memref<401x128xf32, #tpu.memory_space<vmem>>, vector<20x128xf32>
      %342 = arith.maximumf %341, %340 : vector<20x128xf32>
      %c141_288 = arith.constant 141 : index
      %c0_289 = arith.constant 0 : index
      %343 = vector.load %arg5[%c141_288, %c0_289] : memref<401x128xf32, #tpu.memory_space<vmem>>, vector<20x128xf32>
      tpu.vector_store %arg5[%c141_288, %c0_289], %342 {strides = array<i32>} : memref<401x128xf32, #tpu.memory_space<vmem>>, vector<20x128xf32>,
    } else {
    }
    %c5_i32 = arith.constant 5 : i32
    %206 = arith.cmpi slt, %187, %c5_i32 : i32
    %c8_i32_209 = arith.constant 8 : i32
    %207 = arith.addi %187, %c8_i32_209 : i32
    %c3_i32_210 = arith.constant 3 : i32
    %208 = arith.cmpi sgt, %207, %c3_i32_210 : i32
    %209 = arith.andi %206, %208 : i1
    %210 = arith.extui %209 : i1 to i32
    %c0_i32_211 = arith.constant 0 : i32
    %211 = arith.cmpi ne, %210, %c0_i32_211 : i32
    scf.if %211 {
      %c3_i32_280 = arith.constant 3 : i32
      %329 = vector.broadcast %c3_i32_280 : i32 to vector<8x1xi32>
      %330 = arith.cmpi sge, %186, %329 : vector<8x1xi32>
      %c5_i32_281 = arith.constant 5 : i32
      %331 = vector.broadcast %c5_i32_281 : i32 to vector<8x1xi32>
      %332 = arith.cmpi slt, %186, %331 : vector<8x1xi32>
      %333 = arith.andi %330, %332 : vector<8x1xi1>
      %c0_282 = arith.constant 0 : index
      %c0_283 = arith.constant 0 : index
      %c0_284 = arith.constant 0 : index
      %334 = vector.load %arg4[%c0_282, %c0_283, %c0_284] : memref<30x8x128xf32, #tpu.memory_space<vmem>>, vector<20x8x128xf32>
      %335 = vector.shape_cast %333 : vector<8x1xi1> to vector<1x8x1xi1>
      %cst_285 = arith.constant 0xFF800000 : f32
      %336 = vector.shape_cast %335 : vector<1x8x1xi1> to vector<1x8x1xi1>
      %337 = vector.broadcast %336 : vector<1x8x1xi1> to vector<20x8x128xi1>
      %338 = vector.broadcast %cst_285 : f32 to vector<20x8x128xf32>
      %339 = arith.select %337, %334, %338 : vector<20x8x128xi1>, vector<20x8x128xf32>
      %cst_286 = arith.constant dense<0xFF800000> : vector<20x128xf32>
      %340 = vector.multi_reduction <maximumf>, %339, %cst_286 [1] : vector<20x8x128xf32> to vector<20x128xf32>
      %c161 = arith.constant 161 : index
      %c0_287 = arith.constant 0 : index
      %341 = vector.load %arg5[%c161, %c0_287] : memref<401x128xf32, #tpu.memory_space<vmem>>, vector<20x128xf32>
      %342 = arith.maximumf %341, %340 : vector<20x128xf32>
      %c161_288 = arith.constant 161 : index
      %c0_289 = arith.constant 0 : index
      %343 = vector.load %arg5[%c161_288, %c0_289] : memref<401x128xf32, #tpu.memory_space<vmem>>, vector<20x128xf32>
      tpu.vector_store %arg5[%c161_288, %c0_289], %342 {strides = array<i32>} : memref<401x128xf32, #tpu.memory_space<vmem>>, vector<20x128xf32>,
    } else {
    }
    %c6_i32 = arith.constant 6 : i32
    %212 = arith.cmpi slt, %187, %c6_i32 : i32
    %c8_i32_212 = arith.constant 8 : i32
    %213 = arith.addi %187, %c8_i32_212 : i32
    %c4_i32_213 = arith.constant 4 : i32
    %214 = arith.cmpi sgt, %213, %c4_i32_213 : i32
    %215 = arith.andi %212, %214 : i1
    %216 = arith.extui %215 : i1 to i32
    %c0_i32_214 = arith.constant 0 : i32
    %217 = arith.cmpi ne, %216, %c0_i32_214 : i32
    scf.if %217 {
      %c4_i32_280 = arith.constant 4 : i32
      %329 = vector.broadcast %c4_i32_280 : i32 to vector<8x1xi32>
      %330 = arith.cmpi sge, %186, %329 : vector<8x1xi32>
      %c6_i32_281 = arith.constant 6 : i32
      %331 = vector.broadcast %c6_i32_281 : i32 to vector<8x1xi32>
      %332 = arith.cmpi slt, %186, %331 : vector<8x1xi32>
      %333 = arith.andi %330, %332 : vector<8x1xi1>
      %c0_282 = arith.constant 0 : index
      %c0_283 = arith.constant 0 : index
      %c0_284 = arith.constant 0 : index
      %334 = vector.load %arg4[%c0_282, %c0_283, %c0_284] : memref<30x8x128xf32, #tpu.memory_space<vmem>>, vector<20x8x128xf32>
      %335 = vector.shape_cast %333 : vector<8x1xi1> to vector<1x8x1xi1>
      %cst_285 = arith.constant 0xFF800000 : f32
      %336 = vector.shape_cast %335 : vector<1x8x1xi1> to vector<1x8x1xi1>
      %337 = vector.broadcast %336 : vector<1x8x1xi1> to vector<20x8x128xi1>
      %338 = vector.broadcast %cst_285 : f32 to vector<20x8x128xf32>
      %339 = arith.select %337, %334, %338 : vector<20x8x128xi1>, vector<20x8x128xf32>
      %cst_286 = arith.constant dense<0xFF800000> : vector<20x128xf32>
      %340 = vector.multi_reduction <maximumf>, %339, %cst_286 [1] : vector<20x8x128xf32> to vector<20x128xf32>
      %c181 = arith.constant 181 : index
      %c0_287 = arith.constant 0 : index
      %341 = vector.load %arg5[%c181, %c0_287] : memref<401x128xf32, #tpu.memory_space<vmem>>, vector<20x128xf32>
      %342 = arith.maximumf %341, %340 : vector<20x128xf32>
      %c181_288 = arith.constant 181 : index
      %c0_289 = arith.constant 0 : index
      %343 = vector.load %arg5[%c181_288, %c0_289] : memref<401x128xf32, #tpu.memory_space<vmem>>, vector<20x128xf32>
      tpu.vector_store %arg5[%c181_288, %c0_289], %342 {strides = array<i32>} : memref<401x128xf32, #tpu.memory_space<vmem>>, vector<20x128xf32>,
    } else {
    }
    %c7_i32 = arith.constant 7 : i32
    %218 = arith.cmpi slt, %187, %c7_i32 : i32
    %c8_i32_215 = arith.constant 8 : i32
    %219 = arith.addi %187, %c8_i32_215 : i32
    %c5_i32_216 = arith.constant 5 : i32
    %220 = arith.cmpi sgt, %219, %c5_i32_216 : i32
    %221 = arith.andi %218, %220 : i1
    %222 = arith.extui %221 : i1 to i32
    %c0_i32_217 = arith.constant 0 : i32
    %223 = arith.cmpi ne, %222, %c0_i32_217 : i32
    scf.if %223 {
      %c5_i32_280 = arith.constant 5 : i32
      %329 = vector.broadcast %c5_i32_280 : i32 to vector<8x1xi32>
      %330 = arith.cmpi sge, %186, %329 : vector<8x1xi32>
      %c7_i32_281 = arith.constant 7 : i32
      %331 = vector.broadcast %c7_i32_281 : i32 to vector<8x1xi32>
      %332 = arith.cmpi slt, %186, %331 : vector<8x1xi32>
      %333 = arith.andi %330, %332 : vector<8x1xi1>
      %c0_282 = arith.constant 0 : index
      %c0_283 = arith.constant 0 : index
      %c0_284 = arith.constant 0 : index
      %334 = vector.load %arg4[%c0_282, %c0_283, %c0_284] : memref<30x8x128xf32, #tpu.memory_space<vmem>>, vector<20x8x128xf32>
      %335 = vector.shape_cast %333 : vector<8x1xi1> to vector<1x8x1xi1>
      %cst_285 = arith.constant 0xFF800000 : f32
      %336 = vector.shape_cast %335 : vector<1x8x1xi1> to vector<1x8x1xi1>
      %337 = vector.broadcast %336 : vector<1x8x1xi1> to vector<20x8x128xi1>
      %338 = vector.broadcast %cst_285 : f32 to vector<20x8x128xf32>
      %339 = arith.select %337, %334, %338 : vector<20x8x128xi1>, vector<20x8x128xf32>
      %cst_286 = arith.constant dense<0xFF800000> : vector<20x128xf32>
      %340 = vector.multi_reduction <maximumf>, %339, %cst_286 [1] : vector<20x8x128xf32> to vector<20x128xf32>
      %c201 = arith.constant 201 : index
      %c0_287 = arith.constant 0 : index
      %341 = vector.load %arg5[%c201, %c0_287] : memref<401x128xf32, #tpu.memory_space<vmem>>, vector<20x128xf32>
      %342 = arith.maximumf %341, %340 : vector<20x128xf32>
      %c201_288 = arith.constant 201 : index
      %c0_289 = arith.constant 0 : index
      %343 = vector.load %arg5[%c201_288, %c0_289] : memref<401x128xf32, #tpu.memory_space<vmem>>, vector<20x128xf32>
      tpu.vector_store %arg5[%c201_288, %c0_289], %342 {strides = array<i32>} : memref<401x128xf32, #tpu.memory_space<vmem>>, vector<20x128xf32>,
    } else {
    }
    %c8_i32_218 = arith.constant 8 : i32
    %224 = arith.cmpi slt, %187, %c8_i32_218 : i32
    %c8_i32_219 = arith.constant 8 : i32
    %225 = arith.addi %187, %c8_i32_219 : i32
    %c6_i32_220 = arith.constant 6 : i32
    %226 = arith.cmpi sgt, %225, %c6_i32_220 : i32
    %227 = arith.andi %224, %226 : i1
    %228 = arith.extui %227 : i1 to i32
    %c0_i32_221 = arith.constant 0 : i32
    %229 = arith.cmpi ne, %228, %c0_i32_221 : i32
    scf.if %229 {
      %c6_i32_280 = arith.constant 6 : i32
      %329 = vector.broadcast %c6_i32_280 : i32 to vector<8x1xi32>
      %330 = arith.cmpi sge, %186, %329 : vector<8x1xi32>
      %c8_i32_281 = arith.constant 8 : i32
      %331 = vector.broadcast %c8_i32_281 : i32 to vector<8x1xi32>
      %332 = arith.cmpi slt, %186, %331 : vector<8x1xi32>
      %333 = arith.andi %330, %332 : vector<8x1xi1>
      %c0_282 = arith.constant 0 : index
      %c0_283 = arith.constant 0 : index
      %c0_284 = arith.constant 0 : index
      %334 = vector.load %arg4[%c0_282, %c0_283, %c0_284] : memref<30x8x128xf32, #tpu.memory_space<vmem>>, vector<20x8x128xf32>
      %335 = vector.shape_cast %333 : vector<8x1xi1> to vector<1x8x1xi1>
      %cst_285 = arith.constant 0xFF800000 : f32
      %336 = vector.shape_cast %335 : vector<1x8x1xi1> to vector<1x8x1xi1>
      %337 = vector.broadcast %336 : vector<1x8x1xi1> to vector<20x8x128xi1>
      %338 = vector.broadcast %cst_285 : f32 to vector<20x8x128xf32>
      %339 = arith.select %337, %334, %338 : vector<20x8x128xi1>, vector<20x8x128xf32>
      %cst_286 = arith.constant dense<0xFF800000> : vector<20x128xf32>
      %340 = vector.multi_reduction <maximumf>, %339, %cst_286 [1] : vector<20x8x128xf32> to vector<20x128xf32>
      %c221 = arith.constant 221 : index
      %c0_287 = arith.constant 0 : index
      %341 = vector.load %arg5[%c221, %c0_287] : memref<401x128xf32, #tpu.memory_space<vmem>>, vector<20x128xf32>
      %342 = arith.maximumf %341, %340 : vector<20x128xf32>
      %c221_288 = arith.constant 221 : index
      %c0_289 = arith.constant 0 : index
      %343 = vector.load %arg5[%c221_288, %c0_289] : memref<401x128xf32, #tpu.memory_space<vmem>>, vector<20x128xf32>
      tpu.vector_store %arg5[%c221_288, %c0_289], %342 {strides = array<i32>} : memref<401x128xf32, #tpu.memory_space<vmem>>, vector<20x128xf32>,
    } else {
    }
    %c9_i32 = arith.constant 9 : i32
    %230 = arith.cmpi slt, %187, %c9_i32 : i32
    %c8_i32_222 = arith.constant 8 : i32
    %231 = arith.addi %187, %c8_i32_222 : i32
    %c7_i32_223 = arith.constant 7 : i32
    %232 = arith.cmpi sgt, %231, %c7_i32_223 : i32
    %233 = arith.andi %230, %232 : i1
    %234 = arith.extui %233 : i1 to i32
    %c0_i32_224 = arith.constant 0 : i32
    %235 = arith.cmpi ne, %234, %c0_i32_224 : i32
    scf.if %235 {
      %c7_i32_280 = arith.constant 7 : i32
      %329 = vector.broadcast %c7_i32_280 : i32 to vector<8x1xi32>
      %330 = arith.cmpi sge, %186, %329 : vector<8x1xi32>
      %c9_i32_281 = arith.constant 9 : i32
      %331 = vector.broadcast %c9_i32_281 : i32 to vector<8x1xi32>
      %332 = arith.cmpi slt, %186, %331 : vector<8x1xi32>
      %333 = arith.andi %330, %332 : vector<8x1xi1>
      %c0_282 = arith.constant 0 : index
      %c0_283 = arith.constant 0 : index
      %c0_284 = arith.constant 0 : index
      %334 = vector.load %arg4[%c0_282, %c0_283, %c0_284] : memref<30x8x128xf32, #tpu.memory_space<vmem>>, vector<20x8x128xf32>
      %335 = vector.shape_cast %333 : vector<8x1xi1> to vector<1x8x1xi1>
      %cst_285 = arith.constant 0xFF800000 : f32
      %336 = vector.shape_cast %335 : vector<1x8x1xi1> to vector<1x8x1xi1>
      %337 = vector.broadcast %336 : vector<1x8x1xi1> to vector<20x8x128xi1>
      %338 = vector.broadcast %cst_285 : f32 to vector<20x8x128xf32>
      %339 = arith.select %337, %334, %338 : vector<20x8x128xi1>, vector<20x8x128xf32>
      %cst_286 = arith.constant dense<0xFF800000> : vector<20x128xf32>
      %340 = vector.multi_reduction <maximumf>, %339, %cst_286 [1] : vector<20x8x128xf32> to vector<20x128xf32>
      %c241 = arith.constant 241 : index
      %c0_287 = arith.constant 0 : index
      %341 = vector.load %arg5[%c241, %c0_287] : memref<401x128xf32, #tpu.memory_space<vmem>>, vector<20x128xf32>
      %342 = arith.maximumf %341, %340 : vector<20x128xf32>
      %c241_288 = arith.constant 241 : index
      %c0_289 = arith.constant 0 : index
      %343 = vector.load %arg5[%c241_288, %c0_289] : memref<401x128xf32, #tpu.memory_space<vmem>>, vector<20x128xf32>
      tpu.vector_store %arg5[%c241_288, %c0_289], %342 {strides = array<i32>} : memref<401x128xf32, #tpu.memory_space<vmem>>, vector<20x128xf32>,
    } else {
    }
    %c10_i32 = arith.constant 10 : i32
    %236 = arith.cmpi slt, %187, %c10_i32 : i32
    %c8_i32_225 = arith.constant 8 : i32
    %237 = arith.addi %187, %c8_i32_225 : i32
    %c8_i32_226 = arith.constant 8 : i32
    %238 = arith.cmpi sgt, %237, %c8_i32_226 : i32
    %239 = arith.andi %236, %238 : i1
    %240 = arith.extui %239 : i1 to i32
    %c0_i32_227 = arith.constant 0 : i32
    %241 = arith.cmpi ne, %240, %c0_i32_227 : i32
    scf.if %241 {
      %c8_i32_280 = arith.constant 8 : i32
      %329 = vector.broadcast %c8_i32_280 : i32 to vector<8x1xi32>
      %330 = arith.cmpi sge, %186, %329 : vector<8x1xi32>
      %c10_i32_281 = arith.constant 10 : i32
      %331 = vector.broadcast %c10_i32_281 : i32 to vector<8x1xi32>
      %332 = arith.cmpi slt, %186, %331 : vector<8x1xi32>
      %333 = arith.andi %330, %332 : vector<8x1xi1>
      %c0_282 = arith.constant 0 : index
      %c0_283 = arith.constant 0 : index
      %c0_284 = arith.constant 0 : index
      %334 = vector.load %arg4[%c0_282, %c0_283, %c0_284] : memref<30x8x128xf32, #tpu.memory_space<vmem>>, vector<20x8x128xf32>
      %335 = vector.shape_cast %333 : vector<8x1xi1> to vector<1x8x1xi1>
      %cst_285 = arith.constant 0xFF800000 : f32
      %336 = vector.shape_cast %335 : vector<1x8x1xi1> to vector<1x8x1xi1>
      %337 = vector.broadcast %336 : vector<1x8x1xi1> to vector<20x8x128xi1>
      %338 = vector.broadcast %cst_285 : f32 to vector<20x8x128xf32>
      %339 = arith.select %337, %334, %338 : vector<20x8x128xi1>, vector<20x8x128xf32>
      %cst_286 = arith.constant dense<0xFF800000> : vector<20x128xf32>
      %340 = vector.multi_reduction <maximumf>, %339, %cst_286 [1] : vector<20x8x128xf32> to vector<20x128xf32>
      %c261 = arith.constant 261 : index
      %c0_287 = arith.constant 0 : index
      %341 = vector.load %arg5[%c261, %c0_287] : memref<401x128xf32, #tpu.memory_space<vmem>>, vector<20x128xf32>
      %342 = arith.maximumf %341, %340 : vector<20x128xf32>
      %c261_288 = arith.constant 261 : index
      %c0_289 = arith.constant 0 : index
      %343 = vector.load %arg5[%c261_288, %c0_289] : memref<401x128xf32, #tpu.memory_space<vmem>>, vector<20x128xf32>
      tpu.vector_store %arg5[%c261_288, %c0_289], %342 {strides = array<i32>} : memref<401x128xf32, #tpu.memory_space<vmem>>, vector<20x128xf32>,
    } else {
    }
    %c11_i32 = arith.constant 11 : i32
    %242 = arith.cmpi slt, %187, %c11_i32 : i32
    %c8_i32_228 = arith.constant 8 : i32
    %243 = arith.addi %187, %c8_i32_228 : i32
    %c9_i32_229 = arith.constant 9 : i32
    %244 = arith.cmpi sgt, %243, %c9_i32_229 : i32
    %245 = arith.andi %242, %244 : i1
    %246 = arith.extui %245 : i1 to i32
    %c0_i32_230 = arith.constant 0 : i32
    %247 = arith.cmpi ne, %246, %c0_i32_230 : i32
    scf.if %247 {
      %c9_i32_280 = arith.constant 9 : i32
      %329 = vector.broadcast %c9_i32_280 : i32 to vector<8x1xi32>
      %330 = arith.cmpi sge, %186, %329 : vector<8x1xi32>
      %c11_i32_281 = arith.constant 11 : i32
      %331 = vector.broadcast %c11_i32_281 : i32 to vector<8x1xi32>
      %332 = arith.cmpi slt, %186, %331 : vector<8x1xi32>
      %333 = arith.andi %330, %332 : vector<8x1xi1>
      %c0_282 = arith.constant 0 : index
      %c0_283 = arith.constant 0 : index
      %c0_284 = arith.constant 0 : index
      %334 = vector.load %arg4[%c0_282, %c0_283, %c0_284] : memref<30x8x128xf32, #tpu.memory_space<vmem>>, vector<20x8x128xf32>
      %335 = vector.shape_cast %333 : vector<8x1xi1> to vector<1x8x1xi1>
      %cst_285 = arith.constant 0xFF800000 : f32
      %336 = vector.shape_cast %335 : vector<1x8x1xi1> to vector<1x8x1xi1>
      %337 = vector.broadcast %336 : vector<1x8x1xi1> to vector<20x8x128xi1>
      %338 = vector.broadcast %cst_285 : f32 to vector<20x8x128xf32>
      %339 = arith.select %337, %334, %338 : vector<20x8x128xi1>, vector<20x8x128xf32>
      %cst_286 = arith.constant dense<0xFF800000> : vector<20x128xf32>
      %340 = vector.multi_reduction <maximumf>, %339, %cst_286 [1] : vector<20x8x128xf32> to vector<20x128xf32>
      %c281 = arith.constant 281 : index
      %c0_287 = arith.constant 0 : index
      %341 = vector.load %arg5[%c281, %c0_287] : memref<401x128xf32, #tpu.memory_space<vmem>>, vector<20x128xf32>
      %342 = arith.maximumf %341, %340 : vector<20x128xf32>
      %c281_288 = arith.constant 281 : index
      %c0_289 = arith.constant 0 : index
      %343 = vector.load %arg5[%c281_288, %c0_289] : memref<401x128xf32, #tpu.memory_space<vmem>>, vector<20x128xf32>
      tpu.vector_store %arg5[%c281_288, %c0_289], %342 {strides = array<i32>} : memref<401x128xf32, #tpu.memory_space<vmem>>, vector<20x128xf32>,
    } else {
    }
    %c12_i32 = arith.constant 12 : i32
    %248 = arith.cmpi slt, %187, %c12_i32 : i32
    %c8_i32_231 = arith.constant 8 : i32
    %249 = arith.addi %187, %c8_i32_231 : i32
    %c10_i32_232 = arith.constant 10 : i32
    %250 = arith.cmpi sgt, %249, %c10_i32_232 : i32
    %251 = arith.andi %248, %250 : i1
    %252 = arith.extui %251 : i1 to i32
    %c0_i32_233 = arith.constant 0 : i32
    %253 = arith.cmpi ne, %252, %c0_i32_233 : i32
    scf.if %253 {
      %c10_i32_280 = arith.constant 10 : i32
      %329 = vector.broadcast %c10_i32_280 : i32 to vector<8x1xi32>
      %330 = arith.cmpi sge, %186, %329 : vector<8x1xi32>
      %c12_i32_281 = arith.constant 12 : i32
      %331 = vector.broadcast %c12_i32_281 : i32 to vector<8x1xi32>
      %332 = arith.cmpi slt, %186, %331 : vector<8x1xi32>
      %333 = arith.andi %330, %332 : vector<8x1xi1>
      %c0_282 = arith.constant 0 : index
      %c0_283 = arith.constant 0 : index
      %c0_284 = arith.constant 0 : index
      %334 = vector.load %arg4[%c0_282, %c0_283, %c0_284] : memref<30x8x128xf32, #tpu.memory_space<vmem>>, vector<20x8x128xf32>
      %335 = vector.shape_cast %333 : vector<8x1xi1> to vector<1x8x1xi1>
      %cst_285 = arith.constant 0xFF800000 : f32
      %336 = vector.shape_cast %335 : vector<1x8x1xi1> to vector<1x8x1xi1>
      %337 = vector.broadcast %336 : vector<1x8x1xi1> to vector<20x8x128xi1>
      %338 = vector.broadcast %cst_285 : f32 to vector<20x8x128xf32>
      %339 = arith.select %337, %334, %338 : vector<20x8x128xi1>, vector<20x8x128xf32>
      %cst_286 = arith.constant dense<0xFF800000> : vector<20x128xf32>
      %340 = vector.multi_reduction <maximumf>, %339, %cst_286 [1] : vector<20x8x128xf32> to vector<20x128xf32>
      %c301 = arith.constant 301 : index
      %c0_287 = arith.constant 0 : index
      %341 = vector.load %arg5[%c301, %c0_287] : memref<401x128xf32, #tpu.memory_space<vmem>>, vector<20x128xf32>
      %342 = arith.maximumf %341, %340 : vector<20x128xf32>
      %c301_288 = arith.constant 301 : index
      %c0_289 = arith.constant 0 : index
      %343 = vector.load %arg5[%c301_288, %c0_289] : memref<401x128xf32, #tpu.memory_space<vmem>>, vector<20x128xf32>
      tpu.vector_store %arg5[%c301_288, %c0_289], %342 {strides = array<i32>} : memref<401x128xf32, #tpu.memory_space<vmem>>, vector<20x128xf32>,
    } else {
    }
    %c13_i32 = arith.constant 13 : i32
    %254 = arith.cmpi slt, %187, %c13_i32 : i32
    %c8_i32_234 = arith.constant 8 : i32
    %255 = arith.addi %187, %c8_i32_234 : i32
    %c11_i32_235 = arith.constant 11 : i32
    %256 = arith.cmpi sgt, %255, %c11_i32_235 : i32
    %257 = arith.andi %254, %256 : i1
    %258 = arith.extui %257 : i1 to i32
    %c0_i32_236 = arith.constant 0 : i32
    %259 = arith.cmpi ne, %258, %c0_i32_236 : i32
    scf.if %259 {
      %c11_i32_280 = arith.constant 11 : i32
      %329 = vector.broadcast %c11_i32_280 : i32 to vector<8x1xi32>
      %330 = arith.cmpi sge, %186, %329 : vector<8x1xi32>
      %c13_i32_281 = arith.constant 13 : i32
      %331 = vector.broadcast %c13_i32_281 : i32 to vector<8x1xi32>
      %332 = arith.cmpi slt, %186, %331 : vector<8x1xi32>
      %333 = arith.andi %330, %332 : vector<8x1xi1>
      %c0_282 = arith.constant 0 : index
      %c0_283 = arith.constant 0 : index
      %c0_284 = arith.constant 0 : index
      %334 = vector.load %arg4[%c0_282, %c0_283, %c0_284] : memref<30x8x128xf32, #tpu.memory_space<vmem>>, vector<20x8x128xf32>
      %335 = vector.shape_cast %333 : vector<8x1xi1> to vector<1x8x1xi1>
      %cst_285 = arith.constant 0xFF800000 : f32
      %336 = vector.shape_cast %335 : vector<1x8x1xi1> to vector<1x8x1xi1>
      %337 = vector.broadcast %336 : vector<1x8x1xi1> to vector<20x8x128xi1>
      %338 = vector.broadcast %cst_285 : f32 to vector<20x8x128xf32>
      %339 = arith.select %337, %334, %338 : vector<20x8x128xi1>, vector<20x8x128xf32>
      %cst_286 = arith.constant dense<0xFF800000> : vector<20x128xf32>
      %340 = vector.multi_reduction <maximumf>, %339, %cst_286 [1] : vector<20x8x128xf32> to vector<20x128xf32>
      %c321 = arith.constant 321 : index
      %c0_287 = arith.constant 0 : index
      %341 = vector.load %arg5[%c321, %c0_287] : memref<401x128xf32, #tpu.memory_space<vmem>>, vector<20x128xf32>
      %342 = arith.maximumf %341, %340 : vector<20x128xf32>
      %c321_288 = arith.constant 321 : index
      %c0_289 = arith.constant 0 : index
      %343 = vector.load %arg5[%c321_288, %c0_289] : memref<401x128xf32, #tpu.memory_space<vmem>>, vector<20x128xf32>
      tpu.vector_store %arg5[%c321_288, %c0_289], %342 {strides = array<i32>} : memref<401x128xf32, #tpu.memory_space<vmem>>, vector<20x128xf32>,
    } else {
    }
    %c14_i32 = arith.constant 14 : i32
    %260 = arith.cmpi slt, %187, %c14_i32 : i32
    %c8_i32_237 = arith.constant 8 : i32
    %261 = arith.addi %187, %c8_i32_237 : i32
    %c12_i32_238 = arith.constant 12 : i32
    %262 = arith.cmpi sgt, %261, %c12_i32_238 : i32
    %263 = arith.andi %260, %262 : i1
    %264 = arith.extui %263 : i1 to i32
    %c0_i32_239 = arith.constant 0 : i32
    %265 = arith.cmpi ne, %264, %c0_i32_239 : i32
    scf.if %265 {
      %c12_i32_280 = arith.constant 12 : i32
      %329 = vector.broadcast %c12_i32_280 : i32 to vector<8x1xi32>
      %330 = arith.cmpi sge, %186, %329 : vector<8x1xi32>
      %c14_i32_281 = arith.constant 14 : i32
      %331 = vector.broadcast %c14_i32_281 : i32 to vector<8x1xi32>
      %332 = arith.cmpi slt, %186, %331 : vector<8x1xi32>
      %333 = arith.andi %330, %332 : vector<8x1xi1>
      %c0_282 = arith.constant 0 : index
      %c0_283 = arith.constant 0 : index
      %c0_284 = arith.constant 0 : index
      %334 = vector.load %arg4[%c0_282, %c0_283, %c0_284] : memref<30x8x128xf32, #tpu.memory_space<vmem>>, vector<20x8x128xf32>
      %335 = vector.shape_cast %333 : vector<8x1xi1> to vector<1x8x1xi1>
      %cst_285 = arith.constant 0xFF800000 : f32
      %336 = vector.shape_cast %335 : vector<1x8x1xi1> to vector<1x8x1xi1>
      %337 = vector.broadcast %336 : vector<1x8x1xi1> to vector<20x8x128xi1>
      %338 = vector.broadcast %cst_285 : f32 to vector<20x8x128xf32>
      %339 = arith.select %337, %334, %338 : vector<20x8x128xi1>, vector<20x8x128xf32>
      %cst_286 = arith.constant dense<0xFF800000> : vector<20x128xf32>
      %340 = vector.multi_reduction <maximumf>, %339, %cst_286 [1] : vector<20x8x128xf32> to vector<20x128xf32>
      %c341 = arith.constant 341 : index
      %c0_287 = arith.constant 0 : index
      %341 = vector.load %arg5[%c341, %c0_287] : memref<401x128xf32, #tpu.memory_space<vmem>>, vector<20x128xf32>
      %342 = arith.maximumf %341, %340 : vector<20x128xf32>
      %c341_288 = arith.constant 341 : index
      %c0_289 = arith.constant 0 : index
      %343 = vector.load %arg5[%c341_288, %c0_289] : memref<401x128xf32, #tpu.memory_space<vmem>>, vector<20x128xf32>
      tpu.vector_store %arg5[%c341_288, %c0_289], %342 {strides = array<i32>} : memref<401x128xf32, #tpu.memory_space<vmem>>, vector<20x128xf32>,
    } else {
    }
    %c15_i32 = arith.constant 15 : i32
    %266 = arith.cmpi slt, %187, %c15_i32 : i32
    %c8_i32_240 = arith.constant 8 : i32
    %267 = arith.addi %187, %c8_i32_240 : i32
    %c13_i32_241 = arith.constant 13 : i32
    %268 = arith.cmpi sgt, %267, %c13_i32_241 : i32
    %269 = arith.andi %266, %268 : i1
    %270 = arith.extui %269 : i1 to i32
    %c0_i32_242 = arith.constant 0 : i32
    %271 = arith.cmpi ne, %270, %c0_i32_242 : i32
    scf.if %271 {
      %c13_i32_280 = arith.constant 13 : i32
      %329 = vector.broadcast %c13_i32_280 : i32 to vector<8x1xi32>
      %330 = arith.cmpi sge, %186, %329 : vector<8x1xi32>
      %c15_i32_281 = arith.constant 15 : i32
      %331 = vector.broadcast %c15_i32_281 : i32 to vector<8x1xi32>
      %332 = arith.cmpi slt, %186, %331 : vector<8x1xi32>
      %333 = arith.andi %330, %332 : vector<8x1xi1>
      %c0_282 = arith.constant 0 : index
      %c0_283 = arith.constant 0 : index
      %c0_284 = arith.constant 0 : index
      %334 = vector.load %arg4[%c0_282, %c0_283, %c0_284] : memref<30x8x128xf32, #tpu.memory_space<vmem>>, vector<20x8x128xf32>
      %335 = vector.shape_cast %333 : vector<8x1xi1> to vector<1x8x1xi1>
      %cst_285 = arith.constant 0xFF800000 : f32
      %336 = vector.shape_cast %335 : vector<1x8x1xi1> to vector<1x8x1xi1>
      %337 = vector.broadcast %336 : vector<1x8x1xi1> to vector<20x8x128xi1>
      %338 = vector.broadcast %cst_285 : f32 to vector<20x8x128xf32>
      %339 = arith.select %337, %334, %338 : vector<20x8x128xi1>, vector<20x8x128xf32>
      %cst_286 = arith.constant dense<0xFF800000> : vector<20x128xf32>
      %340 = vector.multi_reduction <maximumf>, %339, %cst_286 [1] : vector<20x8x128xf32> to vector<20x128xf32>
      %c361 = arith.constant 361 : index
      %c0_287 = arith.constant 0 : index
      %341 = vector.load %arg5[%c361, %c0_287] : memref<401x128xf32, #tpu.memory_space<vmem>>, vector<20x128xf32>
      %342 = arith.maximumf %341, %340 : vector<20x128xf32>
      %c361_288 = arith.constant 361 : index
      %c0_289 = arith.constant 0 : index
      %343 = vector.load %arg5[%c361_288, %c0_289] : memref<401x128xf32, #tpu.memory_space<vmem>>, vector<20x128xf32>
      tpu.vector_store %arg5[%c361_288, %c0_289], %342 {strides = array<i32>} : memref<401x128xf32, #tpu.memory_space<vmem>>, vector<20x128xf32>,
    } else {
    }
    %c16_i32 = arith.constant 16 : i32
    %272 = arith.cmpi slt, %187, %c16_i32 : i32
    %c8_i32_243 = arith.constant 8 : i32
    %273 = arith.addi %187, %c8_i32_243 : i32
    %c14_i32_244 = arith.constant 14 : i32
    %274 = arith.cmpi sgt, %273, %c14_i32_244 : i32
    %275 = arith.andi %272, %274 : i1
    %276 = arith.extui %275 : i1 to i32
    %c0_i32_245 = arith.constant 0 : i32
    %277 = arith.cmpi ne, %276, %c0_i32_245 : i32
    scf.if %277 {
      %c14_i32_280 = arith.constant 14 : i32
      %329 = vector.broadcast %c14_i32_280 : i32 to vector<8x1xi32>
      %330 = arith.cmpi sge, %186, %329 : vector<8x1xi32>
      %c16_i32_281 = arith.constant 16 : i32
      %331 = vector.broadcast %c16_i32_281 : i32 to vector<8x1xi32>
      %332 = arith.cmpi slt, %186, %331 : vector<8x1xi32>
      %333 = arith.andi %330, %332 : vector<8x1xi1>
      %c0_282 = arith.constant 0 : index
      %c0_283 = arith.constant 0 : index
      %c0_284 = arith.constant 0 : index
      %334 = vector.load %arg4[%c0_282, %c0_283, %c0_284] : memref<30x8x128xf32, #tpu.memory_space<vmem>>, vector<20x8x128xf32>
      %335 = vector.shape_cast %333 : vector<8x1xi1> to vector<1x8x1xi1>
      %cst_285 = arith.constant 0xFF800000 : f32
      %336 = vector.shape_cast %335 : vector<1x8x1xi1> to vector<1x8x1xi1>
      %337 = vector.broadcast %336 : vector<1x8x1xi1> to vector<20x8x128xi1>
      %338 = vector.broadcast %cst_285 : f32 to vector<20x8x128xf32>
      %339 = arith.select %337, %334, %338 : vector<20x8x128xi1>, vector<20x8x128xf32>
      %cst_286 = arith.constant dense<0xFF800000> : vector<20x128xf32>
      %340 = vector.multi_reduction <maximumf>, %339, %cst_286 [1] : vector<20x8x128xf32> to vector<20x128xf32>
      %c381 = arith.constant 381 : index
      %c0_287 = arith.constant 0 : index
      %341 = vector.load %arg5[%c381, %c0_287] : memref<401x128xf32, #tpu.memory_space<vmem>>, vector<20x128xf32>
      %342 = arith.maximumf %341, %340 : vector<20x128xf32>
      %c381_288 = arith.constant 381 : index
      %c0_289 = arith.constant 0 : index
      %343 = vector.load %arg5[%c381_288, %c0_289] : memref<401x128xf32, #tpu.memory_space<vmem>>, vector<20x128xf32>
      tpu.vector_store %arg5[%c381_288, %c0_289], %342 {strides = array<i32>} : memref<401x128xf32, #tpu.memory_space<vmem>>, vector<20x128xf32>,
    } else {
    }
    %c2_i32_246 = arith.constant 2 : i32
    %278 = arith.cmpi slt, %187, %c2_i32_246 : i32
    %c8_i32_247 = arith.constant 8 : i32
    %279 = arith.addi %187, %c8_i32_247 : i32
    %c0_i32_248 = arith.constant 0 : i32
    %280 = arith.cmpi sgt, %279, %c0_i32_248 : i32
    %281 = arith.andi %278, %280 : i1
    %282 = arith.extui %281 : i1 to i32
    %c0_i32_249 = arith.constant 0 : i32
    %283 = arith.cmpi ne, %282, %c0_i32_249 : i32
    scf.if %283 {
      %c0_i32_280 = arith.constant 0 : i32
      %329 = vector.broadcast %c0_i32_280 : i32 to vector<8x1xi32>
      %330 = arith.cmpi sge, %186, %329 : vector<8x1xi32>
      %c2_i32_281 = arith.constant 2 : i32
      %331 = vector.broadcast %c2_i32_281 : i32 to vector<8x1xi32>
      %332 = arith.cmpi slt, %186, %331 : vector<8x1xi32>
      %333 = arith.andi %330, %332 : vector<8x1xi1>
      %c20_282 = arith.constant 20 : index
      %c0_283 = arith.constant 0 : index
      %c0_284 = arith.constant 0 : index
      %334 = vector.load %arg4[%c20_282, %c0_283, %c0_284] : memref<30x8x128xf32, #tpu.memory_space<vmem>>, vector<10x8x128xf32>
      %335 = vector.shape_cast %333 : vector<8x1xi1> to vector<1x8x1xi1>
      %cst_285 = arith.constant 0xFF800000 : f32
      %336 = vector.shape_cast %335 : vector<1x8x1xi1> to vector<1x8x1xi1>
      %337 = vector.broadcast %336 : vector<1x8x1xi1> to vector<10x8x128xi1>
      %338 = vector.broadcast %cst_285 : f32 to vector<10x8x128xf32>
      %339 = arith.select %337, %334, %338 : vector<10x8x128xi1>, vector<10x8x128xf32>
      %cst_286 = arith.constant dense<0xFF800000> : vector<10x128xf32>
      %340 = vector.multi_reduction <maximumf>, %339, %cst_286 [1] : vector<10x8x128xf32> to vector<10x128xf32>
      %c21_287 = arith.constant 21 : index
      %c0_288 = arith.constant 0 : index
      %341 = vector.load %arg5[%c21_287, %c0_288] : memref<401x128xf32, #tpu.memory_space<vmem>>, vector<10x128xf32>
      %342 = arith.maximumf %341, %340 : vector<10x128xf32>
      %c21_289 = arith.constant 21 : index
      %c0_290 = arith.constant 0 : index
      %343 = vector.load %arg5[%c21_289, %c0_290] : memref<401x128xf32, #tpu.memory_space<vmem>>, vector<10x128xf32>
      tpu.vector_store %arg5[%c21_289, %c0_290], %342 {strides = array<i32>} : memref<401x128xf32, #tpu.memory_space<vmem>>, vector<10x128xf32>,
    } else {
    }
    %c4_i32_250 = arith.constant 4 : i32
    %284 = arith.cmpi slt, %187, %c4_i32_250 : i32
    %c8_i32_251 = arith.constant 8 : i32
    %285 = arith.addi %187, %c8_i32_251 : i32
    %c2_i32_252 = arith.constant 2 : i32
    %286 = arith.cmpi sgt, %285, %c2_i32_252 : i32
    %287 = arith.andi %284, %286 : i1
    %288 = arith.extui %287 : i1 to i32
    %c0_i32_253 = arith.constant 0 : i32
    %289 = arith.cmpi ne, %288, %c0_i32_253 : i32
    scf.if %289 {
      %c2_i32_280 = arith.constant 2 : i32
      %329 = vector.broadcast %c2_i32_280 : i32 to vector<8x1xi32>
      %330 = arith.cmpi sge, %186, %329 : vector<8x1xi32>
      %c4_i32_281 = arith.constant 4 : i32
      %331 = vector.broadcast %c4_i32_281 : i32 to vector<8x1xi32>
      %332 = arith.cmpi slt, %186, %331 : vector<8x1xi32>
      %333 = arith.andi %330, %332 : vector<8x1xi1>
      %c20_282 = arith.constant 20 : index
      %c0_283 = arith.constant 0 : index
      %c0_284 = arith.constant 0 : index
      %334 = vector.load %arg4[%c20_282, %c0_283, %c0_284] : memref<30x8x128xf32, #tpu.memory_space<vmem>>, vector<10x8x128xf32>
      %335 = vector.shape_cast %333 : vector<8x1xi1> to vector<1x8x1xi1>
      %cst_285 = arith.constant 0xFF800000 : f32
      %336 = vector.shape_cast %335 : vector<1x8x1xi1> to vector<1x8x1xi1>
      %337 = vector.broadcast %336 : vector<1x8x1xi1> to vector<10x8x128xi1>
      %338 = vector.broadcast %cst_285 : f32 to vector<10x8x128xf32>
      %339 = arith.select %337, %334, %338 : vector<10x8x128xi1>, vector<10x8x128xf32>
      %cst_286 = arith.constant dense<0xFF800000> : vector<10x128xf32>
      %340 = vector.multi_reduction <maximumf>, %339, %cst_286 [1] : vector<10x8x128xf32> to vector<10x128xf32>
      %c31 = arith.constant 31 : index
      %c0_287 = arith.constant 0 : index
      %341 = vector.load %arg5[%c31, %c0_287] : memref<401x128xf32, #tpu.memory_space<vmem>>, vector<10x128xf32>
      %342 = arith.maximumf %341, %340 : vector<10x128xf32>
      %c31_288 = arith.constant 31 : index
      %c0_289 = arith.constant 0 : index
      %343 = vector.load %arg5[%c31_288, %c0_289] : memref<401x128xf32, #tpu.memory_space<vmem>>, vector<10x128xf32>
      tpu.vector_store %arg5[%c31_288, %c0_289], %342 {strides = array<i32>} : memref<401x128xf32, #tpu.memory_space<vmem>>, vector<10x128xf32>,
    } else {
    }
    %c6_i32_254 = arith.constant 6 : i32
    %290 = arith.cmpi slt, %187, %c6_i32_254 : i32
    %c8_i32_255 = arith.constant 8 : i32
    %291 = arith.addi %187, %c8_i32_255 : i32
    %c4_i32_256 = arith.constant 4 : i32
    %292 = arith.cmpi sgt, %291, %c4_i32_256 : i32
    %293 = arith.andi %290, %292 : i1
    %294 = arith.extui %293 : i1 to i32
    %c0_i32_257 = arith.constant 0 : i32
    %295 = arith.cmpi ne, %294, %c0_i32_257 : i32
    scf.if %295 {
      %c4_i32_280 = arith.constant 4 : i32
      %329 = vector.broadcast %c4_i32_280 : i32 to vector<8x1xi32>
      %330 = arith.cmpi sge, %186, %329 : vector<8x1xi32>
      %c6_i32_281 = arith.constant 6 : i32
      %331 = vector.broadcast %c6_i32_281 : i32 to vector<8x1xi32>
      %332 = arith.cmpi slt, %186, %331 : vector<8x1xi32>
      %333 = arith.andi %330, %332 : vector<8x1xi1>
      %c20_282 = arith.constant 20 : index
      %c0_283 = arith.constant 0 : index
      %c0_284 = arith.constant 0 : index
      %334 = vector.load %arg4[%c20_282, %c0_283, %c0_284] : memref<30x8x128xf32, #tpu.memory_space<vmem>>, vector<10x8x128xf32>
      %335 = vector.shape_cast %333 : vector<8x1xi1> to vector<1x8x1xi1>
      %cst_285 = arith.constant 0xFF800000 : f32
      %336 = vector.shape_cast %335 : vector<1x8x1xi1> to vector<1x8x1xi1>
      %337 = vector.broadcast %336 : vector<1x8x1xi1> to vector<10x8x128xi1>
      %338 = vector.broadcast %cst_285 : f32 to vector<10x8x128xf32>
      %339 = arith.select %337, %334, %338 : vector<10x8x128xi1>, vector<10x8x128xf32>
      %cst_286 = arith.constant dense<0xFF800000> : vector<10x128xf32>
      %340 = vector.multi_reduction <maximumf>, %339, %cst_286 [1] : vector<10x8x128xf32> to vector<10x128xf32>
      %c41 = arith.constant 41 : index
      %c0_287 = arith.constant 0 : index
      %341 = vector.load %arg5[%c41, %c0_287] : memref<401x128xf32, #tpu.memory_space<vmem>>, vector<10x128xf32>
      %342 = arith.maximumf %341, %340 : vector<10x128xf32>
      %c41_288 = arith.constant 41 : index
      %c0_289 = arith.constant 0 : index
      %343 = vector.load %arg5[%c41_288, %c0_289] : memref<401x128xf32, #tpu.memory_space<vmem>>, vector<10x128xf32>
      tpu.vector_store %arg5[%c41_288, %c0_289], %342 {strides = array<i32>} : memref<401x128xf32, #tpu.memory_space<vmem>>, vector<10x128xf32>,
    } else {
    }
    %c8_i32_258 = arith.constant 8 : i32
    %296 = arith.cmpi slt, %187, %c8_i32_258 : i32
    %c8_i32_259 = arith.constant 8 : i32
    %297 = arith.addi %187, %c8_i32_259 : i32
    %c6_i32_260 = arith.constant 6 : i32
    %298 = arith.cmpi sgt, %297, %c6_i32_260 : i32
    %299 = arith.andi %296, %298 : i1
    %300 = arith.extui %299 : i1 to i32
    %c0_i32_261 = arith.constant 0 : i32
    %301 = arith.cmpi ne, %300, %c0_i32_261 : i32
    scf.if %301 {
      %c6_i32_280 = arith.constant 6 : i32
      %329 = vector.broadcast %c6_i32_280 : i32 to vector<8x1xi32>
      %330 = arith.cmpi sge, %186, %329 : vector<8x1xi32>
      %c8_i32_281 = arith.constant 8 : i32
      %331 = vector.broadcast %c8_i32_281 : i32 to vector<8x1xi32>
      %332 = arith.cmpi slt, %186, %331 : vector<8x1xi32>
      %333 = arith.andi %330, %332 : vector<8x1xi1>
      %c20_282 = arith.constant 20 : index
      %c0_283 = arith.constant 0 : index
      %c0_284 = arith.constant 0 : index
      %334 = vector.load %arg4[%c20_282, %c0_283, %c0_284] : memref<30x8x128xf32, #tpu.memory_space<vmem>>, vector<10x8x128xf32>
      %335 = vector.shape_cast %333 : vector<8x1xi1> to vector<1x8x1xi1>
      %cst_285 = arith.constant 0xFF800000 : f32
      %336 = vector.shape_cast %335 : vector<1x8x1xi1> to vector<1x8x1xi1>
      %337 = vector.broadcast %336 : vector<1x8x1xi1> to vector<10x8x128xi1>
      %338 = vector.broadcast %cst_285 : f32 to vector<10x8x128xf32>
      %339 = arith.select %337, %334, %338 : vector<10x8x128xi1>, vector<10x8x128xf32>
      %cst_286 = arith.constant dense<0xFF800000> : vector<10x128xf32>
      %340 = vector.multi_reduction <maximumf>, %339, %cst_286 [1] : vector<10x8x128xf32> to vector<10x128xf32>
      %c51 = arith.constant 51 : index
      %c0_287 = arith.constant 0 : index
      %341 = vector.load %arg5[%c51, %c0_287] : memref<401x128xf32, #tpu.memory_space<vmem>>, vector<10x128xf32>
      %342 = arith.maximumf %341, %340 : vector<10x128xf32>
      %c51_288 = arith.constant 51 : index
      %c0_289 = arith.constant 0 : index
      %343 = vector.load %arg5[%c51_288, %c0_289] : memref<401x128xf32, #tpu.memory_space<vmem>>, vector<10x128xf32>
      tpu.vector_store %arg5[%c51_288, %c0_289], %342 {strides = array<i32>} : memref<401x128xf32, #tpu.memory_space<vmem>>, vector<10x128xf32>,
    } else {
    }
    %c10_i32_262 = arith.constant 10 : i32
    %302 = arith.cmpi slt, %187, %c10_i32_262 : i32
    %c8_i32_263 = arith.constant 8 : i32
    %303 = arith.addi %187, %c8_i32_263 : i32
    %c8_i32_264 = arith.constant 8 : i32
    %304 = arith.cmpi sgt, %303, %c8_i32_264 : i32
    %305 = arith.andi %302, %304 : i1
    %306 = arith.extui %305 : i1 to i32
    %c0_i32_265 = arith.constant 0 : i32
    %307 = arith.cmpi ne, %306, %c0_i32_265 : i32
    scf.if %307 {
      %c8_i32_280 = arith.constant 8 : i32
      %329 = vector.broadcast %c8_i32_280 : i32 to vector<8x1xi32>
      %330 = arith.cmpi sge, %186, %329 : vector<8x1xi32>
      %c10_i32_281 = arith.constant 10 : i32
      %331 = vector.broadcast %c10_i32_281 : i32 to vector<8x1xi32>
      %332 = arith.cmpi slt, %186, %331 : vector<8x1xi32>
      %333 = arith.andi %330, %332 : vector<8x1xi1>
      %c20_282 = arith.constant 20 : index
      %c0_283 = arith.constant 0 : index
      %c0_284 = arith.constant 0 : index
      %334 = vector.load %arg4[%c20_282, %c0_283, %c0_284] : memref<30x8x128xf32, #tpu.memory_space<vmem>>, vector<10x8x128xf32>
      %335 = vector.shape_cast %333 : vector<8x1xi1> to vector<1x8x1xi1>
      %cst_285 = arith.constant 0xFF800000 : f32
      %336 = vector.shape_cast %335 : vector<1x8x1xi1> to vector<1x8x1xi1>
      %337 = vector.broadcast %336 : vector<1x8x1xi1> to vector<10x8x128xi1>
      %338 = vector.broadcast %cst_285 : f32 to vector<10x8x128xf32>
      %339 = arith.select %337, %334, %338 : vector<10x8x128xi1>, vector<10x8x128xf32>
      %cst_286 = arith.constant dense<0xFF800000> : vector<10x128xf32>
      %340 = vector.multi_reduction <maximumf>, %339, %cst_286 [1] : vector<10x8x128xf32> to vector<10x128xf32>
      %c61 = arith.constant 61 : index
      %c0_287 = arith.constant 0 : index
      %341 = vector.load %arg5[%c61, %c0_287] : memref<401x128xf32, #tpu.memory_space<vmem>>, vector<10x128xf32>
      %342 = arith.maximumf %341, %340 : vector<10x128xf32>
      %c61_288 = arith.constant 61 : index
      %c0_289 = arith.constant 0 : index
      %343 = vector.load %arg5[%c61_288, %c0_289] : memref<401x128xf32, #tpu.memory_space<vmem>>, vector<10x128xf32>
      tpu.vector_store %arg5[%c61_288, %c0_289], %342 {strides = array<i32>} : memref<401x128xf32, #tpu.memory_space<vmem>>, vector<10x128xf32>,
    } else {
    }
    %c12_i32_266 = arith.constant 12 : i32
    %308 = arith.cmpi slt, %187, %c12_i32_266 : i32
    %c8_i32_267 = arith.constant 8 : i32
    %309 = arith.addi %187, %c8_i32_267 : i32
    %c10_i32_268 = arith.constant 10 : i32
    %310 = arith.cmpi sgt, %309, %c10_i32_268 : i32
    %311 = arith.andi %308, %310 : i1
    %312 = arith.extui %311 : i1 to i32
    %c0_i32_269 = arith.constant 0 : i32
    %313 = arith.cmpi ne, %312, %c0_i32_269 : i32
    scf.if %313 {
      %c10_i32_280 = arith.constant 10 : i32
      %329 = vector.broadcast %c10_i32_280 : i32 to vector<8x1xi32>
      %330 = arith.cmpi sge, %186, %329 : vector<8x1xi32>
      %c12_i32_281 = arith.constant 12 : i32
      %331 = vector.broadcast %c12_i32_281 : i32 to vector<8x1xi32>
      %332 = arith.cmpi slt, %186, %331 : vector<8x1xi32>
      %333 = arith.andi %330, %332 : vector<8x1xi1>
      %c20_282 = arith.constant 20 : index
      %c0_283 = arith.constant 0 : index
      %c0_284 = arith.constant 0 : index
      %334 = vector.load %arg4[%c20_282, %c0_283, %c0_284] : memref<30x8x128xf32, #tpu.memory_space<vmem>>, vector<10x8x128xf32>
      %335 = vector.shape_cast %333 : vector<8x1xi1> to vector<1x8x1xi1>
      %cst_285 = arith.constant 0xFF800000 : f32
      %336 = vector.shape_cast %335 : vector<1x8x1xi1> to vector<1x8x1xi1>
      %337 = vector.broadcast %336 : vector<1x8x1xi1> to vector<10x8x128xi1>
      %338 = vector.broadcast %cst_285 : f32 to vector<10x8x128xf32>
      %339 = arith.select %337, %334, %338 : vector<10x8x128xi1>, vector<10x8x128xf32>
      %cst_286 = arith.constant dense<0xFF800000> : vector<10x128xf32>
      %340 = vector.multi_reduction <maximumf>, %339, %cst_286 [1] : vector<10x8x128xf32> to vector<10x128xf32>
      %c71 = arith.constant 71 : index
      %c0_287 = arith.constant 0 : index
      %341 = vector.load %arg5[%c71, %c0_287] : memref<401x128xf32, #tpu.memory_space<vmem>>, vector<10x128xf32>
      %342 = arith.maximumf %341, %340 : vector<10x128xf32>
      %c71_288 = arith.constant 71 : index
      %c0_289 = arith.constant 0 : index
      %343 = vector.load %arg5[%c71_288, %c0_289] : memref<401x128xf32, #tpu.memory_space<vmem>>, vector<10x128xf32>
      tpu.vector_store %arg5[%c71_288, %c0_289], %342 {strides = array<i32>} : memref<401x128xf32, #tpu.memory_space<vmem>>, vector<10x128xf32>,
    } else {
    }
    %c14_i32_270 = arith.constant 14 : i32
    %314 = arith.cmpi slt, %187, %c14_i32_270 : i32
    %c8_i32_271 = arith.constant 8 : i32
    %315 = arith.addi %187, %c8_i32_271 : i32
    %c12_i32_272 = arith.constant 12 : i32
    %316 = arith.cmpi sgt, %315, %c12_i32_272 : i32
    %317 = arith.andi %314, %316 : i1
    %318 = arith.extui %317 : i1 to i32
    %c0_i32_273 = arith.constant 0 : i32
    %319 = arith.cmpi ne, %318, %c0_i32_273 : i32
    scf.if %319 {
      %c12_i32_280 = arith.constant 12 : i32
      %329 = vector.broadcast %c12_i32_280 : i32 to vector<8x1xi32>
      %330 = arith.cmpi sge, %186, %329 : vector<8x1xi32>
      %c14_i32_281 = arith.constant 14 : i32
      %331 = vector.broadcast %c14_i32_281 : i32 to vector<8x1xi32>
      %332 = arith.cmpi slt, %186, %331 : vector<8x1xi32>
      %333 = arith.andi %330, %332 : vector<8x1xi1>
      %c20_282 = arith.constant 20 : index
      %c0_283 = arith.constant 0 : index
      %c0_284 = arith.constant 0 : index
      %334 = vector.load %arg4[%c20_282, %c0_283, %c0_284] : memref<30x8x128xf32, #tpu.memory_space<vmem>>, vector<10x8x128xf32>
      %335 = vector.shape_cast %333 : vector<8x1xi1> to vector<1x8x1xi1>
      %cst_285 = arith.constant 0xFF800000 : f32
      %336 = vector.shape_cast %335 : vector<1x8x1xi1> to vector<1x8x1xi1>
      %337 = vector.broadcast %336 : vector<1x8x1xi1> to vector<10x8x128xi1>
      %338 = vector.broadcast %cst_285 : f32 to vector<10x8x128xf32>
      %339 = arith.select %337, %334, %338 : vector<10x8x128xi1>, vector<10x8x128xf32>
      %cst_286 = arith.constant dense<0xFF800000> : vector<10x128xf32>
      %340 = vector.multi_reduction <maximumf>, %339, %cst_286 [1] : vector<10x8x128xf32> to vector<10x128xf32>
      %c81 = arith.constant 81 : index
      %c0_287 = arith.constant 0 : index
      %341 = vector.load %arg5[%c81, %c0_287] : memref<401x128xf32, #tpu.memory_space<vmem>>, vector<10x128xf32>
      %342 = arith.maximumf %341, %340 : vector<10x128xf32>
      %c81_288 = arith.constant 81 : index
      %c0_289 = arith.constant 0 : index
      %343 = vector.load %arg5[%c81_288, %c0_289] : memref<401x128xf32, #tpu.memory_space<vmem>>, vector<10x128xf32>
      tpu.vector_store %arg5[%c81_288, %c0_289], %342 {strides = array<i32>} : memref<401x128xf32, #tpu.memory_space<vmem>>, vector<10x128xf32>,
    } else {
    }
    %c16_i32_274 = arith.constant 16 : i32
    %320 = arith.cmpi slt, %187, %c16_i32_274 : i32
    %c8_i32_275 = arith.constant 8 : i32
    %321 = arith.addi %187, %c8_i32_275 : i32
    %c14_i32_276 = arith.constant 14 : i32
    %322 = arith.cmpi sgt, %321, %c14_i32_276 : i32
    %323 = arith.andi %320, %322 : i1
    %324 = arith.extui %323 : i1 to i32
    %c0_i32_277 = arith.constant 0 : i32
    %325 = arith.cmpi ne, %324, %c0_i32_277 : i32
    scf.if %325 {
      %c14_i32_280 = arith.constant 14 : i32
      %329 = vector.broadcast %c14_i32_280 : i32 to vector<8x1xi32>
      %330 = arith.cmpi sge, %186, %329 : vector<8x1xi32>
      %c16_i32_281 = arith.constant 16 : i32
      %331 = vector.broadcast %c16_i32_281 : i32 to vector<8x1xi32>
      %332 = arith.cmpi slt, %186, %331 : vector<8x1xi32>
      %333 = arith.andi %330, %332 : vector<8x1xi1>
      %c20_282 = arith.constant 20 : index
      %c0_283 = arith.constant 0 : index
      %c0_284 = arith.constant 0 : index
      %334 = vector.load %arg4[%c20_282, %c0_283, %c0_284] : memref<30x8x128xf32, #tpu.memory_space<vmem>>, vector<10x8x128xf32>
      %335 = vector.shape_cast %333 : vector<8x1xi1> to vector<1x8x1xi1>
      %cst_285 = arith.constant 0xFF800000 : f32
      %336 = vector.shape_cast %335 : vector<1x8x1xi1> to vector<1x8x1xi1>
      %337 = vector.broadcast %336 : vector<1x8x1xi1> to vector<10x8x128xi1>
      %338 = vector.broadcast %cst_285 : f32 to vector<10x8x128xf32>
      %339 = arith.select %337, %334, %338 : vector<10x8x128xi1>, vector<10x8x128xf32>
      %cst_286 = arith.constant dense<0xFF800000> : vector<10x128xf32>
      %340 = vector.multi_reduction <maximumf>, %339, %cst_286 [1] : vector<10x8x128xf32> to vector<10x128xf32>
      %c91 = arith.constant 91 : index
      %c0_287 = arith.constant 0 : index
      %341 = vector.load %arg5[%c91, %c0_287] : memref<401x128xf32, #tpu.memory_space<vmem>>, vector<10x128xf32>
      %342 = arith.maximumf %341, %340 : vector<10x128xf32>
      %c91_288 = arith.constant 91 : index
      %c0_289 = arith.constant 0 : index
      %343 = vector.load %arg5[%c91_288, %c0_289] : memref<401x128xf32, #tpu.memory_space<vmem>>, vector<10x128xf32>
      tpu.vector_store %arg5[%c91_288, %c0_289], %342 {strides = array<i32>} : memref<401x128xf32, #tpu.memory_space<vmem>>, vector<10x128xf32>,
    } else {
    }
    %c1_i32_278 = arith.constant 1 : i32
    %326 = arith.cmpi eq, %arg1, %c1_i32_278 : i32
    %327 = arith.extui %326 : i1 to i32
    %c0_i32_279 = arith.constant 0 : i32
    %328 = arith.cmpi ne, %327, %c0_i32_279 : i32
    scf.if %328 {
      %c21_280 = arith.constant 21 : index
      %c0_281 = arith.constant 0 : index
      %329 = vector.load %arg5[%c21_280, %c0_281] : memref<401x128xf32, #tpu.memory_space<vmem>>, vector<10x128xf32>
      %c31 = arith.constant 31 : index
      %c0_282 = arith.constant 0 : index
      %330 = vector.load %arg5[%c31, %c0_282] : memref<401x128xf32, #tpu.memory_space<vmem>>, vector<10x128xf32>
      %331 = arith.maximumf %329, %330 : vector<10x128xf32>
      %332 = vector.extract_strided_slice %331 {offsets = [0, 0], sizes = [1, 128], strides = [1, 1]} : vector<10x128xf32> to vector<1x128xf32>
      %333 = vector.extract_strided_slice %331 {offsets = [1, 0], sizes = [1, 128], strides = [1, 1]} : vector<10x128xf32> to vector<1x128xf32>
      %334 = arith.maximumf %332, %333 : vector<1x128xf32>
      %c1_283 = arith.constant 1 : index
      %c0_284 = arith.constant 0 : index
      %335 = vector.load %arg5[%c1_283, %c0_284] : memref<401x128xf32, #tpu.memory_space<vmem>>, vector<1x128xf32>
      tpu.vector_store %arg5[%c1_283, %c0_284], %334 {strides = array<i32>} : memref<401x128xf32, #tpu.memory_space<vmem>>, vector<1x128xf32>,
      %336 = vector.extract_strided_slice %331 {offsets = [2, 0], sizes = [1, 128], strides = [1, 1]} : vector<10x128xf32> to vector<1x128xf32>
      %337 = vector.extract_strided_slice %331 {offsets = [3, 0], sizes = [1, 128], strides = [1, 1]} : vector<10x128xf32> to vector<1x128xf32>
      %338 = arith.maximumf %336, %337 : vector<1x128xf32>
      %c2_285 = arith.constant 2 : index
      %c0_286 = arith.constant 0 : index
      %339 = vector.load %arg5[%c2_285, %c0_286] : memref<401x128xf32, #tpu.memory_space<vmem>>, vector<1x128xf32>
      tpu.vector_store %arg5[%c2_285, %c0_286], %338 {strides = array<i32>} : memref<401x128xf32, #tpu.memory_space<vmem>>, vector<1x128xf32>,
      %340 = vector.extract_strided_slice %331 {offsets = [4, 0], sizes = [1, 128], strides = [1, 1]} : vector<10x128xf32> to vector<1x128xf32>
      %341 = vector.extract_strided_slice %331 {offsets = [5, 0], sizes = [1, 128], strides = [1, 1]} : vector<10x128xf32> to vector<1x128xf32>
      %342 = arith.maximumf %340, %341 : vector<1x128xf32>
      %c3_287 = arith.constant 3 : index
      %c0_288 = arith.constant 0 : index
      %343 = vector.load %arg5[%c3_287, %c0_288] : memref<401x128xf32, #tpu.memory_space<vmem>>, vector<1x128xf32>
      tpu.vector_store %arg5[%c3_287, %c0_288], %342 {strides = array<i32>} : memref<401x128xf32, #tpu.memory_space<vmem>>, vector<1x128xf32>,
      %344 = vector.extract_strided_slice %331 {offsets = [6, 0], sizes = [1, 128], strides = [1, 1]} : vector<10x128xf32> to vector<1x128xf32>
      %345 = vector.extract_strided_slice %331 {offsets = [7, 0], sizes = [1, 128], strides = [1, 1]} : vector<10x128xf32> to vector<1x128xf32>
      %346 = arith.maximumf %344, %345 : vector<1x128xf32>
      %c4_289 = arith.constant 4 : index
      %c0_290 = arith.constant 0 : index
      %347 = vector.load %arg5[%c4_289, %c0_290] : memref<401x128xf32, #tpu.memory_space<vmem>>, vector<1x128xf32>
      tpu.vector_store %arg5[%c4_289, %c0_290], %346 {strides = array<i32>} : memref<401x128xf32, #tpu.memory_space<vmem>>, vector<1x128xf32>,
      %348 = vector.extract_strided_slice %331 {offsets = [8, 0], sizes = [1, 128], strides = [1, 1]} : vector<10x128xf32> to vector<1x128xf32>
      %349 = vector.extract_strided_slice %331 {offsets = [9, 0], sizes = [1, 128], strides = [1, 1]} : vector<10x128xf32> to vector<1x128xf32>
      %350 = arith.maximumf %348, %349 : vector<1x128xf32>
      %c5_291 = arith.constant 5 : index
      %c0_292 = arith.constant 0 : index
      %351 = vector.load %arg5[%c5_291, %c0_292] : memref<401x128xf32, #tpu.memory_space<vmem>>, vector<1x128xf32>
      tpu.vector_store %arg5[%c5_291, %c0_292], %350 {strides = array<i32>} : memref<401x128xf32, #tpu.memory_space<vmem>>, vector<1x128xf32>,
      %c41 = arith.constant 41 : index
      %c0_293 = arith.constant 0 : index
      %352 = vector.load %arg5[%c41, %c0_293] : memref<401x128xf32, #tpu.memory_space<vmem>>, vector<10x128xf32>
      %c51 = arith.constant 51 : index
      %c0_294 = arith.constant 0 : index
      %353 = vector.load %arg5[%c51, %c0_294] : memref<401x128xf32, #tpu.memory_space<vmem>>, vector<10x128xf32>
      %354 = arith.maximumf %352, %353 : vector<10x128xf32>
      %355 = vector.extract_strided_slice %354 {offsets = [0, 0], sizes = [1, 128], strides = [1, 1]} : vector<10x128xf32> to vector<1x128xf32>
      %356 = vector.extract_strided_slice %354 {offsets = [1, 0], sizes = [1, 128], strides = [1, 1]} : vector<10x128xf32> to vector<1x128xf32>
      %357 = arith.maximumf %355, %356 : vector<1x128xf32>
      %c6_295 = arith.constant 6 : index
      %c0_296 = arith.constant 0 : index
      %358 = vector.load %arg5[%c6_295, %c0_296] : memref<401x128xf32, #tpu.memory_space<vmem>>, vector<1x128xf32>
      tpu.vector_store %arg5[%c6_295, %c0_296], %357 {strides = array<i32>} : memref<401x128xf32, #tpu.memory_space<vmem>>, vector<1x128xf32>,
      %359 = vector.extract_strided_slice %354 {offsets = [2, 0], sizes = [1, 128], strides = [1, 1]} : vector<10x128xf32> to vector<1x128xf32>
      %360 = vector.extract_strided_slice %354 {offsets = [3, 0], sizes = [1, 128], strides = [1, 1]} : vector<10x128xf32> to vector<1x128xf32>
      %361 = arith.maximumf %359, %360 : vector<1x128xf32>
      %c7_297 = arith.constant 7 : index
      %c0_298 = arith.constant 0 : index
      %362 = vector.load %arg5[%c7_297, %c0_298] : memref<401x128xf32, #tpu.memory_space<vmem>>, vector<1x128xf32>
      tpu.vector_store %arg5[%c7_297, %c0_298], %361 {strides = array<i32>} : memref<401x128xf32, #tpu.memory_space<vmem>>, vector<1x128xf32>,
      %363 = vector.extract_strided_slice %354 {offsets = [4, 0], sizes = [1, 128], strides = [1, 1]} : vector<10x128xf32> to vector<1x128xf32>
      %364 = vector.extract_strided_slice %354 {offsets = [5, 0], sizes = [1, 128], strides = [1, 1]} : vector<10x128xf32> to vector<1x128xf32>
      %365 = arith.maximumf %363, %364 : vector<1x128xf32>
      %c8_299 = arith.constant 8 : index
      %c0_300 = arith.constant 0 : index
      %366 = vector.load %arg5[%c8_299, %c0_300] : memref<401x128xf32, #tpu.memory_space<vmem>>, vector<1x128xf32>
      tpu.vector_store %arg5[%c8_299, %c0_300], %365 {strides = array<i32>} : memref<401x128xf32, #tpu.memory_space<vmem>>, vector<1x128xf32>,
      %367 = vector.extract_strided_slice %354 {offsets = [6, 0], sizes = [1, 128], strides = [1, 1]} : vector<10x128xf32> to vector<1x128xf32>
      %368 = vector.extract_strided_slice %354 {offsets = [7, 0], sizes = [1, 128], strides = [1, 1]} : vector<10x128xf32> to vector<1x128xf32>
      %369 = arith.maximumf %367, %368 : vector<1x128xf32>
      %c9_301 = arith.constant 9 : index
      %c0_302 = arith.constant 0 : index
      %370 = vector.load %arg5[%c9_301, %c0_302] : memref<401x128xf32, #tpu.memory_space<vmem>>, vector<1x128xf32>
      tpu.vector_store %arg5[%c9_301, %c0_302], %369 {strides = array<i32>} : memref<401x128xf32, #tpu.memory_space<vmem>>, vector<1x128xf32>,
      %371 = vector.extract_strided_slice %354 {offsets = [8, 0], sizes = [1, 128], strides = [1, 1]} : vector<10x128xf32> to vector<1x128xf32>
      %372 = vector.extract_strided_slice %354 {offsets = [9, 0], sizes = [1, 128], strides = [1, 1]} : vector<10x128xf32> to vector<1x128xf32>
      %373 = arith.maximumf %371, %372 : vector<1x128xf32>
      %c10_303 = arith.constant 10 : index
      %c0_304 = arith.constant 0 : index
      %374 = vector.load %arg5[%c10_303, %c0_304] : memref<401x128xf32, #tpu.memory_space<vmem>>, vector<1x128xf32>
      tpu.vector_store %arg5[%c10_303, %c0_304], %373 {strides = array<i32>} : memref<401x128xf32, #tpu.memory_space<vmem>>, vector<1x128xf32>,
      %c61 = arith.constant 61 : index
      %c0_305 = arith.constant 0 : index
      %375 = vector.load %arg5[%c61, %c0_305] : memref<401x128xf32, #tpu.memory_space<vmem>>, vector<10x128xf32>
      %c71 = arith.constant 71 : index
      %c0_306 = arith.constant 0 : index
      %376 = vector.load %arg5[%c71, %c0_306] : memref<401x128xf32, #tpu.memory_space<vmem>>, vector<10x128xf32>
      %377 = arith.maximumf %375, %376 : vector<10x128xf32>
      %378 = vector.extract_strided_slice %377 {offsets = [0, 0], sizes = [1, 128], strides = [1, 1]} : vector<10x128xf32> to vector<1x128xf32>
      %379 = vector.extract_strided_slice %377 {offsets = [1, 0], sizes = [1, 128], strides = [1, 1]} : vector<10x128xf32> to vector<1x128xf32>
      %380 = arith.maximumf %378, %379 : vector<1x128xf32>
      %c11_307 = arith.constant 11 : index
      %c0_308 = arith.constant 0 : index
      %381 = vector.load %arg5[%c11_307, %c0_308] : memref<401x128xf32, #tpu.memory_space<vmem>>, vector<1x128xf32>
      tpu.vector_store %arg5[%c11_307, %c0_308], %380 {strides = array<i32>} : memref<401x128xf32, #tpu.memory_space<vmem>>, vector<1x128xf32>,
      %382 = vector.extract_strided_slice %377 {offsets = [2, 0], sizes = [1, 128], strides = [1, 1]} : vector<10x128xf32> to vector<1x128xf32>
      %383 = vector.extract_strided_slice %377 {offsets = [3, 0], sizes = [1, 128], strides = [1, 1]} : vector<10x128xf32> to vector<1x128xf32>
      %384 = arith.maximumf %382, %383 : vector<1x128xf32>
      %c12_309 = arith.constant 12 : index
      %c0_310 = arith.constant 0 : index
      %385 = vector.load %arg5[%c12_309, %c0_310] : memref<401x128xf32, #tpu.memory_space<vmem>>, vector<1x128xf32>
      tpu.vector_store %arg5[%c12_309, %c0_310], %384 {strides = array<i32>} : memref<401x128xf32, #tpu.memory_space<vmem>>, vector<1x128xf32>,
      %386 = vector.extract_strided_slice %377 {offsets = [4, 0], sizes = [1, 128], strides = [1, 1]} : vector<10x128xf32> to vector<1x128xf32>
      %387 = vector.extract_strided_slice %377 {offsets = [5, 0], sizes = [1, 128], strides = [1, 1]} : vector<10x128xf32> to vector<1x128xf32>
      %388 = arith.maximumf %386, %387 : vector<1x128xf32>
      %c13_311 = arith.constant 13 : index
      %c0_312 = arith.constant 0 : index
      %389 = vector.load %arg5[%c13_311, %c0_312] : memref<401x128xf32, #tpu.memory_space<vmem>>, vector<1x128xf32>
      tpu.vector_store %arg5[%c13_311, %c0_312], %388 {strides = array<i32>} : memref<401x128xf32, #tpu.memory_space<vmem>>, vector<1x128xf32>,
      %390 = vector.extract_strided_slice %377 {offsets = [6, 0], sizes = [1, 128], strides = [1, 1]} : vector<10x128xf32> to vector<1x128xf32>
      %391 = vector.extract_strided_slice %377 {offsets = [7, 0], sizes = [1, 128], strides = [1, 1]} : vector<10x128xf32> to vector<1x128xf32>
      %392 = arith.maximumf %390, %391 : vector<1x128xf32>
      %c14_313 = arith.constant 14 : index
      %c0_314 = arith.constant 0 : index
      %393 = vector.load %arg5[%c14_313, %c0_314] : memref<401x128xf32, #tpu.memory_space<vmem>>, vector<1x128xf32>
      tpu.vector_store %arg5[%c14_313, %c0_314], %392 {strides = array<i32>} : memref<401x128xf32, #tpu.memory_space<vmem>>, vector<1x128xf32>,
      %394 = vector.extract_strided_slice %377 {offsets = [8, 0], sizes = [1, 128], strides = [1, 1]} : vector<10x128xf32> to vector<1x128xf32>
      %395 = vector.extract_strided_slice %377 {offsets = [9, 0], sizes = [1, 128], strides = [1, 1]} : vector<10x128xf32> to vector<1x128xf32>
      %396 = arith.maximumf %394, %395 : vector<1x128xf32>
      %c15_315 = arith.constant 15 : index
      %c0_316 = arith.constant 0 : index
      %397 = vector.load %arg5[%c15_315, %c0_316] : memref<401x128xf32, #tpu.memory_space<vmem>>, vector<1x128xf32>
      tpu.vector_store %arg5[%c15_315, %c0_316], %396 {strides = array<i32>} : memref<401x128xf32, #tpu.memory_space<vmem>>, vector<1x128xf32>,
      %c81 = arith.constant 81 : index
      %c0_317 = arith.constant 0 : index
      %398 = vector.load %arg5[%c81, %c0_317] : memref<401x128xf32, #tpu.memory_space<vmem>>, vector<10x128xf32>
      %c91 = arith.constant 91 : index
      %c0_318 = arith.constant 0 : index
      %399 = vector.load %arg5[%c91, %c0_318] : memref<401x128xf32, #tpu.memory_space<vmem>>, vector<10x128xf32>
      %400 = arith.maximumf %398, %399 : vector<10x128xf32>
      %401 = vector.extract_strided_slice %400 {offsets = [0, 0], sizes = [1, 128], strides = [1, 1]} : vector<10x128xf32> to vector<1x128xf32>
      %402 = vector.extract_strided_slice %400 {offsets = [1, 0], sizes = [1, 128], strides = [1, 1]} : vector<10x128xf32> to vector<1x128xf32>
      %403 = arith.maximumf %401, %402 : vector<1x128xf32>
      %c16_319 = arith.constant 16 : index
      %c0_320 = arith.constant 0 : index
      %404 = vector.load %arg5[%c16_319, %c0_320] : memref<401x128xf32, #tpu.memory_space<vmem>>, vector<1x128xf32>
      tpu.vector_store %arg5[%c16_319, %c0_320], %403 {strides = array<i32>} : memref<401x128xf32, #tpu.memory_space<vmem>>, vector<1x128xf32>,
      %405 = vector.extract_strided_slice %400 {offsets = [2, 0], sizes = [1, 128], strides = [1, 1]} : vector<10x128xf32> to vector<1x128xf32>
      %406 = vector.extract_strided_slice %400 {offsets = [3, 0], sizes = [1, 128], strides = [1, 1]} : vector<10x128xf32> to vector<1x128xf32>
      %407 = arith.maximumf %405, %406 : vector<1x128xf32>
      %c17_321 = arith.constant 17 : index
      %c0_322 = arith.constant 0 : index
      %408 = vector.load %arg5[%c17_321, %c0_322] : memref<401x128xf32, #tpu.memory_space<vmem>>, vector<1x128xf32>
      tpu.vector_store %arg5[%c17_321, %c0_322], %407 {strides = array<i32>} : memref<401x128xf32, #tpu.memory_space<vmem>>, vector<1x128xf32>,
      %409 = vector.extract_strided_slice %400 {offsets = [4, 0], sizes = [1, 128], strides = [1, 1]} : vector<10x128xf32> to vector<1x128xf32>
      %410 = vector.extract_strided_slice %400 {offsets = [5, 0], sizes = [1, 128], strides = [1, 1]} : vector<10x128xf32> to vector<1x128xf32>
      %411 = arith.maximumf %409, %410 : vector<1x128xf32>
      %c18_323 = arith.constant 18 : index
      %c0_324 = arith.constant 0 : index
      %412 = vector.load %arg5[%c18_323, %c0_324] : memref<401x128xf32, #tpu.memory_space<vmem>>, vector<1x128xf32>
      tpu.vector_store %arg5[%c18_323, %c0_324], %411 {strides = array<i32>} : memref<401x128xf32, #tpu.memory_space<vmem>>, vector<1x128xf32>,
      %413 = vector.extract_strided_slice %400 {offsets = [6, 0], sizes = [1, 128], strides = [1, 1]} : vector<10x128xf32> to vector<1x128xf32>
      %414 = vector.extract_strided_slice %400 {offsets = [7, 0], sizes = [1, 128], strides = [1, 1]} : vector<10x128xf32> to vector<1x128xf32>
      %415 = arith.maximumf %413, %414 : vector<1x128xf32>
      %c19_325 = arith.constant 19 : index
      %c0_326 = arith.constant 0 : index
      %416 = vector.load %arg5[%c19_325, %c0_326] : memref<401x128xf32, #tpu.memory_space<vmem>>, vector<1x128xf32>
      tpu.vector_store %arg5[%c19_325, %c0_326], %415 {strides = array<i32>} : memref<401x128xf32, #tpu.memory_space<vmem>>, vector<1x128xf32>,
      %417 = vector.extract_strided_slice %400 {offsets = [8, 0], sizes = [1, 128], strides = [1, 1]} : vector<10x128xf32> to vector<1x128xf32>
      %418 = vector.extract_strided_slice %400 {offsets = [9, 0], sizes = [1, 128], strides = [1, 1]} : vector<10x128xf32> to vector<1x128xf32>
      %419 = arith.maximumf %417, %418 : vector<1x128xf32>
      %c20_327 = arith.constant 20 : index
      %c0_328 = arith.constant 0 : index
      %420 = vector.load %arg5[%c20_327, %c0_328] : memref<401x128xf32, #tpu.memory_space<vmem>>, vector<1x128xf32>
      tpu.vector_store %arg5[%c20_327, %c0_328], %419 {strides = array<i32>} : memref<401x128xf32, #tpu.memory_space<vmem>>, vector<1x128xf32>,
      %c1_329 = arith.constant 1 : index
      %c0_330 = arith.constant 0 : index
      %421 = vector.load %arg5[%c1_329, %c0_330] : memref<401x128xf32, #tpu.memory_space<vmem>>, vector<20x128xf32>
      %cst_331 = arith.constant dense<0xFF800000> : vector<128xf32>
      %422 = vector.multi_reduction <maximumf>, %421, %cst_331 [0] : vector<20x128xf32> to vector<128xf32>
      %423 = vector.shape_cast %422 : vector<128xf32> to vector<1x128xf32>
      %c0_332 = arith.constant 0 : index
      %c0_333 = arith.constant 0 : index
      %424 = vector.load %arg5[%c0_332, %c0_333] : memref<401x128xf32, #tpu.memory_space<vmem>>, vector<1x128xf32>
      tpu.vector_store %arg5[%c0_332, %c0_333], %423 {strides = array<i32>} : memref<401x128xf32, #tpu.memory_space<vmem>>, vector<1x128xf32>,
      %c0_334 = arith.constant 0 : index
      %c0_335 = arith.constant 0 : index
      %425 = vector.load %arg5[%c0_334, %c0_335] : memref<401x128xf32, #tpu.memory_space<vmem>>, vector<401x128xf32>
      %c0_336 = arith.constant 0 : index
      %c0_337 = arith.constant 0 : index
      %426 = vector.load %arg3[%c0_336, %c0_337] : memref<401x128xf32, #tpu.memory_space<vmem>>, vector<401x128xf32>
      tpu.vector_store %arg3[%c0_336, %c0_337], %425 {strides = array<i32>} : memref<401x128xf32, #tpu.memory_space<vmem>>, vector<401x128xf32>,
    } else {
    }
    return
  }
  func.func @transform_0(%arg0: i32, %arg1: i32) -> (i32, i32, i32) {
    %c0_i32 = arith.constant 0 : i32
    %c0_i32_0 = arith.constant 0 : i32
    return %arg1, %c0_i32, %arg0 : i32, i32, i32
  }
  func.func @transform_1(%arg0: i32, %arg1: i32) -> (i32, i32) {
    %c0_i32 = arith.constant 0 : i32
    %c0_i32_0 = arith.constant 0 : i32
    return %c0_i32, %arg0 : i32, i32
  }
}

</mosaic_0001>

<bundles_post_ra>
// kernel: tpu_custom_call.1
= control target key start
LH: loop header
LB: loop body
LE: loop exit
PB: predicated region body
PF: predicated region fallthrough
CT: control target
= control target key end

     0   :  { %6 = vsyncpa [#allocation6], 0  ;;  %s7676_s0 = inlined_call_operand.vmem [shape: f32[16,20,256], index: 0, kind: input, shape index: {}]   ;;  %s7677_s1 = inlined_call_operand.hbm [shape: f32[401,256], index: 1, kind: output, shape index: {}]  }
   0x1   :  { %8 = vsyncpa [#allocation6 + $0x1], 0  ;;  %s5766_s6 = smov 0   ;;  %s5768_s7 = smov 0  }
   0x2   :  { %s5770_s8 = smov 0   ;;  %s5772_s9 = smov 0  }
   0x3   :  { %s5774_s10 = smov 0   ;;  %s5776_s11 = smov 0  }
   0x4   :  { %s5778_s12 = smov 0   ;;  %s5780_s13 = smov 0  }
   0x5   :  { %s5782_s14 = smov 0   ;;  %s5784_s15 = smov 0  }
   0x6 LB: > { %s5530_s16 = sadd.s32 4294967295, %s5749_s15   ;;  %s5531_s17 = sadd.s32 4294967294, %s5749_s15   ;;  %s5749_s15 = sphi %s5784_s15, %s14_s15   ;;  %s5745_s14 = sphi %s5782_s14, %s7743_s14   ;;  %s5741_s13 = sphi %s5780_s13, %s7742_s13   ;;  %s5737_s12 = sphi %s5778_s12, %s7741_s12   ;;  %s5733_s11 = sphi %s5776_s11, %s7740_s11   ;;  %s5729_s10 = sphi %s5774_s10, %s7739_s10   ;;  %s5725_s9 = sphi %s5772_s9, %s7738_s9   ;;  %s5721_s8 = sphi %s5770_s8, %s7737_s8   ;;  %s5717_s7 = sphi %s5768_s7, %s7736_s7   ;;  %s5713_s6 = sphi %s5766_s6, %s7735_s6  }
   0x7   : > { %s23_s18 = sadd.s32 1, %s5741_s13  ;;  %s26_s19 = sadd.s32 1, %s5745_s14 }
   0x8   : > { %p24_p0 = scmp.ge.s32.totalorder %s23_s18, 2  ;;  %s35_s20 = sadd.s32 1, %s5729_s10 }
   0x9   : > { %p42_p1 = scmp.ne.s32.totalorder %s5729_s10, %s5725_s9  ;;  %p43_p2 = scmp.eq.s32.totalorder %s5749_s15, 0 }
   0xa   : > { %s7745_s18 = smov (%p24_p0, %s23_s18), 0  ;;  %s7747_s19 = smov (!%p24_p0, %s26_s19), %s5745_s14 }
   0xb   : > { %s30_s21 = ssub.s32 %s5741_s13, %s7745_s18  ;;  %p5829_p3 = por %p43_p2, %p42_p1 }
   0xc   : > { %p28_p4 = scmp.ge.s32.totalorder %s7747_s19, 2  ;;  %s61_s23 = sadd.s32 1, %s5721_s8 }
   0xd   : > { %p71_p5 = scmp.ne.s32.totalorder %s5721_s8, %s5717_s7  ;;  %p72_p6 = scmp.eq.s32.totalorder %s5530_s16, 3 }
   0xe   : > { %s7749_s19 = smov (%p28_p4, %s7747_s19), 0  ;;  %p77_p8 = scmp.ne.s32.totalorder %s5717_s7, %s5713_s6 }
   0xf   : > { %p5838_p7 = por %p72_p6, %p71_p5  ;;  %s31_s25 = ssub.s32 %s5745_s14, %s7749_s19 }
  0x10   : > { %p78_p9 = scmp.eq.s32.totalorder %s5531_s17, 3  ;;  %s32_s26 = sor.u32 %s31_s25, %s30_s21 }
  0x11   : > { %p59_p10 = scmp.eq.s32.totalorder %s31_s25, 0  ;;  %p33_p11 = scmp.eq.s32.totalorder %s32_s26, 0 }
  0x12   : > { %p5846_p12 = por %p78_p9, %p77_p8  ;;  %p5533_p13 = scmp.ge.s32.totalorder %s5749_s15, 4 }
  0x13   : > { %s5851_s28 = scalar_select %p59_p10, %s5721_s8, %s61_s23  }
  0x14   : > { %s5854_s29 = scalar_select %p33_p11, %s5729_s10, %s35_s20  }
  0x15   : > { %94 = sbr.rel (%p5533_p13) target bundleno = 47 (0x2f), region = 16 }
  0x1c   : > { %97 = sbr.rel (!%p5829_p3) target bundleno = 47 (0x2f), region = 20  ;;  %s99_s30 = sand.u32 (%p5829_p3), 1, %s5729_s10  }
  0x1d   : > { %s5545_s2 = smul.u32 (%p5829_p3), 48, %s5741_s13 }
  0x1e   : > { %s5544_s3 = smul.u32 (%p5829_p3), 192, %s99_s30 }
  0x1f   : > { %s104_s4 = sadd.s32 (%p5829_p3), %s5745_s14, %s5545_s2 }
  0x20   : > { %s5536_s5 = sshll.u32 (%p5829_p3), %s104_s4, 3  ;;  %s5870_s20 = scalar_lea.vmem (%p5829_p3), [#allocation4], %s5544_s3 }
  0x21   : > { %s5865_s21 = scalar_lea.vmem (%p5829_p3), %s7676_s0, %s5536_s5 }
  0x22   : > { %v180_v0 = vld [vmem:[%s5865_s21] sm:$0xff] (%p5829_p3)  ;;  %v182_v1 = vld [vmem:[%s5865_s21 + $0x10] sm:$0xff] (%p5829_p3) }
  0x23   : > { %v184_v2 = vld [vmem:[%s5865_s21 + $0x20] sm:$0xff]  ;;  %181 = vst [vmem:[%s5870_s20] sm:$0xff] %v180_v0  ;;  %183 = vst [vmem:[%s5870_s20 + $0x8] sm:$0xff] %v182_v1  ;;  %v186_v3 = vld [vmem:[%s5865_s21 + $0x30] sm:$0xff] }
  0x24   : > { %185 = vst [vmem:[%s5870_s20 + $0x10] sm:$0xff] %v184_v2  ;;  %v188_v4 = vld [vmem:[%s5865_s21 + $0x40] sm:$0xff]  ;;  %v190_v5 = vld [vmem:[%s5865_s21 + $0x50] sm:$0xff]  ;;  %187 = vst [vmem:[%s5870_s20 + $0x18] sm:$0xff] %v186_v3 }
  0x25   : > { %189 = vst [vmem:[%s5870_s20 + $0x20] sm:$0xff] %v188_v4  ;;  %191 = vst [vmem:[%s5870_s20 + $0x28] sm:$0xff] %v190_v5  ;;  %v192_v6 = vld [vmem:[%s5865_s21 + $0x60] sm:$0xff]  ;;  %v194_v7 = vld [vmem:[%s5865_s21 + $0x70] sm:$0xff] }
  0x26   : > { %v196_v8 = vld [vmem:[%s5865_s21 + $0x80] sm:$0xff]  ;;  %193 = vst [vmem:[%s5870_s20 + $0x30] sm:$0xff] %v192_v6  ;;  %195 = vst [vmem:[%s5870_s20 + $0x38] sm:$0xff] %v194_v7  ;;  %v198_v9 = vld [vmem:[%s5865_s21 + $0x90] sm:$0xff] }
  0x27   : > { %197 = vst [vmem:[%s5870_s20 + $0x40] sm:$0xff] %v196_v8  ;;  %v200_v10 = vld [vmem:[%s5865_s21 + $0xa0] sm:$0xff]  ;;  %v202_v11 = vld [vmem:[%s5865_s21 + $0xb0] sm:$0xff]  ;;  %199 = vst [vmem:[%s5870_s20 + $0x48] sm:$0xff] %v198_v9 }
  0x28   : > { %201 = vst [vmem:[%s5870_s20 + $0x50] sm:$0xff] %v200_v10  ;;  %203 = vst [vmem:[%s5870_s20 + $0x58] sm:$0xff] %v202_v11  ;;  %v204_v12 = vld [vmem:[%s5865_s21 + $0xc0] sm:$0xff]  ;;  %v206_v13 = vld [vmem:[%s5865_s21 + $0xd0] sm:$0xff] }
  0x29   : > { %v208_v14 = vld [vmem:[%s5865_s21 + $0xe0] sm:$0xff]  ;;  %205 = vst [vmem:[%s5870_s20 + $0x60] sm:$0xff] %v204_v12  ;;  %207 = vst [vmem:[%s5870_s20 + $0x68] sm:$0xff] %v206_v13  ;;  %v210_v15 = vld [vmem:[%s5865_s21 + $0xf0] sm:$0xff] }
  0x2a   : > { %209 = vst [vmem:[%s5870_s20 + $0x70] sm:$0xff] %v208_v14  ;;  %v212_v16 = vld [vmem:[%s5865_s21 + $0x100] sm:$0xff]  ;;  %v214_v17 = vld [vmem:[%s5865_s21 + $0x110] sm:$0xff]  ;;  %211 = vst [vmem:[%s5870_s20 + $0x78] sm:$0xff] %v210_v15 }
  0x2b   : > { %213 = vst [vmem:[%s5870_s20 + $0x80] sm:$0xff] %v212_v16  ;;  %215 = vst [vmem:[%s5870_s20 + $0x88] sm:$0xff] %v214_v17  ;;  %v216_v18 = vld [vmem:[%s5865_s21 + $0x120] sm:$0xff]  ;;  %v218_v19 = vld [vmem:[%s5865_s21 + $0x130] sm:$0xff] }
  0x2c   : > { %v220_v20 = vld [vmem:[%s5865_s21 + $0x140] sm:$0xff]  ;;  %217 = vst [vmem:[%s5870_s20 + $0x90] sm:$0xff] %v216_v18  ;;  %219 = vst [vmem:[%s5870_s20 + $0x98] sm:$0xff] %v218_v19  ;;  %v222_v21 = vld [vmem:[%s5865_s21 + $0x150] sm:$0xff] }
  0x2d   : > { %221 = vst [vmem:[%s5870_s20 + $0xa0] sm:$0xff] %v220_v20  ;;  %v224_v22 = vld [vmem:[%s5865_s21 + $0x160] sm:$0xff]  ;;  %v226_v23 = vld [vmem:[%s5865_s21 + $0x170] sm:$0xff]  ;;  %223 = vst [vmem:[%s5870_s20 + $0xa8] sm:$0xff] %v222_v21 }
  0x2e   : > { %225 = vst [vmem:[%s5870_s20 + $0xb0] sm:$0xff] %v224_v22  ;;  %227 = vst [vmem:[%s5870_s20 + $0xb8] sm:$0xff] %v226_v23 }
  0x2f PF: > { %p5537_p0 = scmp.ge.s32.totalorder %s5749_s15, 1  ;;  %p232_p1 = scmp.lt.s32.totalorder %s5749_s15, 5 }
  0x31   : > { %p233_p2 = pnand %p5537_p0, %p232_p1 }
  0x32   : > { %s239_s22 = sand.u32 (!%p233_p2), 1, %s5725_s9   ;;  %s255_s23 = sand.u32 (!%p233_p2), 1, %s5717_s7  }
  0x33   : > { %236 = sbr.rel (%p233_p2) target bundleno = 1329 (0x531), region = 58  ;;  %p5538_p3 = scmp.ne.s32.totalorder (!%p233_p2), %s5733_s11, 0 }
  0x34   : > { %s5546_s25 = smul.u32 (!%p233_p2), 192, %s239_s22 }
  0x35   : > { %s5547_s26 = smul.u32 (!%p233_p2), 408, %s255_s23 }
  0x36   : > { %s5923_s30 = scalar_lea.vmem (!%p233_p2), [#allocation4], %s5546_s25 }
  0x37   : > { %s5925_s2 = scalar_lea.vmem (!%p233_p2), [#allocation5], %s5547_s26 }
  0x3a   : > { %262 = sbr.rel (%p5538_p3) target bundleno = 85 (0x55), region = 66  ;;  %v5751_v24 = vmov (!%p5538_p3), -inf  }
  0x3b   : > { %263 = vst [vmem:[#allocation3] sm:$0xff] (!%p5538_p3), %v5751_v24  ;;  %264 = vst [vmem:[#allocation3 + $0x8] sm:$0xff] (!%p5538_p3), %v5751_v24 }
  0x3c   : > { %265 = vst [vmem:[#allocation3 + $0x10] sm:$0xff] (!%p5538_p3), %v5751_v24  ;;  %266 = vst [vmem:[#allocation3 + $0x18] sm:$0xff] (!%p5538_p3), %v5751_v24 }
  0x3d   : > { %267 = vst [vmem:[#allocation3 + $0x20] sm:$0xff] (!%p5538_p3), %v5751_v24  ;;  %268 = vst [vmem:[#allocation3 + $0x28] sm:$0xff] (!%p5538_p3), %v5751_v24 }
  0x3e   : > { %269 = vst [vmem:[#allocation3 + $0x30] sm:$0xff] (!%p5538_p3), %v5751_v24  ;;  %270 = vst [vmem:[#allocation3 + $0x38] sm:$0xff] (!%p5538_p3), %v5751_v24 }
  0x3f   : > { %271 = vst [vmem:[#allocation3 + $0x40] sm:$0xff] (!%p5538_p3), %v5751_v24  ;;  %272 = vst [vmem:[#allocation3 + $0x48] sm:$0xff] (!%p5538_p3), %v5751_v24 }
  0x40   : > { %273 = vst [vmem:[#allocation3 + $0x50] sm:$0xff] (!%p5538_p3), %v5751_v24  ;;  %274 = vst [vmem:[#allocation3 + $0x58] sm:$0xff] (!%p5538_p3), %v5751_v24 }
  0x41   : > { %275 = vst [vmem:[#allocation3 + $0x60] sm:$0xff] %v5751_v24  ;;  %276 = vst [vmem:[#allocation3 + $0x68] sm:$0xff] %v5751_v24 }
  0x42   : > { %277 = vst [vmem:[#allocation3 + $0x70] sm:$0xff] %v5751_v24  ;;  %278 = vst [vmem:[#allocation3 + $0x78] sm:$0xff] %v5751_v24 }
  0x43   : > { %279 = vst [vmem:[#allocation3 + $0x80] sm:$0xff] %v5751_v24  ;;  %280 = vst [vmem:[#allocation3 + $0x88] sm:$0xff] %v5751_v24 }
  0x44   : > { %281 = vst [vmem:[#allocation3 + $0x90] sm:$0xff] %v5751_v24  ;;  %282 = vst [vmem:[#allocation3 + $0x98] sm:$0xff] %v5751_v24 }
  0x45   : > { %283 = vst [vmem:[#allocation3 + $0xa0] sm:$0xff] %v5751_v24  ;;  %284 = vst [vmem:[#allocation3 + $0xa8] sm:$0xff] %v5751_v24 }
  0x46   : > { %285 = vst [vmem:[#allocation3 + $0xb0] sm:$0xff] %v5751_v24  ;;  %286 = vst [vmem:[#allocation3 + $0xb8] sm:$0xff] %v5751_v24 }
  0x47   : > { %287 = vst [vmem:[#allocation3 + $0xc0] sm:$0xff] %v5751_v24  ;;  %288 = vst [vmem:[#allocation3 + $0xc8] sm:$0xff] %v5751_v24 }
  0x48   : > { %289 = vst [vmem:[#allocation3 + $0xd0] sm:$0xff] %v5751_v24  ;;  %290 = vst [vmem:[#allocation3 + $0xd8] sm:$0xff] %v5751_v24 }
  0x49   : > { %291 = vst [vmem:[#allocation3 + $0xe0] sm:$0xff] %v5751_v24  ;;  %292 = vst [vmem:[#allocation3 + $0xe8] sm:$0xff] %v5751_v24 }
  0x4a   : > { %293 = vst [vmem:[#allocation3 + $0xf0] sm:$0xff] %v5751_v24  ;;  %294 = vst [vmem:[#allocation3 + $0xf8] sm:$0xff] %v5751_v24 }
  0x4b   : > { %295 = vst [vmem:[#allocation3 + $0x100] sm:$0xff] %v5751_v24  ;;  %296 = vst [vmem:[#allocation3 + $0x108] sm:$0xff] %v5751_v24 }
  0x4c   : > { %297 = vst [vmem:[#allocation3 + $0x110] sm:$0xff] %v5751_v24  ;;  %298 = vst [vmem:[#allocation3 + $0x118] sm:$0xff] %v5751_v24 }
  0x4d   : > { %299 = vst [vmem:[#allocation3 + $0x120] sm:$0xff] %v5751_v24  ;;  %300 = vst [vmem:[#allocation3 + $0x128] sm:$0xff] %v5751_v24 }
  0x4e   : > { %301 = vst [vmem:[#allocation3 + $0x130] sm:$0xff] %v5751_v24  ;;  %302 = vst [vmem:[#allocation3 + $0x138] sm:$0xff] %v5751_v24 }
  0x4f   : > { %303 = vst [vmem:[#allocation3 + $0x140] sm:$0xff] %v5751_v24  ;;  %304 = vst [vmem:[#allocation3 + $0x148] sm:$0xff] %v5751_v24 }
  0x50   : > { %305 = vst [vmem:[#allocation3 + $0x150] sm:$0xff] %v5751_v24  ;;  %306 = vst [vmem:[#allocation3 + $0x158] sm:$0xff] %v5751_v24 }
  0x51   : > { %307 = vst [vmem:[#allocation3 + $0x160] sm:$0xff] %v5751_v24  ;;  %308 = vst [vmem:[#allocation3 + $0x168] sm:$0xff] %v5751_v24 }
  0x52   : > { %309 = vst [vmem:[#allocation3 + $0x170] sm:$0xff] %v5751_v24  ;;  %310 = vst [vmem:[#allocation3 + $0x178] sm:$0xff] %v5751_v24 }
  0x53   : > { %311 = vst [vmem:[#allocation3 + $0x180] sm:$0xff] %v5751_v24  ;;  %312 = vst [vmem:[#allocation3 + $0x188] sm:$0xff] %v5751_v24 }
  0x54   : > { %313 = vst [vmem:[#allocation3 + $0x190] sm:$0x1] %v5751_v24 }
  0x55 PF: > { %v314_v25 = vld [vmem:[%s5923_s30] sm:$0x1]  ;;  %v315_v26 = vld [vmem:[%s5923_s30 + $0x18] sm:$0x1]  ;;  %v316_v27 = vld [vmem:[%s5923_s30 + $0x30] sm:$0x1] }
  0x56   : > { %v317_v28 = vld [vmem:[%s5923_s30 + $0x48] sm:$0x1]  ;;  %v318_v29 = vld [vmem:[%s5923_s30 + $0x60] sm:$0x1]  ;;  %v319_v30 = vld [vmem:[%s5923_s30 + $0x78] sm:$0x1] }
  0x57   : > { %v320_v31 = vld [vmem:[%s5923_s30 + $0x90] sm:$0x1]  ;;  %v330_v32 = vrot.slane %v315_v26, 7  ;;  %vm331_vm0 = vcmask 1041409   ;;  %v321_v33 = vld [vmem:[%s5923_s30 + $0xa8] sm:$0x1] }
  0x58   : > { %v333_v34 = vrot.slane %v316_v27, 6  ;;  %vm334_vm1 = vcmask 1042434   ;;  %v336_v35 = vrot.slane %v317_v28, 5  ;;  %vm337_vm2 = vcmask 1043459   ;;  %v354_v39 = vld [vmem:[%s5923_s30 + $0x19] sm:$0x1] }
  0x59   : > { %v332_v36 = vsel %vm331_vm0, %v330_v32, %v314_v25  ;;  %v339_v37 = vrot.slane %v318_v29, 4  ;;  %vm340_vm3 = vcmask 1044484   ;;  %v342_v38 = vrot.slane %v319_v30, 3  ;;  %s5939_s9 = sshll.u32 %s5733_s11, 3  ;;  %v353_v42 = vld [vmem:[%s5923_s30 + $0x1] sm:$0x1] }
  0x5a   : > { %v335_v40 = vsel %vm334_vm1, %v333_v34, %v332_v36  ;;  %vm343_vm4 = vcmask 1045509   ;;  %v345_v41 = vrot.slane %v320_v31, 2  ;;  %vm346_vm5 = vcmask 1046534   ;;  %v355_v43 = vld [vmem:[%s5923_s30 + $0x31] sm:$0x1]  ;;  %p1035_p4 = scmp.lt.s32.totalorder %s5939_s9, 2 }
  0x5b   : > { %v338_v44 = vsel %vm337_vm2, %v336_v35, %v335_v40  ;;  %v348_v45 = vrot.slane %v321_v33, 1  ;;  %vm349_vm6 = vcmask 1047559   ;;  %v356_v46 = vld [vmem:[%s5923_s30 + $0x49] sm:$0x1]  ;;  %v357_v47 = vld [vmem:[%s5923_s30 + $0x61] sm:$0x1]  ;;  %v1031_v30 = vlaneseq }
  0x5c   : > { %v341_v48 = vsel %vm340_vm3, %v339_v37, %v338_v44  ;;  %v358_v49 = vld [vmem:[%s5923_s30 + $0x79] sm:$0x1]  ;;  %v359_v50 = vld [vmem:[%s5923_s30 + $0x91] sm:$0x1]  ;;  %v360_v51 = vld [vmem:[%s5923_s30 + $0xa9] sm:$0x1] }
  0x5d   : > { %v344_v52 = vsel %vm343_vm4, %v342_v38, %v341_v48  ;;  %v369_v53 = vrot.slane %v354_v39, 7  ;;  %v371_v54 = vrot.slane %v355_v43, 6  ;;  %v373_v55 = vrot.slane %v356_v46, 5  ;;  %v386_v56 = vld [vmem:[%s5923_s30 + $0x2] sm:$0x1]  ;;  %s5955_s3 = sadd.s32 8, %s5939_s9 }
  0x5e   : > { %v347_v57 = vsel %vm346_vm5, %v345_v41, %v344_v52  ;;  %v375_v58 = vrot.slane %v357_v47, 4  ;;  %v377_v59 = vrot.slane %v358_v49, 3  ;;  %v379_v60 = vrot.slane %v359_v50, 2  ;;  %v387_v61 = vld [vmem:[%s5923_s30 + $0x1a] sm:$0x1]  ;;  %p1037_p5 = scmp.gt.s32.totalorder %s5955_s3, 0 }
  0x5f   : > { %v5961_v62 = vsel %vm349_vm6, %v348_v45, %v347_v57  ;;  %v370_v63 = vsel %vm331_vm0, %v369_v53, %v353_v42  ;;  %v381_v0 = vrot.slane %v360_v51, 1  ;;  %v388_v1 = vld [vmem:[%s5923_s30 + $0x32] sm:$0x1]  ;;  %v389_v2 = vld [vmem:[%s5923_s30 + $0x4a] sm:$0x1]  ;;  %v402_v3 = vrot.slane %v387_v61, 7 }
  0x60   : > { %352 = vst [vmem:[#allocation2] sm:$0xff] %v5961_v62  ;;  %v372_v4 = vsel %vm334_vm1, %v371_v54, %v370_v63  ;;  %v390_v5 = vld [vmem:[%s5923_s30 + $0x62] sm:$0x1]  ;;  %v391_v6 = vld [vmem:[%s5923_s30 + $0x7a] sm:$0x1]  ;;  %p5973_p6 = pnand %p1037_p5, %p1035_p4  ;;  %v404_v11 = vrot.slane %v388_v1, 6 }
  0x61   : > { %v392_v7 = vld [vmem:[%s5923_s30 + $0x92] sm:$0x1]  ;;  %v374_v8 = vsel %vm337_vm2, %v373_v55, %v372_v4  ;;  %v393_v9 = vld [vmem:[%s5923_s30 + $0xaa] sm:$0x1]  ;;  %v403_v10 = vsel %vm331_vm0, %v402_v3, %v386_v56  ;;  %v406_v12 = vrot.slane %v389_v2, 5  ;;  %v408_v15 = vrot.slane %v390_v5, 4 }
  0x62   : > { %v419_v13 = vld [vmem:[%s5923_s30 + $0x3] sm:$0x1]  ;;  %v376_v14 = vsel %vm340_vm3, %v375_v58, %v374_v8  ;;  %v410_v16 = vrot.slane %v391_v6, 3  ;;  %v412_v17 = vrot.slane %v392_v7, 2  ;;  %v420_v18 = vld [vmem:[%s5923_s30 + $0x1b] sm:$0x1]  ;;  %v405_v20 = vsel %vm334_vm1, %v404_v11, %v403_v10 }
  0x63   : > { %v378_v19 = vsel %vm343_vm4, %v377_v59, %v376_v14  ;;  %v414_v21 = vrot.slane %v393_v9, 1  ;;  %v421_v22 = vld [vmem:[%s5923_s30 + $0x33] sm:$0x1]  ;;  %v422_v23 = vld [vmem:[%s5923_s30 + $0x4b] sm:$0x1]  ;;  %v435_v24 = vrot.slane %v420_v18, 7  ;;  %v407_v26 = vsel %vm337_vm2, %v406_v12, %v405_v20 }
  0x64   : > { %v380_v25 = vsel %vm346_vm5, %v379_v60, %v378_v19  ;;  %v423_v27 = vld [vmem:[%s5923_s30 + $0x63] sm:$0x1]  ;;  %v424_v28 = vld [vmem:[%s5923_s30 + $0x7b] sm:$0x1]  ;;  %v425_v29 = vld [vmem:[%s5923_s30 + $0x93] sm:$0x1]  ;;  %v409_v32 = vsel %vm340_vm3, %v408_v15, %v407_v26  ;;  %v1033_v11 = vstv %s5939_s9 }
  0x65   : > { %v382_v31 = vsel %vm349_vm6, %v381_v0, %v380_v25  ;;  %v426_v33 = vld [vmem:[%s5923_s30 + $0xab] sm:$0x1]  ;;  %v436_v34 = vsel %vm331_vm0, %v435_v24, %v419_v13  ;;  %v437_v35 = vrot.slane %v421_v22, 6  ;;  %v411_v36 = vsel %vm343_vm4, %v410_v16, %v409_v32  ;;  %v452_v40 = vld [vmem:[%s5923_s30 + $0x4] sm:$0x1] }
  0x66   : > { %385 = vst [vmem:[#allocation2 + $0x8] sm:$0xff] %v382_v31  ;;  %v439_v37 = vrot.slane %v422_v23, 5  ;;  %v441_v38 = vrot.slane %v423_v27, 4  ;;  %v443_v39 = vrot.slane %v424_v28, 3  ;;  %v453_v41 = vld [vmem:[%s5923_s30 + $0x1c] sm:$0x1]  ;;  %v413_v42 = vsel %vm346_vm5, %v412_v17, %v411_v36 }
  0x67   : > { %v438_v43 = vsel %vm334_vm1, %v437_v35, %v436_v34  ;;  %v445_v44 = vrot.slane %v425_v29, 2  ;;  %v447_v45 = vrot.slane %v426_v33, 1  ;;  %v454_v46 = vld [vmem:[%s5923_s30 + $0x34] sm:$0x1]  ;;  %v455_v47 = vld [vmem:[%s5923_s30 + $0x4c] sm:$0x1]  ;;  %v415_v48 = vsel %vm349_vm6, %v414_v21, %v413_v42 }
  0x68   : > { %v440_v49 = vsel %vm337_vm2, %v439_v37, %v438_v43  ;;  %v456_v50 = vld [vmem:[%s5923_s30 + $0x64] sm:$0x1]  ;;  %v457_v51 = vld [vmem:[%s5923_s30 + $0x7c] sm:$0x1]  ;;  %v458_v52 = vld [vmem:[%s5923_s30 + $0x94] sm:$0x1]  ;;  %v982_v53 = vmax.f32 %v5961_v62, %v382_v31 }
  0x69   : > { %418 = vst [vmem:[#allocation2 + $0x10] sm:$0xff] %v415_v48  ;;  %v442_v54 = vsel %vm340_vm3, %v441_v38, %v440_v49  ;;  %v459_v55 = vld [vmem:[%s5923_s30 + $0xac] sm:$0x1]  ;;  %v468_v56 = vrot.slane %v453_v41, 7  ;;  %v470_v57 = vrot.slane %v454_v46, 6  ;;  %v472_v58 = vrot.slane %v455_v47, 5 }
  0x6a   : > { %v444_v59 = vsel %vm343_vm4, %v443_v39, %v442_v54  ;;  %v474_v60 = vrot.slane %v456_v50, 4  ;;  %v476_v61 = vrot.slane %v457_v51, 3  ;;  %v478_v63 = vrot.slane %v458_v52, 2  ;;  %v485_v0 = vld [vmem:[%s5923_s30 + $0x5] sm:$0x1]  ;;  %984 = vst [vmem:[#allocation2 + $0xa0] sm:$0xff] %v982_v53 }
  0x6b   : > { %v446_v62 = vsel %vm346_vm5, %v445_v44, %v444_v59  ;;  %v469_v1 = vsel %vm331_vm0, %v468_v56, %v452_v40  ;;  %v480_v2 = vrot.slane %v459_v55, 1  ;;  %v486_v3 = vld [vmem:[%s5923_s30 + $0x1d] sm:$0x1]  ;;  %v487_v4 = vld [vmem:[%s5923_s30 + $0x35] sm:$0x1]  ;;  %v1032_v5 = vshrl.u32 %v1031_v30, 7 }
  0x6c   : > { %v448_v6 = vsel %vm349_vm6, %v447_v45, %v446_v62  ;;  %v471_v7 = vsel %vm334_vm1, %v470_v57, %v469_v1  ;;  %v488_v8 = vld [vmem:[%s5923_s30 + $0x4d] sm:$0x1]  ;;  %v489_v9 = vld [vmem:[%s5923_s30 + $0x65] sm:$0x1]  ;;  %v490_v10 = vld [vmem:[%s5923_s30 + $0x7d] sm:$0x1] }
  0x6d   : > { %451 = vst [vmem:[#allocation2 + $0x18] sm:$0xff] %v448_v6  ;;  %v473_v12 = vsel %vm337_vm2, %v472_v58, %v471_v7  ;;  %v491_v13 = vld [vmem:[%s5923_s30 + $0x95] sm:$0x1]  ;;  %v492_v14 = vld [vmem:[%s5923_s30 + $0xad] sm:$0x1]  ;;  %v501_v15 = vrot.slane %v486_v3, 7  ;;  %v987_v17 = vmax.f32 %v415_v48, %v448_v6  ;;  %v6037_v34 = vadd.s32 %v1033_v11, %v1032_v5 }
  0x6e   : > { %v503_v16 = vrot.slane %v487_v4, 6  ;;  %v475_v18 = vsel %vm340_vm3, %v474_v60, %v473_v12  ;;  %v505_v19 = vrot.slane %v488_v8, 5  ;;  %v507_v20 = vrot.slane %v489_v9, 4  ;;  %v518_v22 = vld [vmem:[%s5923_s30 + $0x6] sm:$0x1] }
  0x6f   : > { %v509_v21 = vrot.slane %v490_v10, 3  ;;  %v477_v23 = vsel %vm343_vm4, %v476_v61, %v475_v18  ;;  %v502_v24 = vsel %vm331_vm0, %v501_v15, %v485_v0  ;;  %v511_v25 = vrot.slane %v491_v13, 2  ;;  %v519_v27 = vld [vmem:[%s5923_s30 + $0x1e] sm:$0x1]  ;;  %v520_v28 = vld [vmem:[%s5923_s30 + $0x36] sm:$0x1] }
  0x70   : > { %v513_v26 = vrot.slane %v492_v14, 1  ;;  %989 = vst [vmem:[#allocation2 + $0xa8] sm:$0xff] %v987_v17  ;;  %v479_v29 = vsel %vm346_vm5, %v478_v63, %v477_v23  ;;  %v504_v30 = vsel %vm334_vm1, %v503_v16, %v502_v24  ;;  %v521_v31 = vld [vmem:[%s5923_s30 + $0x4e] sm:$0x1]  ;;  %v522_v32 = vld [vmem:[%s5923_s30 + $0x66] sm:$0x1] }
  0x71   : > { %v523_v33 = vld [vmem:[%s5923_s30 + $0x7e] sm:$0x1]  ;;  %v481_v35 = vsel %vm349_vm6, %v480_v2, %v479_v29  ;;  %v506_v36 = vsel %vm337_vm2, %v505_v19, %v504_v30  ;;  %v524_v37 = vld [vmem:[%s5923_s30 + $0x96] sm:$0x1]  ;;  %v525_v38 = vld [vmem:[%s5923_s30 + $0xae] sm:$0x1] }
  0x72   : > { %v534_v39 = vrot.slane %v519_v27, 7  ;;  %v536_v40 = vrot.slane %v520_v28, 6  ;;  %484 = vst [vmem:[#allocation2 + $0x20] sm:$0xff] %v481_v35  ;;  %v508_v41 = vsel %vm340_vm3, %v507_v20, %v506_v36  ;;  %v538_v42 = vrot.slane %v521_v31, 5  ;;  %v551_v45 = vld [vmem:[%s5923_s30 + $0x7] sm:$0x1] }
  0x73   : > { %v540_v43 = vrot.slane %v522_v32, 4  ;;  %v542_v44 = vrot.slane %v523_v33, 3  ;;  %v510_v46 = vsel %vm343_vm4, %v509_v21, %v508_v41  ;;  %v544_v48 = vrot.slane %v524_v37, 2  ;;  %v552_v50 = vld [vmem:[%s5923_s30 + $0x1f] sm:$0x1] }
  0x74   : > { %v535_v47 = vsel %vm331_vm0, %v534_v39, %v518_v22  ;;  %v546_v49 = vrot.slane %v525_v38, 1  ;;  %v553_v51 = vld [vmem:[%s5923_s30 + $0x37] sm:$0x1]  ;;  %v512_v52 = vsel %vm346_vm5, %v511_v25, %v510_v46  ;;  %v554_v54 = vld [vmem:[%s5923_s30 + $0x4f] sm:$0x1]  ;;  %v567_v61 = vrot.slane %v552_v50, 7 }
  0x75   : > { %v537_v53 = vsel %vm334_vm1, %v536_v40, %v535_v47  ;;  %v555_v55 = vld [vmem:[%s5923_s30 + $0x67] sm:$0x1]  ;;  %v556_v56 = vld [vmem:[%s5923_s30 + $0x7f] sm:$0x1]  ;;  %v514_v57 = vsel %vm349_vm6, %v513_v26, %v512_v52  ;;  %v557_v59 = vld [vmem:[%s5923_s30 + $0x97] sm:$0x1] }
  0x76   : > { %v539_v58 = vsel %vm337_vm2, %v538_v42, %v537_v53  ;;  %v558_v60 = vld [vmem:[%s5923_s30 + $0xaf] sm:$0x1]  ;;  %v569_v63 = vrot.slane %v553_v51, 6  ;;  %517 = vst [vmem:[#allocation2 + $0x28] sm:$0xff] %v514_v57  ;;  %v571_v62 = vrot.slane %v554_v54, 5  ;;  %v573_v1 = vrot.slane %v555_v55, 4 }
  0x77   : > { %v541_v0 = vsel %vm340_vm3, %v540_v43, %v539_v58  ;;  %v575_v2 = vrot.slane %v556_v56, 3  ;;  %v584_v3 = vld [vmem:[%s5923_s30 + $0x8] sm:$0x1]  ;;  %v568_v5 = vsel %vm331_vm0, %v567_v61, %v551_v45  ;;  %v577_v6 = vrot.slane %v557_v59, 2  ;;  %v585_v8 = vld [vmem:[%s5923_s30 + $0x20] sm:$0x1] }
  0x78   : > { %v543_v4 = vsel %vm343_vm4, %v542_v44, %v541_v0  ;;  %v579_v7 = vrot.slane %v558_v60, 1  ;;  %v586_v9 = vld [vmem:[%s5923_s30 + $0x38] sm:$0x1]  ;;  %v570_v11 = vsel %vm334_vm1, %v569_v63, %v568_v5  ;;  %v587_v12 = vld [vmem:[%s5923_s30 + $0x50] sm:$0x1]  ;;  %v992_v15 = vmax.f32 %v481_v35, %v514_v57 }
  0x79   : > { %v545_v10 = vsel %vm346_vm5, %v544_v48, %v543_v4  ;;  %v588_v13 = vld [vmem:[%s5923_s30 + $0x68] sm:$0x1]  ;;  %v589_v14 = vld [vmem:[%s5923_s30 + $0x80] sm:$0x1]  ;;  %v572_v17 = vsel %vm337_vm2, %v571_v62, %v570_v11  ;;  %v590_v18 = vld [vmem:[%s5923_s30 + $0x98] sm:$0x1] }
  0x7a   : > { %v547_v16 = vsel %vm349_vm6, %v546_v49, %v545_v10  ;;  %v591_v19 = vld [vmem:[%s5923_s30 + $0xb0] sm:$0x1]  ;;  %v600_v20 = vrot.slane %v585_v8, 7  ;;  %v602_v21 = vrot.slane %v586_v9, 6  ;;  %v574_v22 = vsel %vm340_vm3, %v573_v1, %v572_v17  ;;  %v617_v26 = vld [vmem:[%s5923_s30 + $0x9] sm:$0x1] }
  0x7b   : > { %550 = vst [vmem:[#allocation2 + $0x30] sm:$0xff] %v547_v16  ;;  %v604_v23 = vrot.slane %v587_v12, 5  ;;  %v606_v24 = vrot.slane %v588_v13, 4  ;;  %v608_v25 = vrot.slane %v589_v14, 3  ;;  %994 = vst [vmem:[#allocation2 + $0xb0] sm:$0xff] %v992_v15  ;;  %v576_v27 = vsel %vm343_vm4, %v575_v2, %v574_v22 }
  0x7c   : > { %v601_v28 = vsel %vm331_vm0, %v600_v20, %v584_v3  ;;  %v610_v29 = vrot.slane %v590_v18, 2  ;;  %v612_v30 = vrot.slane %v591_v19, 1  ;;  %v618_v31 = vld [vmem:[%s5923_s30 + $0x21] sm:$0x1]  ;;  %v619_v32 = vld [vmem:[%s5923_s30 + $0x39] sm:$0x1]  ;;  %v578_v33 = vsel %vm346_vm5, %v577_v6, %v576_v27 }
  0x7d   : > { %v603_v35 = vsel %vm334_vm1, %v602_v21, %v601_v28  ;;  %v620_v36 = vld [vmem:[%s5923_s30 + $0x51] sm:$0x1]  ;;  %v621_v37 = vld [vmem:[%s5923_s30 + $0x69] sm:$0x1]  ;;  %v622_v38 = vld [vmem:[%s5923_s30 + $0x81] sm:$0x1]  ;;  %v580_v39 = vsel %vm349_vm6, %v579_v7, %v578_v33 }
  0x7e   : > { %v605_v40 = vsel %vm337_vm2, %v604_v23, %v603_v35  ;;  %v623_v41 = vld [vmem:[%s5923_s30 + $0x99] sm:$0x1]  ;;  %v624_v42 = vld [vmem:[%s5923_s30 + $0xb1] sm:$0x1]  ;;  %v633_v43 = vrot.slane %v618_v31, 7  ;;  %v635_v44 = vrot.slane %v619_v32, 6  ;;  %v997_v61 = vmax.f32 %v547_v16, %v580_v39 }
  0x7f   : > { %583 = vst [vmem:[#allocation2 + $0x38] sm:$0xff] %v580_v39  ;;  %v607_v45 = vsel %vm340_vm3, %v606_v24, %v605_v40  ;;  %v637_v46 = vrot.slane %v620_v36, 5  ;;  %v639_v47 = vrot.slane %v621_v37, 4  ;;  %v641_v48 = vrot.slane %v622_v38, 3  ;;  %v650_v49 = vld [vmem:[%s5923_s30 + $0xa] sm:$0x1] }
  0x80   : > { %v609_v50 = vsel %vm343_vm4, %v608_v25, %v607_v45  ;;  %v634_v51 = vsel %vm331_vm0, %v633_v43, %v617_v26  ;;  %v643_v52 = vrot.slane %v623_v41, 2  ;;  %v645_v53 = vrot.slane %v624_v42, 1  ;;  %v651_v54 = vld [vmem:[%s5923_s30 + $0x22] sm:$0x1]  ;;  %v652_v55 = vld [vmem:[%s5923_s30 + $0x3a] sm:$0x1] }
  0x81   : > { %v611_v56 = vsel %vm346_vm5, %v610_v29, %v609_v50  ;;  %v636_v57 = vsel %vm334_vm1, %v635_v44, %v634_v51  ;;  %v653_v58 = vld [vmem:[%s5923_s30 + $0x52] sm:$0x1]  ;;  %v654_v59 = vld [vmem:[%s5923_s30 + $0x6a] sm:$0x1]  ;;  %v655_v60 = vld [vmem:[%s5923_s30 + $0x82] sm:$0x1] }
  0x82   : > { %v613_v63 = vsel %vm349_vm6, %v612_v30, %v611_v56  ;;  %v638_v0 = vsel %vm337_vm2, %v637_v46, %v636_v57  ;;  %v656_v62 = vld [vmem:[%s5923_s30 + $0x9a] sm:$0x1]  ;;  %v657_v1 = vld [vmem:[%s5923_s30 + $0xb2] sm:$0x1]  ;;  %v666_v2 = vrot.slane %v651_v54, 7  ;;  %v668_v3 = vrot.slane %v652_v55, 6 }
  0x83   : > { %616 = vst [vmem:[#allocation2 + $0x40] sm:$0xff] %v613_v63  ;;  %v640_v4 = vsel %vm340_vm3, %v639_v47, %v638_v0  ;;  %v670_v5 = vrot.slane %v653_v58, 5  ;;  %v672_v6 = vrot.slane %v654_v59, 4  ;;  %v674_v7 = vrot.slane %v655_v60, 3  ;;  %v683_v8 = vld [vmem:[%s5923_s30 + $0xb] sm:$0x1] }
  0x84   : > { %999 = vst [vmem:[#allocation2 + $0xb8] sm:$0xff] %v997_v61  ;;  %v642_v9 = vsel %vm343_vm4, %v641_v48, %v640_v4  ;;  %v667_v10 = vsel %vm331_vm0, %v666_v2, %v650_v49  ;;  %v676_v11 = vrot.slane %v656_v62, 2  ;;  %v678_v12 = vrot.slane %v657_v1, 1  ;;  %v684_v13 = vld [vmem:[%s5923_s30 + $0x23] sm:$0x1] }
  0x85   : > { %v685_v14 = vld [vmem:[%s5923_s30 + $0x3b] sm:$0x1]  ;;  %v644_v15 = vsel %vm346_vm5, %v643_v52, %v642_v9  ;;  %v669_v16 = vsel %vm334_vm1, %v668_v3, %v667_v10  ;;  %v686_v17 = vld [vmem:[%s5923_s30 + $0x53] sm:$0x1]  ;;  %v687_v18 = vld [vmem:[%s5923_s30 + $0x6b] sm:$0x1] }
  0x86   : > { %v688_v19 = vld [vmem:[%s5923_s30 + $0x83] sm:$0x1]  ;;  %v646_v20 = vsel %vm349_vm6, %v645_v53, %v644_v15  ;;  %v671_v21 = vsel %vm337_vm2, %v670_v5, %v669_v16  ;;  %v689_v22 = vld [vmem:[%s5923_s30 + $0x9b] sm:$0x1]  ;;  %v690_v23 = vld [vmem:[%s5923_s30 + $0xb3] sm:$0x1] }
  0x87   : > { %v699_v24 = vrot.slane %v684_v13, 7  ;;  %v701_v25 = vrot.slane %v685_v14, 6  ;;  %649 = vst [vmem:[#allocation2 + $0x48] sm:$0xff] %v646_v20  ;;  %v673_v26 = vsel %vm340_vm3, %v672_v6, %v671_v21  ;;  %v703_v27 = vrot.slane %v686_v17, 5  ;;  %v716_v30 = vld [vmem:[%s5923_s30 + $0xc] sm:$0x1] }
  0x88   : > { %v705_v28 = vrot.slane %v687_v18, 4  ;;  %v707_v29 = vrot.slane %v688_v19, 3  ;;  %v675_v31 = vsel %vm343_vm4, %v674_v7, %v673_v26  ;;  %v709_v33 = vrot.slane %v689_v22, 2  ;;  %v717_v36 = vld [vmem:[%s5923_s30 + $0x24] sm:$0x1] }
  0x89   : > { %v700_v32 = vsel %vm331_vm0, %v699_v24, %v683_v8  ;;  %v711_v35 = vrot.slane %v690_v23, 1  ;;  %v718_v37 = vld [vmem:[%s5923_s30 + $0x3c] sm:$0x1]  ;;  %v677_v38 = vsel %vm346_vm5, %v676_v11, %v675_v31  ;;  %v719_v40 = vld [vmem:[%s5923_s30 + $0x54] sm:$0x1]  ;;  %v1002_v43 = vmax.f32 %v613_v63, %v646_v20 }
  0x8a   : > { %v702_v39 = vsel %vm334_vm1, %v701_v25, %v700_v32  ;;  %v720_v41 = vld [vmem:[%s5923_s30 + $0x6c] sm:$0x1]  ;;  %v721_v42 = vld [vmem:[%s5923_s30 + $0x84] sm:$0x1]  ;;  %v679_v44 = vsel %vm349_vm6, %v678_v12, %v677_v38  ;;  %v722_v46 = vld [vmem:[%s5923_s30 + $0x9c] sm:$0x1] }
  0x8b   : > { %v704_v45 = vsel %vm337_vm2, %v703_v27, %v702_v39  ;;  %v723_v47 = vld [vmem:[%s5923_s30 + $0xb4] sm:$0x1]  ;;  %v732_v48 = vrot.slane %v717_v36, 7  ;;  %v734_v49 = vrot.slane %v718_v37, 6  ;;  %682 = vst [vmem:[#allocation2 + $0x50] sm:$0xff] %v679_v44  ;;  %v736_v51 = vrot.slane %v719_v40, 5 }
  0x8c   : > { %v706_v50 = vsel %vm340_vm3, %v705_v28, %v704_v45  ;;  %v738_v52 = vrot.slane %v720_v41, 4  ;;  %v740_v53 = vrot.slane %v721_v42, 3  ;;  %v749_v54 = vld [vmem:[%s5923_s30 + $0xd] sm:$0x1]  ;;  %1004 = vst [vmem:[#allocation2 + $0xc0] sm:$0xff] %v1002_v43  ;;  %v742_v57 = vrot.slane %v722_v46, 2 }
  0x8d   : > { %v708_v55 = vsel %vm343_vm4, %v707_v29, %v706_v50  ;;  %v733_v56 = vsel %vm331_vm0, %v732_v48, %v716_v30  ;;  %v744_v58 = vrot.slane %v723_v47, 1  ;;  %v750_v59 = vld [vmem:[%s5923_s30 + $0x25] sm:$0x1]  ;;  %v751_v60 = vld [vmem:[%s5923_s30 + $0x3d] sm:$0x1]  ;;  %vm1042_vm7 = vcmp.ge.s32.totalorder (!%p5973_p6), %v6037_v34, 0 }
  0x8e   : > { %v710_v61 = vsel %vm346_vm5, %v709_v33, %v708_v55  ;;  %v735_v63 = vsel %vm334_vm1, %v734_v49, %v733_v56  ;;  %v752_v0 = vld [vmem:[%s5923_s30 + $0x55] sm:$0x1]  ;;  %v753_v62 = vld [vmem:[%s5923_s30 + $0x6d] sm:$0x1]  ;;  %v754_v1 = vld [vmem:[%s5923_s30 + $0x85] sm:$0x1] }
  0x8f   : > { %v712_v2 = vsel %vm349_vm6, %v711_v35, %v710_v61  ;;  %v737_v3 = vsel %vm337_vm2, %v736_v51, %v735_v63  ;;  %v755_v4 = vld [vmem:[%s5923_s30 + $0x9d] sm:$0x1]  ;;  %v756_v5 = vld [vmem:[%s5923_s30 + $0xb5] sm:$0x1]  ;;  %v765_v6 = vrot.slane %v750_v59, 7  ;;  %v767_v7 = vrot.slane %v751_v60, 6 }
  0x90   : > { %715 = vst [vmem:[#allocation2 + $0x58] sm:$0xff] %v712_v2  ;;  %v739_v8 = vsel %vm340_vm3, %v738_v52, %v737_v3  ;;  %v769_v9 = vrot.slane %v752_v0, 5  ;;  %v771_v10 = vrot.slane %v753_v62, 4  ;;  %v773_v11 = vrot.slane %v754_v1, 3  ;;  %v782_v12 = vld [vmem:[%s5923_s30 + $0xe] sm:$0x1] }
  0x91   : > { %v741_v13 = vsel %vm343_vm4, %v740_v53, %v739_v8  ;;  %v766_v14 = vsel %vm331_vm0, %v765_v6, %v749_v54  ;;  %v775_v15 = vrot.slane %v755_v4, 2  ;;  %v777_v16 = vrot.slane %v756_v5, 1  ;;  %v783_v17 = vld [vmem:[%s5923_s30 + $0x26] sm:$0x1]  ;;  %v784_v18 = vld [vmem:[%s5923_s30 + $0x3e] sm:$0x1] }
  0x92   : > { %v743_v19 = vsel %vm346_vm5, %v742_v57, %v741_v13  ;;  %v768_v20 = vsel %vm334_vm1, %v767_v7, %v766_v14  ;;  %v785_v21 = vld [vmem:[%s5923_s30 + $0x56] sm:$0x1]  ;;  %v786_v22 = vld [vmem:[%s5923_s30 + $0x6e] sm:$0x1]  ;;  %v787_v23 = vld [vmem:[%s5923_s30 + $0x86] sm:$0x1]  ;;  %v1007_v24 = vmax.f32 %v679_v44, %v712_v2 }
  0x93   : > { %v745_v25 = vsel %vm349_vm6, %v744_v58, %v743_v19  ;;  %v770_v26 = vsel %vm337_vm2, %v769_v9, %v768_v20  ;;  %v788_v27 = vld [vmem:[%s5923_s30 + $0x9e] sm:$0x1]  ;;  %v789_v28 = vld [vmem:[%s5923_s30 + $0xb6] sm:$0x1]  ;;  %v798_v29 = vrot.slane %v783_v17, 7  ;;  %v800_v30 = vrot.slane %v784_v18, 6 }
  0x94   : > { %748 = vst [vmem:[#allocation2 + $0x60] sm:$0xff] %v745_v25  ;;  %v772_v31 = vsel %vm340_vm3, %v771_v10, %v770_v26  ;;  %v802_v32 = vrot.slane %v785_v21, 5  ;;  %v804_v33 = vrot.slane %v786_v22, 4  ;;  %v806_v35 = vrot.slane %v787_v23, 3  ;;  %v815_v36 = vld [vmem:[%s5923_s30 + $0xf] sm:$0x1] }
  0x95   : > { %1009 = vst [vmem:[#allocation2 + $0xc8] sm:$0xff] %v1007_v24  ;;  %v774_v37 = vsel %vm343_vm4, %v773_v11, %v772_v31  ;;  %v799_v38 = vsel %vm331_vm0, %v798_v29, %v782_v12  ;;  %v808_v39 = vrot.slane %v788_v27, 2  ;;  %v810_v40 = vrot.slane %v789_v28, 1  ;;  %v816_v41 = vld [vmem:[%s5923_s30 + $0x27] sm:$0x1] }
  0x96   : > { %v817_v42 = vld [vmem:[%s5923_s30 + $0x3f] sm:$0x1]  ;;  %v776_v43 = vsel %vm346_vm5, %v775_v15, %v774_v37  ;;  %v801_v44 = vsel %vm334_vm1, %v800_v30, %v799_v38  ;;  %v818_v45 = vld [vmem:[%s5923_s30 + $0x57] sm:$0x1]  ;;  %v819_v46 = vld [vmem:[%s5923_s30 + $0x6f] sm:$0x1] }
  0x97   : > { %v820_v47 = vld [vmem:[%s5923_s30 + $0x87] sm:$0x1]  ;;  %v778_v48 = vsel %vm349_vm6, %v777_v16, %v776_v43  ;;  %v803_v49 = vsel %vm337_vm2, %v802_v32, %v801_v44  ;;  %v821_v50 = vld [vmem:[%s5923_s30 + $0x9f] sm:$0x1]  ;;  %v822_v51 = vld [vmem:[%s5923_s30 + $0xb7] sm:$0x1] }
  0x98   : > { %v831_v52 = vrot.slane %v816_v41, 7  ;;  %v833_v53 = vrot.slane %v817_v42, 6  ;;  %781 = vst [vmem:[#allocation2 + $0x68] sm:$0xff] %v778_v48  ;;  %v805_v54 = vsel %vm340_vm3, %v804_v33, %v803_v49  ;;  %v835_v55 = vrot.slane %v818_v45, 5  ;;  %v848_v58 = vld [vmem:[%s5923_s30 + $0x10] sm:$0x1] }
  0x99   : > { %v837_v56 = vrot.slane %v819_v46, 4  ;;  %v839_v57 = vrot.slane %v820_v47, 3  ;;  %v807_v59 = vsel %vm343_vm4, %v806_v35, %v805_v54  ;;  %v841_v61 = vrot.slane %v821_v50, 2  ;;  %v849_v0 = vld [vmem:[%s5923_s30 + $0x28] sm:$0x1] }
  0x9a   : > { %v832_v60 = vsel %vm331_vm0, %v831_v52, %v815_v36  ;;  %v843_v63 = vrot.slane %v822_v51, 1  ;;  %v850_v62 = vld [vmem:[%s5923_s30 + $0x40] sm:$0x1]  ;;  %v809_v1 = vsel %vm346_vm5, %v808_v39, %v807_v59  ;;  %v851_v3 = vld [vmem:[%s5923_s30 + $0x58] sm:$0x1]  ;;  %v1012_v6 = vmax.f32 %v745_v25, %v778_v48 }
  0x9b   : > { %v834_v2 = vsel %vm334_vm1, %v833_v53, %v832_v60  ;;  %v852_v4 = vld [vmem:[%s5923_s30 + $0x70] sm:$0x1]  ;;  %v853_v5 = vld [vmem:[%s5923_s30 + $0x88] sm:$0x1]  ;;  %v811_v7 = vsel %vm349_vm6, %v810_v40, %v809_v1  ;;  %v854_v9 = vld [vmem:[%s5923_s30 + $0xa0] sm:$0x1] }
  0x9c   : > { %v836_v8 = vsel %vm337_vm2, %v835_v55, %v834_v2  ;;  %v855_v10 = vld [vmem:[%s5923_s30 + $0xb8] sm:$0x1]  ;;  %v864_v11 = vrot.slane %v849_v0, 7  ;;  %v866_v12 = vrot.slane %v850_v62, 6  ;;  %814 = vst [vmem:[#allocation2 + $0x70] sm:$0xff] %v811_v7  ;;  %v868_v14 = vrot.slane %v851_v3, 5 }
  0x9d   : > { %v838_v13 = vsel %vm340_vm3, %v837_v56, %v836_v8  ;;  %v870_v15 = vrot.slane %v852_v4, 4  ;;  %v872_v16 = vrot.slane %v853_v5, 3  ;;  %v881_v17 = vld [vmem:[%s5923_s30 + $0x11] sm:$0x1]  ;;  %1014 = vst [vmem:[#allocation2 + $0xd0] sm:$0xff] %v1012_v6  ;;  %v874_v20 = vrot.slane %v854_v9, 2 }
  0x9e   : > { %v840_v18 = vsel %vm343_vm4, %v839_v57, %v838_v13  ;;  %v865_v19 = vsel %vm331_vm0, %v864_v11, %v848_v58  ;;  %v876_v21 = vrot.slane %v855_v10, 1  ;;  %v882_v22 = vld [vmem:[%s5923_s30 + $0x29] sm:$0x1]  ;;  %v883_v23 = vld [vmem:[%s5923_s30 + $0x41] sm:$0x1]  ;;  %vm1043_vm8 = vcmp.lt.s32.totalorder (!%p5973_p6), %v6037_v34, 2 }
  0x9f   : > { %v842_v24 = vsel %vm346_vm5, %v841_v61, %v840_v18  ;;  %v867_v25 = vsel %vm334_vm1, %v866_v12, %v865_v19  ;;  %v884_v26 = vld [vmem:[%s5923_s30 + $0x59] sm:$0x1]  ;;  %v885_v27 = vld [vmem:[%s5923_s30 + $0x71] sm:$0x1]  ;;  %v886_v28 = vld [vmem:[%s5923_s30 + $0x89] sm:$0x1] }
  0xa0   : > { %v844_v29 = vsel %vm349_vm6, %v843_v63, %v842_v24  ;;  %v869_v30 = vsel %vm337_vm2, %v868_v14, %v867_v25  ;;  %v887_v31 = vld [vmem:[%s5923_s30 + $0xa1] sm:$0x1]  ;;  %v888_v32 = vld [vmem:[%s5923_s30 + $0xb9] sm:$0x1]  ;;  %v897_v33 = vrot.slane %v882_v22, 7  ;;  %v899_v35 = vrot.slane %v883_v23, 6  ;;  %vm6253_vm9 = vmand (!%p5973_p6), %vm1042_vm7, %vm1043_vm8 }
  0xa1   : > { %847 = vst [vmem:[#allocation2 + $0x78] sm:$0xff] %v844_v29  ;;  %v871_v36 = vsel %vm340_vm3, %v870_v15, %v869_v30  ;;  %v901_v37 = vrot.slane %v884_v26, 5  ;;  %v903_v38 = vrot.slane %v885_v27, 4  ;;  %v905_v39 = vrot.slane %v886_v28, 3  ;;  %v914_v40 = vld [vmem:[%s5923_s30 + $0x12] sm:$0x1] }
  0xa2   : > { %v873_v41 = vsel %vm343_vm4, %v872_v16, %v871_v36  ;;  %v898_v42 = vsel %vm331_vm0, %v897_v33, %v881_v17  ;;  %v907_v43 = vrot.slane %v887_v31, 2  ;;  %v909_v44 = vrot.slane %v888_v32, 1  ;;  %v915_v45 = vld [vmem:[%s5923_s30 + $0x2a] sm:$0x1]  ;;  %v916_v46 = vld [vmem:[%s5923_s30 + $0x42] sm:$0x1] }
  0xa3   : > { %v875_v47 = vsel %vm346_vm5, %v874_v20, %v873_v41  ;;  %v900_v48 = vsel %vm334_vm1, %v899_v35, %v898_v42  ;;  %v917_v49 = vld [vmem:[%s5923_s30 + $0x5a] sm:$0x1]  ;;  %v918_v50 = vld [vmem:[%s5923_s30 + $0x72] sm:$0x1]  ;;  %v919_v51 = vld [vmem:[%s5923_s30 + $0x8a] sm:$0x1]  ;;  %v1017_v52 = vmax.f32 %v811_v7, %v844_v29 }
  0xa4   : > { %v877_v53 = vsel %vm349_vm6, %v876_v21, %v875_v47  ;;  %v902_v54 = vsel %vm337_vm2, %v901_v37, %v900_v48  ;;  %v920_v55 = vld [vmem:[%s5923_s30 + $0xa2] sm:$0x1]  ;;  %v921_v56 = vld [vmem:[%s5923_s30 + $0xba] sm:$0x1]  ;;  %v930_v57 = vrot.slane %v915_v45, 7  ;;  %v932_v58 = vrot.slane %v916_v46, 6 }
  0xa5   : > { %880 = vst [vmem:[#allocation2 + $0x80] sm:$0xff] %v877_v53  ;;  %v904_v59 = vsel %vm340_vm3, %v903_v38, %v902_v54  ;;  %v934_v60 = vrot.slane %v917_v49, 5  ;;  %v936_v61 = vrot.slane %v918_v50, 4  ;;  %v938_v63 = vrot.slane %v919_v51, 3  ;;  %v947_v0 = vld [vmem:[%s5923_s30 + $0x13] sm:$0x1] }
  0xa6   : > { %1019 = vst [vmem:[#allocation2 + $0xd8] sm:$0xff] %v1017_v52  ;;  %v906_v62 = vsel %vm343_vm4, %v905_v39, %v904_v59  ;;  %v931_v1 = vsel %vm331_vm0, %v930_v57, %v914_v40  ;;  %v940_v2 = vrot.slane %v920_v55, 2  ;;  %v942_v3 = vrot.slane %v921_v56, 1  ;;  %v948_v4 = vld [vmem:[%s5923_s30 + $0x2b] sm:$0x1]  ;;  %v1045_v36 = vld [vmem:[#allocation2] sm:$0xff] (!%p5973_p6) }
  0xa7   : > { %v949_v5 = vld [vmem:[%s5923_s30 + $0x43] sm:$0x1]  ;;  %v908_v6 = vsel %vm346_vm5, %v907_v43, %v906_v62  ;;  %v933_v7 = vsel %vm334_vm1, %v932_v58, %v931_v1  ;;  %v950_v8 = vld [vmem:[%s5923_s30 + $0x5b] sm:$0x1]  ;;  %v951_v9 = vld [vmem:[%s5923_s30 + $0x73] sm:$0x1] }
  0xa8   : > { %v952_v10 = vld [vmem:[%s5923_s30 + $0x8b] sm:$0x1]  ;;  %v910_v11 = vsel %vm349_vm6, %v909_v44, %v908_v6  ;;  %v935_v12 = vsel %vm337_vm2, %v934_v60, %v933_v7  ;;  %v953_v13 = vld [vmem:[%s5923_s30 + $0xa3] sm:$0x1]  ;;  %v963_v14 = vrot.slane %v948_v4, 7  ;;  %v965_v15 = vrot.slane %v949_v5, 6 }
  0xa9   : > { %913 = vst [vmem:[#allocation2 + $0x88] sm:$0xff] %v910_v11  ;;  %v937_v16 = vsel %vm340_vm3, %v936_v61, %v935_v12  ;;  %v954_v17 = vld [vmem:[%s5923_s30 + $0xbb] sm:$0x1]  ;;  %v967_v18 = vrot.slane %v950_v8, 5  ;;  %v969_v19 = vrot.slane %v951_v9, 4  ;;  %v971_v22 = vrot.slane %v952_v10, 3 }
  0xaa   : > { %v939_v20 = vsel %vm343_vm4, %v938_v63, %v937_v16  ;;  %v964_v21 = vsel %vm331_vm0, %v963_v14, %v947_v0  ;;  %v973_v25 = vrot.slane %v953_v13, 2  ;;  %v1022_v26 = vmax.f32 %v877_v53, %v910_v11  ;;  %v1046_v37 = vld [vmem:[#allocation2 + $0x8] sm:$0xff] (!%p5973_p6)  ;;  %v1047_v38 = vld [vmem:[#allocation2 + $0x10] sm:$0xff] (!%p5973_p6)  ;;  %v1048_v40 = vld [vmem:[#allocation2 + $0x18] sm:$0xff] (!%p5973_p6) }
  0xab   : > { %v941_v23 = vsel %vm346_vm5, %v940_v2, %v939_v20  ;;  %v966_v24 = vsel %vm334_vm1, %v965_v15, %v964_v21  ;;  %v975_v29 = vrot.slane %v954_v17, 1  ;;  %v1049_v41 = vld [vmem:[#allocation2 + $0x20] sm:$0xff] (!%p5973_p6)  ;;  %v1050_v42 = vld [vmem:[#allocation2 + $0x28] sm:$0xff] (!%p5973_p6)  ;;  %v1051_v43 = vld [vmem:[#allocation2 + $0x30] sm:$0xff] (!%p5973_p6)  ;;  %v1067_v45 = vsel (!%p5973_p6), %vm6253_vm9, %v1045_v36, -inf }
  0xac   : > { %v943_v27 = vsel %vm349_vm6, %v942_v3, %v941_v23  ;;  %v968_v28 = vsel %vm337_vm2, %v967_v18, %v966_v24  ;;  %1024 = vst [vmem:[#allocation2 + $0xe0] sm:$0xff] %v1022_v26  ;;  %v1052_v44 = vld [vmem:[#allocation2 + $0x38] sm:$0xff] (!%p5973_p6)  ;;  %v1068_v46 = vsel (!%p5973_p6), %vm6253_vm9, %v1046_v37, -inf  ;;  %v1069_v47 = vsel (!%p5973_p6), %vm6253_vm9, %v1047_v38, -inf  ;;  %v1057_v37 = vld [vmem:[#allocation2 + $0x60] sm:$0xff] (!%p5973_p6) }
  0xad   : > { %946 = vst [vmem:[#allocation2 + $0x90] sm:$0xff] %v943_v27  ;;  %v970_v30 = vsel %vm340_vm3, %v969_v19, %v968_v28  ;;  %1041 = sbr.rel (%p5973_p6) target bundleno = 223 (0xdf), region = 70  ;;  %v1070_v48 = vsel (!%p5973_p6), %vm6253_vm9, %v1048_v40, -inf  ;;  %v1071_v49 = vsel (!%p5973_p6), %vm6253_vm9, %v1049_v41, -inf  ;;  %v1072_v50 = vsel (!%p5973_p6), %vm6253_vm9, %v1050_v42, -inf  ;;  %v1053_v28 = vld [vmem:[#allocation2 + $0x40] sm:$0xff] (!%p5973_p6) }
  0xae   : > { %v972_v31 = vsel %vm343_vm4, %v971_v22, %v970_v30  ;;  %v1073_v51 = vsel (!%p5973_p6), %vm6253_vm9, %v1051_v43, -inf  ;;  %v1074_v52 = vsel (!%p5973_p6), %vm6253_vm9, %v1052_v44, -inf  ;;  %v1087_v53 = vrot.slane (!%p5973_p6), %v1067_v45, 4  ;;  %v1056_v36 = vld [vmem:[#allocation2 + $0x58] sm:$0xff] (!%p5973_p6)  ;;  %v1058_v43 = vld [vmem:[#allocation2 + $0x68] sm:$0xff] (!%p5973_p6)  ;;  %v1059_v44 = vld [vmem:[#allocation2 + $0x70] sm:$0xff] (!%p5973_p6) }
  0xaf   : > { %v974_v32 = vsel %vm346_vm5, %v973_v25, %v972_v31  ;;  %v1093_v54 = vrot.slane (!%p5973_p6), %v1068_v46, 4  ;;  %v1099_v55 = vrot.slane (!%p5973_p6), %v1069_v47, 4  ;;  %v1105_v56 = vrot.slane (!%p5973_p6), %v1070_v48, 4 }
  0xb0   : > { %v976_v33 = vsel %vm349_vm6, %v975_v29, %v974_v32  ;;  %v1111_v57 = vrot.slane (!%p5973_p6), %v1071_v49, 4  ;;  %v1117_v58 = vrot.slane (!%p5973_p6), %v1072_v50, 4  ;;  %v1123_v59 = vrot.slane (!%p5973_p6), %v1073_v51, 4  ;;  %v1054_v29 = vld [vmem:[#allocation2 + $0x48] sm:$0xff] (!%p5973_p6) }
  0xb1   : > { %979 = vst [vmem:[#allocation2 + $0x98] sm:$0xff] %v976_v33  ;;  %v1027_v35 = vmax.f32 %v943_v27, %v976_v33  ;;  %v1088_v60 = vmax.f32 (!%p5973_p6), %v1067_v45, %v1087_v53  ;;  %v1094_v61 = vmax.f32 (!%p5973_p6), %v1068_v46, %v1093_v54  ;;  %v1100_v63 = vmax.f32 (!%p5973_p6), %v1069_v47, %v1099_v55  ;;  %v1060_v45 = vld [vmem:[#allocation2 + $0x78] sm:$0xff] (!%p5973_p6) }
  0xb2   : > { %v1129_v0 = vrot.slane (!%p5973_p6), %v1074_v52, 4  ;;  %v1106_v62 = vmax.f32 (!%p5973_p6), %v1070_v48, %v1105_v56  ;;  %v1112_v1 = vmax.f32 (!%p5973_p6), %v1071_v49, %v1111_v57  ;;  %v1118_v2 = vmax.f32 (!%p5973_p6), %v1072_v50, %v1117_v58 }
  0xb3   : > { %1029 = vst [vmem:[#allocation2 + $0xe8] sm:$0xff] %v1027_v35  ;;  %v1124_v3 = vmax.f32 (!%p5973_p6), %v1073_v51, %v1123_v59  ;;  %v1089_v4 = vrot.slane (!%p5973_p6), %v1088_v60, 2  ;;  %v1095_v5 = vrot.slane (!%p5973_p6), %v1094_v61, 2  ;;  %v1101_v6 = vrot.slane (!%p5973_p6), %v1100_v63, 2  ;;  %v1055_v35 = vld [vmem:[#allocation2 + $0x50] sm:$0xff] (!%p5973_p6) }
  0xb4   : > { %v1130_v7 = vmax.f32 %v1074_v52, %v1129_v0  ;;  %v1107_v8 = vrot.slane %v1106_v62, 2  ;;  %v1113_v9 = vrot.slane %v1112_v1, 2  ;;  %v1119_v10 = vrot.slane %v1118_v2, 2 }
  0xb5   : > { %v1125_v11 = vrot.slane %v1124_v3, 2  ;;  %v1090_v12 = vmax.f32 %v1088_v60, %v1089_v4  ;;  %v1096_v13 = vmax.f32 %v1094_v61, %v1095_v5  ;;  %v1102_v14 = vmax.f32 %v1100_v63, %v1101_v6  ;;  %v1207_v63 = vld [vmem:[#allocation3 + $0x65] sm:$0xff] }
  0xb6   : > { %v1131_v15 = vrot.slane %v1130_v7, 2  ;;  %v1108_v16 = vmax.f32 %v1106_v62, %v1107_v8  ;;  %v1114_v17 = vmax.f32 %v1112_v1, %v1113_v9  ;;  %v1120_v18 = vmax.f32 %v1118_v2, %v1119_v10 }
  0xb7   : > { %v1126_v19 = vmax.f32 %v1124_v3, %v1125_v11  ;;  %v1091_v20 = vrot.slane %v1090_v12, 1  ;;  %v1097_v21 = vrot.slane %v1096_v13, 1  ;;  %v1103_v22 = vrot.slane %v1102_v14, 1 }
  0xb8   : > { %v1132_v23 = vmax.f32 %v1130_v7, %v1131_v15  ;;  %v1109_v24 = vrot.slane %v1108_v16, 1  ;;  %v1115_v25 = vrot.slane %v1114_v17, 1  ;;  %v1121_v26 = vrot.slane %v1120_v18, 1 }
  0xb9   : > { %v1127_v27 = vrot.slane %v1126_v19, 1  ;;  %v1092_v30 = vmax.f32 %v1090_v12, %v1091_v20  ;;  %v1098_v31 = vmax.f32 %v1096_v13, %v1097_v21  ;;  %v1104_v32 = vmax.f32 %v1102_v14, %v1103_v22 }
  0xba   : > { %v1133_v33 = vrot.slane %v1132_v23, 1  ;;  %v1110_v38 = vmax.f32 %v1108_v16, %v1109_v24  ;;  %v1116_v40 = vmax.f32 %v1114_v17, %v1115_v25  ;;  %v1122_v41 = vmax.f32 %v1120_v18, %v1121_v26 }
  0xbb   : > { %v1128_v42 = vmax.f32 %v1126_v19, %v1127_v27  ;;  %v1230_v47 = vsel %vm331_vm0, %v1098_v31, %v1092_v30  ;;  %v1075_v48 = vsel %vm6253_vm9, %v1053_v28, -inf  ;;  %v1076_v49 = vsel %vm6253_vm9, %v1054_v29, -inf }
  0xbc   : > { %v1134_v46 = vmax.f32 %v1132_v23, %v1133_v33  ;;  %v1231_v50 = vsel %vm334_vm1, %v1104_v32, %v1230_v47  ;;  %v1077_v51 = vsel %vm6253_vm9, %v1055_v35, -inf  ;;  %v1078_v52 = vsel %vm6253_vm9, %v1056_v36, -inf  ;;  %v1061_v36 = vld [vmem:[#allocation2 + $0x80] sm:$0xff] }
  0xbd   : > { %v1079_v53 = vsel %vm6253_vm9, %v1057_v37, -inf  ;;  %v1232_v54 = vsel %vm337_vm2, %v1110_v38, %v1231_v50  ;;  %v1080_v55 = vsel %vm6253_vm9, %v1058_v43, -inf  ;;  %v1081_v56 = vsel %vm6253_vm9, %v1059_v44, -inf  ;;  %v1062_v37 = vld [vmem:[#allocation2 + $0x88] sm:$0xff]  ;;  %v1063_v43 = vld [vmem:[#allocation2 + $0x90] sm:$0xff]  ;;  %v1064_v44 = vld [vmem:[#allocation2 + $0x98] sm:$0xff] }
  0xbe   : > { %v1082_v57 = vsel %vm6253_vm9, %v1060_v45, -inf  ;;  %v1233_v58 = vsel %vm340_vm3, %v1116_v40, %v1232_v54  ;;  %v1135_v59 = vrot.slane %v1075_v48, 4  ;;  %v1141_v60 = vrot.slane %v1076_v49, 4 }
  0xbf   : > { %v1147_v61 = vrot.slane %v1077_v51, 4  ;;  %v1234_v0 = vsel %vm343_vm4, %v1122_v41, %v1233_v58  ;;  %v1153_v62 = vrot.slane %v1078_v52, 4  ;;  %v1159_v1 = vrot.slane %v1079_v53, 4 }
  0xc0   : > { %v1165_v2 = vrot.slane %v1080_v55, 4  ;;  %v1235_v3 = vsel %vm346_vm5, %v1128_v42, %v1234_v0  ;;  %v1136_v4 = vmax.f32 %v1075_v48, %v1135_v59  ;;  %v1142_v5 = vmax.f32 %v1076_v49, %v1141_v60 }
  0xc1   : > { %v1148_v6 = vmax.f32 %v1077_v51, %v1147_v61  ;;  %v1236_v7 = vsel %vm349_vm6, %v1134_v46, %v1235_v3  ;;  %v1154_v8 = vmax.f32 %v1078_v52, %v1153_v62  ;;  %v1160_v9 = vmax.f32 %v1079_v53, %v1159_v1 }
  0xc2   : > { %v1166_v10 = vmax.f32 %v1080_v55, %v1165_v2  ;;  %v1250_v11 = vmax.f32 %v1207_v63, %v1236_v7  ;;  %v1137_v12 = vrot.slane %v1136_v4, 2  ;;  %v1143_v13 = vrot.slane %v1142_v5, 2  ;;  %v1208_v2 = vld [vmem:[#allocation3 + $0x6d] sm:$0xff] }
  0xc3   : > { %v1149_v14 = vrot.slane %v1148_v6, 2  ;;  %v1155_v15 = vrot.slane %v1154_v8, 2  ;;  %v1161_v16 = vrot.slane %v1160_v9, 2  ;;  %v1171_v18 = vrot.slane %v1081_v56, 4 }
  0xc4   : > { %v1167_v17 = vrot.slane %v1166_v10, 2  ;;  %1253 = vst [vmem:[#allocation3 + $0x65] sm:$0xff] %v1250_v11  ;;  %v1138_v19 = vmax.f32 %v1136_v4, %v1137_v12  ;;  %v1144_v20 = vmax.f32 %v1142_v5, %v1143_v13  ;;  %v1177_v22 = vrot.slane %v1082_v57, 4 }
  0xc5   : > { %v1150_v21 = vmax.f32 %v1148_v6, %v1149_v14  ;;  %v1156_v23 = vmax.f32 %v1154_v8, %v1155_v15  ;;  %v1162_v24 = vmax.f32 %v1160_v9, %v1161_v16  ;;  %v1172_v26 = vmax.f32 %v1081_v56, %v1171_v18 }
  0xc6   : > { %v1168_v25 = vmax.f32 %v1166_v10, %v1167_v17  ;;  %v1139_v27 = vrot.slane %v1138_v19, 1  ;;  %v1145_v28 = vrot.slane %v1144_v20, 1  ;;  %v1178_v30 = vmax.f32 %v1082_v57, %v1177_v22 }
  0xc7   : > { %v1151_v29 = vrot.slane %v1150_v21, 1  ;;  %v1157_v31 = vrot.slane %v1156_v23, 1  ;;  %v1163_v32 = vrot.slane %v1162_v24, 1  ;;  %v1173_v35 = vrot.slane %v1172_v26, 2 }
  0xc8   : > { %v1169_v33 = vrot.slane %v1168_v25, 1  ;;  %v1140_v38 = vmax.f32 %v1138_v19, %v1139_v27  ;;  %v1146_v40 = vmax.f32 %v1144_v20, %v1145_v28  ;;  %v1179_v42 = vrot.slane %v1178_v30, 2 }
  0xc9   : > { %v1152_v41 = vmax.f32 %v1150_v21, %v1151_v29  ;;  %v1158_v45 = vmax.f32 %v1156_v23, %v1157_v31  ;;  %v1164_v46 = vmax.f32 %v1162_v24, %v1163_v32  ;;  %v1174_v48 = vmax.f32 %v1172_v26, %v1173_v35  ;;  %v1209_v26 = vld [vmem:[#allocation3 + $0x75] sm:$0xf] }
  0xca   : > { %v1170_v47 = vmax.f32 %v1168_v25, %v1169_v33  ;;  %v1180_v49 = vmax.f32 %v1178_v30, %v1179_v42  ;;  %v1237_v50 = vsel %vm331_vm0, %v1146_v40, %v1140_v38  ;;  %v1083_v51 = vsel %vm6253_vm9, %v1061_v36, -inf }
  0xcb   : > { %v1084_v52 = vsel %vm6253_vm9, %v1062_v37, -inf  ;;  %v1175_v53 = vrot.slane %v1174_v48, 1  ;;  %v1238_v54 = vsel %vm334_vm1, %v1152_v41, %v1237_v50  ;;  %v1085_v55 = vsel %vm6253_vm9, %v1063_v43, -inf }
  0xcc   : > { %v1086_v56 = vsel %vm6253_vm9, %v1064_v44, -inf  ;;  %v1181_v57 = vrot.slane %v1180_v49, 1  ;;  %v1239_v58 = vsel %vm337_vm2, %v1158_v45, %v1238_v54  ;;  %v1183_v59 = vrot.slane %v1083_v51, 4 }
  0xcd   : > { %v1189_v60 = vrot.slane %v1084_v52, 4  ;;  %v1176_v61 = vmax.f32 %v1174_v48, %v1175_v53  ;;  %v1240_v63 = vsel %vm340_vm3, %v1164_v46, %v1239_v58  ;;  %v1195_v0 = vrot.slane %v1085_v55, 4 }
  0xce   : > { %v1201_v62 = vrot.slane %v1086_v56, 4  ;;  %v1182_v1 = vmax.f32 %v1180_v49, %v1181_v57  ;;  %v1241_v3 = vsel %vm343_vm4, %v1170_v47, %v1240_v63  ;;  %v1184_v4 = vmax.f32 %v1083_v51, %v1183_v59 }
  0xcf   : > { %v1190_v5 = vmax.f32 %v1084_v52, %v1189_v60  ;;  %v1242_v6 = vsel %vm346_vm5, %v1176_v61, %v1241_v3  ;;  %v1196_v39 = vmax.f32 %v1085_v55, %v1195_v0 }
  0xd0   : > { %v1202_v7 = vmax.f32 %v1086_v56, %v1201_v62  ;;  %v1243_v8 = vsel %vm349_vm6, %v1182_v1, %v1242_v6  ;;  %v1185_v9 = vrot.slane %v1184_v4, 2 }
  0xd1   : > { %v1191_v10 = vrot.slane %v1190_v5, 2  ;;  %v1251_v11 = vmax.f32 %v1208_v2, %v1243_v8  ;;  %v1197_v12 = vrot.slane %v1196_v39, 2 }
  0xd2   : > { %v1203_v13 = vrot.slane %v1202_v7, 2  ;;  %v1186_v14 = vmax.f32 %v1184_v4, %v1185_v9 }
  0xd3   : > { %v1192_v15 = vmax.f32 %v1190_v5, %v1191_v10  ;;  %1254 = vst [vmem:[#allocation3 + $0x6d] sm:$0xff] %v1251_v11  ;;  %v1198_v16 = vmax.f32 %v1196_v39, %v1197_v12 }
  0xd4   : > { %v1204_v17 = vmax.f32 %v1202_v7, %v1203_v13  ;;  %v1187_v18 = vrot.slane %v1186_v14, 1 }
  0xd5   : > { %v1193_v19 = vrot.slane %v1192_v15, 1  ;;  %v1199_v20 = vrot.slane %v1198_v16, 1 }
  0xd6   : > { %v1205_v21 = vrot.slane %v1204_v17, 1  ;;  %v1188_v22 = vmax.f32 %v1186_v14, %v1187_v18 }
  0xd7   : > { %v1194_v23 = vmax.f32 %v1192_v15, %v1193_v19  ;;  %v1200_v24 = vmax.f32 %v1198_v16, %v1199_v20 }
  0xd8   : > { %v1206_v25 = vmax.f32 %v1204_v17, %v1205_v21 }
  0xd9   : > { %v1244_v27 = vsel %vm331_vm0, %v1194_v23, %v1188_v22 }
  0xda   : > { %v1245_v28 = vsel %vm334_vm1, %v1200_v24, %v1244_v27 }
  0xdb   : > { %v1246_v29 = vsel %vm337_vm2, %v1206_v25, %v1245_v28 }
  0xdc   : > { %v1252_v30 = vmax.f32 %v1209_v26, %v1246_v29 }
  0xde   : > { %1255 = vst [vmem:[#allocation3 + $0x75] sm:$0xf] %v1252_v30 }
  0xdf PF: > { %p1256_p8 = scmp.lt.s32.totalorder %s5939_s9, 3  ;;  %p1257_p9 = scmp.gt.s32.totalorder %s5955_s3, 1 }
  0xe1   : > { %p1258_p10 = pnand %p1257_p9, %p1256_p8 }
  0xe2   : > { %vm1262_vm10 = vcmp.ge.s32.totalorder (!%p1258_p10), %v6037_v34, 1  ;;  %vm1263_vm11 = vcmp.lt.s32.totalorder (!%p1258_p10), %v6037_v34, 3  ;;  %v1265_v31 = vld [vmem:[#allocation2] sm:$0xff] (!%p1258_p10)  ;;  %v1266_v32 = vld [vmem:[#allocation2 + $0x8] sm:$0xff] (!%p1258_p10)  ;;  %v1267_v33 = vld [vmem:[#allocation2 + $0x10] sm:$0xff] (!%p1258_p10) }
  0xe3   : > { %1261 = sbr.rel (%p1258_p10) target bundleno = 277 (0x115), region = 74  ;;  %vm6318_vm12 = vmand (!%p1258_p10), %vm1262_vm10, %vm1263_vm11  ;;  %v1268_v36 = vld [vmem:[#allocation2 + $0x18] sm:$0xff] (!%p1258_p10)  ;;  %v1269_v37 = vld [vmem:[#allocation2 + $0x20] sm:$0xff] (!%p1258_p10) }
  0xe4   : > { %v1270_v38 = vld [vmem:[#allocation2 + $0x28] sm:$0xff] (!%p1258_p10)  ;;  %v1271_v40 = vld [vmem:[#allocation2 + $0x30] sm:$0xff] (!%p1258_p10)  ;;  %v1272_v41 = vld [vmem:[#allocation2 + $0x38] sm:$0xff] (!%p1258_p10)  ;;  %v1287_v42 = vsel (!%p1258_p10), %vm6318_vm12, %v1265_v31, -inf  ;;  %v1288_v43 = vsel (!%p1258_p10), %vm6318_vm12, %v1266_v32, -inf  ;;  %v1289_v44 = vsel (!%p1258_p10), %vm6318_vm12, %v1267_v33, -inf }
  0xe5   : > { %v1290_v45 = vsel (!%p1258_p10), %vm6318_vm12, %v1268_v36, -inf  ;;  %v1291_v46 = vsel (!%p1258_p10), %vm6318_vm12, %v1269_v37, -inf  ;;  %v1292_v47 = vsel (!%p1258_p10), %vm6318_vm12, %v1270_v38, -inf  ;;  %v1293_v48 = vsel (!%p1258_p10), %vm6318_vm12, %v1271_v40, -inf  ;;  %v1273_v24 = vld [vmem:[#allocation2 + $0x40] sm:$0xff] (!%p1258_p10)  ;;  %v1274_v25 = vld [vmem:[#allocation2 + $0x48] sm:$0xff] (!%p1258_p10) }
  0xe6   : > { %v1294_v49 = vsel (!%p1258_p10), %vm6318_vm12, %v1272_v41, -inf  ;;  %v1307_v50 = vrot.slane (!%p1258_p10), %v1287_v42, 4  ;;  %v1313_v51 = vrot.slane (!%p1258_p10), %v1288_v43, 4  ;;  %v1319_v52 = vrot.slane (!%p1258_p10), %v1289_v44, 4  ;;  %v1275_v30 = vld [vmem:[#allocation2 + $0x50] sm:$0xff] (!%p1258_p10)  ;;  %v1276_v31 = vld [vmem:[#allocation2 + $0x58] sm:$0xff] (!%p1258_p10) }
  0xe7   : > { %v1325_v53 = vrot.slane (!%p1258_p10), %v1290_v45, 4  ;;  %v1331_v54 = vrot.slane (!%p1258_p10), %v1291_v46, 4  ;;  %v1337_v55 = vrot.slane (!%p1258_p10), %v1292_v47, 4  ;;  %v1343_v56 = vrot.slane (!%p1258_p10), %v1293_v48, 4  ;;  %v1277_v32 = vld [vmem:[#allocation2 + $0x60] sm:$0xff] (!%p1258_p10)  ;;  %v1278_v40 = vld [vmem:[#allocation2 + $0x68] sm:$0xff] (!%p1258_p10) }
  0xe8   : > { %v1308_v57 = vmax.f32 (!%p1258_p10), %v1287_v42, %v1307_v50  ;;  %v1314_v58 = vmax.f32 (!%p1258_p10), %v1288_v43, %v1313_v51  ;;  %v1320_v59 = vmax.f32 (!%p1258_p10), %v1289_v44, %v1319_v52  ;;  %v1349_v60 = vrot.slane (!%p1258_p10), %v1294_v49, 4  ;;  %v1279_v41 = vld [vmem:[#allocation2 + $0x70] sm:$0xff] (!%p1258_p10)  ;;  %v1280_v42 = vld [vmem:[#allocation2 + $0x78] sm:$0xff] (!%p1258_p10) }
  0xe9   : > { %v1326_v61 = vmax.f32 (!%p1258_p10), %v1290_v45, %v1325_v53  ;;  %v1332_v63 = vmax.f32 (!%p1258_p10), %v1291_v46, %v1331_v54  ;;  %v1338_v0 = vmax.f32 (!%p1258_p10), %v1292_v47, %v1337_v55  ;;  %v1344_v62 = vmax.f32 (!%p1258_p10), %v1293_v48, %v1343_v56 }
  0xea   : > { %v1309_v1 = vrot.slane %v1308_v57, 2  ;;  %v1315_v2 = vrot.slane %v1314_v58, 2  ;;  %v1321_v3 = vrot.slane %v1320_v59, 2  ;;  %v1350_v4 = vmax.f32 %v1294_v49, %v1349_v60 }
  0xeb   : > { %v1327_v5 = vrot.slane %v1326_v61, 2  ;;  %v1333_v6 = vrot.slane %v1332_v63, 2  ;;  %v1339_v39 = vrot.slane %v1338_v0, 2  ;;  %v1345_v7 = vrot.slane %v1344_v62, 2 }
  0xec   : > { %v1310_v8 = vmax.f32 %v1308_v57, %v1309_v1  ;;  %v1316_v9 = vmax.f32 %v1314_v58, %v1315_v2  ;;  %v1322_v10 = vmax.f32 %v1320_v59, %v1321_v3  ;;  %v1351_v11 = vrot.slane %v1350_v4, 2  ;;  %v1427_v59 = vld [vmem:[#allocation3 + $0x79] sm:$0xff] }
  0xed   : > { %v1328_v12 = vmax.f32 %v1326_v61, %v1327_v5  ;;  %v1334_v13 = vmax.f32 %v1332_v63, %v1333_v6  ;;  %v1340_v14 = vmax.f32 %v1338_v0, %v1339_v39  ;;  %v1346_v15 = vmax.f32 %v1344_v62, %v1345_v7 }
  0xee   : > { %v1311_v16 = vrot.slane %v1310_v8, 1  ;;  %v1317_v17 = vrot.slane %v1316_v9, 1  ;;  %v1323_v18 = vrot.slane %v1322_v10, 1  ;;  %v1352_v19 = vmax.f32 %v1350_v4, %v1351_v11 }
  0xef   : > { %v1329_v20 = vrot.slane %v1328_v12, 1  ;;  %v1335_v21 = vrot.slane %v1334_v13, 1  ;;  %v1341_v22 = vrot.slane %v1340_v14, 1  ;;  %v1347_v23 = vrot.slane %v1346_v15, 1 }
  0xf0   : > { %v1312_v26 = vmax.f32 %v1310_v8, %v1311_v16  ;;  %v1318_v27 = vmax.f32 %v1316_v9, %v1317_v17  ;;  %v1324_v28 = vmax.f32 %v1322_v10, %v1323_v18  ;;  %v1353_v29 = vrot.slane %v1352_v19, 1 }
  0xf1   : > { %v1330_v33 = vmax.f32 %v1328_v12, %v1329_v20  ;;  %v1336_v36 = vmax.f32 %v1334_v13, %v1335_v21  ;;  %v1342_v37 = vmax.f32 %v1340_v14, %v1341_v22  ;;  %v1348_v38 = vmax.f32 %v1346_v15, %v1347_v23 }
  0xf2   : > { %v1354_v43 = vmax.f32 %v1352_v19, %v1353_v29  ;;  %v1450_v44 = vsel %vm331_vm0, %v1318_v27, %v1312_v26  ;;  %v1295_v45 = vsel %vm6318_vm12, %v1273_v24, -inf  ;;  %v1296_v46 = vsel %vm6318_vm12, %v1274_v25, -inf }
  0xf3   : > { %v1451_v47 = vsel %vm334_vm1, %v1324_v28, %v1450_v44  ;;  %v1297_v48 = vsel %vm6318_vm12, %v1275_v30, -inf  ;;  %v1298_v49 = vsel %vm6318_vm12, %v1276_v31, -inf  ;;  %v1299_v50 = vsel %vm6318_vm12, %v1277_v32, -inf  ;;  %v1281_v31 = vld [vmem:[#allocation2 + $0x80] sm:$0xff]  ;;  %v1282_v32 = vld [vmem:[#allocation2 + $0x88] sm:$0xff] }
  0xf4   : > { %v1452_v51 = vsel %vm337_vm2, %v1330_v33, %v1451_v47  ;;  %v1300_v52 = vsel %vm6318_vm12, %v1278_v40, -inf  ;;  %v1301_v53 = vsel %vm6318_vm12, %v1279_v41, -inf  ;;  %v1302_v54 = vsel %vm6318_vm12, %v1280_v42, -inf  ;;  %v1283_v40 = vld [vmem:[#allocation2 + $0x90] sm:$0xff]  ;;  %v1284_v41 = vld [vmem:[#allocation2 + $0x98] sm:$0xff] }
  0xf5   : > { %v1453_v55 = vsel %vm340_vm3, %v1336_v36, %v1452_v51  ;;  %v1355_v56 = vrot.slane %v1295_v45, 4  ;;  %v1361_v57 = vrot.slane %v1296_v46, 4  ;;  %v1367_v58 = vrot.slane %v1297_v48, 4 }
  0xf6   : > { %v1454_v60 = vsel %vm343_vm4, %v1342_v37, %v1453_v55  ;;  %v1373_v61 = vrot.slane %v1298_v49, 4  ;;  %v1379_v63 = vrot.slane %v1299_v50, 4  ;;  %v1385_v0 = vrot.slane %v1300_v52, 4 }
  0xf7   : > { %v1455_v62 = vsel %vm346_vm5, %v1348_v38, %v1454_v60  ;;  %v1356_v1 = vmax.f32 %v1295_v45, %v1355_v56  ;;  %v1362_v2 = vmax.f32 %v1296_v46, %v1361_v57  ;;  %v1368_v3 = vmax.f32 %v1297_v48, %v1367_v58 }
  0xf8   : > { %v1456_v4 = vsel %vm349_vm6, %v1354_v43, %v1455_v62  ;;  %v1374_v5 = vmax.f32 %v1298_v49, %v1373_v61  ;;  %v1380_v6 = vmax.f32 %v1299_v50, %v1379_v63  ;;  %v1386_v39 = vmax.f32 %v1300_v52, %v1385_v0  ;;  %v1428_v0 = vld [vmem:[#allocation3 + $0x81] sm:$0xff] }
  0xf9   : > { %v1470_v7 = vmax.f32 %v1427_v59, %v1456_v4  ;;  %v1357_v8 = vrot.slane %v1356_v1, 2  ;;  %v1363_v9 = vrot.slane %v1362_v2, 2  ;;  %v1369_v10 = vrot.slane %v1368_v3, 2 }
  0xfa   : > { %v1375_v11 = vrot.slane %v1374_v5, 2  ;;  %v1381_v12 = vrot.slane %v1380_v6, 2  ;;  %v1387_v13 = vrot.slane %v1386_v39, 2  ;;  %v1391_v14 = vrot.slane %v1301_v53, 4 }
  0xfb   : > { %1473 = vst [vmem:[#allocation3 + $0x79] sm:$0xff] %v1470_v7  ;;  %v1358_v15 = vmax.f32 %v1356_v1, %v1357_v8  ;;  %v1364_v16 = vmax.f32 %v1362_v2, %v1363_v9  ;;  %v1370_v17 = vmax.f32 %v1368_v3, %v1369_v10  ;;  %v1397_v18 = vrot.slane %v1302_v54, 4 }
  0xfc   : > { %v1376_v19 = vmax.f32 %v1374_v5, %v1375_v11  ;;  %v1382_v20 = vmax.f32 %v1380_v6, %v1381_v12  ;;  %v1388_v21 = vmax.f32 %v1386_v39, %v1387_v13  ;;  %v1392_v22 = vmax.f32 %v1301_v53, %v1391_v14 }
  0xfd   : > { %v1359_v23 = vrot.slane %v1358_v15, 1  ;;  %v1365_v24 = vrot.slane %v1364_v16, 1  ;;  %v1371_v25 = vrot.slane %v1370_v17, 1  ;;  %v1398_v26 = vmax.f32 %v1302_v54, %v1397_v18 }
  0xfe   : > { %v1377_v27 = vrot.slane %v1376_v19, 1  ;;  %v1383_v28 = vrot.slane %v1382_v20, 1  ;;  %v1389_v29 = vrot.slane %v1388_v21, 1  ;;  %v1393_v30 = vrot.slane %v1392_v22, 2 }
  0xff   : > { %v1360_v33 = vmax.f32 %v1358_v15, %v1359_v23  ;;  %v1366_v36 = vmax.f32 %v1364_v16, %v1365_v24  ;;  %v1372_v37 = vmax.f32 %v1370_v17, %v1371_v25  ;;  %v1399_v38 = vrot.slane %v1398_v26, 2 }
 0x100   : > { %v1378_v42 = vmax.f32 %v1376_v19, %v1377_v27  ;;  %v1384_v43 = vmax.f32 %v1382_v20, %v1383_v28  ;;  %v1390_v44 = vmax.f32 %v1388_v21, %v1389_v29  ;;  %v1394_v45 = vmax.f32 %v1392_v22, %v1393_v30  ;;  %v1429_v22 = vld [vmem:[#allocation3 + $0x89] sm:$0xf] }
 0x101   : > { %v1400_v46 = vmax.f32 %v1398_v26, %v1399_v38  ;;  %v1457_v47 = vsel %vm331_vm0, %v1366_v36, %v1360_v33  ;;  %v1303_v48 = vsel %vm6318_vm12, %v1281_v31, -inf  ;;  %v1304_v49 = vsel %vm6318_vm12, %v1282_v32, -inf }
 0x102   : > { %v1395_v50 = vrot.slane %v1394_v45, 1  ;;  %v1458_v51 = vsel %vm334_vm1, %v1372_v37, %v1457_v47  ;;  %v1305_v52 = vsel %vm6318_vm12, %v1283_v40, -inf  ;;  %v1306_v53 = vsel %vm6318_vm12, %v1284_v41, -inf }
 0x103   : > { %v1401_v54 = vrot.slane %v1400_v46, 1  ;;  %v1459_v55 = vsel %vm337_vm2, %v1378_v42, %v1458_v51  ;;  %v1403_v56 = vrot.slane %v1303_v48, 4  ;;  %v1409_v57 = vrot.slane %v1304_v49, 4 }
 0x104   : > { %v1396_v58 = vmax.f32 %v1394_v45, %v1395_v50  ;;  %v1460_v59 = vsel %vm340_vm3, %v1384_v43, %v1459_v55  ;;  %v1415_v60 = vrot.slane %v1305_v52, 4  ;;  %v1421_v61 = vrot.slane %v1306_v53, 4 }
 0x105   : > { %v1402_v63 = vmax.f32 %v1400_v46, %v1401_v54  ;;  %v1461_v62 = vsel %vm343_vm4, %v1390_v44, %v1460_v59  ;;  %v1404_v1 = vmax.f32 %v1303_v48, %v1403_v56  ;;  %v1410_v2 = vmax.f32 %v1304_v49, %v1409_v57 }
 0x106   : > { %v1462_v3 = vsel %vm346_vm5, %v1396_v58, %v1461_v62  ;;  %v1416_v35 = vmax.f32 %v1305_v52, %v1415_v60  ;;  %v1422_v4 = vmax.f32 %v1306_v53, %v1421_v61 }
 0x107   : > { %v1463_v5 = vsel %vm349_vm6, %v1402_v63, %v1462_v3  ;;  %v1405_v6 = vrot.slane %v1404_v1, 2  ;;  %v1411_v39 = vrot.slane %v1410_v2, 2 }
 0x108   : > { %v1471_v7 = vmax.f32 %v1428_v0, %v1463_v5  ;;  %v1417_v8 = vrot.slane %v1416_v35, 2  ;;  %v1423_v9 = vrot.slane %v1422_v4, 2 }
 0x109   : > { %v1406_v10 = vmax.f32 %v1404_v1, %v1405_v6  ;;  %v1412_v11 = vmax.f32 %v1410_v2, %v1411_v39 }
 0x10a   : > { %1474 = vst [vmem:[#allocation3 + $0x81] sm:$0xff] %v1471_v7  ;;  %v1418_v12 = vmax.f32 %v1416_v35, %v1417_v8  ;;  %v1424_v13 = vmax.f32 %v1422_v4, %v1423_v9 }
 0x10b   : > { %v1407_v14 = vrot.slane %v1406_v10, 1  ;;  %v1413_v15 = vrot.slane %v1412_v11, 1 }
 0x10c   : > { %v1419_v16 = vrot.slane %v1418_v12, 1  ;;  %v1425_v17 = vrot.slane %v1424_v13, 1 }
 0x10d   : > { %v1408_v18 = vmax.f32 %v1406_v10, %v1407_v14  ;;  %v1414_v19 = vmax.f32 %v1412_v11, %v1413_v15 }
 0x10e   : > { %v1420_v20 = vmax.f32 %v1418_v12, %v1419_v16  ;;  %v1426_v21 = vmax.f32 %v1424_v13, %v1425_v17 }
 0x10f   : > { %v1464_v23 = vsel %vm331_vm0, %v1414_v19, %v1408_v18 }
 0x110   : > { %v1465_v24 = vsel %vm334_vm1, %v1420_v20, %v1464_v23 }
 0x111   : > { %v1466_v25 = vsel %vm337_vm2, %v1426_v21, %v1465_v24 }
 0x112   : > { %v1472_v26 = vmax.f32 %v1429_v22, %v1466_v25 }
 0x114   : > { %1475 = vst [vmem:[#allocation3 + $0x89] sm:$0xf] %v1472_v26 }
 0x115 PF: > { %p1476_p11 = scmp.lt.s32.totalorder %s5939_s9, 4  ;;  %p1477_p13 = scmp.gt.s32.totalorder %s5955_s3, 2 }
 0x117   : > { %p6381_p0 = pnand %p1477_p13, %p1476_p11 }
 0x118   : > { %vm1482_vm13 = vcmp.ge.s32.totalorder (!%p6381_p0), %v6037_v34, 2  ;;  %vm1483_vm14 = vcmp.lt.s32.totalorder (!%p6381_p0), %v6037_v34, 4  ;;  %v1485_v27 = vld [vmem:[#allocation2] sm:$0xff] (!%p6381_p0)  ;;  %v1486_v28 = vld [vmem:[#allocation2 + $0x8] sm:$0xff] (!%p6381_p0)  ;;  %v1487_v29 = vld [vmem:[#allocation2 + $0x10] sm:$0xff] (!%p6381_p0) }
 0x119   : > { %1481 = sbr.rel (%p6381_p0) target bundleno = 331 (0x14b), region = 78  ;;  %vm6389_vm15 = vmand (!%p6381_p0), %vm1482_vm13, %vm1483_vm14  ;;  %v1488_v31 = vld [vmem:[#allocation2 + $0x18] sm:$0xff] (!%p6381_p0)  ;;  %v1489_v32 = vld [vmem:[#allocation2 + $0x20] sm:$0xff] (!%p6381_p0) }
 0x11a   : > { %v1490_v33 = vld [vmem:[#allocation2 + $0x28] sm:$0xff] (!%p6381_p0)  ;;  %v1491_v36 = vld [vmem:[#allocation2 + $0x30] sm:$0xff] (!%p6381_p0)  ;;  %v1492_v37 = vld [vmem:[#allocation2 + $0x38] sm:$0xff] (!%p6381_p0)  ;;  %v1507_v38 = vsel (!%p6381_p0), %vm6389_vm15, %v1485_v27, -inf  ;;  %v1508_v40 = vsel (!%p6381_p0), %vm6389_vm15, %v1486_v28, -inf  ;;  %v1509_v41 = vsel (!%p6381_p0), %vm6389_vm15, %v1487_v29, -inf }
 0x11b   : > { %v1510_v42 = vsel (!%p6381_p0), %vm6389_vm15, %v1488_v31, -inf  ;;  %v1511_v43 = vsel (!%p6381_p0), %vm6389_vm15, %v1489_v32, -inf  ;;  %v1512_v44 = vsel (!%p6381_p0), %vm6389_vm15, %v1490_v33, -inf  ;;  %v1513_v45 = vsel (!%p6381_p0), %vm6389_vm15, %v1491_v36, -inf  ;;  %v1493_v20 = vld [vmem:[#allocation2 + $0x40] sm:$0xff] (!%p6381_p0)  ;;  %v1494_v21 = vld [vmem:[#allocation2 + $0x48] sm:$0xff] (!%p6381_p0) }
 0x11c   : > { %v1514_v46 = vsel (!%p6381_p0), %vm6389_vm15, %v1492_v37, -inf  ;;  %v1527_v47 = vrot.slane (!%p6381_p0), %v1507_v38, 4  ;;  %v1533_v48 = vrot.slane (!%p6381_p0), %v1508_v40, 4  ;;  %v1539_v49 = vrot.slane (!%p6381_p0), %v1509_v41, 4  ;;  %v1495_v26 = vld [vmem:[#allocation2 + $0x50] sm:$0xff] (!%p6381_p0)  ;;  %v1496_v27 = vld [vmem:[#allocation2 + $0x58] sm:$0xff] (!%p6381_p0) }
 0x11d   : > { %v1545_v50 = vrot.slane (!%p6381_p0), %v1510_v42, 4  ;;  %v1551_v51 = vrot.slane (!%p6381_p0), %v1511_v43, 4  ;;  %v1557_v52 = vrot.slane (!%p6381_p0), %v1512_v44, 4  ;;  %v1563_v53 = vrot.slane (!%p6381_p0), %v1513_v45, 4  ;;  %v1497_v28 = vld [vmem:[#allocation2 + $0x60] sm:$0xff] (!%p6381_p0)  ;;  %v1498_v36 = vld [vmem:[#allocation2 + $0x68] sm:$0xff] (!%p6381_p0) }
 0x11e   : > { %v1528_v54 = vmax.f32 (!%p6381_p0), %v1507_v38, %v1527_v47  ;;  %v1534_v55 = vmax.f32 (!%p6381_p0), %v1508_v40, %v1533_v48  ;;  %v1540_v56 = vmax.f32 (!%p6381_p0), %v1509_v41, %v1539_v49  ;;  %v1569_v57 = vrot.slane (!%p6381_p0), %v1514_v46, 4  ;;  %v1499_v37 = vld [vmem:[#allocation2 + $0x70] sm:$0xff] (!%p6381_p0)  ;;  %v1500_v38 = vld [vmem:[#allocation2 + $0x78] sm:$0xff] (!%p6381_p0) }
 0x11f   : > { %v1546_v58 = vmax.f32 (!%p6381_p0), %v1510_v42, %v1545_v50  ;;  %v1552_v59 = vmax.f32 (!%p6381_p0), %v1511_v43, %v1551_v51  ;;  %v1558_v60 = vmax.f32 (!%p6381_p0), %v1512_v44, %v1557_v52  ;;  %v1564_v61 = vmax.f32 (!%p6381_p0), %v1513_v45, %v1563_v53 }
 0x120   : > { %v1529_v63 = vrot.slane %v1528_v54, 2  ;;  %v1535_v0 = vrot.slane %v1534_v55, 2  ;;  %v1541_v62 = vrot.slane %v1540_v56, 2  ;;  %v1570_v1 = vmax.f32 %v1514_v46, %v1569_v57 }
 0x121   : > { %v1547_v2 = vrot.slane %v1546_v58, 2  ;;  %v1553_v3 = vrot.slane %v1552_v59, 2  ;;  %v1559_v35 = vrot.slane %v1558_v60, 2  ;;  %v1565_v4 = vrot.slane %v1564_v61, 2 }
 0x122   : > { %v1530_v5 = vmax.f32 %v1528_v54, %v1529_v63  ;;  %v1536_v6 = vmax.f32 %v1534_v55, %v1535_v0  ;;  %v1542_v39 = vmax.f32 %v1540_v56, %v1541_v62  ;;  %v1571_v7 = vrot.slane %v1570_v1, 2  ;;  %v1647_v56 = vld [vmem:[#allocation3 + $0x8d] sm:$0xff] }
 0x123   : > { %v1548_v8 = vmax.f32 %v1546_v58, %v1547_v2  ;;  %v1554_v9 = vmax.f32 %v1552_v59, %v1553_v3  ;;  %v1560_v10 = vmax.f32 %v1558_v60, %v1559_v35  ;;  %v1566_v11 = vmax.f32 %v1564_v61, %v1565_v4 }
 0x124   : > { %v1531_v12 = vrot.slane %v1530_v5, 1  ;;  %v1537_v13 = vrot.slane %v1536_v6, 1  ;;  %v1543_v14 = vrot.slane %v1542_v39, 1  ;;  %v1572_v15 = vmax.f32 %v1570_v1, %v1571_v7 }
 0x125   : > { %v1549_v16 = vrot.slane %v1548_v8, 1  ;;  %v1555_v17 = vrot.slane %v1554_v9, 1  ;;  %v1561_v18 = vrot.slane %v1560_v10, 1  ;;  %v1567_v19 = vrot.slane %v1566_v11, 1 }
 0x126   : > { %v1532_v22 = vmax.f32 %v1530_v5, %v1531_v12  ;;  %v1538_v23 = vmax.f32 %v1536_v6, %v1537_v13  ;;  %v1544_v24 = vmax.f32 %v1542_v39, %v1543_v14  ;;  %v1573_v25 = vrot.slane %v1572_v15, 1 }
 0x127   : > { %v1550_v29 = vmax.f32 %v1548_v8, %v1549_v16  ;;  %v1556_v31 = vmax.f32 %v1554_v9, %v1555_v17  ;;  %v1562_v32 = vmax.f32 %v1560_v10, %v1561_v18  ;;  %v1568_v33 = vmax.f32 %v1566_v11, %v1567_v19 }
 0x128   : > { %v1574_v40 = vmax.f32 %v1572_v15, %v1573_v25  ;;  %v1670_v41 = vsel %vm331_vm0, %v1538_v23, %v1532_v22  ;;  %v1515_v42 = vsel %vm6389_vm15, %v1493_v20, -inf  ;;  %v1516_v43 = vsel %vm6389_vm15, %v1494_v21, -inf }
 0x129   : > { %v1671_v44 = vsel %vm334_vm1, %v1544_v24, %v1670_v41  ;;  %v1517_v45 = vsel %vm6389_vm15, %v1495_v26, -inf  ;;  %v1518_v46 = vsel %vm6389_vm15, %v1496_v27, -inf  ;;  %v1519_v47 = vsel %vm6389_vm15, %v1497_v28, -inf  ;;  %v1501_v27 = vld [vmem:[#allocation2 + $0x80] sm:$0xff]  ;;  %v1502_v28 = vld [vmem:[#allocation2 + $0x88] sm:$0xff] }
 0x12a   : > { %v1672_v48 = vsel %vm337_vm2, %v1550_v29, %v1671_v44  ;;  %v1520_v49 = vsel %vm6389_vm15, %v1498_v36, -inf  ;;  %v1521_v50 = vsel %vm6389_vm15, %v1499_v37, -inf  ;;  %v1522_v51 = vsel %vm6389_vm15, %v1500_v38, -inf  ;;  %v1503_v36 = vld [vmem:[#allocation2 + $0x90] sm:$0xff]  ;;  %v1504_v37 = vld [vmem:[#allocation2 + $0x98] sm:$0xff] }
 0x12b   : > { %v1673_v52 = vsel %vm340_vm3, %v1556_v31, %v1672_v48  ;;  %v1575_v53 = vrot.slane %v1515_v42, 4  ;;  %v1581_v54 = vrot.slane %v1516_v43, 4  ;;  %v1587_v55 = vrot.slane %v1517_v45, 4 }
 0x12c   : > { %v1674_v57 = vsel %vm343_vm4, %v1562_v32, %v1673_v52  ;;  %v1593_v58 = vrot.slane %v1518_v46, 4  ;;  %v1599_v59 = vrot.slane %v1519_v47, 4  ;;  %v1605_v60 = vrot.slane %v1520_v49, 4 }
 0x12d   : > { %v1675_v61 = vsel %vm346_vm5, %v1568_v33, %v1674_v57  ;;  %v1576_v63 = vmax.f32 %v1515_v42, %v1575_v53  ;;  %v1582_v0 = vmax.f32 %v1516_v43, %v1581_v54  ;;  %v1588_v62 = vmax.f32 %v1517_v45, %v1587_v55 }
 0x12e   : > { %v1676_v1 = vsel %vm349_vm6, %v1574_v40, %v1675_v61  ;;  %v1594_v2 = vmax.f32 %v1518_v46, %v1593_v58  ;;  %v1600_v3 = vmax.f32 %v1519_v47, %v1599_v59  ;;  %v1606_v35 = vmax.f32 %v1520_v49, %v1605_v60  ;;  %v1648_v60 = vld [vmem:[#allocation3 + $0x95] sm:$0xff] }
 0x12f   : > { %v1690_v4 = vmax.f32 %v1647_v56, %v1676_v1  ;;  %v1577_v5 = vrot.slane %v1576_v63, 2  ;;  %v1583_v6 = vrot.slane %v1582_v0, 2  ;;  %v1589_v39 = vrot.slane %v1588_v62, 2 }
 0x130   : > { %v1595_v7 = vrot.slane %v1594_v2, 2  ;;  %v1601_v8 = vrot.slane %v1600_v3, 2  ;;  %v1607_v9 = vrot.slane %v1606_v35, 2  ;;  %v1611_v10 = vrot.slane %v1521_v50, 4 }
 0x131   : > { %1693 = vst [vmem:[#allocation3 + $0x8d] sm:$0xff] %v1690_v4  ;;  %v1578_v11 = vmax.f32 %v1576_v63, %v1577_v5  ;;  %v1584_v12 = vmax.f32 %v1582_v0, %v1583_v6  ;;  %v1590_v13 = vmax.f32 %v1588_v62, %v1589_v39  ;;  %v1617_v14 = vrot.slane %v1522_v51, 4 }
 0x132   : > { %v1596_v15 = vmax.f32 %v1594_v2, %v1595_v7  ;;  %v1602_v16 = vmax.f32 %v1600_v3, %v1601_v8  ;;  %v1608_v17 = vmax.f32 %v1606_v35, %v1607_v9  ;;  %v1612_v18 = vmax.f32 %v1521_v50, %v1611_v10 }
 0x133   : > { %v1579_v19 = vrot.slane %v1578_v11, 1  ;;  %v1585_v20 = vrot.slane %v1584_v12, 1  ;;  %v1591_v21 = vrot.slane %v1590_v13, 1  ;;  %v1618_v22 = vmax.f32 %v1522_v51, %v1617_v14 }
 0x134   : > { %v1597_v23 = vrot.slane %v1596_v15, 1  ;;  %v1603_v24 = vrot.slane %v1602_v16, 1  ;;  %v1609_v25 = vrot.slane %v1608_v17, 1  ;;  %v1613_v26 = vrot.slane %v1612_v18, 2 }
 0x135   : > { %v1580_v29 = vmax.f32 %v1578_v11, %v1579_v19  ;;  %v1586_v31 = vmax.f32 %v1584_v12, %v1585_v20  ;;  %v1592_v32 = vmax.f32 %v1590_v13, %v1591_v21  ;;  %v1619_v33 = vrot.slane %v1618_v22, 2 }
 0x136   : > { %v1598_v38 = vmax.f32 %v1596_v15, %v1597_v23  ;;  %v1604_v40 = vmax.f32 %v1602_v16, %v1603_v24  ;;  %v1610_v41 = vmax.f32 %v1608_v17, %v1609_v25  ;;  %v1614_v42 = vmax.f32 %v1612_v18, %v1613_v26  ;;  %v1649_v18 = vld [vmem:[#allocation3 + $0x9d] sm:$0xf] }
 0x137   : > { %v1620_v43 = vmax.f32 %v1618_v22, %v1619_v33  ;;  %v1677_v44 = vsel %vm331_vm0, %v1586_v31, %v1580_v29  ;;  %v1523_v45 = vsel %vm6389_vm15, %v1501_v27, -inf  ;;  %v1524_v46 = vsel %vm6389_vm15, %v1502_v28, -inf }
 0x138   : > { %v1615_v47 = vrot.slane %v1614_v42, 1  ;;  %v1678_v48 = vsel %vm334_vm1, %v1592_v32, %v1677_v44  ;;  %v1525_v49 = vsel %vm6389_vm15, %v1503_v36, -inf  ;;  %v1526_v50 = vsel %vm6389_vm15, %v1504_v37, -inf }
 0x139   : > { %v1621_v51 = vrot.slane %v1620_v43, 1  ;;  %v1679_v52 = vsel %vm337_vm2, %v1598_v38, %v1678_v48  ;;  %v1623_v53 = vrot.slane %v1523_v45, 4  ;;  %v1629_v54 = vrot.slane %v1524_v46, 4 }
 0x13a   : > { %v1616_v55 = vmax.f32 %v1614_v42, %v1615_v47  ;;  %v1680_v56 = vsel %vm340_vm3, %v1604_v40, %v1679_v52  ;;  %v1635_v57 = vrot.slane %v1525_v49, 4  ;;  %v1641_v58 = vrot.slane %v1526_v50, 4 }
 0x13b   : > { %v1622_v59 = vmax.f32 %v1620_v43, %v1621_v51  ;;  %v1681_v61 = vsel %vm343_vm4, %v1610_v41, %v1680_v56  ;;  %v1624_v63 = vmax.f32 %v1523_v45, %v1623_v53  ;;  %v1630_v0 = vmax.f32 %v1524_v46, %v1629_v54 }
 0x13c   : > { %v1682_v62 = vsel %vm346_vm5, %v1616_v55, %v1681_v61  ;;  %v1636_v30 = vmax.f32 %v1525_v49, %v1635_v57  ;;  %v1642_v1 = vmax.f32 %v1526_v50, %v1641_v58 }
 0x13d   : > { %v1683_v2 = vsel %vm349_vm6, %v1622_v59, %v1682_v62  ;;  %v1625_v3 = vrot.slane %v1624_v63, 2  ;;  %v1631_v35 = vrot.slane %v1630_v0, 2 }
 0x13e   : > { %v1691_v4 = vmax.f32 %v1648_v60, %v1683_v2  ;;  %v1637_v5 = vrot.slane %v1636_v30, 2  ;;  %v1643_v6 = vrot.slane %v1642_v1, 2 }
 0x13f   : > { %v1626_v39 = vmax.f32 %v1624_v63, %v1625_v3  ;;  %v1632_v7 = vmax.f32 %v1630_v0, %v1631_v35 }
 0x140   : > { %1694 = vst [vmem:[#allocation3 + $0x95] sm:$0xff] %v1691_v4  ;;  %v1638_v8 = vmax.f32 %v1636_v30, %v1637_v5  ;;  %v1644_v9 = vmax.f32 %v1642_v1, %v1643_v6 }
 0x141   : > { %v1627_v10 = vrot.slane %v1626_v39, 1  ;;  %v1633_v11 = vrot.slane %v1632_v7, 1 }
 0x142   : > { %v1639_v12 = vrot.slane %v1638_v8, 1  ;;  %v1645_v13 = vrot.slane %v1644_v9, 1 }
 0x143   : > { %v1628_v14 = vmax.f32 %v1626_v39, %v1627_v10  ;;  %v1634_v15 = vmax.f32 %v1632_v7, %v1633_v11 }
 0x144   : > { %v1640_v16 = vmax.f32 %v1638_v8, %v1639_v12  ;;  %v1646_v17 = vmax.f32 %v1644_v9, %v1645_v13 }
 0x145   : > { %v1684_v19 = vsel %vm331_vm0, %v1634_v15, %v1628_v14 }
 0x146   : > { %v1685_v20 = vsel %vm334_vm1, %v1640_v16, %v1684_v19 }
 0x147   : > { %v1686_v21 = vsel %vm337_vm2, %v1646_v17, %v1685_v20 }
 0x148   : > { %v1692_v22 = vmax.f32 %v1649_v18, %v1686_v21 }
 0x14a   : > { %1695 = vst [vmem:[#allocation3 + $0x9d] sm:$0xf] %v1692_v22 }
 0x14b PF: > { %p1696_p1 = scmp.lt.s32.totalorder %s5939_s9, 5  ;;  %p1697_p2 = scmp.gt.s32.totalorder %s5955_s3, 3 }
 0x14d   : > { %p1698_p3 = pnand %p1697_p2, %p1696_p1 }
 0x14e   : > { %vm1702_vm7 = vcmp.ge.s32.totalorder (!%p1698_p3), %v6037_v34, 3  ;;  %vm1703_vm8 = vcmp.lt.s32.totalorder (!%p1698_p3), %v6037_v34, 5  ;;  %v1705_v23 = vld [vmem:[#allocation2] sm:$0xff] (!%p1698_p3)  ;;  %v1706_v24 = vld [vmem:[#allocation2 + $0x8] sm:$0xff] (!%p1698_p3)  ;;  %v1707_v25 = vld [vmem:[#allocation2 + $0x10] sm:$0xff] (!%p1698_p3) }
 0x14f   : > { %1701 = sbr.rel (%p1698_p3) target bundleno = 385 (0x181), region = 82  ;;  %vm6454_vm9 = vmand (!%p1698_p3), %vm1702_vm7, %vm1703_vm8  ;;  %v1708_v27 = vld [vmem:[#allocation2 + $0x18] sm:$0xff] (!%p1698_p3)  ;;  %v1709_v28 = vld [vmem:[#allocation2 + $0x20] sm:$0xff] (!%p1698_p3) }
 0x150   : > { %v1710_v29 = vld [vmem:[#allocation2 + $0x28] sm:$0xff] (!%p1698_p3)  ;;  %v1711_v31 = vld [vmem:[#allocation2 + $0x30] sm:$0xff] (!%p1698_p3)  ;;  %v1712_v32 = vld [vmem:[#allocation2 + $0x38] sm:$0xff] (!%p1698_p3)  ;;  %v1727_v33 = vsel (!%p1698_p3), %vm6454_vm9, %v1705_v23, -inf  ;;  %v1728_v36 = vsel (!%p1698_p3), %vm6454_vm9, %v1706_v24, -inf  ;;  %v1729_v37 = vsel (!%p1698_p3), %vm6454_vm9, %v1707_v25, -inf }
 0x151   : > { %v1730_v38 = vsel (!%p1698_p3), %vm6454_vm9, %v1708_v27, -inf  ;;  %v1731_v40 = vsel (!%p1698_p3), %vm6454_vm9, %v1709_v28, -inf  ;;  %v1732_v41 = vsel (!%p1698_p3), %vm6454_vm9, %v1710_v29, -inf  ;;  %v1733_v42 = vsel (!%p1698_p3), %vm6454_vm9, %v1711_v31, -inf  ;;  %v1713_v16 = vld [vmem:[#allocation2 + $0x40] sm:$0xff] (!%p1698_p3)  ;;  %v1714_v17 = vld [vmem:[#allocation2 + $0x48] sm:$0xff] (!%p1698_p3) }
 0x152   : > { %v1734_v43 = vsel (!%p1698_p3), %vm6454_vm9, %v1712_v32, -inf  ;;  %v1747_v44 = vrot.slane (!%p1698_p3), %v1727_v33, 4  ;;  %v1753_v45 = vrot.slane (!%p1698_p3), %v1728_v36, 4  ;;  %v1759_v46 = vrot.slane (!%p1698_p3), %v1729_v37, 4  ;;  %v1715_v22 = vld [vmem:[#allocation2 + $0x50] sm:$0xff] (!%p1698_p3)  ;;  %v1716_v23 = vld [vmem:[#allocation2 + $0x58] sm:$0xff] (!%p1698_p3) }
 0x153   : > { %v1765_v47 = vrot.slane (!%p1698_p3), %v1730_v38, 4  ;;  %v1771_v48 = vrot.slane (!%p1698_p3), %v1731_v40, 4  ;;  %v1777_v49 = vrot.slane (!%p1698_p3), %v1732_v41, 4  ;;  %v1783_v50 = vrot.slane (!%p1698_p3), %v1733_v42, 4  ;;  %v1717_v24 = vld [vmem:[#allocation2 + $0x60] sm:$0xff] (!%p1698_p3)  ;;  %v1718_v31 = vld [vmem:[#allocation2 + $0x68] sm:$0xff] (!%p1698_p3) }
 0x154   : > { %v1748_v51 = vmax.f32 (!%p1698_p3), %v1727_v33, %v1747_v44  ;;  %v1754_v52 = vmax.f32 (!%p1698_p3), %v1728_v36, %v1753_v45  ;;  %v1760_v53 = vmax.f32 (!%p1698_p3), %v1729_v37, %v1759_v46  ;;  %v1789_v54 = vrot.slane (!%p1698_p3), %v1734_v43, 4  ;;  %v1719_v32 = vld [vmem:[#allocation2 + $0x70] sm:$0xff] (!%p1698_p3)  ;;  %v1720_v33 = vld [vmem:[#allocation2 + $0x78] sm:$0xff] (!%p1698_p3) }
 0x155   : > { %v1766_v55 = vmax.f32 (!%p1698_p3), %v1730_v38, %v1765_v47  ;;  %v1772_v56 = vmax.f32 (!%p1698_p3), %v1731_v40, %v1771_v48  ;;  %v1778_v57 = vmax.f32 (!%p1698_p3), %v1732_v41, %v1777_v49  ;;  %v1784_v58 = vmax.f32 (!%p1698_p3), %v1733_v42, %v1783_v50 }
 0x156   : > { %v1749_v59 = vrot.slane %v1748_v51, 2  ;;  %v1755_v60 = vrot.slane %v1754_v52, 2  ;;  %v1761_v61 = vrot.slane %v1760_v53, 2  ;;  %v1790_v63 = vmax.f32 %v1734_v43, %v1789_v54 }
 0x157   : > { %v1767_v0 = vrot.slane %v1766_v55, 2  ;;  %v1773_v62 = vrot.slane %v1772_v56, 2  ;;  %v1779_v30 = vrot.slane %v1778_v57, 2  ;;  %v1785_v1 = vrot.slane %v1784_v58, 2 }
 0x158   : > { %v1750_v2 = vmax.f32 %v1748_v51, %v1749_v59  ;;  %v1756_v3 = vmax.f32 %v1754_v52, %v1755_v60  ;;  %v1762_v35 = vmax.f32 %v1760_v53, %v1761_v61  ;;  %v1791_v4 = vrot.slane %v1790_v63, 2  ;;  %v1867_v53 = vld [vmem:[#allocation3 + $0xa1] sm:$0xff] }
 0x159   : > { %v1768_v5 = vmax.f32 %v1766_v55, %v1767_v0  ;;  %v1774_v6 = vmax.f32 %v1772_v56, %v1773_v62  ;;  %v1780_v39 = vmax.f32 %v1778_v57, %v1779_v30  ;;  %v1786_v7 = vmax.f32 %v1784_v58, %v1785_v1 }
 0x15a   : > { %v1751_v8 = vrot.slane %v1750_v2, 1  ;;  %v1757_v9 = vrot.slane %v1756_v3, 1  ;;  %v1763_v10 = vrot.slane %v1762_v35, 1  ;;  %v1792_v11 = vmax.f32 %v1790_v63, %v1791_v4 }
 0x15b   : > { %v1769_v12 = vrot.slane %v1768_v5, 1  ;;  %v1775_v13 = vrot.slane %v1774_v6, 1  ;;  %v1781_v14 = vrot.slane %v1780_v39, 1  ;;  %v1787_v15 = vrot.slane %v1786_v7, 1 }
 0x15c   : > { %v1752_v18 = vmax.f32 %v1750_v2, %v1751_v8  ;;  %v1758_v19 = vmax.f32 %v1756_v3, %v1757_v9  ;;  %v1764_v20 = vmax.f32 %v1762_v35, %v1763_v10  ;;  %v1793_v21 = vrot.slane %v1792_v11, 1 }
 0x15d   : > { %v1770_v25 = vmax.f32 %v1768_v5, %v1769_v12  ;;  %v1776_v27 = vmax.f32 %v1774_v6, %v1775_v13  ;;  %v1782_v28 = vmax.f32 %v1780_v39, %v1781_v14  ;;  %v1788_v29 = vmax.f32 %v1786_v7, %v1787_v15 }
 0x15e   : > { %v1794_v36 = vmax.f32 %v1792_v11, %v1793_v21  ;;  %v1890_v37 = vsel %vm331_vm0, %v1758_v19, %v1752_v18  ;;  %v1735_v38 = vsel %vm6454_vm9, %v1713_v16, -inf  ;;  %v1736_v40 = vsel %vm6454_vm9, %v1714_v17, -inf }
 0x15f   : > { %v1891_v41 = vsel %vm334_vm1, %v1764_v20, %v1890_v37  ;;  %v1737_v42 = vsel %vm6454_vm9, %v1715_v22, -inf  ;;  %v1738_v43 = vsel %vm6454_vm9, %v1716_v23, -inf  ;;  %v1739_v44 = vsel %vm6454_vm9, %v1717_v24, -inf  ;;  %v1721_v23 = vld [vmem:[#allocation2 + $0x80] sm:$0xff]  ;;  %v1722_v24 = vld [vmem:[#allocation2 + $0x88] sm:$0xff] }
 0x160   : > { %v1892_v45 = vsel %vm337_vm2, %v1770_v25, %v1891_v41  ;;  %v1740_v46 = vsel %vm6454_vm9, %v1718_v31, -inf  ;;  %v1741_v47 = vsel %vm6454_vm9, %v1719_v32, -inf  ;;  %v1742_v48 = vsel %vm6454_vm9, %v1720_v33, -inf  ;;  %v1723_v31 = vld [vmem:[#allocation2 + $0x90] sm:$0xff]  ;;  %v1724_v32 = vld [vmem:[#allocation2 + $0x98] sm:$0xff] }
 0x161   : > { %v1893_v49 = vsel %vm340_vm3, %v1776_v27, %v1892_v45  ;;  %v1795_v50 = vrot.slane %v1735_v38, 4  ;;  %v1801_v51 = vrot.slane %v1736_v40, 4  ;;  %v1807_v52 = vrot.slane %v1737_v42, 4 }
 0x162   : > { %v1894_v54 = vsel %vm343_vm4, %v1782_v28, %v1893_v49  ;;  %v1813_v55 = vrot.slane %v1738_v43, 4  ;;  %v1819_v56 = vrot.slane %v1739_v44, 4  ;;  %v1825_v57 = vrot.slane %v1740_v46, 4 }
 0x163   : > { %v1895_v58 = vsel %vm346_vm5, %v1788_v29, %v1894_v54  ;;  %v1796_v59 = vmax.f32 %v1735_v38, %v1795_v50  ;;  %v1802_v60 = vmax.f32 %v1736_v40, %v1801_v51  ;;  %v1808_v61 = vmax.f32 %v1737_v42, %v1807_v52 }
 0x164   : > { %v1896_v63 = vsel %vm349_vm6, %v1794_v36, %v1895_v58  ;;  %v1814_v0 = vmax.f32 %v1738_v43, %v1813_v55  ;;  %v1820_v62 = vmax.f32 %v1739_v44, %v1819_v56  ;;  %v1826_v30 = vmax.f32 %v1740_v46, %v1825_v57  ;;  %v1868_v57 = vld [vmem:[#allocation3 + $0xa9] sm:$0xff] }
 0x165   : > { %v1910_v1 = vmax.f32 %v1867_v53, %v1896_v63  ;;  %v1797_v2 = vrot.slane %v1796_v59, 2  ;;  %v1803_v3 = vrot.slane %v1802_v60, 2  ;;  %v1809_v35 = vrot.slane %v1808_v61, 2 }
 0x166   : > { %v1815_v4 = vrot.slane %v1814_v0, 2  ;;  %v1821_v5 = vrot.slane %v1820_v62, 2  ;;  %v1827_v6 = vrot.slane %v1826_v30, 2  ;;  %v1831_v39 = vrot.slane %v1741_v47, 4 }
 0x167   : > { %1913 = vst [vmem:[#allocation3 + $0xa1] sm:$0xff] %v1910_v1  ;;  %v1798_v7 = vmax.f32 %v1796_v59, %v1797_v2  ;;  %v1804_v8 = vmax.f32 %v1802_v60, %v1803_v3  ;;  %v1810_v9 = vmax.f32 %v1808_v61, %v1809_v35  ;;  %v1837_v10 = vrot.slane %v1742_v48, 4 }
 0x168   : > { %v1816_v11 = vmax.f32 %v1814_v0, %v1815_v4  ;;  %v1822_v12 = vmax.f32 %v1820_v62, %v1821_v5  ;;  %v1828_v13 = vmax.f32 %v1826_v30, %v1827_v6  ;;  %v1832_v14 = vmax.f32 %v1741_v47, %v1831_v39 }
 0x169   : > { %v1799_v15 = vrot.slane %v1798_v7, 1  ;;  %v1805_v16 = vrot.slane %v1804_v8, 1  ;;  %v1811_v17 = vrot.slane %v1810_v9, 1  ;;  %v1838_v18 = vmax.f32 %v1742_v48, %v1837_v10 }
 0x16a   : > { %v1817_v19 = vrot.slane %v1816_v11, 1  ;;  %v1823_v20 = vrot.slane %v1822_v12, 1  ;;  %v1829_v21 = vrot.slane %v1828_v13, 1  ;;  %v1833_v22 = vrot.slane %v1832_v14, 2 }
 0x16b   : > { %v1800_v25 = vmax.f32 %v1798_v7, %v1799_v15  ;;  %v1806_v27 = vmax.f32 %v1804_v8, %v1805_v16  ;;  %v1812_v28 = vmax.f32 %v1810_v9, %v1811_v17  ;;  %v1839_v29 = vrot.slane %v1838_v18, 2 }
 0x16c   : > { %v1818_v33 = vmax.f32 %v1816_v11, %v1817_v19  ;;  %v1824_v36 = vmax.f32 %v1822_v12, %v1823_v20  ;;  %v1830_v37 = vmax.f32 %v1828_v13, %v1829_v21  ;;  %v1834_v38 = vmax.f32 %v1832_v14, %v1833_v22  ;;  %v1869_v14 = vld [vmem:[#allocation3 + $0xb1] sm:$0xf] }
 0x16d   : > { %v1840_v40 = vmax.f32 %v1838_v18, %v1839_v29  ;;  %v1897_v41 = vsel %vm331_vm0, %v1806_v27, %v1800_v25  ;;  %v1743_v42 = vsel %vm6454_vm9, %v1721_v23, -inf  ;;  %v1744_v43 = vsel %vm6454_vm9, %v1722_v24, -inf }
 0x16e   : > { %v1835_v44 = vrot.slane %v1834_v38, 1  ;;  %v1898_v45 = vsel %vm334_vm1, %v1812_v28, %v1897_v41  ;;  %v1745_v46 = vsel %vm6454_vm9, %v1723_v31, -inf  ;;  %v1746_v47 = vsel %vm6454_vm9, %v1724_v32, -inf }
 0x16f   : > { %v1841_v48 = vrot.slane %v1840_v40, 1  ;;  %v1899_v49 = vsel %vm337_vm2, %v1818_v33, %v1898_v45  ;;  %v1843_v50 = vrot.slane %v1743_v42, 4  ;;  %v1849_v51 = vrot.slane %v1744_v43, 4 }
 0x170   : > { %v1836_v52 = vmax.f32 %v1834_v38, %v1835_v44  ;;  %v1900_v53 = vsel %vm340_vm3, %v1824_v36, %v1899_v49  ;;  %v1855_v54 = vrot.slane %v1745_v46, 4  ;;  %v1861_v55 = vrot.slane %v1746_v47, 4 }
 0x171   : > { %v1842_v56 = vmax.f32 %v1840_v40, %v1841_v48  ;;  %v1901_v58 = vsel %vm343_vm4, %v1830_v37, %v1900_v53  ;;  %v1844_v59 = vmax.f32 %v1743_v42, %v1843_v50  ;;  %v1850_v60 = vmax.f32 %v1744_v43, %v1849_v51 }
 0x172   : > { %v1902_v61 = vsel %vm346_vm5, %v1836_v52, %v1901_v58  ;;  %v1856_v26 = vmax.f32 %v1745_v46, %v1855_v54  ;;  %v1862_v63 = vmax.f32 %v1746_v47, %v1861_v55 }
 0x173   : > { %v1903_v0 = vsel %vm349_vm6, %v1842_v56, %v1902_v61  ;;  %v1845_v62 = vrot.slane %v1844_v59, 2  ;;  %v1851_v30 = vrot.slane %v1850_v60, 2 }
 0x174   : > { %v1911_v1 = vmax.f32 %v1868_v57, %v1903_v0  ;;  %v1857_v2 = vrot.slane %v1856_v26, 2  ;;  %v1863_v3 = vrot.slane %v1862_v63, 2 }
 0x175   : > { %v1846_v35 = vmax.f32 %v1844_v59, %v1845_v62  ;;  %v1852_v4 = vmax.f32 %v1850_v60, %v1851_v30 }
 0x176   : > { %1914 = vst [vmem:[#allocation3 + $0xa9] sm:$0xff] %v1911_v1  ;;  %v1858_v5 = vmax.f32 %v1856_v26, %v1857_v2  ;;  %v1864_v6 = vmax.f32 %v1862_v63, %v1863_v3 }
 0x177   : > { %v1847_v39 = vrot.slane %v1846_v35, 1  ;;  %v1853_v7 = vrot.slane %v1852_v4, 1 }
 0x178   : > { %v1859_v8 = vrot.slane %v1858_v5, 1  ;;  %v1865_v9 = vrot.slane %v1864_v6, 1 }
 0x179   : > { %v1848_v10 = vmax.f32 %v1846_v35, %v1847_v39  ;;  %v1854_v11 = vmax.f32 %v1852_v4, %v1853_v7 }
 0x17a   : > { %v1860_v12 = vmax.f32 %v1858_v5, %v1859_v8  ;;  %v1866_v13 = vmax.f32 %v1864_v6, %v1865_v9 }
 0x17b   : > { %v1904_v15 = vsel %vm331_vm0, %v1854_v11, %v1848_v10 }
 0x17c   : > { %v1905_v16 = vsel %vm334_vm1, %v1860_v12, %v1904_v15 }
 0x17d   : > { %v1906_v17 = vsel %vm337_vm2, %v1866_v13, %v1905_v16 }
 0x17e   : > { %v1912_v18 = vmax.f32 %v1869_v14, %v1906_v17 }
 0x180   : > { %1915 = vst [vmem:[#allocation3 + $0xb1] sm:$0xf] %v1912_v18 }
 0x181 PF: > { %p1916_p4 = scmp.lt.s32.totalorder %s5939_s9, 6  ;;  %p1917_p5 = scmp.gt.s32.totalorder %s5955_s3, 4 }
 0x183   : > { %p6517_p8 = pnand %p1917_p5, %p1916_p4 }
 0x184   : > { %vm1922_vm10 = vcmp.ge.s32.totalorder (!%p6517_p8), %v6037_v34, 4  ;;  %vm1923_vm11 = vcmp.lt.s32.totalorder (!%p6517_p8), %v6037_v34, 6  ;;  %v1925_v19 = vld [vmem:[#allocation2] sm:$0xff] (!%p6517_p8)  ;;  %v1926_v20 = vld [vmem:[#allocation2 + $0x8] sm:$0xff] (!%p6517_p8)  ;;  %v1927_v21 = vld [vmem:[#allocation2 + $0x10] sm:$0xff] (!%p6517_p8) }
 0x185   : > { %1921 = sbr.rel (%p6517_p8) target bundleno = 439 (0x1b7), region = 86  ;;  %vm6525_vm12 = vmand (!%p6517_p8), %vm1922_vm10, %vm1923_vm11  ;;  %v1928_v23 = vld [vmem:[#allocation2 + $0x18] sm:$0xff] (!%p6517_p8)  ;;  %v1929_v24 = vld [vmem:[#allocation2 + $0x20] sm:$0xff] (!%p6517_p8) }
 0x186   : > { %v1930_v25 = vld [vmem:[#allocation2 + $0x28] sm:$0xff] (!%p6517_p8)  ;;  %v1931_v27 = vld [vmem:[#allocation2 + $0x30] sm:$0xff] (!%p6517_p8)  ;;  %v1932_v28 = vld [vmem:[#allocation2 + $0x38] sm:$0xff] (!%p6517_p8)  ;;  %v1947_v29 = vsel (!%p6517_p8), %vm6525_vm12, %v1925_v19, -inf  ;;  %v1948_v31 = vsel (!%p6517_p8), %vm6525_vm12, %v1926_v20, -inf  ;;  %v1949_v32 = vsel (!%p6517_p8), %vm6525_vm12, %v1927_v21, -inf }
 0x187   : > { %v1950_v33 = vsel (!%p6517_p8), %vm6525_vm12, %v1928_v23, -inf  ;;  %v1951_v36 = vsel (!%p6517_p8), %vm6525_vm12, %v1929_v24, -inf  ;;  %v1952_v37 = vsel (!%p6517_p8), %vm6525_vm12, %v1930_v25, -inf  ;;  %v1953_v38 = vsel (!%p6517_p8), %vm6525_vm12, %v1931_v27, -inf  ;;  %v1933_v12 = vld [vmem:[#allocation2 + $0x40] sm:$0xff] (!%p6517_p8)  ;;  %v1934_v13 = vld [vmem:[#allocation2 + $0x48] sm:$0xff] (!%p6517_p8) }
 0x188   : > { %v1954_v40 = vsel (!%p6517_p8), %vm6525_vm12, %v1932_v28, -inf  ;;  %v1967_v41 = vrot.slane (!%p6517_p8), %v1947_v29, 4  ;;  %v1973_v42 = vrot.slane (!%p6517_p8), %v1948_v31, 4  ;;  %v1979_v43 = vrot.slane (!%p6517_p8), %v1949_v32, 4  ;;  %v1935_v18 = vld [vmem:[#allocation2 + $0x50] sm:$0xff] (!%p6517_p8)  ;;  %v1936_v19 = vld [vmem:[#allocation2 + $0x58] sm:$0xff] (!%p6517_p8) }
 0x189   : > { %v1985_v44 = vrot.slane (!%p6517_p8), %v1950_v33, 4  ;;  %v1991_v45 = vrot.slane (!%p6517_p8), %v1951_v36, 4  ;;  %v1997_v46 = vrot.slane (!%p6517_p8), %v1952_v37, 4  ;;  %v2003_v47 = vrot.slane (!%p6517_p8), %v1953_v38, 4  ;;  %v1937_v20 = vld [vmem:[#allocation2 + $0x60] sm:$0xff] (!%p6517_p8)  ;;  %v1938_v27 = vld [vmem:[#allocation2 + $0x68] sm:$0xff] (!%p6517_p8) }
 0x18a   : > { %v1968_v48 = vmax.f32 (!%p6517_p8), %v1947_v29, %v1967_v41  ;;  %v1974_v49 = vmax.f32 (!%p6517_p8), %v1948_v31, %v1973_v42  ;;  %v1980_v50 = vmax.f32 (!%p6517_p8), %v1949_v32, %v1979_v43  ;;  %v2009_v51 = vrot.slane (!%p6517_p8), %v1954_v40, 4  ;;  %v1939_v28 = vld [vmem:[#allocation2 + $0x70] sm:$0xff] (!%p6517_p8)  ;;  %v1940_v29 = vld [vmem:[#allocation2 + $0x78] sm:$0xff] (!%p6517_p8) }
 0x18b   : > { %v1986_v52 = vmax.f32 (!%p6517_p8), %v1950_v33, %v1985_v44  ;;  %v1992_v53 = vmax.f32 (!%p6517_p8), %v1951_v36, %v1991_v45  ;;  %v1998_v54 = vmax.f32 (!%p6517_p8), %v1952_v37, %v1997_v46  ;;  %v2004_v55 = vmax.f32 (!%p6517_p8), %v1953_v38, %v2003_v47 }
 0x18c   : > { %v1969_v56 = vrot.slane %v1968_v48, 2  ;;  %v1975_v57 = vrot.slane %v1974_v49, 2  ;;  %v1981_v58 = vrot.slane %v1980_v50, 2  ;;  %v2010_v59 = vmax.f32 %v1954_v40, %v2009_v51 }
 0x18d   : > { %v1987_v60 = vrot.slane %v1986_v52, 2  ;;  %v1993_v61 = vrot.slane %v1992_v53, 2  ;;  %v1999_v26 = vrot.slane %v1998_v54, 2  ;;  %v2005_v63 = vrot.slane %v2004_v55, 2 }
 0x18e   : > { %v1970_v0 = vmax.f32 %v1968_v48, %v1969_v56  ;;  %v1976_v62 = vmax.f32 %v1974_v49, %v1975_v57  ;;  %v1982_v30 = vmax.f32 %v1980_v50, %v1981_v58  ;;  %v2011_v1 = vrot.slane %v2010_v59, 2  ;;  %v2087_v50 = vld [vmem:[#allocation3 + $0xb5] sm:$0xff] }
 0x18f   : > { %v1988_v2 = vmax.f32 %v1986_v52, %v1987_v60  ;;  %v1994_v3 = vmax.f32 %v1992_v53, %v1993_v61  ;;  %v2000_v35 = vmax.f32 %v1998_v54, %v1999_v26  ;;  %v2006_v4 = vmax.f32 %v2004_v55, %v2005_v63 }
 0x190   : > { %v1971_v5 = vrot.slane %v1970_v0, 1  ;;  %v1977_v6 = vrot.slane %v1976_v62, 1  ;;  %v1983_v39 = vrot.slane %v1982_v30, 1  ;;  %v2012_v7 = vmax.f32 %v2010_v59, %v2011_v1 }
 0x191   : > { %v1989_v8 = vrot.slane %v1988_v2, 1  ;;  %v1995_v9 = vrot.slane %v1994_v3, 1  ;;  %v2001_v10 = vrot.slane %v2000_v35, 1  ;;  %v2007_v11 = vrot.slane %v2006_v4, 1 }
 0x192   : > { %v1972_v14 = vmax.f32 %v1970_v0, %v1971_v5  ;;  %v1978_v15 = vmax.f32 %v1976_v62, %v1977_v6  ;;  %v1984_v16 = vmax.f32 %v1982_v30, %v1983_v39  ;;  %v2013_v17 = vrot.slane %v2012_v7, 1 }
 0x193   : > { %v1990_v21 = vmax.f32 %v1988_v2, %v1989_v8  ;;  %v1996_v23 = vmax.f32 %v1994_v3, %v1995_v9  ;;  %v2002_v24 = vmax.f32 %v2000_v35, %v2001_v10  ;;  %v2008_v25 = vmax.f32 %v2006_v4, %v2007_v11 }
 0x194   : > { %v2014_v31 = vmax.f32 %v2012_v7, %v2013_v17  ;;  %v2110_v32 = vsel %vm331_vm0, %v1978_v15, %v1972_v14  ;;  %v1955_v33 = vsel %vm6525_vm12, %v1933_v12, -inf  ;;  %v1956_v36 = vsel %vm6525_vm12, %v1934_v13, -inf }
 0x195   : > { %v2111_v37 = vsel %vm334_vm1, %v1984_v16, %v2110_v32  ;;  %v1957_v38 = vsel %vm6525_vm12, %v1935_v18, -inf  ;;  %v1958_v40 = vsel %vm6525_vm12, %v1936_v19, -inf  ;;  %v1959_v41 = vsel %vm6525_vm12, %v1937_v20, -inf  ;;  %v1941_v19 = vld [vmem:[#allocation2 + $0x80] sm:$0xff]  ;;  %v1942_v20 = vld [vmem:[#allocation2 + $0x88] sm:$0xff] }
 0x196   : > { %v2112_v42 = vsel %vm337_vm2, %v1990_v21, %v2111_v37  ;;  %v1960_v43 = vsel %vm6525_vm12, %v1938_v27, -inf  ;;  %v1961_v44 = vsel %vm6525_vm12, %v1939_v28, -inf  ;;  %v1962_v45 = vsel %vm6525_vm12, %v1940_v29, -inf  ;;  %v1943_v27 = vld [vmem:[#allocation2 + $0x90] sm:$0xff]  ;;  %v1944_v28 = vld [vmem:[#allocation2 + $0x98] sm:$0xff] }
 0x197   : > { %v2113_v46 = vsel %vm340_vm3, %v1996_v23, %v2112_v42  ;;  %v2015_v47 = vrot.slane %v1955_v33, 4  ;;  %v2021_v48 = vrot.slane %v1956_v36, 4  ;;  %v2027_v49 = vrot.slane %v1957_v38, 4 }
 0x198   : > { %v2114_v51 = vsel %vm343_vm4, %v2002_v24, %v2113_v46  ;;  %v2033_v52 = vrot.slane %v1958_v40, 4  ;;  %v2039_v53 = vrot.slane %v1959_v41, 4  ;;  %v2045_v54 = vrot.slane %v1960_v43, 4 }
 0x199   : > { %v2115_v55 = vsel %vm346_vm5, %v2008_v25, %v2114_v51  ;;  %v2016_v56 = vmax.f32 %v1955_v33, %v2015_v47  ;;  %v2022_v57 = vmax.f32 %v1956_v36, %v2021_v48  ;;  %v2028_v58 = vmax.f32 %v1957_v38, %v2027_v49 }
 0x19a   : > { %v2116_v59 = vsel %vm349_vm6, %v2014_v31, %v2115_v55  ;;  %v2034_v60 = vmax.f32 %v1958_v40, %v2033_v52  ;;  %v2040_v61 = vmax.f32 %v1959_v41, %v2039_v53  ;;  %v2046_v26 = vmax.f32 %v1960_v43, %v2045_v54  ;;  %v2088_v54 = vld [vmem:[#allocation3 + $0xbd] sm:$0xff] }
 0x19b   : > { %v2130_v63 = vmax.f32 %v2087_v50, %v2116_v59  ;;  %v2017_v0 = vrot.slane %v2016_v56, 2  ;;  %v2023_v62 = vrot.slane %v2022_v57, 2  ;;  %v2029_v30 = vrot.slane %v2028_v58, 2 }
 0x19c   : > { %v2035_v1 = vrot.slane %v2034_v60, 2  ;;  %v2041_v2 = vrot.slane %v2040_v61, 2  ;;  %v2047_v3 = vrot.slane %v2046_v26, 2  ;;  %v2051_v35 = vrot.slane %v1961_v44, 4 }
 0x19d   : > { %2133 = vst [vmem:[#allocation3 + $0xb5] sm:$0xff] %v2130_v63  ;;  %v2018_v4 = vmax.f32 %v2016_v56, %v2017_v0  ;;  %v2024_v5 = vmax.f32 %v2022_v57, %v2023_v62  ;;  %v2030_v6 = vmax.f32 %v2028_v58, %v2029_v30  ;;  %v2057_v39 = vrot.slane %v1962_v45, 4 }
 0x19e   : > { %v2036_v7 = vmax.f32 %v2034_v60, %v2035_v1  ;;  %v2042_v8 = vmax.f32 %v2040_v61, %v2041_v2  ;;  %v2048_v9 = vmax.f32 %v2046_v26, %v2047_v3  ;;  %v2052_v10 = vmax.f32 %v1961_v44, %v2051_v35 }
 0x19f   : > { %v2019_v11 = vrot.slane %v2018_v4, 1  ;;  %v2025_v12 = vrot.slane %v2024_v5, 1  ;;  %v2031_v13 = vrot.slane %v2030_v6, 1  ;;  %v2058_v14 = vmax.f32 %v1962_v45, %v2057_v39 }
 0x1a0   : > { %v2037_v15 = vrot.slane %v2036_v7, 1  ;;  %v2043_v16 = vrot.slane %v2042_v8, 1  ;;  %v2049_v17 = vrot.slane %v2048_v9, 1  ;;  %v2053_v18 = vrot.slane %v2052_v10, 2 }
 0x1a1   : > { %v2020_v21 = vmax.f32 %v2018_v4, %v2019_v11  ;;  %v2026_v23 = vmax.f32 %v2024_v5, %v2025_v12  ;;  %v2032_v24 = vmax.f32 %v2030_v6, %v2031_v13  ;;  %v2059_v25 = vrot.slane %v2058_v14, 2 }
 0x1a2   : > { %v2038_v29 = vmax.f32 %v2036_v7, %v2037_v15  ;;  %v2044_v31 = vmax.f32 %v2042_v8, %v2043_v16  ;;  %v2050_v32 = vmax.f32 %v2048_v9, %v2049_v17  ;;  %v2054_v33 = vmax.f32 %v2052_v10, %v2053_v18  ;;  %v2089_v10 = vld [vmem:[#allocation3 + $0xc5] sm:$0xf] }
 0x1a3   : > { %v2060_v36 = vmax.f32 %v2058_v14, %v2059_v25  ;;  %v2117_v37 = vsel %vm331_vm0, %v2026_v23, %v2020_v21  ;;  %v1963_v38 = vsel %vm6525_vm12, %v1941_v19, -inf  ;;  %v1964_v40 = vsel %vm6525_vm12, %v1942_v20, -inf }
 0x1a4   : > { %v2055_v41 = vrot.slane %v2054_v33, 1  ;;  %v2118_v42 = vsel %vm334_vm1, %v2032_v24, %v2117_v37  ;;  %v1965_v43 = vsel %vm6525_vm12, %v1943_v27, -inf  ;;  %v1966_v44 = vsel %vm6525_vm12, %v1944_v28, -inf }
 0x1a5   : > { %v2061_v45 = vrot.slane %v2060_v36, 1  ;;  %v2119_v46 = vsel %vm337_vm2, %v2038_v29, %v2118_v42  ;;  %v2063_v47 = vrot.slane %v1963_v38, 4  ;;  %v2069_v48 = vrot.slane %v1964_v40, 4 }
 0x1a6   : > { %v2056_v49 = vmax.f32 %v2054_v33, %v2055_v41  ;;  %v2120_v50 = vsel %vm340_vm3, %v2044_v31, %v2119_v46  ;;  %v2075_v51 = vrot.slane %v1965_v43, 4  ;;  %v2081_v52 = vrot.slane %v1966_v44, 4 }
 0x1a7   : > { %v2062_v53 = vmax.f32 %v2060_v36, %v2061_v45  ;;  %v2121_v55 = vsel %vm343_vm4, %v2050_v32, %v2120_v50  ;;  %v2064_v56 = vmax.f32 %v1963_v38, %v2063_v47  ;;  %v2070_v57 = vmax.f32 %v1964_v40, %v2069_v48 }
 0x1a8   : > { %v2122_v58 = vsel %vm346_vm5, %v2056_v49, %v2121_v55  ;;  %v2076_v22 = vmax.f32 %v1965_v43, %v2075_v51  ;;  %v2082_v59 = vmax.f32 %v1966_v44, %v2081_v52 }
 0x1a9   : > { %v2123_v60 = vsel %vm349_vm6, %v2062_v53, %v2122_v58  ;;  %v2065_v61 = vrot.slane %v2064_v56, 2  ;;  %v2071_v26 = vrot.slane %v2070_v57, 2 }
 0x1aa   : > { %v2131_v63 = vmax.f32 %v2088_v54, %v2123_v60  ;;  %v2077_v0 = vrot.slane %v2076_v22, 2  ;;  %v2083_v62 = vrot.slane %v2082_v59, 2 }
 0x1ab   : > { %v2066_v30 = vmax.f32 %v2064_v56, %v2065_v61  ;;  %v2072_v1 = vmax.f32 %v2070_v57, %v2071_v26 }
 0x1ac   : > { %2134 = vst [vmem:[#allocation3 + $0xbd] sm:$0xff] %v2131_v63  ;;  %v2078_v2 = vmax.f32 %v2076_v22, %v2077_v0  ;;  %v2084_v3 = vmax.f32 %v2082_v59, %v2083_v62 }
 0x1ad   : > { %v2067_v35 = vrot.slane %v2066_v30, 1  ;;  %v2073_v4 = vrot.slane %v2072_v1, 1 }
 0x1ae   : > { %v2079_v5 = vrot.slane %v2078_v2, 1  ;;  %v2085_v6 = vrot.slane %v2084_v3, 1 }
 0x1af   : > { %v2068_v39 = vmax.f32 %v2066_v30, %v2067_v35  ;;  %v2074_v7 = vmax.f32 %v2072_v1, %v2073_v4 }
 0x1b0   : > { %v2080_v8 = vmax.f32 %v2078_v2, %v2079_v5  ;;  %v2086_v9 = vmax.f32 %v2084_v3, %v2085_v6 }
 0x1b1   : > { %v2124_v11 = vsel %vm331_vm0, %v2074_v7, %v2068_v39 }
 0x1b2   : > { %v2125_v12 = vsel %vm334_vm1, %v2080_v8, %v2124_v11 }
 0x1b3   : > { %v2126_v13 = vsel %vm337_vm2, %v2086_v9, %v2125_v12 }
 0x1b4   : > { %v2132_v14 = vmax.f32 %v2089_v10, %v2126_v13 }
 0x1b6   : > { %2135 = vst [vmem:[#allocation3 + $0xc5] sm:$0xf] %v2132_v14 }
 0x1b7 PF: > { %p2136_p9 = scmp.lt.s32.totalorder %s5939_s9, 7  ;;  %p2137_p10 = scmp.gt.s32.totalorder %s5955_s3, 5 }
 0x1b9   : > { %p2138_p11 = pnand %p2137_p10, %p2136_p9 }
 0x1ba   : > { %vm2142_vm13 = vcmp.ge.s32.totalorder (!%p2138_p11), %v6037_v34, 5  ;;  %vm2143_vm14 = vcmp.lt.s32.totalorder (!%p2138_p11), %v6037_v34, 7  ;;  %v2145_v15 = vld [vmem:[#allocation2] sm:$0xff] (!%p2138_p11)  ;;  %v2146_v16 = vld [vmem:[#allocation2 + $0x8] sm:$0xff] (!%p2138_p11)  ;;  %v2147_v17 = vld [vmem:[#allocation2 + $0x10] sm:$0xff] (!%p2138_p11) }
 0x1bb   : > { %2141 = sbr.rel (%p2138_p11) target bundleno = 493 (0x1ed), region = 90  ;;  %vm6590_vm15 = vmand (!%p2138_p11), %vm2142_vm13, %vm2143_vm14  ;;  %v2148_v19 = vld [vmem:[#allocation2 + $0x18] sm:$0xff] (!%p2138_p11)  ;;  %v2149_v20 = vld [vmem:[#allocation2 + $0x20] sm:$0xff] (!%p2138_p11) }
 0x1bc   : > { %v2150_v21 = vld [vmem:[#allocation2 + $0x28] sm:$0xff] (!%p2138_p11)  ;;  %v2151_v23 = vld [vmem:[#allocation2 + $0x30] sm:$0xff] (!%p2138_p11)  ;;  %v2152_v24 = vld [vmem:[#allocation2 + $0x38] sm:$0xff] (!%p2138_p11)  ;;  %v2167_v25 = vsel (!%p2138_p11), %vm6590_vm15, %v2145_v15, -inf  ;;  %v2168_v27 = vsel (!%p2138_p11), %vm6590_vm15, %v2146_v16, -inf  ;;  %v2169_v28 = vsel (!%p2138_p11), %vm6590_vm15, %v2147_v17, -inf }
 0x1bd   : > { %v2170_v29 = vsel (!%p2138_p11), %vm6590_vm15, %v2148_v19, -inf  ;;  %v2171_v31 = vsel (!%p2138_p11), %vm6590_vm15, %v2149_v20, -inf  ;;  %v2172_v32 = vsel (!%p2138_p11), %vm6590_vm15, %v2150_v21, -inf  ;;  %v2173_v33 = vsel (!%p2138_p11), %vm6590_vm15, %v2151_v23, -inf  ;;  %v2153_v8 = vld [vmem:[#allocation2 + $0x40] sm:$0xff] (!%p2138_p11)  ;;  %v2154_v9 = vld [vmem:[#allocation2 + $0x48] sm:$0xff] (!%p2138_p11) }
 0x1be   : > { %v2174_v36 = vsel (!%p2138_p11), %vm6590_vm15, %v2152_v24, -inf  ;;  %v2187_v37 = vrot.slane (!%p2138_p11), %v2167_v25, 4  ;;  %v2193_v38 = vrot.slane (!%p2138_p11), %v2168_v27, 4  ;;  %v2199_v40 = vrot.slane (!%p2138_p11), %v2169_v28, 4  ;;  %v2155_v14 = vld [vmem:[#allocation2 + $0x50] sm:$0xff] (!%p2138_p11)  ;;  %v2156_v15 = vld [vmem:[#allocation2 + $0x58] sm:$0xff] (!%p2138_p11) }
 0x1bf   : > { %v2205_v41 = vrot.slane (!%p2138_p11), %v2170_v29, 4  ;;  %v2211_v42 = vrot.slane (!%p2138_p11), %v2171_v31, 4  ;;  %v2217_v43 = vrot.slane (!%p2138_p11), %v2172_v32, 4  ;;  %v2223_v44 = vrot.slane (!%p2138_p11), %v2173_v33, 4  ;;  %v2157_v16 = vld [vmem:[#allocation2 + $0x60] sm:$0xff] (!%p2138_p11)  ;;  %v2158_v23 = vld [vmem:[#allocation2 + $0x68] sm:$0xff] (!%p2138_p11) }
 0x1c0   : > { %v2188_v45 = vmax.f32 (!%p2138_p11), %v2167_v25, %v2187_v37  ;;  %v2194_v46 = vmax.f32 (!%p2138_p11), %v2168_v27, %v2193_v38  ;;  %v2200_v47 = vmax.f32 (!%p2138_p11), %v2169_v28, %v2199_v40  ;;  %v2229_v48 = vrot.slane (!%p2138_p11), %v2174_v36, 4  ;;  %v2159_v24 = vld [vmem:[#allocation2 + $0x70] sm:$0xff] (!%p2138_p11)  ;;  %v2160_v25 = vld [vmem:[#allocation2 + $0x78] sm:$0xff] (!%p2138_p11) }
 0x1c1   : > { %v2206_v49 = vmax.f32 (!%p2138_p11), %v2170_v29, %v2205_v41  ;;  %v2212_v50 = vmax.f32 (!%p2138_p11), %v2171_v31, %v2211_v42  ;;  %v2218_v51 = vmax.f32 (!%p2138_p11), %v2172_v32, %v2217_v43  ;;  %v2224_v52 = vmax.f32 (!%p2138_p11), %v2173_v33, %v2223_v44 }
 0x1c2   : > { %v2189_v53 = vrot.slane %v2188_v45, 2  ;;  %v2195_v54 = vrot.slane %v2194_v46, 2  ;;  %v2201_v55 = vrot.slane %v2200_v47, 2  ;;  %v2230_v56 = vmax.f32 %v2174_v36, %v2229_v48 }
 0x1c3   : > { %v2207_v57 = vrot.slane %v2206_v49, 2  ;;  %v2213_v58 = vrot.slane %v2212_v50, 2  ;;  %v2219_v22 = vrot.slane %v2218_v51, 2  ;;  %v2225_v59 = vrot.slane %v2224_v52, 2 }
 0x1c4   : > { %v2190_v60 = vmax.f32 %v2188_v45, %v2189_v53  ;;  %v2196_v61 = vmax.f32 %v2194_v46, %v2195_v54  ;;  %v2202_v26 = vmax.f32 %v2200_v47, %v2201_v55  ;;  %v2231_v63 = vrot.slane %v2230_v56, 2  ;;  %v2307_v47 = vld [vmem:[#allocation3 + $0xc9] sm:$0xff] }
 0x1c5   : > { %v2208_v0 = vmax.f32 %v2206_v49, %v2207_v57  ;;  %v2214_v62 = vmax.f32 %v2212_v50, %v2213_v58  ;;  %v2220_v30 = vmax.f32 %v2218_v51, %v2219_v22  ;;  %v2226_v1 = vmax.f32 %v2224_v52, %v2225_v59 }
 0x1c6   : > { %v2191_v2 = vrot.slane %v2190_v60, 1  ;;  %v2197_v3 = vrot.slane %v2196_v61, 1  ;;  %v2203_v35 = vrot.slane %v2202_v26, 1  ;;  %v2232_v4 = vmax.f32 %v2230_v56, %v2231_v63 }
 0x1c7   : > { %v2209_v5 = vrot.slane %v2208_v0, 1  ;;  %v2215_v6 = vrot.slane %v2214_v62, 1  ;;  %v2221_v39 = vrot.slane %v2220_v30, 1  ;;  %v2227_v7 = vrot.slane %v2226_v1, 1 }
 0x1c8   : > { %v2192_v10 = vmax.f32 %v2190_v60, %v2191_v2  ;;  %v2198_v11 = vmax.f32 %v2196_v61, %v2197_v3  ;;  %v2204_v12 = vmax.f32 %v2202_v26, %v2203_v35  ;;  %v2233_v13 = vrot.slane %v2232_v4, 1 }
 0x1c9   : > { %v2210_v17 = vmax.f32 %v2208_v0, %v2209_v5  ;;  %v2216_v19 = vmax.f32 %v2214_v62, %v2215_v6  ;;  %v2222_v20 = vmax.f32 %v2220_v30, %v2221_v39  ;;  %v2228_v21 = vmax.f32 %v2226_v1, %v2227_v7 }
 0x1ca   : > { %v2234_v27 = vmax.f32 %v2232_v4, %v2233_v13  ;;  %v2330_v28 = vsel %vm331_vm0, %v2198_v11, %v2192_v10  ;;  %v2175_v29 = vsel %vm6590_vm15, %v2153_v8, -inf  ;;  %v2176_v31 = vsel %vm6590_vm15, %v2154_v9, -inf }
 0x1cb   : > { %v2331_v32 = vsel %vm334_vm1, %v2204_v12, %v2330_v28  ;;  %v2177_v33 = vsel %vm6590_vm15, %v2155_v14, -inf  ;;  %v2178_v36 = vsel %vm6590_vm15, %v2156_v15, -inf  ;;  %v2179_v37 = vsel %vm6590_vm15, %v2157_v16, -inf  ;;  %v2161_v15 = vld [vmem:[#allocation2 + $0x80] sm:$0xff]  ;;  %v2162_v16 = vld [vmem:[#allocation2 + $0x88] sm:$0xff] }
 0x1cc   : > { %v2332_v38 = vsel %vm337_vm2, %v2210_v17, %v2331_v32  ;;  %v2180_v40 = vsel %vm6590_vm15, %v2158_v23, -inf  ;;  %v2181_v41 = vsel %vm6590_vm15, %v2159_v24, -inf  ;;  %v2182_v42 = vsel %vm6590_vm15, %v2160_v25, -inf  ;;  %v2163_v23 = vld [vmem:[#allocation2 + $0x90] sm:$0xff]  ;;  %v2164_v24 = vld [vmem:[#allocation2 + $0x98] sm:$0xff] }
 0x1cd   : > { %v2333_v43 = vsel %vm340_vm3, %v2216_v19, %v2332_v38  ;;  %v2235_v44 = vrot.slane %v2175_v29, 4  ;;  %v2241_v45 = vrot.slane %v2176_v31, 4  ;;  %v2247_v46 = vrot.slane %v2177_v33, 4 }
 0x1ce   : > { %v2334_v48 = vsel %vm343_vm4, %v2222_v20, %v2333_v43  ;;  %v2253_v49 = vrot.slane %v2178_v36, 4  ;;  %v2259_v50 = vrot.slane %v2179_v37, 4  ;;  %v2265_v51 = vrot.slane %v2180_v40, 4 }
 0x1cf   : > { %v2335_v52 = vsel %vm346_vm5, %v2228_v21, %v2334_v48  ;;  %v2236_v53 = vmax.f32 %v2175_v29, %v2235_v44  ;;  %v2242_v54 = vmax.f32 %v2176_v31, %v2241_v45  ;;  %v2248_v55 = vmax.f32 %v2177_v33, %v2247_v46 }
 0x1d0   : > { %v2336_v56 = vsel %vm349_vm6, %v2234_v27, %v2335_v52  ;;  %v2254_v57 = vmax.f32 %v2178_v36, %v2253_v49  ;;  %v2260_v58 = vmax.f32 %v2179_v37, %v2259_v50  ;;  %v2266_v22 = vmax.f32 %v2180_v40, %v2265_v51  ;;  %v2308_v51 = vld [vmem:[#allocation3 + $0xd1] sm:$0xff] }
 0x1d1   : > { %v2350_v59 = vmax.f32 %v2307_v47, %v2336_v56  ;;  %v2237_v60 = vrot.slane %v2236_v53, 2  ;;  %v2243_v61 = vrot.slane %v2242_v54, 2  ;;  %v2249_v26 = vrot.slane %v2248_v55, 2 }
 0x1d2   : > { %v2255_v63 = vrot.slane %v2254_v57, 2  ;;  %v2261_v0 = vrot.slane %v2260_v58, 2  ;;  %v2267_v62 = vrot.slane %v2266_v22, 2  ;;  %v2271_v30 = vrot.slane %v2181_v41, 4 }
 0x1d3   : > { %2353 = vst [vmem:[#allocation3 + $0xc9] sm:$0xff] %v2350_v59  ;;  %v2238_v1 = vmax.f32 %v2236_v53, %v2237_v60  ;;  %v2244_v2 = vmax.f32 %v2242_v54, %v2243_v61  ;;  %v2250_v3 = vmax.f32 %v2248_v55, %v2249_v26  ;;  %v2277_v35 = vrot.slane %v2182_v42, 4 }
 0x1d4   : > { %v2256_v4 = vmax.f32 %v2254_v57, %v2255_v63  ;;  %v2262_v5 = vmax.f32 %v2260_v58, %v2261_v0  ;;  %v2268_v6 = vmax.f32 %v2266_v22, %v2267_v62  ;;  %v2272_v39 = vmax.f32 %v2181_v41, %v2271_v30 }
 0x1d5   : > { %v2239_v7 = vrot.slane %v2238_v1, 1  ;;  %v2245_v8 = vrot.slane %v2244_v2, 1  ;;  %v2251_v9 = vrot.slane %v2250_v3, 1  ;;  %v2278_v10 = vmax.f32 %v2182_v42, %v2277_v35 }
 0x1d6   : > { %v2257_v11 = vrot.slane %v2256_v4, 1  ;;  %v2263_v12 = vrot.slane %v2262_v5, 1  ;;  %v2269_v13 = vrot.slane %v2268_v6, 1  ;;  %v2273_v14 = vrot.slane %v2272_v39, 2 }
 0x1d7   : > { %v2240_v17 = vmax.f32 %v2238_v1, %v2239_v7  ;;  %v2246_v19 = vmax.f32 %v2244_v2, %v2245_v8  ;;  %v2252_v20 = vmax.f32 %v2250_v3, %v2251_v9  ;;  %v2279_v21 = vrot.slane %v2278_v10, 2 }
 0x1d8   : > { %v2258_v25 = vmax.f32 %v2256_v4, %v2257_v11  ;;  %v2264_v27 = vmax.f32 %v2262_v5, %v2263_v12  ;;  %v2270_v28 = vmax.f32 %v2268_v6, %v2269_v13  ;;  %v2274_v29 = vmax.f32 %v2272_v39, %v2273_v14  ;;  %v2309_v39 = vld [vmem:[#allocation3 + $0xd9] sm:$0xf] }
 0x1d9   : > { %v2280_v31 = vmax.f32 %v2278_v10, %v2279_v21  ;;  %v2337_v32 = vsel %vm331_vm0, %v2246_v19, %v2240_v17  ;;  %v2183_v33 = vsel %vm6590_vm15, %v2161_v15, -inf  ;;  %v2184_v36 = vsel %vm6590_vm15, %v2162_v16, -inf }
 0x1da   : > { %v2275_v37 = vrot.slane %v2274_v29, 1  ;;  %v2338_v38 = vsel %vm334_vm1, %v2252_v20, %v2337_v32  ;;  %v2185_v40 = vsel %vm6590_vm15, %v2163_v23, -inf  ;;  %v2186_v41 = vsel %vm6590_vm15, %v2164_v24, -inf }
 0x1db   : > { %v2281_v42 = vrot.slane %v2280_v31, 1  ;;  %v2339_v43 = vsel %vm337_vm2, %v2258_v25, %v2338_v38  ;;  %v2283_v44 = vrot.slane %v2183_v33, 4  ;;  %v2289_v45 = vrot.slane %v2184_v36, 4 }
 0x1dc   : > { %v2276_v46 = vmax.f32 %v2274_v29, %v2275_v37  ;;  %v2340_v47 = vsel %vm340_vm3, %v2264_v27, %v2339_v43  ;;  %v2295_v48 = vrot.slane %v2185_v40, 4  ;;  %v2301_v49 = vrot.slane %v2186_v41, 4 }
 0x1dd   : > { %v2282_v50 = vmax.f32 %v2280_v31, %v2281_v42  ;;  %v2341_v52 = vsel %vm343_vm4, %v2270_v28, %v2340_v47  ;;  %v2284_v53 = vmax.f32 %v2183_v33, %v2283_v44  ;;  %v2290_v54 = vmax.f32 %v2184_v36, %v2289_v45 }
 0x1de   : > { %v2342_v55 = vsel %vm346_vm5, %v2276_v46, %v2341_v52  ;;  %v2296_v18 = vmax.f32 %v2185_v40, %v2295_v48  ;;  %v2302_v56 = vmax.f32 %v2186_v41, %v2301_v49 }
 0x1df   : > { %v2343_v57 = vsel %vm349_vm6, %v2282_v50, %v2342_v55  ;;  %v2285_v58 = vrot.slane %v2284_v53, 2  ;;  %v2291_v22 = vrot.slane %v2290_v54, 2 }
 0x1e0   : > { %v2351_v59 = vmax.f32 %v2308_v51, %v2343_v57  ;;  %v2297_v60 = vrot.slane %v2296_v18, 2  ;;  %v2303_v61 = vrot.slane %v2302_v56, 2 }
 0x1e1   : > { %v2286_v26 = vmax.f32 %v2284_v53, %v2285_v58  ;;  %v2292_v63 = vmax.f32 %v2290_v54, %v2291_v22 }
 0x1e2   : > { %2354 = vst [vmem:[#allocation3 + $0xd1] sm:$0xff] %v2351_v59  ;;  %v2298_v0 = vmax.f32 %v2296_v18, %v2297_v60  ;;  %v2304_v62 = vmax.f32 %v2302_v56, %v2303_v61 }
 0x1e3   : > { %v2287_v30 = vrot.slane %v2286_v26, 1  ;;  %v2293_v1 = vrot.slane %v2292_v63, 1 }
 0x1e4   : > { %v2299_v2 = vrot.slane %v2298_v0, 1  ;;  %v2305_v3 = vrot.slane %v2304_v62, 1 }
 0x1e5   : > { %v2288_v35 = vmax.f32 %v2286_v26, %v2287_v30  ;;  %v2294_v4 = vmax.f32 %v2292_v63, %v2293_v1 }
 0x1e6   : > { %v2300_v5 = vmax.f32 %v2298_v0, %v2299_v2  ;;  %v2306_v6 = vmax.f32 %v2304_v62, %v2305_v3 }
 0x1e7   : > { %v2344_v7 = vsel %vm331_vm0, %v2294_v4, %v2288_v35 }
 0x1e8   : > { %v2345_v8 = vsel %vm334_vm1, %v2300_v5, %v2344_v7 }
 0x1e9   : > { %v2346_v9 = vsel %vm337_vm2, %v2306_v6, %v2345_v8 }
 0x1ea   : > { %v2352_v10 = vmax.f32 %v2309_v39, %v2346_v9 }
 0x1ec   : > { %2355 = vst [vmem:[#allocation3 + $0xd9] sm:$0xf] %v2352_v10 }
 0x1ed PF: > { %p2356_p13 = scmp.lt.s32.totalorder %s5939_s9, 8  ;;  %p2357_p1 = scmp.gt.s32.totalorder %s5955_s3, 6 }
 0x1ef   : > { %p6653_p2 = pnand %p2357_p1, %p2356_p13 }
 0x1f0   : > { %vm2362_vm7 = vcmp.ge.s32.totalorder (!%p6653_p2), %v6037_v34, 6  ;;  %vm2363_vm8 = vcmp.lt.s32.totalorder (!%p6653_p2), %v6037_v34, 8  ;;  %v2365_v11 = vld [vmem:[#allocation2] sm:$0xff] (!%p6653_p2)  ;;  %v2366_v12 = vld [vmem:[#allocation2 + $0x8] sm:$0xff] (!%p6653_p2)  ;;  %v2367_v13 = vld [vmem:[#allocation2 + $0x10] sm:$0xff] (!%p6653_p2) }
 0x1f1   : > { %2361 = sbr.rel (%p6653_p2) target bundleno = 547 (0x223), region = 94  ;;  %vm6661_vm9 = vmand (!%p6653_p2), %vm2362_vm7, %vm2363_vm8  ;;  %v2368_v15 = vld [vmem:[#allocation2 + $0x18] sm:$0xff] (!%p6653_p2)  ;;  %v2369_v16 = vld [vmem:[#allocation2 + $0x20] sm:$0xff] (!%p6653_p2) }
 0x1f2   : > { %v2370_v17 = vld [vmem:[#allocation2 + $0x28] sm:$0xff] (!%p6653_p2)  ;;  %v2371_v19 = vld [vmem:[#allocation2 + $0x30] sm:$0xff] (!%p6653_p2)  ;;  %v2372_v20 = vld [vmem:[#allocation2 + $0x38] sm:$0xff] (!%p6653_p2)  ;;  %v2387_v21 = vsel (!%p6653_p2), %vm6661_vm9, %v2365_v11, -inf  ;;  %v2388_v23 = vsel (!%p6653_p2), %vm6661_vm9, %v2366_v12, -inf  ;;  %v2389_v24 = vsel (!%p6653_p2), %vm6661_vm9, %v2367_v13, -inf }
 0x1f3   : > { %v2390_v25 = vsel (!%p6653_p2), %vm6661_vm9, %v2368_v15, -inf  ;;  %v2391_v27 = vsel (!%p6653_p2), %vm6661_vm9, %v2369_v16, -inf  ;;  %v2392_v28 = vsel (!%p6653_p2), %vm6661_vm9, %v2370_v17, -inf  ;;  %v2393_v29 = vsel (!%p6653_p2), %vm6661_vm9, %v2371_v19, -inf  ;;  %v2373_v5 = vld [vmem:[#allocation2 + $0x40] sm:$0xff] (!%p6653_p2)  ;;  %v2374_v6 = vld [vmem:[#allocation2 + $0x48] sm:$0xff] (!%p6653_p2) }
 0x1f4   : > { %v2394_v31 = vsel (!%p6653_p2), %vm6661_vm9, %v2372_v20, -inf  ;;  %v2407_v32 = vrot.slane (!%p6653_p2), %v2387_v21, 4  ;;  %v2413_v33 = vrot.slane (!%p6653_p2), %v2388_v23, 4  ;;  %v2419_v36 = vrot.slane (!%p6653_p2), %v2389_v24, 4  ;;  %v2375_v10 = vld [vmem:[#allocation2 + $0x50] sm:$0xff] (!%p6653_p2)  ;;  %v2376_v11 = vld [vmem:[#allocation2 + $0x58] sm:$0xff] (!%p6653_p2) }
 0x1f5   : > { %v2425_v37 = vrot.slane (!%p6653_p2), %v2390_v25, 4  ;;  %v2431_v38 = vrot.slane (!%p6653_p2), %v2391_v27, 4  ;;  %v2437_v40 = vrot.slane (!%p6653_p2), %v2392_v28, 4  ;;  %v2443_v41 = vrot.slane (!%p6653_p2), %v2393_v29, 4  ;;  %v2377_v12 = vld [vmem:[#allocation2 + $0x60] sm:$0xff] (!%p6653_p2)  ;;  %v2378_v19 = vld [vmem:[#allocation2 + $0x68] sm:$0xff] (!%p6653_p2) }
 0x1f6   : > { %v2408_v42 = vmax.f32 (!%p6653_p2), %v2387_v21, %v2407_v32  ;;  %v2414_v43 = vmax.f32 (!%p6653_p2), %v2388_v23, %v2413_v33  ;;  %v2420_v44 = vmax.f32 (!%p6653_p2), %v2389_v24, %v2419_v36  ;;  %v2449_v45 = vrot.slane (!%p6653_p2), %v2394_v31, 4  ;;  %v2379_v20 = vld [vmem:[#allocation2 + $0x70] sm:$0xff] (!%p6653_p2)  ;;  %v2380_v21 = vld [vmem:[#allocation2 + $0x78] sm:$0xff] (!%p6653_p2) }
 0x1f7   : > { %v2426_v46 = vmax.f32 (!%p6653_p2), %v2390_v25, %v2425_v37  ;;  %v2432_v47 = vmax.f32 (!%p6653_p2), %v2391_v27, %v2431_v38  ;;  %v2438_v48 = vmax.f32 (!%p6653_p2), %v2392_v28, %v2437_v40  ;;  %v2444_v49 = vmax.f32 (!%p6653_p2), %v2393_v29, %v2443_v41 }
 0x1f8   : > { %v2409_v50 = vrot.slane %v2408_v42, 2  ;;  %v2415_v51 = vrot.slane %v2414_v43, 2  ;;  %v2421_v52 = vrot.slane %v2420_v44, 2  ;;  %v2450_v53 = vmax.f32 %v2394_v31, %v2449_v45 }
 0x1f9   : > { %v2427_v54 = vrot.slane %v2426_v46, 2  ;;  %v2433_v55 = vrot.slane %v2432_v47, 2  ;;  %v2439_v18 = vrot.slane %v2438_v48, 2  ;;  %v2445_v56 = vrot.slane %v2444_v49, 2 }
 0x1fa   : > { %v2410_v57 = vmax.f32 %v2408_v42, %v2409_v50  ;;  %v2416_v58 = vmax.f32 %v2414_v43, %v2415_v51  ;;  %v2422_v22 = vmax.f32 %v2420_v44, %v2421_v52  ;;  %v2451_v59 = vrot.slane %v2450_v53, 2  ;;  %v2527_v44 = vld [vmem:[#allocation3 + $0xdd] sm:$0xff] }
 0x1fb   : > { %v2428_v60 = vmax.f32 %v2426_v46, %v2427_v54  ;;  %v2434_v61 = vmax.f32 %v2432_v47, %v2433_v55  ;;  %v2440_v26 = vmax.f32 %v2438_v48, %v2439_v18  ;;  %v2446_v63 = vmax.f32 %v2444_v49, %v2445_v56 }
 0x1fc   : > { %v2411_v0 = vrot.slane %v2410_v57, 1  ;;  %v2417_v62 = vrot.slane %v2416_v58, 1  ;;  %v2423_v30 = vrot.slane %v2422_v22, 1  ;;  %v2452_v1 = vmax.f32 %v2450_v53, %v2451_v59 }
 0x1fd   : > { %v2429_v2 = vrot.slane %v2428_v60, 1  ;;  %v2435_v3 = vrot.slane %v2434_v61, 1  ;;  %v2441_v35 = vrot.slane %v2440_v26, 1  ;;  %v2447_v4 = vrot.slane %v2446_v63, 1 }
 0x1fe   : > { %v2412_v39 = vmax.f32 %v2410_v57, %v2411_v0  ;;  %v2418_v7 = vmax.f32 %v2416_v58, %v2417_v62  ;;  %v2424_v8 = vmax.f32 %v2422_v22, %v2423_v30  ;;  %v2453_v9 = vrot.slane %v2452_v1, 1 }
 0x1ff   : > { %v2430_v13 = vmax.f32 %v2428_v60, %v2429_v2  ;;  %v2436_v15 = vmax.f32 %v2434_v61, %v2435_v3  ;;  %v2442_v16 = vmax.f32 %v2440_v26, %v2441_v35  ;;  %v2448_v17 = vmax.f32 %v2446_v63, %v2447_v4 }
 0x200   : > { %v2454_v23 = vmax.f32 %v2452_v1, %v2453_v9  ;;  %v2550_v24 = vsel %vm331_vm0, %v2418_v7, %v2412_v39  ;;  %v2395_v25 = vsel %vm6661_vm9, %v2373_v5, -inf  ;;  %v2396_v27 = vsel %vm6661_vm9, %v2374_v6, -inf }
 0x201   : > { %v2551_v28 = vsel %vm334_vm1, %v2424_v8, %v2550_v24  ;;  %v2397_v29 = vsel %vm6661_vm9, %v2375_v10, -inf  ;;  %v2398_v31 = vsel %vm6661_vm9, %v2376_v11, -inf  ;;  %v2399_v32 = vsel %vm6661_vm9, %v2377_v12, -inf  ;;  %v2381_v11 = vld [vmem:[#allocation2 + $0x80] sm:$0xff]  ;;  %v2382_v12 = vld [vmem:[#allocation2 + $0x88] sm:$0xff] }
 0x202   : > { %v2552_v33 = vsel %vm337_vm2, %v2430_v13, %v2551_v28  ;;  %v2400_v36 = vsel %vm6661_vm9, %v2378_v19, -inf  ;;  %v2401_v37 = vsel %vm6661_vm9, %v2379_v20, -inf  ;;  %v2402_v38 = vsel %vm6661_vm9, %v2380_v21, -inf  ;;  %v2383_v19 = vld [vmem:[#allocation2 + $0x90] sm:$0xff]  ;;  %v2384_v20 = vld [vmem:[#allocation2 + $0x98] sm:$0xff] }
 0x203   : > { %v2553_v40 = vsel %vm340_vm3, %v2436_v15, %v2552_v33  ;;  %v2455_v41 = vrot.slane %v2395_v25, 4  ;;  %v2461_v42 = vrot.slane %v2396_v27, 4  ;;  %v2467_v43 = vrot.slane %v2397_v29, 4 }
 0x204   : > { %v2554_v45 = vsel %vm343_vm4, %v2442_v16, %v2553_v40  ;;  %v2473_v46 = vrot.slane %v2398_v31, 4  ;;  %v2479_v47 = vrot.slane %v2399_v32, 4  ;;  %v2485_v48 = vrot.slane %v2400_v36, 4 }
 0x205   : > { %v2555_v49 = vsel %vm346_vm5, %v2448_v17, %v2554_v45  ;;  %v2456_v50 = vmax.f32 %v2395_v25, %v2455_v41  ;;  %v2462_v51 = vmax.f32 %v2396_v27, %v2461_v42  ;;  %v2468_v52 = vmax.f32 %v2397_v29, %v2467_v43 }
 0x206   : > { %v2556_v53 = vsel %vm349_vm6, %v2454_v23, %v2555_v49  ;;  %v2474_v54 = vmax.f32 %v2398_v31, %v2473_v46  ;;  %v2480_v55 = vmax.f32 %v2399_v32, %v2479_v47  ;;  %v2486_v18 = vmax.f32 %v2400_v36, %v2485_v48  ;;  %v2528_v48 = vld [vmem:[#allocation3 + $0xe5] sm:$0xff] }
 0x207   : > { %v2570_v56 = vmax.f32 %v2527_v44, %v2556_v53  ;;  %v2457_v57 = vrot.slane %v2456_v50, 2  ;;  %v2463_v58 = vrot.slane %v2462_v51, 2  ;;  %v2469_v22 = vrot.slane %v2468_v52, 2 }
 0x208   : > { %v2475_v59 = vrot.slane %v2474_v54, 2  ;;  %v2481_v60 = vrot.slane %v2480_v55, 2  ;;  %v2487_v61 = vrot.slane %v2486_v18, 2  ;;  %v2491_v26 = vrot.slane %v2401_v37, 4 }
 0x209   : > { %2573 = vst [vmem:[#allocation3 + $0xdd] sm:$0xff] %v2570_v56  ;;  %v2458_v63 = vmax.f32 %v2456_v50, %v2457_v57  ;;  %v2464_v0 = vmax.f32 %v2462_v51, %v2463_v58  ;;  %v2470_v62 = vmax.f32 %v2468_v52, %v2469_v22  ;;  %v2497_v30 = vrot.slane %v2402_v38, 4 }
 0x20a   : > { %v2476_v1 = vmax.f32 %v2474_v54, %v2475_v59  ;;  %v2482_v2 = vmax.f32 %v2480_v55, %v2481_v60  ;;  %v2488_v3 = vmax.f32 %v2486_v18, %v2487_v61  ;;  %v2492_v35 = vmax.f32 %v2401_v37, %v2491_v26 }
 0x20b   : > { %v2459_v4 = vrot.slane %v2458_v63, 1  ;;  %v2465_v5 = vrot.slane %v2464_v0, 1  ;;  %v2471_v6 = vrot.slane %v2470_v62, 1  ;;  %v2498_v39 = vmax.f32 %v2402_v38, %v2497_v30 }
 0x20c   : > { %v2477_v7 = vrot.slane %v2476_v1, 1  ;;  %v2483_v8 = vrot.slane %v2482_v2, 1  ;;  %v2489_v9 = vrot.slane %v2488_v3, 1  ;;  %v2493_v10 = vrot.slane %v2492_v35, 2 }
 0x20d   : > { %v2460_v13 = vmax.f32 %v2458_v63, %v2459_v4  ;;  %v2466_v15 = vmax.f32 %v2464_v0, %v2465_v5  ;;  %v2472_v16 = vmax.f32 %v2470_v62, %v2471_v6  ;;  %v2499_v17 = vrot.slane %v2498_v39, 2 }
 0x20e   : > { %v2478_v21 = vmax.f32 %v2476_v1, %v2477_v7  ;;  %v2484_v23 = vmax.f32 %v2482_v2, %v2483_v8  ;;  %v2490_v24 = vmax.f32 %v2488_v3, %v2489_v9  ;;  %v2494_v25 = vmax.f32 %v2492_v35, %v2493_v10  ;;  %v2529_v35 = vld [vmem:[#allocation3 + $0xed] sm:$0xf] }
 0x20f   : > { %v2500_v27 = vmax.f32 %v2498_v39, %v2499_v17  ;;  %v2557_v28 = vsel %vm331_vm0, %v2466_v15, %v2460_v13  ;;  %v2403_v29 = vsel %vm6661_vm9, %v2381_v11, -inf  ;;  %v2404_v31 = vsel %vm6661_vm9, %v2382_v12, -inf }
 0x210   : > { %v2495_v32 = vrot.slane %v2494_v25, 1  ;;  %v2558_v33 = vsel %vm334_vm1, %v2472_v16, %v2557_v28  ;;  %v2405_v36 = vsel %vm6661_vm9, %v2383_v19, -inf  ;;  %v2406_v37 = vsel %vm6661_vm9, %v2384_v20, -inf }
 0x211   : > { %v2501_v38 = vrot.slane %v2500_v27, 1  ;;  %v2559_v40 = vsel %vm337_vm2, %v2478_v21, %v2558_v33  ;;  %v2503_v41 = vrot.slane %v2403_v29, 4  ;;  %v2509_v42 = vrot.slane %v2404_v31, 4 }
 0x212   : > { %v2496_v43 = vmax.f32 %v2494_v25, %v2495_v32  ;;  %v2560_v44 = vsel %vm340_vm3, %v2484_v23, %v2559_v40  ;;  %v2515_v45 = vrot.slane %v2405_v36, 4  ;;  %v2521_v46 = vrot.slane %v2406_v37, 4 }
 0x213   : > { %v2502_v47 = vmax.f32 %v2500_v27, %v2501_v38  ;;  %v2561_v49 = vsel %vm343_vm4, %v2490_v24, %v2560_v44  ;;  %v2504_v50 = vmax.f32 %v2403_v29, %v2503_v41  ;;  %v2510_v51 = vmax.f32 %v2404_v31, %v2509_v42 }
 0x214   : > { %v2562_v52 = vsel %vm346_vm5, %v2496_v43, %v2561_v49  ;;  %v2516_v14 = vmax.f32 %v2405_v36, %v2515_v45  ;;  %v2522_v53 = vmax.f32 %v2406_v37, %v2521_v46 }
 0x215   : > { %v2563_v54 = vsel %vm349_vm6, %v2502_v47, %v2562_v52  ;;  %v2505_v55 = vrot.slane %v2504_v50, 2  ;;  %v2511_v18 = vrot.slane %v2510_v51, 2 }
 0x216   : > { %v2571_v56 = vmax.f32 %v2528_v48, %v2563_v54  ;;  %v2517_v57 = vrot.slane %v2516_v14, 2  ;;  %v2523_v58 = vrot.slane %v2522_v53, 2 }
 0x217   : > { %v2506_v22 = vmax.f32 %v2504_v50, %v2505_v55  ;;  %v2512_v59 = vmax.f32 %v2510_v51, %v2511_v18 }
 0x218   : > { %2574 = vst [vmem:[#allocation3 + $0xe5] sm:$0xff] %v2571_v56  ;;  %v2518_v60 = vmax.f32 %v2516_v14, %v2517_v57  ;;  %v2524_v61 = vmax.f32 %v2522_v53, %v2523_v58 }
 0x219   : > { %v2507_v26 = vrot.slane %v2506_v22, 1  ;;  %v2513_v63 = vrot.slane %v2512_v59, 1 }
 0x21a   : > { %v2519_v0 = vrot.slane %v2518_v60, 1  ;;  %v2525_v62 = vrot.slane %v2524_v61, 1 }
 0x21b   : > { %v2508_v30 = vmax.f32 %v2506_v22, %v2507_v26  ;;  %v2514_v1 = vmax.f32 %v2512_v59, %v2513_v63 }
 0x21c   : > { %v2520_v2 = vmax.f32 %v2518_v60, %v2519_v0  ;;  %v2526_v3 = vmax.f32 %v2524_v61, %v2525_v62 }
 0x21d   : > { %v2564_v4 = vsel %vm331_vm0, %v2514_v1, %v2508_v30 }
 0x21e   : > { %v2565_v5 = vsel %vm334_vm1, %v2520_v2, %v2564_v4 }
 0x21f   : > { %v2566_v6 = vsel %vm337_vm2, %v2526_v3, %v2565_v5 }
 0x220   : > { %v2572_v39 = vmax.f32 %v2529_v35, %v2566_v6 }
 0x222   : > { %2575 = vst [vmem:[#allocation3 + $0xed] sm:$0xf] %v2572_v39 }
 0x223 PF: > { %p2576_p3 = scmp.lt.s32.totalorder %s5939_s9, 9  ;;  %p2577_p4 = scmp.gt.s32.totalorder %s5955_s3, 7 }
 0x225   : > { %p2578_p5 = pnand %p2577_p4, %p2576_p3 }
 0x226   : > { %vm2582_vm10 = vcmp.ge.s32.totalorder (!%p2578_p5), %v6037_v34, 7  ;;  %vm2583_vm11 = vcmp.lt.s32.totalorder (!%p2578_p5), %v6037_v34, 9  ;;  %v2585_v7 = vld [vmem:[#allocation2] sm:$0xff] (!%p2578_p5)  ;;  %v2586_v8 = vld [vmem:[#allocation2 + $0x8] sm:$0xff] (!%p2578_p5)  ;;  %v2587_v9 = vld [vmem:[#allocation2 + $0x10] sm:$0xff] (!%p2578_p5) }
 0x227   : > { %2581 = sbr.rel (%p2578_p5) target bundleno = 601 (0x259), region = 98  ;;  %vm6726_vm12 = vmand (!%p2578_p5), %vm2582_vm10, %vm2583_vm11  ;;  %v2588_v11 = vld [vmem:[#allocation2 + $0x18] sm:$0xff] (!%p2578_p5)  ;;  %v2589_v12 = vld [vmem:[#allocation2 + $0x20] sm:$0xff] (!%p2578_p5) }
 0x228   : > { %v2590_v13 = vld [vmem:[#allocation2 + $0x28] sm:$0xff] (!%p2578_p5)  ;;  %v2591_v15 = vld [vmem:[#allocation2 + $0x30] sm:$0xff] (!%p2578_p5)  ;;  %v2592_v16 = vld [vmem:[#allocation2 + $0x38] sm:$0xff] (!%p2578_p5)  ;;  %v2607_v17 = vsel (!%p2578_p5), %vm6726_vm12, %v2585_v7, -inf  ;;  %v2608_v19 = vsel (!%p2578_p5), %vm6726_vm12, %v2586_v8, -inf  ;;  %v2609_v20 = vsel (!%p2578_p5), %vm6726_vm12, %v2587_v9, -inf }
 0x229   : > { %v2610_v21 = vsel (!%p2578_p5), %vm6726_vm12, %v2588_v11, -inf  ;;  %v2611_v23 = vsel (!%p2578_p5), %vm6726_vm12, %v2589_v12, -inf  ;;  %v2612_v24 = vsel (!%p2578_p5), %vm6726_vm12, %v2590_v13, -inf  ;;  %v2613_v25 = vsel (!%p2578_p5), %vm6726_vm12, %v2591_v15, -inf  ;;  %v2593_v2 = vld [vmem:[#allocation2 + $0x40] sm:$0xff] (!%p2578_p5)  ;;  %v2594_v3 = vld [vmem:[#allocation2 + $0x48] sm:$0xff] (!%p2578_p5) }
 0x22a   : > { %v2614_v27 = vsel (!%p2578_p5), %vm6726_vm12, %v2592_v16, -inf  ;;  %v2627_v28 = vrot.slane (!%p2578_p5), %v2607_v17, 4  ;;  %v2633_v29 = vrot.slane (!%p2578_p5), %v2608_v19, 4  ;;  %v2639_v31 = vrot.slane (!%p2578_p5), %v2609_v20, 4  ;;  %v2595_v39 = vld [vmem:[#allocation2 + $0x50] sm:$0xff] (!%p2578_p5)  ;;  %v2596_v7 = vld [vmem:[#allocation2 + $0x58] sm:$0xff] (!%p2578_p5) }
 0x22b   : > { %v2645_v32 = vrot.slane (!%p2578_p5), %v2610_v21, 4  ;;  %v2651_v33 = vrot.slane (!%p2578_p5), %v2611_v23, 4  ;;  %v2657_v36 = vrot.slane (!%p2578_p5), %v2612_v24, 4  ;;  %v2663_v37 = vrot.slane (!%p2578_p5), %v2613_v25, 4  ;;  %v2597_v8 = vld [vmem:[#allocation2 + $0x60] sm:$0xff] (!%p2578_p5)  ;;  %v2598_v15 = vld [vmem:[#allocation2 + $0x68] sm:$0xff] (!%p2578_p5) }
 0x22c   : > { %v2628_v38 = vmax.f32 (!%p2578_p5), %v2607_v17, %v2627_v28  ;;  %v2634_v40 = vmax.f32 (!%p2578_p5), %v2608_v19, %v2633_v29  ;;  %v2640_v41 = vmax.f32 (!%p2578_p5), %v2609_v20, %v2639_v31  ;;  %v2669_v42 = vrot.slane (!%p2578_p5), %v2614_v27, 4  ;;  %v2599_v16 = vld [vmem:[#allocation2 + $0x70] sm:$0xff] (!%p2578_p5)  ;;  %v2600_v17 = vld [vmem:[#allocation2 + $0x78] sm:$0xff] (!%p2578_p5) }
 0x22d   : > { %v2646_v43 = vmax.f32 (!%p2578_p5), %v2610_v21, %v2645_v32  ;;  %v2652_v44 = vmax.f32 (!%p2578_p5), %v2611_v23, %v2651_v33  ;;  %v2658_v45 = vmax.f32 (!%p2578_p5), %v2612_v24, %v2657_v36  ;;  %v2664_v46 = vmax.f32 (!%p2578_p5), %v2613_v25, %v2663_v37 }
 0x22e   : > { %v2629_v47 = vrot.slane %v2628_v38, 2  ;;  %v2635_v48 = vrot.slane %v2634_v40, 2  ;;  %v2641_v49 = vrot.slane %v2640_v41, 2  ;;  %v2670_v50 = vmax.f32 %v2614_v27, %v2669_v42 }
 0x22f   : > { %v2647_v51 = vrot.slane %v2646_v43, 2  ;;  %v2653_v52 = vrot.slane %v2652_v44, 2  ;;  %v2659_v14 = vrot.slane %v2658_v45, 2  ;;  %v2665_v53 = vrot.slane %v2664_v46, 2 }
 0x230   : > { %v2630_v54 = vmax.f32 %v2628_v38, %v2629_v47  ;;  %v2636_v55 = vmax.f32 %v2634_v40, %v2635_v48  ;;  %v2642_v18 = vmax.f32 %v2640_v41, %v2641_v49  ;;  %v2671_v56 = vrot.slane %v2670_v50, 2  ;;  %v2747_v41 = vld [vmem:[#allocation3 + $0xf1] sm:$0xff] }
 0x231   : > { %v2648_v57 = vmax.f32 %v2646_v43, %v2647_v51  ;;  %v2654_v58 = vmax.f32 %v2652_v44, %v2653_v52  ;;  %v2660_v22 = vmax.f32 %v2658_v45, %v2659_v14  ;;  %v2666_v59 = vmax.f32 %v2664_v46, %v2665_v53 }
 0x232   : > { %v2631_v60 = vrot.slane %v2630_v54, 1  ;;  %v2637_v61 = vrot.slane %v2636_v55, 1  ;;  %v2643_v26 = vrot.slane %v2642_v18, 1  ;;  %v2672_v63 = vmax.f32 %v2670_v50, %v2671_v56 }
 0x233   : > { %v2649_v0 = vrot.slane %v2648_v57, 1  ;;  %v2655_v62 = vrot.slane %v2654_v58, 1  ;;  %v2661_v30 = vrot.slane %v2660_v22, 1  ;;  %v2667_v1 = vrot.slane %v2666_v59, 1 }
 0x234   : > { %v2632_v35 = vmax.f32 %v2630_v54, %v2631_v60  ;;  %v2638_v4 = vmax.f32 %v2636_v55, %v2637_v61  ;;  %v2644_v5 = vmax.f32 %v2642_v18, %v2643_v26  ;;  %v2673_v6 = vrot.slane %v2672_v63, 1 }
 0x235   : > { %v2650_v9 = vmax.f32 %v2648_v57, %v2649_v0  ;;  %v2656_v11 = vmax.f32 %v2654_v58, %v2655_v62  ;;  %v2662_v12 = vmax.f32 %v2660_v22, %v2661_v30  ;;  %v2668_v13 = vmax.f32 %v2666_v59, %v2667_v1 }
 0x236   : > { %v2674_v19 = vmax.f32 %v2672_v63, %v2673_v6  ;;  %v2770_v20 = vsel %vm331_vm0, %v2638_v4, %v2632_v35  ;;  %v2615_v21 = vsel %vm6726_vm12, %v2593_v2, -inf  ;;  %v2616_v23 = vsel %vm6726_vm12, %v2594_v3, -inf }
 0x237   : > { %v2771_v24 = vsel %vm334_vm1, %v2644_v5, %v2770_v20  ;;  %v2617_v25 = vsel %vm6726_vm12, %v2595_v39, -inf  ;;  %v2618_v27 = vsel %vm6726_vm12, %v2596_v7, -inf  ;;  %v2619_v28 = vsel %vm6726_vm12, %v2597_v8, -inf  ;;  %v2601_v7 = vld [vmem:[#allocation2 + $0x80] sm:$0xff]  ;;  %v2602_v8 = vld [vmem:[#allocation2 + $0x88] sm:$0xff] }
 0x238   : > { %v2772_v29 = vsel %vm337_vm2, %v2650_v9, %v2771_v24  ;;  %v2620_v31 = vsel %vm6726_vm12, %v2598_v15, -inf  ;;  %v2621_v32 = vsel %vm6726_vm12, %v2599_v16, -inf  ;;  %v2622_v33 = vsel %vm6726_vm12, %v2600_v17, -inf  ;;  %v2603_v15 = vld [vmem:[#allocation2 + $0x90] sm:$0xff]  ;;  %v2604_v16 = vld [vmem:[#allocation2 + $0x98] sm:$0xff] }
 0x239   : > { %v2773_v36 = vsel %vm340_vm3, %v2656_v11, %v2772_v29  ;;  %v2675_v37 = vrot.slane %v2615_v21, 4  ;;  %v2681_v38 = vrot.slane %v2616_v23, 4  ;;  %v2687_v40 = vrot.slane %v2617_v25, 4 }
 0x23a   : > { %v2774_v42 = vsel %vm343_vm4, %v2662_v12, %v2773_v36  ;;  %v2693_v43 = vrot.slane %v2618_v27, 4  ;;  %v2699_v44 = vrot.slane %v2619_v28, 4  ;;  %v2705_v45 = vrot.slane %v2620_v31, 4 }
 0x23b   : > { %v2775_v46 = vsel %vm346_vm5, %v2668_v13, %v2774_v42  ;;  %v2676_v47 = vmax.f32 %v2615_v21, %v2675_v37  ;;  %v2682_v48 = vmax.f32 %v2616_v23, %v2681_v38  ;;  %v2688_v49 = vmax.f32 %v2617_v25, %v2687_v40 }
 0x23c   : > { %v2776_v50 = vsel %vm349_vm6, %v2674_v19, %v2775_v46  ;;  %v2694_v51 = vmax.f32 %v2618_v27, %v2693_v43  ;;  %v2700_v52 = vmax.f32 %v2619_v28, %v2699_v44  ;;  %v2706_v14 = vmax.f32 %v2620_v31, %v2705_v45  ;;  %v2748_v45 = vld [vmem:[#allocation3 + $0xf9] sm:$0xff] }
 0x23d   : > { %v2790_v53 = vmax.f32 %v2747_v41, %v2776_v50  ;;  %v2677_v54 = vrot.slane %v2676_v47, 2  ;;  %v2683_v55 = vrot.slane %v2682_v48, 2  ;;  %v2689_v18 = vrot.slane %v2688_v49, 2 }
 0x23e   : > { %v2695_v56 = vrot.slane %v2694_v51, 2  ;;  %v2701_v57 = vrot.slane %v2700_v52, 2  ;;  %v2707_v58 = vrot.slane %v2706_v14, 2  ;;  %v2711_v22 = vrot.slane %v2621_v32, 4 }
 0x23f   : > { %2793 = vst [vmem:[#allocation3 + $0xf1] sm:$0xff] %v2790_v53  ;;  %v2678_v59 = vmax.f32 %v2676_v47, %v2677_v54  ;;  %v2684_v60 = vmax.f32 %v2682_v48, %v2683_v55  ;;  %v2690_v61 = vmax.f32 %v2688_v49, %v2689_v18  ;;  %v2717_v26 = vrot.slane %v2622_v33, 4 }
 0x240   : > { %v2696_v63 = vmax.f32 %v2694_v51, %v2695_v56  ;;  %v2702_v0 = vmax.f32 %v2700_v52, %v2701_v57  ;;  %v2708_v62 = vmax.f32 %v2706_v14, %v2707_v58  ;;  %v2712_v30 = vmax.f32 %v2621_v32, %v2711_v22 }
 0x241   : > { %v2679_v1 = vrot.slane %v2678_v59, 1  ;;  %v2685_v2 = vrot.slane %v2684_v60, 1  ;;  %v2691_v3 = vrot.slane %v2690_v61, 1  ;;  %v2718_v35 = vmax.f32 %v2622_v33, %v2717_v26 }
 0x242   : > { %v2697_v4 = vrot.slane %v2696_v63, 1  ;;  %v2703_v5 = vrot.slane %v2702_v0, 1  ;;  %v2709_v6 = vrot.slane %v2708_v62, 1  ;;  %v2713_v39 = vrot.slane %v2712_v30, 2 }
 0x243   : > { %v2680_v9 = vmax.f32 %v2678_v59, %v2679_v1  ;;  %v2686_v11 = vmax.f32 %v2684_v60, %v2685_v2  ;;  %v2692_v12 = vmax.f32 %v2690_v61, %v2691_v3  ;;  %v2719_v13 = vrot.slane %v2718_v35, 2 }
 0x244   : > { %v2698_v17 = vmax.f32 %v2696_v63, %v2697_v4  ;;  %v2704_v19 = vmax.f32 %v2702_v0, %v2703_v5  ;;  %v2710_v20 = vmax.f32 %v2708_v62, %v2709_v6  ;;  %v2714_v21 = vmax.f32 %v2712_v30, %v2713_v39  ;;  %v2749_v30 = vld [vmem:[#allocation3 + $0x101] sm:$0xf] }
 0x245   : > { %v2720_v23 = vmax.f32 %v2718_v35, %v2719_v13  ;;  %v2777_v24 = vsel %vm331_vm0, %v2686_v11, %v2680_v9  ;;  %v2623_v25 = vsel %vm6726_vm12, %v2601_v7, -inf  ;;  %v2624_v27 = vsel %vm6726_vm12, %v2602_v8, -inf }
 0x246   : > { %v2715_v28 = vrot.slane %v2714_v21, 1  ;;  %v2778_v29 = vsel %vm334_vm1, %v2692_v12, %v2777_v24  ;;  %v2625_v31 = vsel %vm6726_vm12, %v2603_v15, -inf  ;;  %v2626_v32 = vsel %vm6726_vm12, %v2604_v16, -inf }
 0x247   : > { %v2721_v33 = vrot.slane %v2720_v23, 1  ;;  %v2779_v36 = vsel %vm337_vm2, %v2698_v17, %v2778_v29  ;;  %v2723_v37 = vrot.slane %v2623_v25, 4  ;;  %v2729_v38 = vrot.slane %v2624_v27, 4 }
 0x248   : > { %v2716_v40 = vmax.f32 %v2714_v21, %v2715_v28  ;;  %v2780_v41 = vsel %vm340_vm3, %v2704_v19, %v2779_v36  ;;  %v2735_v42 = vrot.slane %v2625_v31, 4  ;;  %v2741_v43 = vrot.slane %v2626_v32, 4 }
 0x249   : > { %v2722_v44 = vmax.f32 %v2720_v23, %v2721_v33  ;;  %v2781_v46 = vsel %vm343_vm4, %v2710_v20, %v2780_v41  ;;  %v2724_v47 = vmax.f32 %v2623_v25, %v2723_v37  ;;  %v2730_v48 = vmax.f32 %v2624_v27, %v2729_v38 }
 0x24a   : > { %v2782_v49 = vsel %vm346_vm5, %v2716_v40, %v2781_v46  ;;  %v2736_v10 = vmax.f32 %v2625_v31, %v2735_v42  ;;  %v2742_v50 = vmax.f32 %v2626_v32, %v2741_v43 }
 0x24b   : > { %v2783_v51 = vsel %vm349_vm6, %v2722_v44, %v2782_v49  ;;  %v2725_v52 = vrot.slane %v2724_v47, 2  ;;  %v2731_v14 = vrot.slane %v2730_v48, 2 }
 0x24c   : > { %v2791_v53 = vmax.f32 %v2748_v45, %v2783_v51  ;;  %v2737_v54 = vrot.slane %v2736_v10, 2  ;;  %v2743_v55 = vrot.slane %v2742_v50, 2 }
 0x24d   : > { %v2726_v18 = vmax.f32 %v2724_v47, %v2725_v52  ;;  %v2732_v56 = vmax.f32 %v2730_v48, %v2731_v14 }
 0x24e   : > { %2794 = vst [vmem:[#allocation3 + $0xf9] sm:$0xff] %v2791_v53  ;;  %v2738_v57 = vmax.f32 %v2736_v10, %v2737_v54  ;;  %v2744_v58 = vmax.f32 %v2742_v50, %v2743_v55 }
 0x24f   : > { %v2727_v22 = vrot.slane %v2726_v18, 1  ;;  %v2733_v59 = vrot.slane %v2732_v56, 1 }
 0x250   : > { %v2739_v60 = vrot.slane %v2738_v57, 1  ;;  %v2745_v61 = vrot.slane %v2744_v58, 1 }
 0x251   : > { %v2728_v26 = vmax.f32 %v2726_v18, %v2727_v22  ;;  %v2734_v63 = vmax.f32 %v2732_v56, %v2733_v59 }
 0x252   : > { %v2740_v0 = vmax.f32 %v2738_v57, %v2739_v60  ;;  %v2746_v62 = vmax.f32 %v2744_v58, %v2745_v61 }
 0x253   : > { %v2784_v1 = vsel %vm331_vm0, %v2734_v63, %v2728_v26 }
 0x254   : > { %v2785_v2 = vsel %vm334_vm1, %v2740_v0, %v2784_v1 }
 0x255   : > { %v2786_v3 = vsel %vm337_vm2, %v2746_v62, %v2785_v2 }
 0x256   : > { %v2792_v35 = vmax.f32 %v2749_v30, %v2786_v3 }
 0x258   : > { %2795 = vst [vmem:[#allocation3 + $0x101] sm:$0xf] %v2792_v35 }
 0x259 PF: > { %p2796_p9 = scmp.lt.s32.totalorder %s5939_s9, 10  ;;  %p2797_p10 = scmp.gt.s32.totalorder %s5955_s3, 8 }
 0x25b   : > { %p6789_p11 = pnand %p2797_p10, %p2796_p9 }
 0x25c   : > { %vm2802_vm13 = vcmp.ge.s32.totalorder (!%p6789_p11), %v6037_v34, 8  ;;  %vm2803_vm14 = vcmp.lt.s32.totalorder (!%p6789_p11), %v6037_v34, 10  ;;  %v2805_v4 = vld [vmem:[#allocation2] sm:$0xff] (!%p6789_p11)  ;;  %v2806_v5 = vld [vmem:[#allocation2 + $0x8] sm:$0xff] (!%p6789_p11)  ;;  %v2807_v6 = vld [vmem:[#allocation2 + $0x10] sm:$0xff] (!%p6789_p11) }
 0x25d   : > { %2801 = sbr.rel (%p6789_p11) target bundleno = 655 (0x28f), region = 102  ;;  %vm6797_vm15 = vmand (!%p6789_p11), %vm2802_vm13, %vm2803_vm14  ;;  %v2808_v7 = vld [vmem:[#allocation2 + $0x18] sm:$0xff] (!%p6789_p11)  ;;  %v2809_v8 = vld [vmem:[#allocation2 + $0x20] sm:$0xff] (!%p6789_p11) }
 0x25e   : > { %v2810_v9 = vld [vmem:[#allocation2 + $0x28] sm:$0xff] (!%p6789_p11)  ;;  %v2811_v11 = vld [vmem:[#allocation2 + $0x30] sm:$0xff] (!%p6789_p11)  ;;  %v2812_v12 = vld [vmem:[#allocation2 + $0x38] sm:$0xff] (!%p6789_p11)  ;;  %v2827_v13 = vsel (!%p6789_p11), %vm6797_vm15, %v2805_v4, -inf  ;;  %v2828_v15 = vsel (!%p6789_p11), %vm6797_vm15, %v2806_v5, -inf  ;;  %v2829_v16 = vsel (!%p6789_p11), %vm6797_vm15, %v2807_v6, -inf }
 0x25f   : > { %v2830_v17 = vsel (!%p6789_p11), %vm6797_vm15, %v2808_v7, -inf  ;;  %v2831_v19 = vsel (!%p6789_p11), %vm6797_vm15, %v2809_v8, -inf  ;;  %v2832_v20 = vsel (!%p6789_p11), %vm6797_vm15, %v2810_v9, -inf  ;;  %v2833_v21 = vsel (!%p6789_p11), %vm6797_vm15, %v2811_v11, -inf  ;;  %v2813_v0 = vld [vmem:[#allocation2 + $0x40] sm:$0xff] (!%p6789_p11)  ;;  %v2814_v62 = vld [vmem:[#allocation2 + $0x48] sm:$0xff] (!%p6789_p11) }
 0x260   : > { %v2834_v23 = vsel (!%p6789_p11), %vm6797_vm15, %v2812_v12, -inf  ;;  %v2847_v24 = vrot.slane (!%p6789_p11), %v2827_v13, 4  ;;  %v2853_v25 = vrot.slane (!%p6789_p11), %v2828_v15, 4  ;;  %v2859_v27 = vrot.slane (!%p6789_p11), %v2829_v16, 4  ;;  %v2815_v35 = vld [vmem:[#allocation2 + $0x50] sm:$0xff] (!%p6789_p11)  ;;  %v2816_v4 = vld [vmem:[#allocation2 + $0x58] sm:$0xff] (!%p6789_p11) }
 0x261   : > { %v2865_v28 = vrot.slane (!%p6789_p11), %v2830_v17, 4  ;;  %v2871_v29 = vrot.slane (!%p6789_p11), %v2831_v19, 4  ;;  %v2877_v31 = vrot.slane (!%p6789_p11), %v2832_v20, 4  ;;  %v2883_v32 = vrot.slane (!%p6789_p11), %v2833_v21, 4  ;;  %v2817_v5 = vld [vmem:[#allocation2 + $0x60] sm:$0xff] (!%p6789_p11)  ;;  %v2818_v11 = vld [vmem:[#allocation2 + $0x68] sm:$0xff] (!%p6789_p11) }
 0x262   : > { %v2848_v33 = vmax.f32 (!%p6789_p11), %v2827_v13, %v2847_v24  ;;  %v2854_v36 = vmax.f32 (!%p6789_p11), %v2828_v15, %v2853_v25  ;;  %v2860_v37 = vmax.f32 (!%p6789_p11), %v2829_v16, %v2859_v27  ;;  %v2889_v38 = vrot.slane (!%p6789_p11), %v2834_v23, 4  ;;  %v2819_v12 = vld [vmem:[#allocation2 + $0x70] sm:$0xff] (!%p6789_p11)  ;;  %v2820_v13 = vld [vmem:[#allocation2 + $0x78] sm:$0xff] (!%p6789_p11) }
 0x263   : > { %v2866_v40 = vmax.f32 (!%p6789_p11), %v2830_v17, %v2865_v28  ;;  %v2872_v41 = vmax.f32 (!%p6789_p11), %v2831_v19, %v2871_v29  ;;  %v2878_v42 = vmax.f32 (!%p6789_p11), %v2832_v20, %v2877_v31  ;;  %v2884_v43 = vmax.f32 (!%p6789_p11), %v2833_v21, %v2883_v32 }
 0x264   : > { %v2849_v44 = vrot.slane %v2848_v33, 2  ;;  %v2855_v45 = vrot.slane %v2854_v36, 2  ;;  %v2861_v46 = vrot.slane %v2860_v37, 2  ;;  %v2890_v47 = vmax.f32 %v2834_v23, %v2889_v38 }
 0x265   : > { %v2867_v48 = vrot.slane %v2866_v40, 2  ;;  %v2873_v49 = vrot.slane %v2872_v41, 2  ;;  %v2879_v10 = vrot.slane %v2878_v42, 2  ;;  %v2885_v50 = vrot.slane %v2884_v43, 2 }
 0x266   : > { %v2850_v51 = vmax.f32 %v2848_v33, %v2849_v44  ;;  %v2856_v52 = vmax.f32 %v2854_v36, %v2855_v45  ;;  %v2862_v14 = vmax.f32 %v2860_v37, %v2861_v46  ;;  %v2891_v53 = vrot.slane %v2890_v47, 2  ;;  %v2967_v37 = vld [vmem:[#allocation3 + $0x105] sm:$0xff] }
 0x267   : > { %v2868_v54 = vmax.f32 %v2866_v40, %v2867_v48  ;;  %v2874_v55 = vmax.f32 %v2872_v41, %v2873_v49  ;;  %v2880_v18 = vmax.f32 %v2878_v42, %v2879_v10  ;;  %v2886_v56 = vmax.f32 %v2884_v43, %v2885_v50 }
 0x268   : > { %v2851_v57 = vrot.slane %v2850_v51, 1  ;;  %v2857_v58 = vrot.slane %v2856_v52, 1  ;;  %v2863_v22 = vrot.slane %v2862_v14, 1  ;;  %v2892_v59 = vmax.f32 %v2890_v47, %v2891_v53 }
 0x269   : > { %v2869_v60 = vrot.slane %v2868_v54, 1  ;;  %v2875_v61 = vrot.slane %v2874_v55, 1  ;;  %v2881_v26 = vrot.slane %v2880_v18, 1  ;;  %v2887_v63 = vrot.slane %v2886_v56, 1 }
 0x26a   : > { %v2852_v30 = vmax.f32 %v2850_v51, %v2851_v57  ;;  %v2858_v1 = vmax.f32 %v2856_v52, %v2857_v58  ;;  %v2864_v2 = vmax.f32 %v2862_v14, %v2863_v22  ;;  %v2893_v3 = vrot.slane %v2892_v59, 1 }
 0x26b   : > { %v2870_v6 = vmax.f32 %v2868_v54, %v2869_v60  ;;  %v2876_v7 = vmax.f32 %v2874_v55, %v2875_v61  ;;  %v2882_v8 = vmax.f32 %v2880_v18, %v2881_v26  ;;  %v2888_v9 = vmax.f32 %v2886_v56, %v2887_v63 }
 0x26c   : > { %v2894_v15 = vmax.f32 %v2892_v59, %v2893_v3  ;;  %v2990_v16 = vsel %vm331_vm0, %v2858_v1, %v2852_v30  ;;  %v2835_v17 = vsel %vm6797_vm15, %v2813_v0, -inf  ;;  %v2836_v19 = vsel %vm6797_vm15, %v2814_v62, -inf }
 0x26d   : > { %v2991_v20 = vsel %vm334_vm1, %v2864_v2, %v2990_v16  ;;  %v2837_v21 = vsel %vm6797_vm15, %v2815_v35, -inf  ;;  %v2838_v23 = vsel %vm6797_vm15, %v2816_v4, -inf  ;;  %v2839_v24 = vsel %vm6797_vm15, %v2817_v5, -inf  ;;  %v2821_v4 = vld [vmem:[#allocation2 + $0x80] sm:$0xff]  ;;  %v2822_v5 = vld [vmem:[#allocation2 + $0x88] sm:$0xff] }
 0x26e   : > { %v2992_v25 = vsel %vm337_vm2, %v2870_v6, %v2991_v20  ;;  %v2840_v27 = vsel %vm6797_vm15, %v2818_v11, -inf  ;;  %v2841_v28 = vsel %vm6797_vm15, %v2819_v12, -inf  ;;  %v2842_v29 = vsel %vm6797_vm15, %v2820_v13, -inf  ;;  %v2823_v11 = vld [vmem:[#allocation2 + $0x90] sm:$0xff]  ;;  %v2824_v12 = vld [vmem:[#allocation2 + $0x98] sm:$0xff] }
 0x26f   : > { %v2993_v31 = vsel %vm340_vm3, %v2876_v7, %v2992_v25  ;;  %v2895_v32 = vrot.slane %v2835_v17, 4  ;;  %v2901_v33 = vrot.slane %v2836_v19, 4  ;;  %v2907_v36 = vrot.slane %v2837_v21, 4 }
 0x270   : > { %v2994_v38 = vsel %vm343_vm4, %v2882_v8, %v2993_v31  ;;  %v2913_v40 = vrot.slane %v2838_v23, 4  ;;  %v2919_v41 = vrot.slane %v2839_v24, 4  ;;  %v2925_v42 = vrot.slane %v2840_v27, 4 }
 0x271   : > { %v2995_v43 = vsel %vm346_vm5, %v2888_v9, %v2994_v38  ;;  %v2896_v44 = vmax.f32 %v2835_v17, %v2895_v32  ;;  %v2902_v45 = vmax.f32 %v2836_v19, %v2901_v33  ;;  %v2908_v46 = vmax.f32 %v2837_v21, %v2907_v36 }
 0x272   : > { %v2996_v47 = vsel %vm349_vm6, %v2894_v15, %v2995_v43  ;;  %v2914_v48 = vmax.f32 %v2838_v23, %v2913_v40  ;;  %v2920_v49 = vmax.f32 %v2839_v24, %v2919_v41  ;;  %v2926_v10 = vmax.f32 %v2840_v27, %v2925_v42  ;;  %v2968_v42 = vld [vmem:[#allocation3 + $0x10d] sm:$0xff] }
 0x273   : > { %v3010_v50 = vmax.f32 %v2967_v37, %v2996_v47  ;;  %v2897_v51 = vrot.slane %v2896_v44, 2  ;;  %v2903_v52 = vrot.slane %v2902_v45, 2  ;;  %v2909_v14 = vrot.slane %v2908_v46, 2 }
 0x274   : > { %v2915_v53 = vrot.slane %v2914_v48, 2  ;;  %v2921_v54 = vrot.slane %v2920_v49, 2  ;;  %v2927_v55 = vrot.slane %v2926_v10, 2  ;;  %v2931_v18 = vrot.slane %v2841_v28, 4 }
 0x275   : > { %3013 = vst [vmem:[#allocation3 + $0x105] sm:$0xff] %v3010_v50  ;;  %v2898_v56 = vmax.f32 %v2896_v44, %v2897_v51  ;;  %v2904_v57 = vmax.f32 %v2902_v45, %v2903_v52  ;;  %v2910_v58 = vmax.f32 %v2908_v46, %v2909_v14  ;;  %v2937_v22 = vrot.slane %v2842_v29, 4 }
 0x276   : > { %v2916_v59 = vmax.f32 %v2914_v48, %v2915_v53  ;;  %v2922_v60 = vmax.f32 %v2920_v49, %v2921_v54  ;;  %v2928_v61 = vmax.f32 %v2926_v10, %v2927_v55  ;;  %v2932_v26 = vmax.f32 %v2841_v28, %v2931_v18 }
 0x277   : > { %v2899_v63 = vrot.slane %v2898_v56, 1  ;;  %v2905_v0 = vrot.slane %v2904_v57, 1  ;;  %v2911_v62 = vrot.slane %v2910_v58, 1  ;;  %v2938_v30 = vmax.f32 %v2842_v29, %v2937_v22 }
 0x278   : > { %v2917_v1 = vrot.slane %v2916_v59, 1  ;;  %v2923_v2 = vrot.slane %v2922_v60, 1  ;;  %v2929_v3 = vrot.slane %v2928_v61, 1  ;;  %v2933_v35 = vrot.slane %v2932_v26, 2 }
 0x279   : > { %v2900_v6 = vmax.f32 %v2898_v56, %v2899_v63  ;;  %v2906_v7 = vmax.f32 %v2904_v57, %v2905_v0  ;;  %v2912_v8 = vmax.f32 %v2910_v58, %v2911_v62  ;;  %v2939_v9 = vrot.slane %v2938_v30, 2 }
 0x27a   : > { %v2918_v13 = vmax.f32 %v2916_v59, %v2917_v1  ;;  %v2924_v15 = vmax.f32 %v2922_v60, %v2923_v2  ;;  %v2930_v16 = vmax.f32 %v2928_v61, %v2929_v3  ;;  %v2934_v17 = vmax.f32 %v2932_v26, %v2933_v35  ;;  %v2969_v26 = vld [vmem:[#allocation3 + $0x115] sm:$0xf] }
 0x27b   : > { %v2940_v19 = vmax.f32 %v2938_v30, %v2939_v9  ;;  %v2997_v20 = vsel %vm331_vm0, %v2906_v7, %v2900_v6  ;;  %v2843_v21 = vsel %vm6797_vm15, %v2821_v4, -inf  ;;  %v2844_v23 = vsel %vm6797_vm15, %v2822_v5, -inf }
 0x27c   : > { %v2935_v24 = vrot.slane %v2934_v17, 1  ;;  %v2998_v25 = vsel %vm334_vm1, %v2912_v8, %v2997_v20  ;;  %v2845_v27 = vsel %vm6797_vm15, %v2823_v11, -inf  ;;  %v2846_v28 = vsel %vm6797_vm15, %v2824_v12, -inf }
 0x27d   : > { %v2941_v29 = vrot.slane %v2940_v19, 1  ;;  %v2999_v31 = vsel %vm337_vm2, %v2918_v13, %v2998_v25  ;;  %v2943_v32 = vrot.slane %v2843_v21, 4  ;;  %v2949_v33 = vrot.slane %v2844_v23, 4 }
 0x27e   : > { %v2936_v36 = vmax.f32 %v2934_v17, %v2935_v24  ;;  %v3000_v37 = vsel %vm340_vm3, %v2924_v15, %v2999_v31  ;;  %v2955_v38 = vrot.slane %v2845_v27, 4  ;;  %v2961_v40 = vrot.slane %v2846_v28, 4 }
 0x27f   : > { %v2942_v41 = vmax.f32 %v2940_v19, %v2941_v29  ;;  %v3001_v43 = vsel %vm343_vm4, %v2930_v16, %v3000_v37  ;;  %v2944_v44 = vmax.f32 %v2843_v21, %v2943_v32  ;;  %v2950_v45 = vmax.f32 %v2844_v23, %v2949_v33 }
 0x280   : > { %v3002_v46 = vsel %vm346_vm5, %v2936_v36, %v3001_v43  ;;  %v2956_v39 = vmax.f32 %v2845_v27, %v2955_v38  ;;  %v2962_v47 = vmax.f32 %v2846_v28, %v2961_v40 }
 0x281   : > { %v3003_v48 = vsel %vm349_vm6, %v2942_v41, %v3002_v46  ;;  %v2945_v49 = vrot.slane %v2944_v44, 2  ;;  %v2951_v10 = vrot.slane %v2950_v45, 2 }
 0x282   : > { %v3011_v50 = vmax.f32 %v2968_v42, %v3003_v48  ;;  %v2957_v51 = vrot.slane %v2956_v39, 2  ;;  %v2963_v52 = vrot.slane %v2962_v47, 2 }
 0x283   : > { %v2946_v14 = vmax.f32 %v2944_v44, %v2945_v49  ;;  %v2952_v53 = vmax.f32 %v2950_v45, %v2951_v10 }
 0x284   : > { %3014 = vst [vmem:[#allocation3 + $0x10d] sm:$0xff] %v3011_v50  ;;  %v2958_v54 = vmax.f32 %v2956_v39, %v2957_v51  ;;  %v2964_v55 = vmax.f32 %v2962_v47, %v2963_v52 }
 0x285   : > { %v2947_v18 = vrot.slane %v2946_v14, 1  ;;  %v2953_v56 = vrot.slane %v2952_v53, 1 }
 0x286   : > { %v2959_v57 = vrot.slane %v2958_v54, 1  ;;  %v2965_v58 = vrot.slane %v2964_v55, 1 }
 0x287   : > { %v2948_v22 = vmax.f32 %v2946_v14, %v2947_v18  ;;  %v2954_v59 = vmax.f32 %v2952_v53, %v2953_v56 }
 0x288   : > { %v2960_v60 = vmax.f32 %v2958_v54, %v2959_v57  ;;  %v2966_v61 = vmax.f32 %v2964_v55, %v2965_v58 }
 0x289   : > { %v3004_v63 = vsel %vm331_vm0, %v2954_v59, %v2948_v22 }
 0x28a   : > { %v3005_v0 = vsel %vm334_vm1, %v2960_v60, %v3004_v63 }
 0x28b   : > { %v3006_v62 = vsel %vm337_vm2, %v2966_v61, %v3005_v0 }
 0x28c   : > { %v3012_v30 = vmax.f32 %v2969_v26, %v3006_v62 }
 0x28e   : > { %3015 = vst [vmem:[#allocation3 + $0x115] sm:$0xf] %v3012_v30 }
 0x28f PF: > { %p3016_p13 = scmp.lt.s32.totalorder %s5939_s9, 11  ;;  %p3017_p1 = scmp.gt.s32.totalorder %s5955_s3, 9 }
 0x291   : > { %p3018_p3 = pnand %p3017_p1, %p3016_p13 }
 0x292   : > { %vm3022_vm7 = vcmp.ge.s32.totalorder (!%p3018_p3), %v6037_v34, 9  ;;  %vm3023_vm8 = vcmp.lt.s32.totalorder (!%p3018_p3), %v6037_v34, 11  ;;  %v3025_v1 = vld [vmem:[#allocation2] sm:$0xff] (!%p3018_p3)  ;;  %v3026_v2 = vld [vmem:[#allocation2 + $0x8] sm:$0xff] (!%p3018_p3)  ;;  %v3027_v3 = vld [vmem:[#allocation2 + $0x10] sm:$0xff] (!%p3018_p3) }
 0x293   : > { %3021 = sbr.rel (%p3018_p3) target bundleno = 709 (0x2c5), region = 106  ;;  %vm6862_vm9 = vmand (!%p3018_p3), %vm3022_vm7, %vm3023_vm8  ;;  %v3028_v4 = vld [vmem:[#allocation2 + $0x18] sm:$0xff] (!%p3018_p3)  ;;  %v3029_v5 = vld [vmem:[#allocation2 + $0x20] sm:$0xff] (!%p3018_p3) }
 0x294   : > { %v3030_v6 = vld [vmem:[#allocation2 + $0x28] sm:$0xff] (!%p3018_p3)  ;;  %v3031_v7 = vld [vmem:[#allocation2 + $0x30] sm:$0xff] (!%p3018_p3)  ;;  %v3032_v8 = vld [vmem:[#allocation2 + $0x38] sm:$0xff] (!%p3018_p3)  ;;  %v3047_v9 = vsel (!%p3018_p3), %vm6862_vm9, %v3025_v1, -inf  ;;  %v3048_v11 = vsel (!%p3018_p3), %vm6862_vm9, %v3026_v2, -inf  ;;  %v3049_v12 = vsel (!%p3018_p3), %vm6862_vm9, %v3027_v3, -inf }
 0x295   : > { %v3050_v13 = vsel (!%p3018_p3), %vm6862_vm9, %v3028_v4, -inf  ;;  %v3051_v15 = vsel (!%p3018_p3), %vm6862_vm9, %v3029_v5, -inf  ;;  %v3052_v16 = vsel (!%p3018_p3), %vm6862_vm9, %v3030_v6, -inf  ;;  %v3053_v17 = vsel (!%p3018_p3), %vm6862_vm9, %v3031_v7, -inf  ;;  %v3033_v60 = vld [vmem:[#allocation2 + $0x40] sm:$0xff] (!%p3018_p3)  ;;  %v3034_v61 = vld [vmem:[#allocation2 + $0x48] sm:$0xff] (!%p3018_p3) }
 0x296   : > { %v3054_v19 = vsel (!%p3018_p3), %vm6862_vm9, %v3032_v8, -inf  ;;  %v3067_v20 = vrot.slane (!%p3018_p3), %v3047_v9, 4  ;;  %v3073_v21 = vrot.slane (!%p3018_p3), %v3048_v11, 4  ;;  %v3079_v23 = vrot.slane (!%p3018_p3), %v3049_v12, 4  ;;  %v3035_v30 = vld [vmem:[#allocation2 + $0x50] sm:$0xff] (!%p3018_p3)  ;;  %v3036_v1 = vld [vmem:[#allocation2 + $0x58] sm:$0xff] (!%p3018_p3) }
 0x297   : > { %v3085_v24 = vrot.slane (!%p3018_p3), %v3050_v13, 4  ;;  %v3091_v25 = vrot.slane (!%p3018_p3), %v3051_v15, 4  ;;  %v3097_v27 = vrot.slane (!%p3018_p3), %v3052_v16, 4  ;;  %v3103_v28 = vrot.slane (!%p3018_p3), %v3053_v17, 4  ;;  %v3037_v2 = vld [vmem:[#allocation2 + $0x60] sm:$0xff] (!%p3018_p3)  ;;  %v3038_v7 = vld [vmem:[#allocation2 + $0x68] sm:$0xff] (!%p3018_p3) }
 0x298   : > { %v3068_v29 = vmax.f32 (!%p3018_p3), %v3047_v9, %v3067_v20  ;;  %v3074_v31 = vmax.f32 (!%p3018_p3), %v3048_v11, %v3073_v21  ;;  %v3080_v32 = vmax.f32 (!%p3018_p3), %v3049_v12, %v3079_v23  ;;  %v3109_v33 = vrot.slane (!%p3018_p3), %v3054_v19, 4  ;;  %v3039_v8 = vld [vmem:[#allocation2 + $0x70] sm:$0xff] (!%p3018_p3)  ;;  %v3040_v9 = vld [vmem:[#allocation2 + $0x78] sm:$0xff] (!%p3018_p3) }
 0x299   : > { %v3086_v36 = vmax.f32 (!%p3018_p3), %v3050_v13, %v3085_v24  ;;  %v3092_v37 = vmax.f32 (!%p3018_p3), %v3051_v15, %v3091_v25  ;;  %v3098_v38 = vmax.f32 (!%p3018_p3), %v3052_v16, %v3097_v27  ;;  %v3104_v40 = vmax.f32 (!%p3018_p3), %v3053_v17, %v3103_v28 }
 0x29a   : > { %v3069_v41 = vrot.slane %v3068_v29, 2  ;;  %v3075_v42 = vrot.slane %v3074_v31, 2  ;;  %v3081_v43 = vrot.slane %v3080_v32, 2  ;;  %v3110_v44 = vmax.f32 %v3054_v19, %v3109_v33 }
 0x29b   : > { %v3087_v45 = vrot.slane %v3086_v36, 2  ;;  %v3093_v46 = vrot.slane %v3092_v37, 2  ;;  %v3099_v39 = vrot.slane %v3098_v38, 2  ;;  %v3105_v47 = vrot.slane %v3104_v40, 2 }
 0x29c   : > { %v3070_v48 = vmax.f32 %v3068_v29, %v3069_v41  ;;  %v3076_v49 = vmax.f32 %v3074_v31, %v3075_v42  ;;  %v3082_v10 = vmax.f32 %v3080_v32, %v3081_v43  ;;  %v3111_v50 = vrot.slane %v3110_v44, 2  ;;  %v3187_v32 = vld [vmem:[#allocation3 + $0x119] sm:$0xff] }
 0x29d   : > { %v3088_v51 = vmax.f32 %v3086_v36, %v3087_v45  ;;  %v3094_v52 = vmax.f32 %v3092_v37, %v3093_v46  ;;  %v3100_v14 = vmax.f32 %v3098_v38, %v3099_v39  ;;  %v3106_v53 = vmax.f32 %v3104_v40, %v3105_v47 }
 0x29e   : > { %v3071_v54 = vrot.slane %v3070_v48, 1  ;;  %v3077_v55 = vrot.slane %v3076_v49, 1  ;;  %v3083_v18 = vrot.slane %v3082_v10, 1  ;;  %v3112_v56 = vmax.f32 %v3110_v44, %v3111_v50 }
 0x29f   : > { %v3089_v57 = vrot.slane %v3088_v51, 1  ;;  %v3095_v58 = vrot.slane %v3094_v52, 1  ;;  %v3101_v22 = vrot.slane %v3100_v14, 1  ;;  %v3107_v59 = vrot.slane %v3106_v53, 1 }
 0x2a0   : > { %v3072_v26 = vmax.f32 %v3070_v48, %v3071_v54  ;;  %v3078_v63 = vmax.f32 %v3076_v49, %v3077_v55  ;;  %v3084_v0 = vmax.f32 %v3082_v10, %v3083_v18  ;;  %v3113_v62 = vrot.slane %v3112_v56, 1 }
 0x2a1   : > { %v3090_v3 = vmax.f32 %v3088_v51, %v3089_v57  ;;  %v3096_v4 = vmax.f32 %v3094_v52, %v3095_v58  ;;  %v3102_v5 = vmax.f32 %v3100_v14, %v3101_v22  ;;  %v3108_v6 = vmax.f32 %v3106_v53, %v3107_v59 }
 0x2a2   : > { %v3114_v11 = vmax.f32 %v3112_v56, %v3113_v62  ;;  %v3210_v12 = vsel %vm331_vm0, %v3078_v63, %v3072_v26  ;;  %v3055_v13 = vsel %vm6862_vm9, %v3033_v60, -inf  ;;  %v3056_v15 = vsel %vm6862_vm9, %v3034_v61, -inf }
 0x2a3   : > { %v3211_v16 = vsel %vm334_vm1, %v3084_v0, %v3210_v12  ;;  %v3057_v17 = vsel %vm6862_vm9, %v3035_v30, -inf  ;;  %v3058_v19 = vsel %vm6862_vm9, %v3036_v1, -inf  ;;  %v3059_v20 = vsel %vm6862_vm9, %v3037_v2, -inf  ;;  %v3041_v1 = vld [vmem:[#allocation2 + $0x80] sm:$0xff]  ;;  %v3042_v2 = vld [vmem:[#allocation2 + $0x88] sm:$0xff] }
 0x2a4   : > { %v3212_v21 = vsel %vm337_vm2, %v3090_v3, %v3211_v16  ;;  %v3060_v23 = vsel %vm6862_vm9, %v3038_v7, -inf  ;;  %v3061_v24 = vsel %vm6862_vm9, %v3039_v8, -inf  ;;  %v3062_v25 = vsel %vm6862_vm9, %v3040_v9, -inf  ;;  %v3043_v7 = vld [vmem:[#allocation2 + $0x90] sm:$0xff]  ;;  %v3044_v8 = vld [vmem:[#allocation2 + $0x98] sm:$0xff] }
 0x2a5   : > { %v3213_v27 = vsel %vm340_vm3, %v3096_v4, %v3212_v21  ;;  %v3115_v28 = vrot.slane %v3055_v13, 4  ;;  %v3121_v29 = vrot.slane %v3056_v15, 4  ;;  %v3127_v31 = vrot.slane %v3057_v17, 4 }
 0x2a6   : > { %v3214_v33 = vsel %vm343_vm4, %v3102_v5, %v3213_v27  ;;  %v3133_v36 = vrot.slane %v3058_v19, 4  ;;  %v3139_v37 = vrot.slane %v3059_v20, 4  ;;  %v3145_v38 = vrot.slane %v3060_v23, 4 }
 0x2a7   : > { %v3215_v40 = vsel %vm346_vm5, %v3108_v6, %v3214_v33  ;;  %v3116_v41 = vmax.f32 %v3055_v13, %v3115_v28  ;;  %v3122_v42 = vmax.f32 %v3056_v15, %v3121_v29  ;;  %v3128_v43 = vmax.f32 %v3057_v17, %v3127_v31 }
 0x2a8   : > { %v3216_v44 = vsel %vm349_vm6, %v3114_v11, %v3215_v40  ;;  %v3134_v45 = vmax.f32 %v3058_v19, %v3133_v36  ;;  %v3140_v46 = vmax.f32 %v3059_v20, %v3139_v37  ;;  %v3146_v39 = vmax.f32 %v3060_v23, %v3145_v38  ;;  %v3188_v38 = vld [vmem:[#allocation3 + $0x121] sm:$0xff] }
 0x2a9   : > { %v3230_v47 = vmax.f32 %v3187_v32, %v3216_v44  ;;  %v3117_v48 = vrot.slane %v3116_v41, 2  ;;  %v3123_v49 = vrot.slane %v3122_v42, 2  ;;  %v3129_v10 = vrot.slane %v3128_v43, 2 }
 0x2aa   : > { %v3135_v50 = vrot.slane %v3134_v45, 2  ;;  %v3141_v51 = vrot.slane %v3140_v46, 2  ;;  %v3147_v52 = vrot.slane %v3146_v39, 2  ;;  %v3151_v14 = vrot.slane %v3061_v24, 4 }
 0x2ab   : > { %3233 = vst [vmem:[#allocation3 + $0x119] sm:$0xff] %v3230_v47  ;;  %v3118_v53 = vmax.f32 %v3116_v41, %v3117_v48  ;;  %v3124_v54 = vmax.f32 %v3122_v42, %v3123_v49  ;;  %v3130_v55 = vmax.f32 %v3128_v43, %v3129_v10  ;;  %v3157_v18 = vrot.slane %v3062_v25, 4 }
 0x2ac   : > { %v3136_v56 = vmax.f32 %v3134_v45, %v3135_v50  ;;  %v3142_v57 = vmax.f32 %v3140_v46, %v3141_v51  ;;  %v3148_v58 = vmax.f32 %v3146_v39, %v3147_v52  ;;  %v3152_v22 = vmax.f32 %v3061_v24, %v3151_v14 }
 0x2ad   : > { %v3119_v59 = vrot.slane %v3118_v53, 1  ;;  %v3125_v60 = vrot.slane %v3124_v54, 1  ;;  %v3131_v61 = vrot.slane %v3130_v55, 1  ;;  %v3158_v26 = vmax.f32 %v3062_v25, %v3157_v18 }
 0x2ae   : > { %v3137_v63 = vrot.slane %v3136_v56, 1  ;;  %v3143_v0 = vrot.slane %v3142_v57, 1  ;;  %v3149_v62 = vrot.slane %v3148_v58, 1  ;;  %v3153_v30 = vrot.slane %v3152_v22, 2 }
 0x2af   : > { %v3120_v3 = vmax.f32 %v3118_v53, %v3119_v59  ;;  %v3126_v4 = vmax.f32 %v3124_v54, %v3125_v60  ;;  %v3132_v5 = vmax.f32 %v3130_v55, %v3131_v61  ;;  %v3159_v6 = vrot.slane %v3158_v26, 2 }
 0x2b0   : > { %v3138_v9 = vmax.f32 %v3136_v56, %v3137_v63  ;;  %v3144_v11 = vmax.f32 %v3142_v57, %v3143_v0  ;;  %v3150_v12 = vmax.f32 %v3148_v58, %v3149_v62  ;;  %v3154_v13 = vmax.f32 %v3152_v22, %v3153_v30  ;;  %v3189_v22 = vld [vmem:[#allocation3 + $0x129] sm:$0xf] }
 0x2b1   : > { %v3160_v15 = vmax.f32 %v3158_v26, %v3159_v6  ;;  %v3217_v16 = vsel %vm331_vm0, %v3126_v4, %v3120_v3  ;;  %v3063_v17 = vsel %vm6862_vm9, %v3041_v1, -inf  ;;  %v3064_v19 = vsel %vm6862_vm9, %v3042_v2, -inf }
 0x2b2   : > { %v3155_v20 = vrot.slane %v3154_v13, 1  ;;  %v3218_v21 = vsel %vm334_vm1, %v3132_v5, %v3217_v16  ;;  %v3065_v23 = vsel %vm6862_vm9, %v3043_v7, -inf  ;;  %v3066_v24 = vsel %vm6862_vm9, %v3044_v8, -inf }
 0x2b3   : > { %v3161_v25 = vrot.slane %v3160_v15, 1  ;;  %v3219_v27 = vsel %vm337_vm2, %v3138_v9, %v3218_v21  ;;  %v3163_v28 = vrot.slane %v3063_v17, 4  ;;  %v3169_v29 = vrot.slane %v3064_v19, 4 }
 0x2b4   : > { %v3156_v31 = vmax.f32 %v3154_v13, %v3155_v20  ;;  %v3220_v32 = vsel %vm340_vm3, %v3144_v11, %v3219_v27  ;;  %v3175_v33 = vrot.slane %v3065_v23, 4  ;;  %v3181_v36 = vrot.slane %v3066_v24, 4 }
 0x2b5   : > { %v3162_v37 = vmax.f32 %v3160_v15, %v3161_v25  ;;  %v3221_v40 = vsel %vm343_vm4, %v3150_v12, %v3220_v32  ;;  %v3164_v41 = vmax.f32 %v3063_v17, %v3163_v28  ;;  %v3170_v42 = vmax.f32 %v3064_v19, %v3169_v29 }
 0x2b6   : > { %v3222_v43 = vsel %vm346_vm5, %v3156_v31, %v3221_v40  ;;  %v3176_v35 = vmax.f32 %v3065_v23, %v3175_v33  ;;  %v3182_v44 = vmax.f32 %v3066_v24, %v3181_v36 }
 0x2b7   : > { %v3223_v45 = vsel %vm349_vm6, %v3162_v37, %v3222_v43  ;;  %v3165_v46 = vrot.slane %v3164_v41, 2  ;;  %v3171_v39 = vrot.slane %v3170_v42, 2 }
 0x2b8   : > { %v3231_v47 = vmax.f32 %v3188_v38, %v3223_v45  ;;  %v3177_v48 = vrot.slane %v3176_v35, 2  ;;  %v3183_v49 = vrot.slane %v3182_v44, 2 }
 0x2b9   : > { %v3166_v10 = vmax.f32 %v3164_v41, %v3165_v46  ;;  %v3172_v50 = vmax.f32 %v3170_v42, %v3171_v39 }
 0x2ba   : > { %3234 = vst [vmem:[#allocation3 + $0x121] sm:$0xff] %v3231_v47  ;;  %v3178_v51 = vmax.f32 %v3176_v35, %v3177_v48  ;;  %v3184_v52 = vmax.f32 %v3182_v44, %v3183_v49 }
 0x2bb   : > { %v3167_v14 = vrot.slane %v3166_v10, 1  ;;  %v3173_v53 = vrot.slane %v3172_v50, 1 }
 0x2bc   : > { %v3179_v54 = vrot.slane %v3178_v51, 1  ;;  %v3185_v55 = vrot.slane %v3184_v52, 1 }
 0x2bd   : > { %v3168_v18 = vmax.f32 %v3166_v10, %v3167_v14  ;;  %v3174_v56 = vmax.f32 %v3172_v50, %v3173_v53 }
 0x2be   : > { %v3180_v57 = vmax.f32 %v3178_v51, %v3179_v54  ;;  %v3186_v58 = vmax.f32 %v3184_v52, %v3185_v55 }
 0x2bf   : > { %v3224_v59 = vsel %vm331_vm0, %v3174_v56, %v3168_v18 }
 0x2c0   : > { %v3225_v60 = vsel %vm334_vm1, %v3180_v57, %v3224_v59 }
 0x2c1   : > { %v3226_v61 = vsel %vm337_vm2, %v3186_v58, %v3225_v60 }
 0x2c2   : > { %v3232_v26 = vmax.f32 %v3189_v22, %v3226_v61 }
 0x2c4   : > { %3235 = vst [vmem:[#allocation3 + $0x129] sm:$0xf] %v3232_v26 }
 0x2c5 PF: > { %p3236_p4 = scmp.lt.s32.totalorder %s5939_s9, 12  ;;  %p3237_p5 = scmp.gt.s32.totalorder %s5955_s3, 10 }
 0x2c7   : > { %p6925_p9 = pnand %p3237_p5, %p3236_p4 }
 0x2c8   : > { %vm3242_vm10 = vcmp.ge.s32.totalorder (!%p6925_p9), %v6037_v34, 10  ;;  %vm3243_vm11 = vcmp.lt.s32.totalorder (!%p6925_p9), %v6037_v34, 12  ;;  %v3245_v63 = vld [vmem:[#allocation2] sm:$0xff] (!%p6925_p9)  ;;  %v3246_v0 = vld [vmem:[#allocation2 + $0x8] sm:$0xff] (!%p6925_p9)  ;;  %v3247_v62 = vld [vmem:[#allocation2 + $0x10] sm:$0xff] (!%p6925_p9) }
 0x2c9   : > { %3241 = sbr.rel (%p6925_p9) target bundleno = 763 (0x2fb), region = 110  ;;  %vm6933_vm12 = vmand (!%p6925_p9), %vm3242_vm10, %vm3243_vm11  ;;  %v3248_v1 = vld [vmem:[#allocation2 + $0x18] sm:$0xff] (!%p6925_p9)  ;;  %v3249_v2 = vld [vmem:[#allocation2 + $0x20] sm:$0xff] (!%p6925_p9) }
 0x2ca   : > { %v3250_v3 = vld [vmem:[#allocation2 + $0x28] sm:$0xff] (!%p6925_p9)  ;;  %v3251_v4 = vld [vmem:[#allocation2 + $0x30] sm:$0xff] (!%p6925_p9)  ;;  %v3252_v5 = vld [vmem:[#allocation2 + $0x38] sm:$0xff] (!%p6925_p9)  ;;  %v3267_v6 = vsel (!%p6925_p9), %vm6933_vm12, %v3245_v63, -inf  ;;  %v3268_v7 = vsel (!%p6925_p9), %vm6933_vm12, %v3246_v0, -inf  ;;  %v3269_v8 = vsel (!%p6925_p9), %vm6933_vm12, %v3247_v62, -inf }
 0x2cb   : > { %v3270_v9 = vsel (!%p6925_p9), %vm6933_vm12, %v3248_v1, -inf  ;;  %v3271_v11 = vsel (!%p6925_p9), %vm6933_vm12, %v3249_v2, -inf  ;;  %v3272_v12 = vsel (!%p6925_p9), %vm6933_vm12, %v3250_v3, -inf  ;;  %v3273_v13 = vsel (!%p6925_p9), %vm6933_vm12, %v3251_v4, -inf  ;;  %v3253_v57 = vld [vmem:[#allocation2 + $0x40] sm:$0xff] (!%p6925_p9)  ;;  %v3254_v58 = vld [vmem:[#allocation2 + $0x48] sm:$0xff] (!%p6925_p9) }
 0x2cc   : > { %v3274_v15 = vsel (!%p6925_p9), %vm6933_vm12, %v3252_v5, -inf  ;;  %v3287_v16 = vrot.slane (!%p6925_p9), %v3267_v6, 4  ;;  %v3293_v17 = vrot.slane (!%p6925_p9), %v3268_v7, 4  ;;  %v3299_v19 = vrot.slane (!%p6925_p9), %v3269_v8, 4  ;;  %v3255_v26 = vld [vmem:[#allocation2 + $0x50] sm:$0xff] (!%p6925_p9)  ;;  %v3256_v63 = vld [vmem:[#allocation2 + $0x58] sm:$0xff] (!%p6925_p9) }
 0x2cd   : > { %v3305_v20 = vrot.slane (!%p6925_p9), %v3270_v9, 4  ;;  %v3311_v21 = vrot.slane (!%p6925_p9), %v3271_v11, 4  ;;  %v3317_v23 = vrot.slane (!%p6925_p9), %v3272_v12, 4  ;;  %v3323_v24 = vrot.slane (!%p6925_p9), %v3273_v13, 4  ;;  %v3257_v0 = vld [vmem:[#allocation2 + $0x60] sm:$0xff] (!%p6925_p9)  ;;  %v3258_v4 = vld [vmem:[#allocation2 + $0x68] sm:$0xff] (!%p6925_p9) }
 0x2ce   : > { %v3288_v25 = vmax.f32 (!%p6925_p9), %v3267_v6, %v3287_v16  ;;  %v3294_v27 = vmax.f32 (!%p6925_p9), %v3268_v7, %v3293_v17  ;;  %v3300_v28 = vmax.f32 (!%p6925_p9), %v3269_v8, %v3299_v19  ;;  %v3329_v29 = vrot.slane (!%p6925_p9), %v3274_v15, 4  ;;  %v3259_v5 = vld [vmem:[#allocation2 + $0x70] sm:$0xff] (!%p6925_p9)  ;;  %v3260_v6 = vld [vmem:[#allocation2 + $0x78] sm:$0xff] (!%p6925_p9) }
 0x2cf   : > { %v3306_v31 = vmax.f32 (!%p6925_p9), %v3270_v9, %v3305_v20  ;;  %v3312_v32 = vmax.f32 (!%p6925_p9), %v3271_v11, %v3311_v21  ;;  %v3318_v33 = vmax.f32 (!%p6925_p9), %v3272_v12, %v3317_v23  ;;  %v3324_v36 = vmax.f32 (!%p6925_p9), %v3273_v13, %v3323_v24 }
 0x2d0   : > { %v3289_v37 = vrot.slane %v3288_v25, 2  ;;  %v3295_v38 = vrot.slane %v3294_v27, 2  ;;  %v3301_v40 = vrot.slane %v3300_v28, 2  ;;  %v3330_v41 = vmax.f32 %v3274_v15, %v3329_v29 }
 0x2d1   : > { %v3307_v42 = vrot.slane %v3306_v31, 2  ;;  %v3313_v43 = vrot.slane %v3312_v32, 2  ;;  %v3319_v35 = vrot.slane %v3318_v33, 2  ;;  %v3325_v44 = vrot.slane %v3324_v36, 2 }
 0x2d2   : > { %v3290_v45 = vmax.f32 %v3288_v25, %v3289_v37  ;;  %v3296_v46 = vmax.f32 %v3294_v27, %v3295_v38  ;;  %v3302_v39 = vmax.f32 %v3300_v28, %v3301_v40  ;;  %v3331_v47 = vrot.slane %v3330_v41, 2  ;;  %v3407_v28 = vld [vmem:[#allocation3 + $0x12d] sm:$0xff] }
 0x2d3   : > { %v3308_v48 = vmax.f32 %v3306_v31, %v3307_v42  ;;  %v3314_v49 = vmax.f32 %v3312_v32, %v3313_v43  ;;  %v3320_v10 = vmax.f32 %v3318_v33, %v3319_v35  ;;  %v3326_v50 = vmax.f32 %v3324_v36, %v3325_v44 }
 0x2d4   : > { %v3291_v51 = vrot.slane %v3290_v45, 1  ;;  %v3297_v52 = vrot.slane %v3296_v46, 1  ;;  %v3303_v14 = vrot.slane %v3302_v39, 1  ;;  %v3332_v53 = vmax.f32 %v3330_v41, %v3331_v47 }
 0x2d5   : > { %v3309_v54 = vrot.slane %v3308_v48, 1  ;;  %v3315_v55 = vrot.slane %v3314_v49, 1  ;;  %v3321_v18 = vrot.slane %v3320_v10, 1  ;;  %v3327_v56 = vrot.slane %v3326_v50, 1 }
 0x2d6   : > { %v3292_v22 = vmax.f32 %v3290_v45, %v3291_v51  ;;  %v3298_v59 = vmax.f32 %v3296_v46, %v3297_v52  ;;  %v3304_v60 = vmax.f32 %v3302_v39, %v3303_v14  ;;  %v3333_v61 = vrot.slane %v3332_v53, 1 }
 0x2d7   : > { %v3310_v62 = vmax.f32 %v3308_v48, %v3309_v54  ;;  %v3316_v1 = vmax.f32 %v3314_v49, %v3315_v55  ;;  %v3322_v2 = vmax.f32 %v3320_v10, %v3321_v18  ;;  %v3328_v3 = vmax.f32 %v3326_v50, %v3327_v56 }
 0x2d8   : > { %v3334_v7 = vmax.f32 %v3332_v53, %v3333_v61  ;;  %v3430_v8 = vsel %vm331_vm0, %v3298_v59, %v3292_v22  ;;  %v3275_v9 = vsel %vm6933_vm12, %v3253_v57, -inf  ;;  %v3276_v11 = vsel %vm6933_vm12, %v3254_v58, -inf }
 0x2d9   : > { %v3431_v12 = vsel %vm334_vm1, %v3304_v60, %v3430_v8  ;;  %v3277_v13 = vsel %vm6933_vm12, %v3255_v26, -inf  ;;  %v3278_v15 = vsel %vm6933_vm12, %v3256_v63, -inf  ;;  %v3279_v16 = vsel %vm6933_vm12, %v3257_v0, -inf  ;;  %v3261_v63 = vld [vmem:[#allocation2 + $0x80] sm:$0xff]  ;;  %v3262_v0 = vld [vmem:[#allocation2 + $0x88] sm:$0xff] }
 0x2da   : > { %v3432_v17 = vsel %vm337_vm2, %v3310_v62, %v3431_v12  ;;  %v3280_v19 = vsel %vm6933_vm12, %v3258_v4, -inf  ;;  %v3281_v20 = vsel %vm6933_vm12, %v3259_v5, -inf  ;;  %v3282_v21 = vsel %vm6933_vm12, %v3260_v6, -inf  ;;  %v3263_v4 = vld [vmem:[#allocation2 + $0x90] sm:$0xff]  ;;  %v3264_v5 = vld [vmem:[#allocation2 + $0x98] sm:$0xff] }
 0x2db   : > { %v3433_v23 = vsel %vm340_vm3, %v3316_v1, %v3432_v17  ;;  %v3335_v24 = vrot.slane %v3275_v9, 4  ;;  %v3341_v25 = vrot.slane %v3276_v11, 4  ;;  %v3347_v27 = vrot.slane %v3277_v13, 4 }
 0x2dc   : > { %v3434_v29 = vsel %vm343_vm4, %v3322_v2, %v3433_v23  ;;  %v3353_v31 = vrot.slane %v3278_v15, 4  ;;  %v3359_v32 = vrot.slane %v3279_v16, 4  ;;  %v3365_v33 = vrot.slane %v3280_v19, 4 }
 0x2dd   : > { %v3435_v36 = vsel %vm346_vm5, %v3328_v3, %v3434_v29  ;;  %v3336_v37 = vmax.f32 %v3275_v9, %v3335_v24  ;;  %v3342_v38 = vmax.f32 %v3276_v11, %v3341_v25  ;;  %v3348_v40 = vmax.f32 %v3277_v13, %v3347_v27 }
 0x2de   : > { %v3436_v41 = vsel %vm349_vm6, %v3334_v7, %v3435_v36  ;;  %v3354_v42 = vmax.f32 %v3278_v15, %v3353_v31  ;;  %v3360_v43 = vmax.f32 %v3279_v16, %v3359_v32  ;;  %v3366_v35 = vmax.f32 %v3280_v19, %v3365_v33  ;;  %v3408_v33 = vld [vmem:[#allocation3 + $0x135] sm:$0xff] }
 0x2df   : > { %v3450_v44 = vmax.f32 %v3407_v28, %v3436_v41  ;;  %v3337_v45 = vrot.slane %v3336_v37, 2  ;;  %v3343_v46 = vrot.slane %v3342_v38, 2  ;;  %v3349_v39 = vrot.slane %v3348_v40, 2 }
 0x2e0   : > { %v3355_v47 = vrot.slane %v3354_v42, 2  ;;  %v3361_v48 = vrot.slane %v3360_v43, 2  ;;  %v3367_v49 = vrot.slane %v3366_v35, 2  ;;  %v3371_v10 = vrot.slane %v3281_v20, 4 }
 0x2e1   : > { %3453 = vst [vmem:[#allocation3 + $0x12d] sm:$0xff] %v3450_v44  ;;  %v3338_v50 = vmax.f32 %v3336_v37, %v3337_v45  ;;  %v3344_v51 = vmax.f32 %v3342_v38, %v3343_v46  ;;  %v3350_v52 = vmax.f32 %v3348_v40, %v3349_v39  ;;  %v3377_v14 = vrot.slane %v3282_v21, 4 }
 0x2e2   : > { %v3356_v53 = vmax.f32 %v3354_v42, %v3355_v47  ;;  %v3362_v54 = vmax.f32 %v3360_v43, %v3361_v48  ;;  %v3368_v55 = vmax.f32 %v3366_v35, %v3367_v49  ;;  %v3372_v18 = vmax.f32 %v3281_v20, %v3371_v10 }
 0x2e3   : > { %v3339_v56 = vrot.slane %v3338_v50, 1  ;;  %v3345_v57 = vrot.slane %v3344_v51, 1  ;;  %v3351_v58 = vrot.slane %v3350_v52, 1  ;;  %v3378_v22 = vmax.f32 %v3282_v21, %v3377_v14 }
 0x2e4   : > { %v3357_v59 = vrot.slane %v3356_v53, 1  ;;  %v3363_v60 = vrot.slane %v3362_v54, 1  ;;  %v3369_v61 = vrot.slane %v3368_v55, 1  ;;  %v3373_v26 = vrot.slane %v3372_v18, 2 }
 0x2e5   : > { %v3340_v62 = vmax.f32 %v3338_v50, %v3339_v56  ;;  %v3346_v1 = vmax.f32 %v3344_v51, %v3345_v57  ;;  %v3352_v2 = vmax.f32 %v3350_v52, %v3351_v58  ;;  %v3379_v3 = vrot.slane %v3378_v22, 2 }
 0x2e6   : > { %v3358_v6 = vmax.f32 %v3356_v53, %v3357_v59  ;;  %v3364_v7 = vmax.f32 %v3362_v54, %v3363_v60  ;;  %v3370_v8 = vmax.f32 %v3368_v55, %v3369_v61  ;;  %v3374_v9 = vmax.f32 %v3372_v18, %v3373_v26  ;;  %v3409_v18 = vld [vmem:[#allocation3 + $0x13d] sm:$0xf] }
 0x2e7   : > { %v3380_v11 = vmax.f32 %v3378_v22, %v3379_v3  ;;  %v3437_v12 = vsel %vm331_vm0, %v3346_v1, %v3340_v62  ;;  %v3283_v13 = vsel %vm6933_vm12, %v3261_v63, -inf  ;;  %v3284_v15 = vsel %vm6933_vm12, %v3262_v0, -inf }
 0x2e8   : > { %v3375_v16 = vrot.slane %v3374_v9, 1  ;;  %v3438_v17 = vsel %vm334_vm1, %v3352_v2, %v3437_v12  ;;  %v3285_v19 = vsel %vm6933_vm12, %v3263_v4, -inf  ;;  %v3286_v20 = vsel %vm6933_vm12, %v3264_v5, -inf }
 0x2e9   : > { %v3381_v21 = vrot.slane %v3380_v11, 1  ;;  %v3439_v23 = vsel %vm337_vm2, %v3358_v6, %v3438_v17  ;;  %v3383_v24 = vrot.slane %v3283_v13, 4  ;;  %v3389_v25 = vrot.slane %v3284_v15, 4 }
 0x2ea   : > { %v3376_v27 = vmax.f32 %v3374_v9, %v3375_v16  ;;  %v3440_v28 = vsel %vm340_vm3, %v3364_v7, %v3439_v23  ;;  %v3395_v29 = vrot.slane %v3285_v19, 4  ;;  %v3401_v31 = vrot.slane %v3286_v20, 4 }
 0x2eb   : > { %v3382_v32 = vmax.f32 %v3380_v11, %v3381_v21  ;;  %v3441_v36 = vsel %vm343_vm4, %v3370_v8, %v3440_v28  ;;  %v3384_v37 = vmax.f32 %v3283_v13, %v3383_v24  ;;  %v3390_v38 = vmax.f32 %v3284_v15, %v3389_v25 }
 0x2ec   : > { %v3442_v40 = vsel %vm346_vm5, %v3376_v27, %v3441_v36  ;;  %v3396_v30 = vmax.f32 %v3285_v19, %v3395_v29  ;;  %v3402_v41 = vmax.f32 %v3286_v20, %v3401_v31 }
 0x2ed   : > { %v3443_v42 = vsel %vm349_vm6, %v3382_v32, %v3442_v40  ;;  %v3385_v43 = vrot.slane %v3384_v37, 2  ;;  %v3391_v35 = vrot.slane %v3390_v38, 2 }
 0x2ee   : > { %v3451_v44 = vmax.f32 %v3408_v33, %v3443_v42  ;;  %v3397_v45 = vrot.slane %v3396_v30, 2  ;;  %v3403_v46 = vrot.slane %v3402_v41, 2 }
 0x2ef   : > { %v3386_v39 = vmax.f32 %v3384_v37, %v3385_v43  ;;  %v3392_v47 = vmax.f32 %v3390_v38, %v3391_v35 }
 0x2f0   : > { %3454 = vst [vmem:[#allocation3 + $0x135] sm:$0xff] %v3451_v44  ;;  %v3398_v48 = vmax.f32 %v3396_v30, %v3397_v45  ;;  %v3404_v49 = vmax.f32 %v3402_v41, %v3403_v46 }
 0x2f1   : > { %v3387_v10 = vrot.slane %v3386_v39, 1  ;;  %v3393_v50 = vrot.slane %v3392_v47, 1 }
 0x2f2   : > { %v3399_v51 = vrot.slane %v3398_v48, 1  ;;  %v3405_v52 = vrot.slane %v3404_v49, 1 }
 0x2f3   : > { %v3388_v14 = vmax.f32 %v3386_v39, %v3387_v10  ;;  %v3394_v53 = vmax.f32 %v3392_v47, %v3393_v50 }
 0x2f4   : > { %v3400_v54 = vmax.f32 %v3398_v48, %v3399_v51  ;;  %v3406_v55 = vmax.f32 %v3404_v49, %v3405_v52 }
 0x2f5   : > { %v3444_v56 = vsel %vm331_vm0, %v3394_v53, %v3388_v14 }
 0x2f6   : > { %v3445_v57 = vsel %vm334_vm1, %v3400_v54, %v3444_v56 }
 0x2f7   : > { %v3446_v58 = vsel %vm337_vm2, %v3406_v55, %v3445_v57 }
 0x2f8   : > { %v3452_v22 = vmax.f32 %v3409_v18, %v3446_v58 }
 0x2fa   : > { %3455 = vst [vmem:[#allocation3 + $0x13d] sm:$0xf] %v3452_v22 }
 0x2fb PF: > { %p3456_p10 = scmp.lt.s32.totalorder %s5939_s9, 13  ;;  %p3457_p13 = scmp.gt.s32.totalorder %s5955_s3, 11 }
 0x2fd   : > { %p3458_p1 = pnand %p3457_p13, %p3456_p10 }
 0x2fe   : > { %vm3462_vm13 = vcmp.ge.s32.totalorder (!%p3458_p1), %v6037_v34, 11  ;;  %vm3463_vm14 = vcmp.lt.s32.totalorder (!%p3458_p1), %v6037_v34, 13  ;;  %v3465_v59 = vld [vmem:[#allocation2] sm:$0xff] (!%p3458_p1)  ;;  %v3466_v60 = vld [vmem:[#allocation2 + $0x8] sm:$0xff] (!%p3458_p1)  ;;  %v3467_v61 = vld [vmem:[#allocation2 + $0x10] sm:$0xff] (!%p3458_p1) }
 0x2ff   : > { %3461 = sbr.rel (%p3458_p1) target bundleno = 817 (0x331), region = 114  ;;  %vm6998_vm15 = vmand (!%p3458_p1), %vm3462_vm13, %vm3463_vm14  ;;  %v3468_v63 = vld [vmem:[#allocation2 + $0x18] sm:$0xff] (!%p3458_p1)  ;;  %v3469_v0 = vld [vmem:[#allocation2 + $0x20] sm:$0xff] (!%p3458_p1) }
 0x300   : > { %v3470_v62 = vld [vmem:[#allocation2 + $0x28] sm:$0xff] (!%p3458_p1)  ;;  %v3471_v1 = vld [vmem:[#allocation2 + $0x30] sm:$0xff] (!%p3458_p1)  ;;  %v3472_v2 = vld [vmem:[#allocation2 + $0x38] sm:$0xff] (!%p3458_p1)  ;;  %v3487_v3 = vsel (!%p3458_p1), %vm6998_vm15, %v3465_v59, -inf  ;;  %v3488_v4 = vsel (!%p3458_p1), %vm6998_vm15, %v3466_v60, -inf  ;;  %v3489_v5 = vsel (!%p3458_p1), %vm6998_vm15, %v3467_v61, -inf }
 0x301   : > { %v3490_v6 = vsel (!%p3458_p1), %vm6998_vm15, %v3468_v63, -inf  ;;  %v3491_v7 = vsel (!%p3458_p1), %vm6998_vm15, %v3469_v0, -inf  ;;  %v3492_v8 = vsel (!%p3458_p1), %vm6998_vm15, %v3470_v62, -inf  ;;  %v3493_v9 = vsel (!%p3458_p1), %vm6998_vm15, %v3471_v1, -inf  ;;  %v3473_v54 = vld [vmem:[#allocation2 + $0x40] sm:$0xff] (!%p3458_p1)  ;;  %v3474_v55 = vld [vmem:[#allocation2 + $0x48] sm:$0xff] (!%p3458_p1) }
 0x302   : > { %v3494_v11 = vsel (!%p3458_p1), %vm6998_vm15, %v3472_v2, -inf  ;;  %v3507_v12 = vrot.slane (!%p3458_p1), %v3487_v3, 4  ;;  %v3513_v13 = vrot.slane (!%p3458_p1), %v3488_v4, 4  ;;  %v3519_v15 = vrot.slane (!%p3458_p1), %v3489_v5, 4  ;;  %v3475_v22 = vld [vmem:[#allocation2 + $0x50] sm:$0xff] (!%p3458_p1)  ;;  %v3476_v59 = vld [vmem:[#allocation2 + $0x58] sm:$0xff] (!%p3458_p1) }
 0x303   : > { %v3525_v16 = vrot.slane (!%p3458_p1), %v3490_v6, 4  ;;  %v3531_v17 = vrot.slane (!%p3458_p1), %v3491_v7, 4  ;;  %v3537_v19 = vrot.slane (!%p3458_p1), %v3492_v8, 4  ;;  %v3543_v20 = vrot.slane (!%p3458_p1), %v3493_v9, 4  ;;  %v3477_v60 = vld [vmem:[#allocation2 + $0x60] sm:$0xff] (!%p3458_p1)  ;;  %v3478_v1 = vld [vmem:[#allocation2 + $0x68] sm:$0xff] (!%p3458_p1) }
 0x304   : > { %v3508_v21 = vmax.f32 (!%p3458_p1), %v3487_v3, %v3507_v12  ;;  %v3514_v23 = vmax.f32 (!%p3458_p1), %v3488_v4, %v3513_v13  ;;  %v3520_v24 = vmax.f32 (!%p3458_p1), %v3489_v5, %v3519_v15  ;;  %v3549_v25 = vrot.slane (!%p3458_p1), %v3494_v11, 4  ;;  %v3479_v2 = vld [vmem:[#allocation2 + $0x70] sm:$0xff] (!%p3458_p1)  ;;  %v3480_v3 = vld [vmem:[#allocation2 + $0x78] sm:$0xff] (!%p3458_p1) }
 0x305   : > { %v3526_v27 = vmax.f32 (!%p3458_p1), %v3490_v6, %v3525_v16  ;;  %v3532_v28 = vmax.f32 (!%p3458_p1), %v3491_v7, %v3531_v17  ;;  %v3538_v29 = vmax.f32 (!%p3458_p1), %v3492_v8, %v3537_v19  ;;  %v3544_v31 = vmax.f32 (!%p3458_p1), %v3493_v9, %v3543_v20 }
 0x306   : > { %v3509_v32 = vrot.slane %v3508_v21, 2  ;;  %v3515_v33 = vrot.slane %v3514_v23, 2  ;;  %v3521_v36 = vrot.slane %v3520_v24, 2  ;;  %v3550_v37 = vmax.f32 %v3494_v11, %v3549_v25 }
 0x307   : > { %v3527_v38 = vrot.slane %v3526_v27, 2  ;;  %v3533_v40 = vrot.slane %v3532_v28, 2  ;;  %v3539_v30 = vrot.slane %v3538_v29, 2  ;;  %v3545_v41 = vrot.slane %v3544_v31, 2 }
 0x308   : > { %v3510_v42 = vmax.f32 %v3508_v21, %v3509_v32  ;;  %v3516_v43 = vmax.f32 %v3514_v23, %v3515_v33  ;;  %v3522_v35 = vmax.f32 %v3520_v24, %v3521_v36  ;;  %v3551_v44 = vrot.slane %v3550_v37, 2  ;;  %v3627_v24 = vld [vmem:[#allocation3 + $0x141] sm:$0xff] }
 0x309   : > { %v3528_v45 = vmax.f32 %v3526_v27, %v3527_v38  ;;  %v3534_v46 = vmax.f32 %v3532_v28, %v3533_v40  ;;  %v3540_v39 = vmax.f32 %v3538_v29, %v3539_v30  ;;  %v3546_v47 = vmax.f32 %v3544_v31, %v3545_v41 }
 0x30a   : > { %v3511_v48 = vrot.slane %v3510_v42, 1  ;;  %v3517_v49 = vrot.slane %v3516_v43, 1  ;;  %v3523_v10 = vrot.slane %v3522_v35, 1  ;;  %v3552_v50 = vmax.f32 %v3550_v37, %v3551_v44 }
 0x30b   : > { %v3529_v51 = vrot.slane %v3528_v45, 1  ;;  %v3535_v52 = vrot.slane %v3534_v46, 1  ;;  %v3541_v14 = vrot.slane %v3540_v39, 1  ;;  %v3547_v53 = vrot.slane %v3546_v47, 1 }
 0x30c   : > { %v3512_v18 = vmax.f32 %v3510_v42, %v3511_v48  ;;  %v3518_v56 = vmax.f32 %v3516_v43, %v3517_v49  ;;  %v3524_v57 = vmax.f32 %v3522_v35, %v3523_v10  ;;  %v3553_v58 = vrot.slane %v3552_v50, 1 }
 0x30d   : > { %v3530_v61 = vmax.f32 %v3528_v45, %v3529_v51  ;;  %v3536_v63 = vmax.f32 %v3534_v46, %v3535_v52  ;;  %v3542_v0 = vmax.f32 %v3540_v39, %v3541_v14  ;;  %v3548_v62 = vmax.f32 %v3546_v47, %v3547_v53 }
 0x30e   : > { %v3554_v4 = vmax.f32 %v3552_v50, %v3553_v58  ;;  %v3650_v5 = vsel %vm331_vm0, %v3518_v56, %v3512_v18  ;;  %v3495_v6 = vsel %vm6998_vm15, %v3473_v54, -inf  ;;  %v3496_v7 = vsel %vm6998_vm15, %v3474_v55, -inf }
 0x30f   : > { %v3651_v8 = vsel %vm334_vm1, %v3524_v57, %v3650_v5  ;;  %v3497_v9 = vsel %vm6998_vm15, %v3475_v22, -inf  ;;  %v3498_v11 = vsel %vm6998_vm15, %v3476_v59, -inf  ;;  %v3499_v12 = vsel %vm6998_vm15, %v3477_v60, -inf  ;;  %v3481_v59 = vld [vmem:[#allocation2 + $0x80] sm:$0xff]  ;;  %v3482_v60 = vld [vmem:[#allocation2 + $0x88] sm:$0xff] }
 0x310   : > { %v3652_v13 = vsel %vm337_vm2, %v3530_v61, %v3651_v8  ;;  %v3500_v15 = vsel %vm6998_vm15, %v3478_v1, -inf  ;;  %v3501_v16 = vsel %vm6998_vm15, %v3479_v2, -inf  ;;  %v3502_v17 = vsel %vm6998_vm15, %v3480_v3, -inf  ;;  %v3483_v1 = vld [vmem:[#allocation2 + $0x90] sm:$0xff]  ;;  %v3484_v2 = vld [vmem:[#allocation2 + $0x98] sm:$0xff] }
 0x311   : > { %v3653_v19 = vsel %vm340_vm3, %v3536_v63, %v3652_v13  ;;  %v3555_v20 = vrot.slane %v3495_v6, 4  ;;  %v3561_v21 = vrot.slane %v3496_v7, 4  ;;  %v3567_v23 = vrot.slane %v3497_v9, 4 }
 0x312   : > { %v3654_v25 = vsel %vm343_vm4, %v3542_v0, %v3653_v19  ;;  %v3573_v27 = vrot.slane %v3498_v11, 4  ;;  %v3579_v28 = vrot.slane %v3499_v12, 4  ;;  %v3585_v29 = vrot.slane %v3500_v15, 4 }
 0x313   : > { %v3655_v31 = vsel %vm346_vm5, %v3548_v62, %v3654_v25  ;;  %v3556_v32 = vmax.f32 %v3495_v6, %v3555_v20  ;;  %v3562_v33 = vmax.f32 %v3496_v7, %v3561_v21  ;;  %v3568_v36 = vmax.f32 %v3497_v9, %v3567_v23 }
 0x314   : > { %v3656_v37 = vsel %vm349_vm6, %v3554_v4, %v3655_v31  ;;  %v3574_v38 = vmax.f32 %v3498_v11, %v3573_v27  ;;  %v3580_v40 = vmax.f32 %v3499_v12, %v3579_v28  ;;  %v3586_v30 = vmax.f32 %v3500_v15, %v3585_v29  ;;  %v3628_v29 = vld [vmem:[#allocation3 + $0x149] sm:$0xff] }
 0x315   : > { %v3670_v41 = vmax.f32 %v3627_v24, %v3656_v37  ;;  %v3557_v42 = vrot.slane %v3556_v32, 2  ;;  %v3563_v43 = vrot.slane %v3562_v33, 2  ;;  %v3569_v35 = vrot.slane %v3568_v36, 2 }
 0x316   : > { %v3575_v44 = vrot.slane %v3574_v38, 2  ;;  %v3581_v45 = vrot.slane %v3580_v40, 2  ;;  %v3587_v46 = vrot.slane %v3586_v30, 2  ;;  %v3591_v39 = vrot.slane %v3501_v16, 4 }
 0x317   : > { %3673 = vst [vmem:[#allocation3 + $0x141] sm:$0xff] %v3670_v41  ;;  %v3558_v47 = vmax.f32 %v3556_v32, %v3557_v42  ;;  %v3564_v48 = vmax.f32 %v3562_v33, %v3563_v43  ;;  %v3570_v49 = vmax.f32 %v3568_v36, %v3569_v35  ;;  %v3597_v10 = vrot.slane %v3502_v17, 4 }
 0x318   : > { %v3576_v50 = vmax.f32 %v3574_v38, %v3575_v44  ;;  %v3582_v51 = vmax.f32 %v3580_v40, %v3581_v45  ;;  %v3588_v52 = vmax.f32 %v3586_v30, %v3587_v46  ;;  %v3592_v14 = vmax.f32 %v3501_v16, %v3591_v39 }
 0x319   : > { %v3559_v53 = vrot.slane %v3558_v47, 1  ;;  %v3565_v54 = vrot.slane %v3564_v48, 1  ;;  %v3571_v55 = vrot.slane %v3570_v49, 1  ;;  %v3598_v18 = vmax.f32 %v3502_v17, %v3597_v10 }
 0x31a   : > { %v3577_v56 = vrot.slane %v3576_v50, 1  ;;  %v3583_v57 = vrot.slane %v3582_v51, 1  ;;  %v3589_v58 = vrot.slane %v3588_v52, 1  ;;  %v3593_v22 = vrot.slane %v3592_v14, 2 }
 0x31b   : > { %v3560_v61 = vmax.f32 %v3558_v47, %v3559_v53  ;;  %v3566_v63 = vmax.f32 %v3564_v48, %v3565_v54  ;;  %v3572_v0 = vmax.f32 %v3570_v49, %v3571_v55  ;;  %v3599_v62 = vrot.slane %v3598_v18, 2 }
 0x31c   : > { %v3578_v3 = vmax.f32 %v3576_v50, %v3577_v56  ;;  %v3584_v4 = vmax.f32 %v3582_v51, %v3583_v57  ;;  %v3590_v5 = vmax.f32 %v3588_v52, %v3589_v58  ;;  %v3594_v6 = vmax.f32 %v3592_v14, %v3593_v22  ;;  %v3629_v14 = vld [vmem:[#allocation3 + $0x151] sm:$0xf] }
 0x31d   : > { %v3600_v7 = vmax.f32 %v3598_v18, %v3599_v62  ;;  %v3657_v8 = vsel %vm331_vm0, %v3566_v63, %v3560_v61  ;;  %v3503_v9 = vsel %vm6998_vm15, %v3481_v59, -inf  ;;  %v3504_v11 = vsel %vm6998_vm15, %v3482_v60, -inf }
 0x31e   : > { %v3595_v12 = vrot.slane %v3594_v6, 1  ;;  %v3658_v13 = vsel %vm334_vm1, %v3572_v0, %v3657_v8  ;;  %v3505_v15 = vsel %vm6998_vm15, %v3483_v1, -inf  ;;  %v3506_v16 = vsel %vm6998_vm15, %v3484_v2, -inf }
 0x31f   : > { %v3601_v17 = vrot.slane %v3600_v7, 1  ;;  %v3659_v19 = vsel %vm337_vm2, %v3578_v3, %v3658_v13  ;;  %v3603_v20 = vrot.slane %v3503_v9, 4  ;;  %v3609_v21 = vrot.slane %v3504_v11, 4 }
 0x320   : > { %v3596_v23 = vmax.f32 %v3594_v6, %v3595_v12  ;;  %v3660_v24 = vsel %vm340_vm3, %v3584_v4, %v3659_v19  ;;  %v3615_v25 = vrot.slane %v3505_v15, 4  ;;  %v3621_v27 = vrot.slane %v3506_v16, 4 }
 0x321   : > { %v3602_v28 = vmax.f32 %v3600_v7, %v3601_v17  ;;  %v3661_v31 = vsel %vm343_vm4, %v3590_v5, %v3660_v24  ;;  %v3604_v32 = vmax.f32 %v3503_v9, %v3603_v20  ;;  %v3610_v33 = vmax.f32 %v3504_v11, %v3609_v21 }
 0x322   : > { %v3662_v36 = vsel %vm346_vm5, %v3596_v23, %v3661_v31  ;;  %v3616_v26 = vmax.f32 %v3505_v15, %v3615_v25  ;;  %v3622_v37 = vmax.f32 %v3506_v16, %v3621_v27 }
 0x323   : > { %v3663_v38 = vsel %vm349_vm6, %v3602_v28, %v3662_v36  ;;  %v3605_v40 = vrot.slane %v3604_v32, 2  ;;  %v3611_v30 = vrot.slane %v3610_v33, 2 }
 0x324   : > { %v3671_v41 = vmax.f32 %v3628_v29, %v3663_v38  ;;  %v3617_v42 = vrot.slane %v3616_v26, 2  ;;  %v3623_v43 = vrot.slane %v3622_v37, 2 }
 0x325   : > { %v3606_v35 = vmax.f32 %v3604_v32, %v3605_v40  ;;  %v3612_v44 = vmax.f32 %v3610_v33, %v3611_v30 }
 0x326   : > { %3674 = vst [vmem:[#allocation3 + $0x149] sm:$0xff] %v3671_v41  ;;  %v3618_v45 = vmax.f32 %v3616_v26, %v3617_v42  ;;  %v3624_v46 = vmax.f32 %v3622_v37, %v3623_v43 }
 0x327   : > { %v3607_v39 = vrot.slane %v3606_v35, 1  ;;  %v3613_v47 = vrot.slane %v3612_v44, 1 }
 0x328   : > { %v3619_v48 = vrot.slane %v3618_v45, 1  ;;  %v3625_v49 = vrot.slane %v3624_v46, 1 }
 0x329   : > { %v3608_v10 = vmax.f32 %v3606_v35, %v3607_v39  ;;  %v3614_v50 = vmax.f32 %v3612_v44, %v3613_v47 }
 0x32a   : > { %v3620_v51 = vmax.f32 %v3618_v45, %v3619_v48  ;;  %v3626_v52 = vmax.f32 %v3624_v46, %v3625_v49 }
 0x32b   : > { %v3664_v53 = vsel %vm331_vm0, %v3614_v50, %v3608_v10 }
 0x32c   : > { %v3665_v54 = vsel %vm334_vm1, %v3620_v51, %v3664_v53 }
 0x32d   : > { %v3666_v55 = vsel %vm337_vm2, %v3626_v52, %v3665_v54 }
 0x32e   : > { %v3672_v18 = vmax.f32 %v3629_v14, %v3666_v55 }
 0x330   : > { %3675 = vst [vmem:[#allocation3 + $0x151] sm:$0xf] %v3672_v18 }
 0x331 PF: > { %p3676_p3 = scmp.lt.s32.totalorder %s5939_s9, 14  ;;  %p3677_p4 = scmp.gt.s32.totalorder %s5955_s3, 12 }
 0x333   : > { %p7061_p5 = pnand %p3677_p4, %p3676_p3 }
 0x334   : > { %vm3682_vm7 = vcmp.ge.s32.totalorder (!%p7061_p5), %v6037_v34, 12  ;;  %vm3683_vm8 = vcmp.lt.s32.totalorder (!%p7061_p5), %v6037_v34, 14  ;;  %v3685_v56 = vld [vmem:[#allocation2] sm:$0xff] (!%p7061_p5)  ;;  %v3686_v57 = vld [vmem:[#allocation2 + $0x8] sm:$0xff] (!%p7061_p5)  ;;  %v3687_v58 = vld [vmem:[#allocation2 + $0x10] sm:$0xff] (!%p7061_p5) }
 0x335   : > { %3681 = sbr.rel (%p7061_p5) target bundleno = 871 (0x367), region = 118  ;;  %vm7069_vm9 = vmand (!%p7061_p5), %vm3682_vm7, %vm3683_vm8  ;;  %v3688_v59 = vld [vmem:[#allocation2 + $0x18] sm:$0xff] (!%p7061_p5)  ;;  %v3689_v60 = vld [vmem:[#allocation2 + $0x20] sm:$0xff] (!%p7061_p5) }
 0x336   : > { %v3690_v61 = vld [vmem:[#allocation2 + $0x28] sm:$0xff] (!%p7061_p5)  ;;  %v3691_v63 = vld [vmem:[#allocation2 + $0x30] sm:$0xff] (!%p7061_p5)  ;;  %v3692_v0 = vld [vmem:[#allocation2 + $0x38] sm:$0xff] (!%p7061_p5)  ;;  %v3707_v62 = vsel (!%p7061_p5), %vm7069_vm9, %v3685_v56, -inf  ;;  %v3708_v1 = vsel (!%p7061_p5), %vm7069_vm9, %v3686_v57, -inf  ;;  %v3709_v2 = vsel (!%p7061_p5), %vm7069_vm9, %v3687_v58, -inf }
 0x337   : > { %v3710_v3 = vsel (!%p7061_p5), %vm7069_vm9, %v3688_v59, -inf  ;;  %v3711_v4 = vsel (!%p7061_p5), %vm7069_vm9, %v3689_v60, -inf  ;;  %v3712_v5 = vsel (!%p7061_p5), %vm7069_vm9, %v3690_v61, -inf  ;;  %v3713_v6 = vsel (!%p7061_p5), %vm7069_vm9, %v3691_v63, -inf  ;;  %v3693_v51 = vld [vmem:[#allocation2 + $0x40] sm:$0xff] (!%p7061_p5)  ;;  %v3694_v52 = vld [vmem:[#allocation2 + $0x48] sm:$0xff] (!%p7061_p5) }
 0x338   : > { %v3714_v7 = vsel (!%p7061_p5), %vm7069_vm9, %v3692_v0, -inf  ;;  %v3727_v8 = vrot.slane (!%p7061_p5), %v3707_v62, 4  ;;  %v3733_v9 = vrot.slane (!%p7061_p5), %v3708_v1, 4  ;;  %v3739_v11 = vrot.slane (!%p7061_p5), %v3709_v2, 4  ;;  %v3695_v18 = vld [vmem:[#allocation2 + $0x50] sm:$0xff] (!%p7061_p5)  ;;  %v3696_v56 = vld [vmem:[#allocation2 + $0x58] sm:$0xff] (!%p7061_p5) }
 0x339   : > { %v3745_v12 = vrot.slane (!%p7061_p5), %v3710_v3, 4  ;;  %v3751_v13 = vrot.slane (!%p7061_p5), %v3711_v4, 4  ;;  %v3757_v15 = vrot.slane (!%p7061_p5), %v3712_v5, 4  ;;  %v3763_v16 = vrot.slane (!%p7061_p5), %v3713_v6, 4  ;;  %v3697_v57 = vld [vmem:[#allocation2 + $0x60] sm:$0xff] (!%p7061_p5)  ;;  %v3698_v63 = vld [vmem:[#allocation2 + $0x68] sm:$0xff] (!%p7061_p5) }
 0x33a   : > { %v3728_v17 = vmax.f32 (!%p7061_p5), %v3707_v62, %v3727_v8  ;;  %v3734_v19 = vmax.f32 (!%p7061_p5), %v3708_v1, %v3733_v9  ;;  %v3740_v20 = vmax.f32 (!%p7061_p5), %v3709_v2, %v3739_v11  ;;  %v3769_v21 = vrot.slane (!%p7061_p5), %v3714_v7, 4  ;;  %v3699_v0 = vld [vmem:[#allocation2 + $0x70] sm:$0xff] (!%p7061_p5)  ;;  %v3700_v62 = vld [vmem:[#allocation2 + $0x78] sm:$0xff] (!%p7061_p5) }
 0x33b   : > { %v3746_v23 = vmax.f32 (!%p7061_p5), %v3710_v3, %v3745_v12  ;;  %v3752_v24 = vmax.f32 (!%p7061_p5), %v3711_v4, %v3751_v13  ;;  %v3758_v25 = vmax.f32 (!%p7061_p5), %v3712_v5, %v3757_v15  ;;  %v3764_v27 = vmax.f32 (!%p7061_p5), %v3713_v6, %v3763_v16 }
 0x33c   : > { %v3729_v28 = vrot.slane %v3728_v17, 2  ;;  %v3735_v29 = vrot.slane %v3734_v19, 2  ;;  %v3741_v31 = vrot.slane %v3740_v20, 2  ;;  %v3770_v32 = vmax.f32 %v3714_v7, %v3769_v21 }
 0x33d   : > { %v3747_v33 = vrot.slane %v3746_v23, 2  ;;  %v3753_v36 = vrot.slane %v3752_v24, 2  ;;  %v3759_v26 = vrot.slane %v3758_v25, 2  ;;  %v3765_v37 = vrot.slane %v3764_v27, 2 }
 0x33e   : > { %v3730_v38 = vmax.f32 %v3728_v17, %v3729_v28  ;;  %v3736_v40 = vmax.f32 %v3734_v19, %v3735_v29  ;;  %v3742_v30 = vmax.f32 %v3740_v20, %v3741_v31  ;;  %v3771_v41 = vrot.slane %v3770_v32, 2  ;;  %v3847_v20 = vld [vmem:[#allocation3 + $0x155] sm:$0xff] }
 0x33f   : > { %v3748_v42 = vmax.f32 %v3746_v23, %v3747_v33  ;;  %v3754_v43 = vmax.f32 %v3752_v24, %v3753_v36  ;;  %v3760_v35 = vmax.f32 %v3758_v25, %v3759_v26  ;;  %v3766_v44 = vmax.f32 %v3764_v27, %v3765_v37 }
 0x340   : > { %v3731_v45 = vrot.slane %v3730_v38, 1  ;;  %v3737_v46 = vrot.slane %v3736_v40, 1  ;;  %v3743_v39 = vrot.slane %v3742_v30, 1  ;;  %v3772_v47 = vmax.f32 %v3770_v32, %v3771_v41 }
 0x341   : > { %v3749_v48 = vrot.slane %v3748_v42, 1  ;;  %v3755_v49 = vrot.slane %v3754_v43, 1  ;;  %v3761_v10 = vrot.slane %v3760_v35, 1  ;;  %v3767_v50 = vrot.slane %v3766_v44, 1 }
 0x342   : > { %v3732_v14 = vmax.f32 %v3730_v38, %v3731_v45  ;;  %v3738_v53 = vmax.f32 %v3736_v40, %v3737_v46  ;;  %v3744_v54 = vmax.f32 %v3742_v30, %v3743_v39  ;;  %v3773_v55 = vrot.slane %v3772_v47, 1 }
 0x343   : > { %v3750_v58 = vmax.f32 %v3748_v42, %v3749_v48  ;;  %v3756_v59 = vmax.f32 %v3754_v43, %v3755_v49  ;;  %v3762_v60 = vmax.f32 %v3760_v35, %v3761_v10  ;;  %v3768_v61 = vmax.f32 %v3766_v44, %v3767_v50 }
 0x344   : > { %v3774_v1 = vmax.f32 %v3772_v47, %v3773_v55  ;;  %v3870_v2 = vsel %vm331_vm0, %v3738_v53, %v3732_v14  ;;  %v3715_v3 = vsel %vm7069_vm9, %v3693_v51, -inf  ;;  %v3716_v4 = vsel %vm7069_vm9, %v3694_v52, -inf }
 0x345   : > { %v3871_v5 = vsel %vm334_vm1, %v3744_v54, %v3870_v2  ;;  %v3717_v6 = vsel %vm7069_vm9, %v3695_v18, -inf  ;;  %v3718_v7 = vsel %vm7069_vm9, %v3696_v56, -inf  ;;  %v3719_v8 = vsel %vm7069_vm9, %v3697_v57, -inf  ;;  %v3701_v56 = vld [vmem:[#allocation2 + $0x80] sm:$0xff]  ;;  %v3702_v57 = vld [vmem:[#allocation2 + $0x88] sm:$0xff] }
 0x346   : > { %v3872_v9 = vsel %vm337_vm2, %v3750_v58, %v3871_v5  ;;  %v3720_v11 = vsel %vm7069_vm9, %v3698_v63, -inf  ;;  %v3721_v12 = vsel %vm7069_vm9, %v3699_v0, -inf  ;;  %v3722_v13 = vsel %vm7069_vm9, %v3700_v62, -inf  ;;  %v3703_v63 = vld [vmem:[#allocation2 + $0x90] sm:$0xff]  ;;  %v3704_v0 = vld [vmem:[#allocation2 + $0x98] sm:$0xff] }
 0x347   : > { %v3873_v15 = vsel %vm340_vm3, %v3756_v59, %v3872_v9  ;;  %v3775_v16 = vrot.slane %v3715_v3, 4  ;;  %v3781_v17 = vrot.slane %v3716_v4, 4  ;;  %v3787_v19 = vrot.slane %v3717_v6, 4 }
 0x348   : > { %v3874_v21 = vsel %vm343_vm4, %v3762_v60, %v3873_v15  ;;  %v3793_v23 = vrot.slane %v3718_v7, 4  ;;  %v3799_v24 = vrot.slane %v3719_v8, 4  ;;  %v3805_v25 = vrot.slane %v3720_v11, 4 }
 0x349   : > { %v3875_v27 = vsel %vm346_vm5, %v3768_v61, %v3874_v21  ;;  %v3776_v28 = vmax.f32 %v3715_v3, %v3775_v16  ;;  %v3782_v29 = vmax.f32 %v3716_v4, %v3781_v17  ;;  %v3788_v31 = vmax.f32 %v3717_v6, %v3787_v19 }
 0x34a   : > { %v3876_v32 = vsel %vm349_vm6, %v3774_v1, %v3875_v27  ;;  %v3794_v33 = vmax.f32 %v3718_v7, %v3793_v23  ;;  %v3800_v36 = vmax.f32 %v3719_v8, %v3799_v24  ;;  %v3806_v26 = vmax.f32 %v3720_v11, %v3805_v25  ;;  %v3848_v25 = vld [vmem:[#allocation3 + $0x15d] sm:$0xff] }
 0x34b   : > { %v3890_v37 = vmax.f32 %v3847_v20, %v3876_v32  ;;  %v3777_v38 = vrot.slane %v3776_v28, 2  ;;  %v3783_v40 = vrot.slane %v3782_v29, 2  ;;  %v3789_v30 = vrot.slane %v3788_v31, 2 }
 0x34c   : > { %v3795_v41 = vrot.slane %v3794_v33, 2  ;;  %v3801_v42 = vrot.slane %v3800_v36, 2  ;;  %v3807_v43 = vrot.slane %v3806_v26, 2  ;;  %v3811_v35 = vrot.slane %v3721_v12, 4 }
 0x34d   : > { %3893 = vst [vmem:[#allocation3 + $0x155] sm:$0xff] %v3890_v37  ;;  %v3778_v44 = vmax.f32 %v3776_v28, %v3777_v38  ;;  %v3784_v45 = vmax.f32 %v3782_v29, %v3783_v40  ;;  %v3790_v46 = vmax.f32 %v3788_v31, %v3789_v30  ;;  %v3817_v39 = vrot.slane %v3722_v13, 4 }
 0x34e   : > { %v3796_v47 = vmax.f32 %v3794_v33, %v3795_v41  ;;  %v3802_v48 = vmax.f32 %v3800_v36, %v3801_v42  ;;  %v3808_v49 = vmax.f32 %v3806_v26, %v3807_v43  ;;  %v3812_v10 = vmax.f32 %v3721_v12, %v3811_v35 }
 0x34f   : > { %v3779_v50 = vrot.slane %v3778_v44, 1  ;;  %v3785_v51 = vrot.slane %v3784_v45, 1  ;;  %v3791_v52 = vrot.slane %v3790_v46, 1  ;;  %v3818_v14 = vmax.f32 %v3722_v13, %v3817_v39 }
 0x350   : > { %v3797_v53 = vrot.slane %v3796_v47, 1  ;;  %v3803_v54 = vrot.slane %v3802_v48, 1  ;;  %v3809_v55 = vrot.slane %v3808_v49, 1  ;;  %v3813_v18 = vrot.slane %v3812_v10, 2 }
 0x351   : > { %v3780_v58 = vmax.f32 %v3778_v44, %v3779_v50  ;;  %v3786_v59 = vmax.f32 %v3784_v45, %v3785_v51  ;;  %v3792_v60 = vmax.f32 %v3790_v46, %v3791_v52  ;;  %v3819_v61 = vrot.slane %v3818_v14, 2 }
 0x352   : > { %v3798_v62 = vmax.f32 %v3796_v47, %v3797_v53  ;;  %v3804_v1 = vmax.f32 %v3802_v48, %v3803_v54  ;;  %v3810_v2 = vmax.f32 %v3808_v49, %v3809_v55  ;;  %v3814_v3 = vmax.f32 %v3812_v10, %v3813_v18  ;;  %v3849_v10 = vld [vmem:[#allocation3 + $0x165] sm:$0xf] }
 0x353   : > { %v3820_v4 = vmax.f32 %v3818_v14, %v3819_v61  ;;  %v3877_v5 = vsel %vm331_vm0, %v3786_v59, %v3780_v58  ;;  %v3723_v6 = vsel %vm7069_vm9, %v3701_v56, -inf  ;;  %v3724_v7 = vsel %vm7069_vm9, %v3702_v57, -inf }
 0x354   : > { %v3815_v8 = vrot.slane %v3814_v3, 1  ;;  %v3878_v9 = vsel %vm334_vm1, %v3792_v60, %v3877_v5  ;;  %v3725_v11 = vsel %vm7069_vm9, %v3703_v63, -inf  ;;  %v3726_v12 = vsel %vm7069_vm9, %v3704_v0, -inf }
 0x355   : > { %v3821_v13 = vrot.slane %v3820_v4, 1  ;;  %v3879_v15 = vsel %vm337_vm2, %v3798_v62, %v3878_v9  ;;  %v3823_v16 = vrot.slane %v3723_v6, 4  ;;  %v3829_v17 = vrot.slane %v3724_v7, 4 }
 0x356   : > { %v3816_v19 = vmax.f32 %v3814_v3, %v3815_v8  ;;  %v3880_v20 = vsel %vm340_vm3, %v3804_v1, %v3879_v15  ;;  %v3835_v21 = vrot.slane %v3725_v11, 4  ;;  %v3841_v23 = vrot.slane %v3726_v12, 4 }
 0x357   : > { %v3822_v24 = vmax.f32 %v3820_v4, %v3821_v13  ;;  %v3881_v27 = vsel %vm343_vm4, %v3810_v2, %v3880_v20  ;;  %v3824_v28 = vmax.f32 %v3723_v6, %v3823_v16  ;;  %v3830_v29 = vmax.f32 %v3724_v7, %v3829_v17 }
 0x358   : > { %v3882_v31 = vsel %vm346_vm5, %v3816_v19, %v3881_v27  ;;  %v3836_v22 = vmax.f32 %v3725_v11, %v3835_v21  ;;  %v3842_v32 = vmax.f32 %v3726_v12, %v3841_v23 }
 0x359   : > { %v3883_v33 = vsel %vm349_vm6, %v3822_v24, %v3882_v31  ;;  %v3825_v36 = vrot.slane %v3824_v28, 2  ;;  %v3831_v26 = vrot.slane %v3830_v29, 2 }
 0x35a   : > { %v3891_v37 = vmax.f32 %v3848_v25, %v3883_v33  ;;  %v3837_v38 = vrot.slane %v3836_v22, 2  ;;  %v3843_v40 = vrot.slane %v3842_v32, 2 }
 0x35b   : > { %v3826_v30 = vmax.f32 %v3824_v28, %v3825_v36  ;;  %v3832_v41 = vmax.f32 %v3830_v29, %v3831_v26 }
 0x35c   : > { %3894 = vst [vmem:[#allocation3 + $0x15d] sm:$0xff] %v3891_v37  ;;  %v3838_v42 = vmax.f32 %v3836_v22, %v3837_v38  ;;  %v3844_v43 = vmax.f32 %v3842_v32, %v3843_v40 }
 0x35d   : > { %v3827_v35 = vrot.slane %v3826_v30, 1  ;;  %v3833_v44 = vrot.slane %v3832_v41, 1 }
 0x35e   : > { %v3839_v45 = vrot.slane %v3838_v42, 1  ;;  %v3845_v46 = vrot.slane %v3844_v43, 1 }
 0x35f   : > { %v3828_v39 = vmax.f32 %v3826_v30, %v3827_v35  ;;  %v3834_v47 = vmax.f32 %v3832_v41, %v3833_v44 }
 0x360   : > { %v3840_v48 = vmax.f32 %v3838_v42, %v3839_v45  ;;  %v3846_v49 = vmax.f32 %v3844_v43, %v3845_v46 }
 0x361   : > { %v3884_v50 = vsel %vm331_vm0, %v3834_v47, %v3828_v39 }
 0x362   : > { %v3885_v51 = vsel %vm334_vm1, %v3840_v48, %v3884_v50 }
 0x363   : > { %v3886_v52 = vsel %vm337_vm2, %v3846_v49, %v3885_v51 }
 0x364   : > { %v3892_v14 = vmax.f32 %v3849_v10, %v3886_v52 }
 0x366   : > { %3895 = vst [vmem:[#allocation3 + $0x165] sm:$0xf] %v3892_v14 }
 0x367 PF: > { %p3896_p10 = scmp.lt.s32.totalorder %s5939_s9, 15  ;;  %p3897_p13 = scmp.gt.s32.totalorder %s5955_s3, 13 }
 0x369   : > { %p3898_p1 = pnand %p3897_p13, %p3896_p10 }
 0x36a   : > { %vm3902_vm10 = vcmp.ge.s32.totalorder (!%p3898_p1), %v6037_v34, 13  ;;  %vm3903_vm11 = vcmp.lt.s32.totalorder (!%p3898_p1), %v6037_v34, 15  ;;  %v3905_v53 = vld [vmem:[#allocation2] sm:$0xff] (!%p3898_p1)  ;;  %v3906_v54 = vld [vmem:[#allocation2 + $0x8] sm:$0xff] (!%p3898_p1)  ;;  %v3907_v55 = vld [vmem:[#allocation2 + $0x10] sm:$0xff] (!%p3898_p1) }
 0x36b   : > { %3901 = sbr.rel (%p3898_p1) target bundleno = 925 (0x39d), region = 122  ;;  %vm7134_vm12 = vmand (!%p3898_p1), %vm3902_vm10, %vm3903_vm11  ;;  %v3908_v56 = vld [vmem:[#allocation2 + $0x18] sm:$0xff] (!%p3898_p1)  ;;  %v3909_v57 = vld [vmem:[#allocation2 + $0x20] sm:$0xff] (!%p3898_p1) }
 0x36c   : > { %v3910_v58 = vld [vmem:[#allocation2 + $0x28] sm:$0xff] (!%p3898_p1)  ;;  %v3911_v59 = vld [vmem:[#allocation2 + $0x30] sm:$0xff] (!%p3898_p1)  ;;  %v3912_v60 = vld [vmem:[#allocation2 + $0x38] sm:$0xff] (!%p3898_p1)  ;;  %v3927_v61 = vsel (!%p3898_p1), %vm7134_vm12, %v3905_v53, -inf  ;;  %v3928_v63 = vsel (!%p3898_p1), %vm7134_vm12, %v3906_v54, -inf  ;;  %v3929_v0 = vsel (!%p3898_p1), %vm7134_vm12, %v3907_v55, -inf }
 0x36d   : > { %v3930_v62 = vsel (!%p3898_p1), %vm7134_vm12, %v3908_v56, -inf  ;;  %v3931_v1 = vsel (!%p3898_p1), %vm7134_vm12, %v3909_v57, -inf  ;;  %v3932_v2 = vsel (!%p3898_p1), %vm7134_vm12, %v3910_v58, -inf  ;;  %v3933_v3 = vsel (!%p3898_p1), %vm7134_vm12, %v3911_v59, -inf  ;;  %v3913_v48 = vld [vmem:[#allocation2 + $0x40] sm:$0xff] (!%p3898_p1)  ;;  %v3914_v49 = vld [vmem:[#allocation2 + $0x48] sm:$0xff] (!%p3898_p1) }
 0x36e   : > { %v3934_v4 = vsel (!%p3898_p1), %vm7134_vm12, %v3912_v60, -inf  ;;  %v3947_v5 = vrot.slane (!%p3898_p1), %v3927_v61, 4  ;;  %v3953_v6 = vrot.slane (!%p3898_p1), %v3928_v63, 4  ;;  %v3959_v7 = vrot.slane (!%p3898_p1), %v3929_v0, 4  ;;  %v3915_v14 = vld [vmem:[#allocation2 + $0x50] sm:$0xff] (!%p3898_p1)  ;;  %v3916_v53 = vld [vmem:[#allocation2 + $0x58] sm:$0xff] (!%p3898_p1) }
 0x36f   : > { %v3965_v8 = vrot.slane (!%p3898_p1), %v3930_v62, 4  ;;  %v3971_v9 = vrot.slane (!%p3898_p1), %v3931_v1, 4  ;;  %v3977_v11 = vrot.slane (!%p3898_p1), %v3932_v2, 4  ;;  %v3983_v12 = vrot.slane (!%p3898_p1), %v3933_v3, 4  ;;  %v3917_v54 = vld [vmem:[#allocation2 + $0x60] sm:$0xff] (!%p3898_p1)  ;;  %v3918_v59 = vld [vmem:[#allocation2 + $0x68] sm:$0xff] (!%p3898_p1) }
 0x370   : > { %v3948_v13 = vmax.f32 (!%p3898_p1), %v3927_v61, %v3947_v5  ;;  %v3954_v15 = vmax.f32 (!%p3898_p1), %v3928_v63, %v3953_v6  ;;  %v3960_v16 = vmax.f32 (!%p3898_p1), %v3929_v0, %v3959_v7  ;;  %v3989_v17 = vrot.slane (!%p3898_p1), %v3934_v4, 4  ;;  %v3919_v60 = vld [vmem:[#allocation2 + $0x70] sm:$0xff] (!%p3898_p1)  ;;  %v3920_v61 = vld [vmem:[#allocation2 + $0x78] sm:$0xff] (!%p3898_p1) }
 0x371   : > { %v3966_v19 = vmax.f32 (!%p3898_p1), %v3930_v62, %v3965_v8  ;;  %v3972_v20 = vmax.f32 (!%p3898_p1), %v3931_v1, %v3971_v9  ;;  %v3978_v21 = vmax.f32 (!%p3898_p1), %v3932_v2, %v3977_v11  ;;  %v3984_v23 = vmax.f32 (!%p3898_p1), %v3933_v3, %v3983_v12 }
 0x372   : > { %v3949_v24 = vrot.slane %v3948_v13, 2  ;;  %v3955_v25 = vrot.slane %v3954_v15, 2  ;;  %v3961_v27 = vrot.slane %v3960_v16, 2  ;;  %v3990_v28 = vmax.f32 %v3934_v4, %v3989_v17 }
 0x373   : > { %v3967_v29 = vrot.slane %v3966_v19, 2  ;;  %v3973_v31 = vrot.slane %v3972_v20, 2  ;;  %v3979_v22 = vrot.slane %v3978_v21, 2  ;;  %v3985_v32 = vrot.slane %v3984_v23, 2 }
 0x374   : > { %v3950_v33 = vmax.f32 %v3948_v13, %v3949_v24  ;;  %v3956_v36 = vmax.f32 %v3954_v15, %v3955_v25  ;;  %v3962_v26 = vmax.f32 %v3960_v16, %v3961_v27  ;;  %v3991_v37 = vrot.slane %v3990_v28, 2  ;;  %v4067_v16 = vld [vmem:[#allocation3 + $0x169] sm:$0xff] }
 0x375   : > { %v3968_v38 = vmax.f32 %v3966_v19, %v3967_v29  ;;  %v3974_v40 = vmax.f32 %v3972_v20, %v3973_v31  ;;  %v3980_v30 = vmax.f32 %v3978_v21, %v3979_v22  ;;  %v3986_v41 = vmax.f32 %v3984_v23, %v3985_v32 }
 0x376   : > { %v3951_v42 = vrot.slane %v3950_v33, 1  ;;  %v3957_v43 = vrot.slane %v3956_v36, 1  ;;  %v3963_v35 = vrot.slane %v3962_v26, 1  ;;  %v3992_v44 = vmax.f32 %v3990_v28, %v3991_v37 }
 0x377   : > { %v3969_v45 = vrot.slane %v3968_v38, 1  ;;  %v3975_v46 = vrot.slane %v3974_v40, 1  ;;  %v3981_v39 = vrot.slane %v3980_v30, 1  ;;  %v3987_v47 = vrot.slane %v3986_v41, 1 }
 0x378   : > { %v3952_v10 = vmax.f32 %v3950_v33, %v3951_v42  ;;  %v3958_v50 = vmax.f32 %v3956_v36, %v3957_v43  ;;  %v3964_v51 = vmax.f32 %v3962_v26, %v3963_v35  ;;  %v3993_v52 = vrot.slane %v3992_v44, 1 }
 0x379   : > { %v3970_v55 = vmax.f32 %v3968_v38, %v3969_v45  ;;  %v3976_v56 = vmax.f32 %v3974_v40, %v3975_v46  ;;  %v3982_v57 = vmax.f32 %v3980_v30, %v3981_v39  ;;  %v3988_v58 = vmax.f32 %v3986_v41, %v3987_v47 }
 0x37a   : > { %v3994_v63 = vmax.f32 %v3992_v44, %v3993_v52  ;;  %v4090_v0 = vsel %vm331_vm0, %v3958_v50, %v3952_v10  ;;  %v3935_v62 = vsel %vm7134_vm12, %v3913_v48, -inf  ;;  %v3936_v1 = vsel %vm7134_vm12, %v3914_v49, -inf }
 0x37b   : > { %v4091_v2 = vsel %vm334_vm1, %v3964_v51, %v4090_v0  ;;  %v3937_v3 = vsel %vm7134_vm12, %v3915_v14, -inf  ;;  %v3938_v4 = vsel %vm7134_vm12, %v3916_v53, -inf  ;;  %v3939_v5 = vsel %vm7134_vm12, %v3917_v54, -inf  ;;  %v3921_v53 = vld [vmem:[#allocation2 + $0x80] sm:$0xff]  ;;  %v3922_v54 = vld [vmem:[#allocation2 + $0x88] sm:$0xff] }
 0x37c   : > { %v4092_v6 = vsel %vm337_vm2, %v3970_v55, %v4091_v2  ;;  %v3940_v7 = vsel %vm7134_vm12, %v3918_v59, -inf  ;;  %v3941_v8 = vsel %vm7134_vm12, %v3919_v60, -inf  ;;  %v3942_v9 = vsel %vm7134_vm12, %v3920_v61, -inf  ;;  %v3923_v59 = vld [vmem:[#allocation2 + $0x90] sm:$0xff]  ;;  %v3924_v60 = vld [vmem:[#allocation2 + $0x98] sm:$0xff] }
 0x37d   : > { %v4093_v11 = vsel %vm340_vm3, %v3976_v56, %v4092_v6  ;;  %v3995_v12 = vrot.slane %v3935_v62, 4  ;;  %v4001_v13 = vrot.slane %v3936_v1, 4  ;;  %v4007_v15 = vrot.slane %v3937_v3, 4 }
 0x37e   : > { %v4094_v17 = vsel %vm343_vm4, %v3982_v57, %v4093_v11  ;;  %v4013_v19 = vrot.slane %v3938_v4, 4  ;;  %v4019_v20 = vrot.slane %v3939_v5, 4  ;;  %v4025_v21 = vrot.slane %v3940_v7, 4 }
 0x37f   : > { %v4095_v23 = vsel %vm346_vm5, %v3988_v58, %v4094_v17  ;;  %v3996_v24 = vmax.f32 %v3935_v62, %v3995_v12  ;;  %v4002_v25 = vmax.f32 %v3936_v1, %v4001_v13  ;;  %v4008_v27 = vmax.f32 %v3937_v3, %v4007_v15 }
 0x380   : > { %v4096_v28 = vsel %vm349_vm6, %v3994_v63, %v4095_v23  ;;  %v4014_v29 = vmax.f32 %v3938_v4, %v4013_v19  ;;  %v4020_v31 = vmax.f32 %v3939_v5, %v4019_v20  ;;  %v4026_v22 = vmax.f32 %v3940_v7, %v4025_v21  ;;  %v4068_v21 = vld [vmem:[#allocation3 + $0x171] sm:$0xff] }
 0x381   : > { %v4110_v32 = vmax.f32 %v4067_v16, %v4096_v28  ;;  %v3997_v33 = vrot.slane %v3996_v24, 2  ;;  %v4003_v36 = vrot.slane %v4002_v25, 2  ;;  %v4009_v26 = vrot.slane %v4008_v27, 2 }
 0x382   : > { %v4015_v37 = vrot.slane %v4014_v29, 2  ;;  %v4021_v38 = vrot.slane %v4020_v31, 2  ;;  %v4027_v40 = vrot.slane %v4026_v22, 2  ;;  %v4031_v30 = vrot.slane %v3941_v8, 4 }
 0x383   : > { %4113 = vst [vmem:[#allocation3 + $0x169] sm:$0xff] %v4110_v32  ;;  %v3998_v41 = vmax.f32 %v3996_v24, %v3997_v33  ;;  %v4004_v42 = vmax.f32 %v4002_v25, %v4003_v36  ;;  %v4010_v43 = vmax.f32 %v4008_v27, %v4009_v26  ;;  %v4037_v35 = vrot.slane %v3942_v9, 4 }
 0x384   : > { %v4016_v44 = vmax.f32 %v4014_v29, %v4015_v37  ;;  %v4022_v45 = vmax.f32 %v4020_v31, %v4021_v38  ;;  %v4028_v46 = vmax.f32 %v4026_v22, %v4027_v40  ;;  %v4032_v39 = vmax.f32 %v3941_v8, %v4031_v30 }
 0x385   : > { %v3999_v47 = vrot.slane %v3998_v41, 1  ;;  %v4005_v48 = vrot.slane %v4004_v42, 1  ;;  %v4011_v49 = vrot.slane %v4010_v43, 1  ;;  %v4038_v10 = vmax.f32 %v3942_v9, %v4037_v35 }
 0x386   : > { %v4017_v50 = vrot.slane %v4016_v44, 1  ;;  %v4023_v51 = vrot.slane %v4022_v45, 1  ;;  %v4029_v52 = vrot.slane %v4028_v46, 1  ;;  %v4033_v14 = vrot.slane %v4032_v39, 2 }
 0x387   : > { %v4000_v55 = vmax.f32 %v3998_v41, %v3999_v47  ;;  %v4006_v56 = vmax.f32 %v4004_v42, %v4005_v48  ;;  %v4012_v57 = vmax.f32 %v4010_v43, %v4011_v49  ;;  %v4039_v58 = vrot.slane %v4038_v10, 2 }
 0x388   : > { %v4018_v61 = vmax.f32 %v4016_v44, %v4017_v50  ;;  %v4024_v63 = vmax.f32 %v4022_v45, %v4023_v51  ;;  %v4030_v0 = vmax.f32 %v4028_v46, %v4029_v52  ;;  %v4034_v62 = vmax.f32 %v4032_v39, %v4033_v14  ;;  %v4069_v39 = vld [vmem:[#allocation3 + $0x179] sm:$0xf] }
 0x389   : > { %v4040_v1 = vmax.f32 %v4038_v10, %v4039_v58  ;;  %v4097_v2 = vsel %vm331_vm0, %v4006_v56, %v4000_v55  ;;  %v3943_v3 = vsel %vm7134_vm12, %v3921_v53, -inf  ;;  %v3944_v4 = vsel %vm7134_vm12, %v3922_v54, -inf }
 0x38a   : > { %v4035_v5 = vrot.slane %v4034_v62, 1  ;;  %v4098_v6 = vsel %vm334_vm1, %v4012_v57, %v4097_v2  ;;  %v3945_v7 = vsel %vm7134_vm12, %v3923_v59, -inf  ;;  %v3946_v8 = vsel %vm7134_vm12, %v3924_v60, -inf }
 0x38b   : > { %v4041_v9 = vrot.slane %v4040_v1, 1  ;;  %v4099_v11 = vsel %vm337_vm2, %v4018_v61, %v4098_v6  ;;  %v4043_v12 = vrot.slane %v3943_v3, 4  ;;  %v4049_v13 = vrot.slane %v3944_v4, 4 }
 0x38c   : > { %v4036_v15 = vmax.f32 %v4034_v62, %v4035_v5  ;;  %v4100_v16 = vsel %vm340_vm3, %v4024_v63, %v4099_v11  ;;  %v4055_v17 = vrot.slane %v3945_v7, 4  ;;  %v4061_v19 = vrot.slane %v3946_v8, 4 }
 0x38d   : > { %v4042_v20 = vmax.f32 %v4040_v1, %v4041_v9  ;;  %v4101_v23 = vsel %vm343_vm4, %v4030_v0, %v4100_v16  ;;  %v4044_v24 = vmax.f32 %v3943_v3, %v4043_v12  ;;  %v4050_v25 = vmax.f32 %v3944_v4, %v4049_v13 }
 0x38e   : > { %v4102_v27 = vsel %vm346_vm5, %v4036_v15, %v4101_v23  ;;  %v4056_v18 = vmax.f32 %v3945_v7, %v4055_v17  ;;  %v4062_v28 = vmax.f32 %v3946_v8, %v4061_v19 }
 0x38f   : > { %v4103_v29 = vsel %vm349_vm6, %v4042_v20, %v4102_v27  ;;  %v4045_v31 = vrot.slane %v4044_v24, 2  ;;  %v4051_v22 = vrot.slane %v4050_v25, 2 }
 0x390   : > { %v4111_v32 = vmax.f32 %v4068_v21, %v4103_v29  ;;  %v4057_v33 = vrot.slane %v4056_v18, 2  ;;  %v4063_v36 = vrot.slane %v4062_v28, 2 }
 0x391   : > { %v4046_v26 = vmax.f32 %v4044_v24, %v4045_v31  ;;  %v4052_v37 = vmax.f32 %v4050_v25, %v4051_v22 }
 0x392   : > { %4114 = vst [vmem:[#allocation3 + $0x171] sm:$0xff] %v4111_v32  ;;  %v4058_v38 = vmax.f32 %v4056_v18, %v4057_v33  ;;  %v4064_v40 = vmax.f32 %v4062_v28, %v4063_v36 }
 0x393   : > { %v4047_v30 = vrot.slane %v4046_v26, 1  ;;  %v4053_v41 = vrot.slane %v4052_v37, 1 }
 0x394   : > { %v4059_v42 = vrot.slane %v4058_v38, 1  ;;  %v4065_v43 = vrot.slane %v4064_v40, 1 }
 0x395   : > { %v4048_v35 = vmax.f32 %v4046_v26, %v4047_v30  ;;  %v4054_v44 = vmax.f32 %v4052_v37, %v4053_v41 }
 0x396   : > { %v4060_v45 = vmax.f32 %v4058_v38, %v4059_v42  ;;  %v4066_v46 = vmax.f32 %v4064_v40, %v4065_v43 }
 0x397   : > { %v4104_v47 = vsel %vm331_vm0, %v4054_v44, %v4048_v35 }
 0x398   : > { %v4105_v48 = vsel %vm334_vm1, %v4060_v45, %v4104_v47 }
 0x399   : > { %v4106_v49 = vsel %vm337_vm2, %v4066_v46, %v4105_v48 }
 0x39a   : > { %v4112_v10 = vmax.f32 %v4069_v39, %v4106_v49 }
 0x39c   : > { %4115 = vst [vmem:[#allocation3 + $0x179] sm:$0xf] %v4112_v10 }
 0x39d PF: > { %p4116_p3 = scmp.lt.s32.totalorder %s5939_s9, 16  ;;  %p4117_p4 = scmp.gt.s32.totalorder %s5955_s3, 14 }
 0x39f   : > { %p7197_p10 = pnand %p4117_p4, %p4116_p3 }
 0x3a0   : > { %vm4122_vm13 = vcmp.ge.s32.totalorder (!%p7197_p10), %v6037_v34, 14  ;;  %vm4123_vm14 = vcmp.lt.s32.totalorder (!%p7197_p10), %v6037_v34, 16  ;;  %v4125_v50 = vld [vmem:[#allocation2] sm:$0xff] (!%p7197_p10)  ;;  %v4126_v51 = vld [vmem:[#allocation2 + $0x8] sm:$0xff] (!%p7197_p10)  ;;  %v4127_v52 = vld [vmem:[#allocation2 + $0x10] sm:$0xff] (!%p7197_p10) }
 0x3a1   : > { %4121 = sbr.rel (%p7197_p10) target bundleno = 979 (0x3d3), region = 126  ;;  %vm7205_vm15 = vmand (!%p7197_p10), %vm4122_vm13, %vm4123_vm14  ;;  %v4128_v53 = vld [vmem:[#allocation2 + $0x18] sm:$0xff] (!%p7197_p10)  ;;  %v4129_v54 = vld [vmem:[#allocation2 + $0x20] sm:$0xff] (!%p7197_p10) }
 0x3a2   : > { %v4130_v55 = vld [vmem:[#allocation2 + $0x28] sm:$0xff] (!%p7197_p10)  ;;  %v4131_v56 = vld [vmem:[#allocation2 + $0x30] sm:$0xff] (!%p7197_p10)  ;;  %v4132_v57 = vld [vmem:[#allocation2 + $0x38] sm:$0xff] (!%p7197_p10)  ;;  %v4147_v58 = vsel (!%p7197_p10), %vm7205_vm15, %v4125_v50, -inf  ;;  %v4148_v59 = vsel (!%p7197_p10), %vm7205_vm15, %v4126_v51, -inf  ;;  %v4149_v60 = vsel (!%p7197_p10), %vm7205_vm15, %v4127_v52, -inf }
 0x3a3   : > { %v4150_v61 = vsel (!%p7197_p10), %vm7205_vm15, %v4128_v53, -inf  ;;  %v4151_v63 = vsel (!%p7197_p10), %vm7205_vm15, %v4129_v54, -inf  ;;  %v4152_v0 = vsel (!%p7197_p10), %vm7205_vm15, %v4130_v55, -inf  ;;  %v4153_v62 = vsel (!%p7197_p10), %vm7205_vm15, %v4131_v56, -inf  ;;  %v4133_v45 = vld [vmem:[#allocation2 + $0x40] sm:$0xff] (!%p7197_p10)  ;;  %v4134_v46 = vld [vmem:[#allocation2 + $0x48] sm:$0xff] (!%p7197_p10) }
 0x3a4   : > { %v4154_v1 = vsel (!%p7197_p10), %vm7205_vm15, %v4132_v57, -inf  ;;  %v4167_v2 = vrot.slane (!%p7197_p10), %v4147_v58, 4  ;;  %v4173_v3 = vrot.slane (!%p7197_p10), %v4148_v59, 4  ;;  %v4179_v4 = vrot.slane (!%p7197_p10), %v4149_v60, 4  ;;  %v4135_v10 = vld [vmem:[#allocation2 + $0x50] sm:$0xff] (!%p7197_p10)  ;;  %v4136_v50 = vld [vmem:[#allocation2 + $0x58] sm:$0xff] (!%p7197_p10) }
 0x3a5   : > { %v4185_v5 = vrot.slane (!%p7197_p10), %v4150_v61, 4  ;;  %v4191_v6 = vrot.slane (!%p7197_p10), %v4151_v63, 4  ;;  %v4197_v7 = vrot.slane (!%p7197_p10), %v4152_v0, 4  ;;  %v4203_v8 = vrot.slane (!%p7197_p10), %v4153_v62, 4  ;;  %v4137_v51 = vld [vmem:[#allocation2 + $0x60] sm:$0xff] (!%p7197_p10)  ;;  %v4138_v56 = vld [vmem:[#allocation2 + $0x68] sm:$0xff] (!%p7197_p10) }
 0x3a6   : > { %v4168_v9 = vmax.f32 (!%p7197_p10), %v4147_v58, %v4167_v2  ;;  %v4174_v11 = vmax.f32 (!%p7197_p10), %v4148_v59, %v4173_v3  ;;  %v4180_v12 = vmax.f32 (!%p7197_p10), %v4149_v60, %v4179_v4  ;;  %v4209_v13 = vrot.slane (!%p7197_p10), %v4154_v1, 4  ;;  %v4139_v57 = vld [vmem:[#allocation2 + $0x70] sm:$0xff] (!%p7197_p10)  ;;  %v4140_v58 = vld [vmem:[#allocation2 + $0x78] sm:$0xff] (!%p7197_p10) }
 0x3a7   : > { %v4186_v15 = vmax.f32 (!%p7197_p10), %v4150_v61, %v4185_v5  ;;  %v4192_v16 = vmax.f32 (!%p7197_p10), %v4151_v63, %v4191_v6  ;;  %v4198_v17 = vmax.f32 (!%p7197_p10), %v4152_v0, %v4197_v7  ;;  %v4204_v19 = vmax.f32 (!%p7197_p10), %v4153_v62, %v4203_v8 }
 0x3a8   : > { %v4169_v20 = vrot.slane %v4168_v9, 2  ;;  %v4175_v21 = vrot.slane %v4174_v11, 2  ;;  %v4181_v23 = vrot.slane %v4180_v12, 2  ;;  %v4210_v24 = vmax.f32 %v4154_v1, %v4209_v13 }
 0x3a9   : > { %v4187_v25 = vrot.slane %v4186_v15, 2  ;;  %v4193_v27 = vrot.slane %v4192_v16, 2  ;;  %v4199_v18 = vrot.slane %v4198_v17, 2  ;;  %v4205_v28 = vrot.slane %v4204_v19, 2 }
 0x3aa   : > { %v4170_v29 = vmax.f32 %v4168_v9, %v4169_v20  ;;  %v4176_v31 = vmax.f32 %v4174_v11, %v4175_v21  ;;  %v4182_v22 = vmax.f32 %v4180_v12, %v4181_v23  ;;  %v4211_v32 = vrot.slane %v4210_v24, 2  ;;  %v4287_v12 = vld [vmem:[#allocation3 + $0x17d] sm:$0xff] }
 0x3ab   : > { %v4188_v33 = vmax.f32 %v4186_v15, %v4187_v25  ;;  %v4194_v36 = vmax.f32 %v4192_v16, %v4193_v27  ;;  %v4200_v26 = vmax.f32 %v4198_v17, %v4199_v18  ;;  %v4206_v37 = vmax.f32 %v4204_v19, %v4205_v28 }
 0x3ac   : > { %v4171_v38 = vrot.slane %v4170_v29, 1  ;;  %v4177_v40 = vrot.slane %v4176_v31, 1  ;;  %v4183_v30 = vrot.slane %v4182_v22, 1  ;;  %v4212_v41 = vmax.f32 %v4210_v24, %v4211_v32 }
 0x3ad   : > { %v4189_v42 = vrot.slane %v4188_v33, 1  ;;  %v4195_v43 = vrot.slane %v4194_v36, 1  ;;  %v4201_v35 = vrot.slane %v4200_v26, 1  ;;  %v4207_v44 = vrot.slane %v4206_v37, 1 }
 0x3ae   : > { %v4172_v39 = vmax.f32 %v4170_v29, %v4171_v38  ;;  %v4178_v47 = vmax.f32 %v4176_v31, %v4177_v40  ;;  %v4184_v48 = vmax.f32 %v4182_v22, %v4183_v30  ;;  %v4213_v49 = vrot.slane %v4212_v41, 1 }
 0x3af   : > { %v4190_v52 = vmax.f32 %v4188_v33, %v4189_v42  ;;  %v4196_v53 = vmax.f32 %v4194_v36, %v4195_v43  ;;  %v4202_v54 = vmax.f32 %v4200_v26, %v4201_v35  ;;  %v4208_v55 = vmax.f32 %v4206_v37, %v4207_v44 }
 0x3b0   : > { %v4214_v59 = vmax.f32 %v4212_v41, %v4213_v49  ;;  %v4310_v60 = vsel %vm331_vm0, %v4178_v47, %v4172_v39  ;;  %v4155_v61 = vsel %vm7205_vm15, %v4133_v45, -inf  ;;  %v4156_v63 = vsel %vm7205_vm15, %v4134_v46, -inf }
 0x3b1   : > { %v4311_v0 = vsel %vm334_vm1, %v4184_v48, %v4310_v60  ;;  %v4157_v62 = vsel %vm7205_vm15, %v4135_v10, -inf  ;;  %v4158_v1 = vsel %vm7205_vm15, %v4136_v50, -inf  ;;  %v4159_v2 = vsel %vm7205_vm15, %v4137_v51, -inf  ;;  %v4141_v50 = vld [vmem:[#allocation2 + $0x80] sm:$0xff]  ;;  %v4142_v51 = vld [vmem:[#allocation2 + $0x88] sm:$0xff] }
 0x3b2   : > { %v4312_v3 = vsel %vm337_vm2, %v4190_v52, %v4311_v0  ;;  %v4160_v4 = vsel %vm7205_vm15, %v4138_v56, -inf  ;;  %v4161_v5 = vsel %vm7205_vm15, %v4139_v57, -inf  ;;  %v4162_v6 = vsel %vm7205_vm15, %v4140_v58, -inf  ;;  %v4143_v56 = vld [vmem:[#allocation2 + $0x90] sm:$0xff]  ;;  %v4144_v57 = vld [vmem:[#allocation2 + $0x98] sm:$0xff] }
 0x3b3   : > { %v4313_v7 = vsel %vm340_vm3, %v4196_v53, %v4312_v3  ;;  %v4215_v8 = vrot.slane %v4155_v61, 4  ;;  %v4221_v9 = vrot.slane %v4156_v63, 4  ;;  %v4227_v11 = vrot.slane %v4157_v62, 4 }
 0x3b4   : > { %v4314_v13 = vsel %vm343_vm4, %v4202_v54, %v4313_v7  ;;  %v4233_v15 = vrot.slane %v4158_v1, 4  ;;  %v4239_v16 = vrot.slane %v4159_v2, 4  ;;  %v4245_v17 = vrot.slane %v4160_v4, 4 }
 0x3b5   : > { %v4315_v19 = vsel %vm346_vm5, %v4208_v55, %v4314_v13  ;;  %v4216_v20 = vmax.f32 %v4155_v61, %v4215_v8  ;;  %v4222_v21 = vmax.f32 %v4156_v63, %v4221_v9  ;;  %v4228_v23 = vmax.f32 %v4157_v62, %v4227_v11 }
 0x3b6   : > { %v4316_v24 = vsel %vm349_vm6, %v4214_v59, %v4315_v19  ;;  %v4234_v25 = vmax.f32 %v4158_v1, %v4233_v15  ;;  %v4240_v27 = vmax.f32 %v4159_v2, %v4239_v16  ;;  %v4246_v18 = vmax.f32 %v4160_v4, %v4245_v17  ;;  %v4288_v17 = vld [vmem:[#allocation3 + $0x185] sm:$0xff] }
 0x3b7   : > { %v4330_v28 = vmax.f32 %v4287_v12, %v4316_v24  ;;  %v4217_v29 = vrot.slane %v4216_v20, 2  ;;  %v4223_v31 = vrot.slane %v4222_v21, 2  ;;  %v4229_v22 = vrot.slane %v4228_v23, 2 }
 0x3b8   : > { %v4235_v32 = vrot.slane %v4234_v25, 2  ;;  %v4241_v33 = vrot.slane %v4240_v27, 2  ;;  %v4247_v36 = vrot.slane %v4246_v18, 2  ;;  %v4251_v26 = vrot.slane %v4161_v5, 4 }
 0x3b9   : > { %4333 = vst [vmem:[#allocation3 + $0x17d] sm:$0xff] %v4330_v28  ;;  %v4218_v37 = vmax.f32 %v4216_v20, %v4217_v29  ;;  %v4224_v38 = vmax.f32 %v4222_v21, %v4223_v31  ;;  %v4230_v40 = vmax.f32 %v4228_v23, %v4229_v22  ;;  %v4257_v30 = vrot.slane %v4162_v6, 4 }
 0x3ba   : > { %v4236_v41 = vmax.f32 %v4234_v25, %v4235_v32  ;;  %v4242_v42 = vmax.f32 %v4240_v27, %v4241_v33  ;;  %v4248_v43 = vmax.f32 %v4246_v18, %v4247_v36  ;;  %v4252_v35 = vmax.f32 %v4161_v5, %v4251_v26 }
 0x3bb   : > { %v4219_v44 = vrot.slane %v4218_v37, 1  ;;  %v4225_v45 = vrot.slane %v4224_v38, 1  ;;  %v4231_v46 = vrot.slane %v4230_v40, 1  ;;  %v4258_v39 = vmax.f32 %v4162_v6, %v4257_v30 }
 0x3bc   : > { %v4237_v47 = vrot.slane %v4236_v41, 1  ;;  %v4243_v48 = vrot.slane %v4242_v42, 1  ;;  %v4249_v49 = vrot.slane %v4248_v43, 1  ;;  %v4253_v10 = vrot.slane %v4252_v35, 2 }
 0x3bd   : > { %v4220_v52 = vmax.f32 %v4218_v37, %v4219_v44  ;;  %v4226_v53 = vmax.f32 %v4224_v38, %v4225_v45  ;;  %v4232_v54 = vmax.f32 %v4230_v40, %v4231_v46  ;;  %v4259_v55 = vrot.slane %v4258_v39, 2 }
 0x3be   : > { %v4238_v58 = vmax.f32 %v4236_v41, %v4237_v47  ;;  %v4244_v59 = vmax.f32 %v4242_v42, %v4243_v48  ;;  %v4250_v60 = vmax.f32 %v4248_v43, %v4249_v49  ;;  %v4254_v61 = vmax.f32 %v4252_v35, %v4253_v10  ;;  %v4289_v35 = vld [vmem:[#allocation3 + $0x18d] sm:$0xf] }
 0x3bf   : > { %v4260_v63 = vmax.f32 %v4258_v39, %v4259_v55  ;;  %v4317_v0 = vsel %vm331_vm0, %v4226_v53, %v4220_v52  ;;  %v4163_v62 = vsel %vm7205_vm15, %v4141_v50, -inf  ;;  %v4164_v1 = vsel %vm7205_vm15, %v4142_v51, -inf }
 0x3c0   : > { %v4255_v2 = vrot.slane %v4254_v61, 1  ;;  %v4318_v3 = vsel %vm334_vm1, %v4232_v54, %v4317_v0  ;;  %v4165_v4 = vsel %vm7205_vm15, %v4143_v56, -inf  ;;  %v4166_v5 = vsel %vm7205_vm15, %v4144_v57, -inf }
 0x3c1   : > { %v4261_v6 = vrot.slane %v4260_v63, 1  ;;  %v4319_v7 = vsel %vm337_vm2, %v4238_v58, %v4318_v3  ;;  %v4263_v8 = vrot.slane %v4163_v62, 4  ;;  %v4269_v9 = vrot.slane %v4164_v1, 4 }
 0x3c2   : > { %v4256_v11 = vmax.f32 %v4254_v61, %v4255_v2  ;;  %v4320_v12 = vsel %vm340_vm3, %v4244_v59, %v4319_v7  ;;  %v4275_v13 = vrot.slane %v4165_v4, 4  ;;  %v4281_v15 = vrot.slane %v4166_v5, 4 }
 0x3c3   : > { %v4262_v16 = vmax.f32 %v4260_v63, %v4261_v6  ;;  %v4321_v19 = vsel %vm343_vm4, %v4250_v60, %v4320_v12  ;;  %v4264_v20 = vmax.f32 %v4163_v62, %v4263_v8  ;;  %v4270_v21 = vmax.f32 %v4164_v1, %v4269_v9 }
 0x3c4   : > { %v4322_v23 = vsel %vm346_vm5, %v4256_v11, %v4321_v19  ;;  %v4276_v14 = vmax.f32 %v4165_v4, %v4275_v13  ;;  %v4282_v24 = vmax.f32 %v4166_v5, %v4281_v15 }
 0x3c5   : > { %v4323_v25 = vsel %vm349_vm6, %v4262_v16, %v4322_v23  ;;  %v4265_v27 = vrot.slane %v4264_v20, 2  ;;  %v4271_v18 = vrot.slane %v4270_v21, 2 }
 0x3c6   : > { %v4331_v28 = vmax.f32 %v4288_v17, %v4323_v25  ;;  %v4277_v29 = vrot.slane %v4276_v14, 2  ;;  %v4283_v31 = vrot.slane %v4282_v24, 2 }
 0x3c7   : > { %v4266_v22 = vmax.f32 %v4264_v20, %v4265_v27  ;;  %v4272_v32 = vmax.f32 %v4270_v21, %v4271_v18 }
 0x3c8   : > { %4334 = vst [vmem:[#allocation3 + $0x185] sm:$0xff] %v4331_v28  ;;  %v4278_v33 = vmax.f32 %v4276_v14, %v4277_v29  ;;  %v4284_v36 = vmax.f32 %v4282_v24, %v4283_v31 }
 0x3c9   : > { %v4267_v26 = vrot.slane %v4266_v22, 1  ;;  %v4273_v37 = vrot.slane %v4272_v32, 1 }
 0x3ca   : > { %v4279_v38 = vrot.slane %v4278_v33, 1  ;;  %v4285_v40 = vrot.slane %v4284_v36, 1 }
 0x3cb   : > { %v4268_v30 = vmax.f32 %v4266_v22, %v4267_v26  ;;  %v4274_v41 = vmax.f32 %v4272_v32, %v4273_v37 }
 0x3cc   : > { %v4280_v42 = vmax.f32 %v4278_v33, %v4279_v38  ;;  %v4286_v43 = vmax.f32 %v4284_v36, %v4285_v40 }
 0x3cd   : > { %v4324_v44 = vsel %vm331_vm0, %v4274_v41, %v4268_v30 }
 0x3ce   : > { %v4325_v45 = vsel %vm334_vm1, %v4280_v42, %v4324_v44 }
 0x3cf   : > { %v4326_v46 = vsel %vm337_vm2, %v4286_v43, %v4325_v45 }
 0x3d0   : > { %v4332_v39 = vmax.f32 %v4289_v35, %v4326_v46 }
 0x3d2   : > { %4335 = vst [vmem:[#allocation3 + $0x18d] sm:$0xf] %v4332_v39 }
 0x3d3 PF: > { %4337 = sbr.rel (%p5973_p6) target bundleno = 1012 (0x3f4), region = 130  ;;  %vm4338_vm7 = vcmp.ge.s32.totalorder (!%p5973_p6), %v6037_v34, 0  ;;  %vm4339_vm8 = vcmp.lt.s32.totalorder (!%p5973_p6), %v6037_v34, 2  ;;  %v4341_v47 = vld [vmem:[#allocation2 + $0xa0] sm:$0xff] (!%p5973_p6)  ;;  %v4342_v48 = vld [vmem:[#allocation2 + $0xa8] sm:$0xff] (!%p5973_p6)  ;;  %v4343_v49 = vld [vmem:[#allocation2 + $0xb0] sm:$0xff] (!%p5973_p6) }
 0x3d4   : > { %vm7270_vm9 = vmand (!%p5973_p6), %vm4338_vm7, %vm4339_vm8  ;;  %v4344_v50 = vld [vmem:[#allocation2 + $0xb8] sm:$0xff] (!%p5973_p6)  ;;  %v4345_v51 = vld [vmem:[#allocation2 + $0xc0] sm:$0xff] (!%p5973_p6) }
 0x3d5   : > { %v4346_v52 = vld [vmem:[#allocation2 + $0xc8] sm:$0xff] (!%p5973_p6)  ;;  %v4347_v53 = vld [vmem:[#allocation2 + $0xd0] sm:$0xff] (!%p5973_p6)  ;;  %v4348_v54 = vld [vmem:[#allocation2 + $0xd8] sm:$0xff] (!%p5973_p6)  ;;  %v4353_v55 = vsel (!%p5973_p6), %vm7270_vm9, %v4341_v47, -inf  ;;  %v4354_v56 = vsel (!%p5973_p6), %vm7270_vm9, %v4342_v48, -inf  ;;  %v4355_v57 = vsel (!%p5973_p6), %vm7270_vm9, %v4343_v49, -inf }
 0x3d6   : > { %v4356_v58 = vsel (!%p5973_p6), %vm7270_vm9, %v4344_v50, -inf  ;;  %v4357_v59 = vsel (!%p5973_p6), %vm7270_vm9, %v4345_v51, -inf  ;;  %v4358_v60 = vsel (!%p5973_p6), %vm7270_vm9, %v4346_v52, -inf  ;;  %v4359_v61 = vsel (!%p5973_p6), %vm7270_vm9, %v4347_v53, -inf  ;;  %v4349_v42 = vld [vmem:[#allocation2 + $0xe0] sm:$0xff] (!%p5973_p6)  ;;  %v4350_v43 = vld [vmem:[#allocation2 + $0xe8] sm:$0xff] (!%p5973_p6) }
 0x3d7   : > { %v4360_v63 = vsel (!%p5973_p6), %vm7270_vm9, %v4348_v54, -inf  ;;  %v4363_v0 = vrot.slane (!%p5973_p6), %v4353_v55, 4  ;;  %v4369_v62 = vrot.slane (!%p5973_p6), %v4354_v56, 4  ;;  %v4375_v1 = vrot.slane (!%p5973_p6), %v4355_v57, 4 }
 0x3d8   : > { %v4381_v2 = vrot.slane (!%p5973_p6), %v4356_v58, 4  ;;  %v4387_v3 = vrot.slane (!%p5973_p6), %v4357_v59, 4  ;;  %v4393_v4 = vrot.slane (!%p5973_p6), %v4358_v60, 4  ;;  %v4399_v5 = vrot.slane (!%p5973_p6), %v4359_v61, 4 }
 0x3d9   : > { %v4364_v6 = vmax.f32 (!%p5973_p6), %v4353_v55, %v4363_v0  ;;  %v4370_v7 = vmax.f32 (!%p5973_p6), %v4354_v56, %v4369_v62  ;;  %v4376_v8 = vmax.f32 (!%p5973_p6), %v4355_v57, %v4375_v1  ;;  %v4405_v9 = vrot.slane (!%p5973_p6), %v4360_v63, 4 }
 0x3da   : > { %v4382_v11 = vmax.f32 %v4356_v58, %v4381_v2  ;;  %v4388_v12 = vmax.f32 %v4357_v59, %v4387_v3  ;;  %v4394_v13 = vmax.f32 %v4358_v60, %v4393_v4  ;;  %v4400_v15 = vmax.f32 %v4359_v61, %v4399_v5  ;;  %v4423_v61 = vld [vmem:[#allocation3 + $0x15] sm:$0xff] }
 0x3db   : > { %v4365_v16 = vrot.slane %v4364_v6, 2  ;;  %v4371_v17 = vrot.slane %v4370_v7, 2  ;;  %v4377_v19 = vrot.slane %v4376_v8, 2  ;;  %v4406_v20 = vmax.f32 %v4360_v63, %v4405_v9  ;;  %v4424_v9 = vld [vmem:[#allocation3 + $0x1d] sm:$0x3] }
 0x3dc   : > { %v4383_v21 = vrot.slane %v4382_v11, 2  ;;  %v4389_v23 = vrot.slane %v4388_v12, 2  ;;  %v4395_v14 = vrot.slane %v4394_v13, 2  ;;  %v4401_v24 = vrot.slane %v4400_v15, 2 }
 0x3dd   : > { %v4366_v25 = vmax.f32 %v4364_v6, %v4365_v16  ;;  %v4372_v27 = vmax.f32 %v4370_v7, %v4371_v17  ;;  %v4378_v18 = vmax.f32 %v4376_v8, %v4377_v19  ;;  %v4407_v28 = vrot.slane %v4406_v20, 2 }
 0x3de   : > { %v4384_v29 = vmax.f32 %v4382_v11, %v4383_v21  ;;  %v4390_v31 = vmax.f32 %v4388_v12, %v4389_v23  ;;  %v4396_v22 = vmax.f32 %v4394_v13, %v4395_v14  ;;  %v4402_v32 = vmax.f32 %v4400_v15, %v4401_v24 }
 0x3df   : > { %v4367_v33 = vrot.slane %v4366_v25, 1  ;;  %v4373_v36 = vrot.slane %v4372_v27, 1  ;;  %v4379_v26 = vrot.slane %v4378_v18, 1  ;;  %v4408_v37 = vmax.f32 %v4406_v20, %v4407_v28 }
 0x3e0   : > { %v4385_v38 = vrot.slane %v4384_v29, 1  ;;  %v4391_v40 = vrot.slane %v4390_v31, 1  ;;  %v4397_v30 = vrot.slane %v4396_v22, 1  ;;  %v4403_v41 = vrot.slane %v4402_v32, 1 }
 0x3e1   : > { %v4368_v35 = vmax.f32 %v4366_v25, %v4367_v33  ;;  %v4374_v44 = vmax.f32 %v4372_v27, %v4373_v36  ;;  %v4380_v45 = vmax.f32 %v4378_v18, %v4379_v26  ;;  %v4409_v46 = vrot.slane %v4408_v37, 1 }
 0x3e2   : > { %v4386_v39 = vmax.f32 %v4384_v29, %v4385_v38  ;;  %v4392_v47 = vmax.f32 %v4390_v31, %v4391_v40  ;;  %v4398_v48 = vmax.f32 %v4396_v22, %v4397_v30  ;;  %v4361_v50 = vsel %vm7270_vm9, %v4349_v42, -inf }
 0x3e3   : > { %v4435_v49 = vsel %vm331_vm0, %v4374_v44, %v4368_v35  ;;  %v4362_v51 = vsel %vm7270_vm9, %v4350_v43, -inf  ;;  %v4404_v52 = vmax.f32 %v4402_v32, %v4403_v41  ;;  %v4411_v54 = vrot.slane %v4361_v50, 4 }
 0x3e4   : > { %v4436_v53 = vsel %vm334_vm1, %v4380_v45, %v4435_v49  ;;  %v4417_v55 = vrot.slane %v4362_v51, 4  ;;  %v4410_v56 = vmax.f32 %v4408_v37, %v4409_v46 }
 0x3e5   : > { %v4437_v57 = vsel %vm337_vm2, %v4386_v39, %v4436_v53  ;;  %v4412_v59 = vmax.f32 %v4361_v50, %v4411_v54 }
 0x3e6   : > { %v4438_v58 = vsel %vm340_vm3, %v4392_v47, %v4437_v57  ;;  %v4418_v60 = vmax.f32 %v4362_v51, %v4417_v55 }
 0x3e7   : > { %v4439_v63 = vsel %vm343_vm4, %v4398_v48, %v4438_v58  ;;  %v4413_v62 = vrot.slane %v4412_v59, 2 }
 0x3e8   : > { %v4440_v0 = vsel %vm346_vm5, %v4404_v52, %v4439_v63  ;;  %v4419_v10 = vrot.slane %v4418_v60, 2 }
 0x3e9   : > { %v4441_v1 = vsel %vm349_vm6, %v4410_v56, %v4440_v0  ;;  %v4414_v3 = vmax.f32 %v4412_v59, %v4413_v62 }
 0x3ea   : > { %v4445_v2 = vmax.f32 %v4423_v61, %v4441_v1  ;;  %v4420_v4 = vmax.f32 %v4418_v60, %v4419_v10 }
 0x3eb   : > { %v4415_v5 = vrot.slane %v4414_v3, 1 }
 0x3ec   : > { %4447 = vst [vmem:[#allocation3 + $0x15] sm:$0xff] %v4445_v2  ;;  %v4421_v6 = vrot.slane %v4420_v4, 1 }
 0x3ed   : > { %v4416_v7 = vmax.f32 %v4414_v3, %v4415_v5 }
 0x3ee   : > { %v4422_v8 = vmax.f32 %v4420_v4, %v4421_v6 }
 0x3f0   : > { %v4442_v11 = vsel %vm331_vm0, %v4422_v8, %v4416_v7 }
 0x3f1   : > { %v4446_v12 = vmax.f32 %v4424_v9, %v4442_v11 }
 0x3f3   : > { %4448 = vst [vmem:[#allocation3 + $0x1d] sm:$0x3] %v4446_v12 }
 0x3f4 PF: > { %4450 = sbr.rel (%p6381_p0) target bundleno = 1045 (0x415), region = 134  ;;  %vm4451_vm10 = vcmp.ge.s32.totalorder (!%p6381_p0), %v6037_v34, 2  ;;  %vm4452_vm11 = vcmp.lt.s32.totalorder (!%p6381_p0), %v6037_v34, 4  ;;  %v4454_v13 = vld [vmem:[#allocation2 + $0xa0] sm:$0xff] (!%p6381_p0)  ;;  %v4455_v15 = vld [vmem:[#allocation2 + $0xa8] sm:$0xff] (!%p6381_p0)  ;;  %v4456_v16 = vld [vmem:[#allocation2 + $0xb0] sm:$0xff] (!%p6381_p0) }
 0x3f5   : > { %vm7306_vm12 = vmand (!%p6381_p0), %vm4451_vm10, %vm4452_vm11  ;;  %v4457_v19 = vld [vmem:[#allocation2 + $0xb8] sm:$0xff] (!%p6381_p0)  ;;  %v4458_v20 = vld [vmem:[#allocation2 + $0xc0] sm:$0xff] (!%p6381_p0) }
 0x3f6   : > { %v4459_v21 = vld [vmem:[#allocation2 + $0xc8] sm:$0xff] (!%p6381_p0)  ;;  %v4460_v23 = vld [vmem:[#allocation2 + $0xd0] sm:$0xff] (!%p6381_p0)  ;;  %v4461_v14 = vld [vmem:[#allocation2 + $0xd8] sm:$0xff] (!%p6381_p0)  ;;  %v4466_v24 = vsel (!%p6381_p0), %vm7306_vm12, %v4454_v13, -inf  ;;  %v4467_v25 = vsel (!%p6381_p0), %vm7306_vm12, %v4455_v15, -inf  ;;  %v4468_v27 = vsel (!%p6381_p0), %vm7306_vm12, %v4456_v16, -inf }
 0x3f7   : > { %v4469_v18 = vsel (!%p6381_p0), %vm7306_vm12, %v4457_v19, -inf  ;;  %v4470_v28 = vsel (!%p6381_p0), %vm7306_vm12, %v4458_v20, -inf  ;;  %v4471_v29 = vsel (!%p6381_p0), %vm7306_vm12, %v4459_v21, -inf  ;;  %v4472_v31 = vsel (!%p6381_p0), %vm7306_vm12, %v4460_v23, -inf  ;;  %v4462_v5 = vld [vmem:[#allocation2 + $0xe0] sm:$0xff] (!%p6381_p0)  ;;  %v4463_v6 = vld [vmem:[#allocation2 + $0xe8] sm:$0xff] (!%p6381_p0) }
 0x3f8   : > { %v4473_v22 = vsel (!%p6381_p0), %vm7306_vm12, %v4461_v14, -inf  ;;  %v4476_v32 = vrot.slane (!%p6381_p0), %v4466_v24, 4  ;;  %v4482_v33 = vrot.slane (!%p6381_p0), %v4467_v25, 4  ;;  %v4488_v36 = vrot.slane (!%p6381_p0), %v4468_v27, 4 }
 0x3f9   : > { %v4494_v26 = vrot.slane (!%p6381_p0), %v4469_v18, 4  ;;  %v4500_v37 = vrot.slane (!%p6381_p0), %v4470_v28, 4  ;;  %v4506_v38 = vrot.slane (!%p6381_p0), %v4471_v29, 4  ;;  %v4512_v40 = vrot.slane (!%p6381_p0), %v4472_v31, 4 }
 0x3fa   : > { %v4477_v30 = vmax.f32 (!%p6381_p0), %v4466_v24, %v4476_v32  ;;  %v4483_v41 = vmax.f32 (!%p6381_p0), %v4467_v25, %v4482_v33  ;;  %v4489_v42 = vmax.f32 (!%p6381_p0), %v4468_v27, %v4488_v36  ;;  %v4518_v43 = vrot.slane (!%p6381_p0), %v4473_v22, 4 }
 0x3fb   : > { %v4495_v35 = vmax.f32 %v4469_v18, %v4494_v26  ;;  %v4501_v44 = vmax.f32 %v4470_v28, %v4500_v37  ;;  %v4507_v45 = vmax.f32 %v4471_v29, %v4506_v38  ;;  %v4513_v46 = vmax.f32 %v4472_v31, %v4512_v40  ;;  %v4536_v31 = vld [vmem:[#allocation3 + $0x1f] sm:$0xff] }
 0x3fc   : > { %v4478_v39 = vrot.slane %v4477_v30, 2  ;;  %v4484_v47 = vrot.slane %v4483_v41, 2  ;;  %v4490_v48 = vrot.slane %v4489_v42, 2  ;;  %v4519_v49 = vmax.f32 %v4473_v22, %v4518_v43  ;;  %v4537_v43 = vld [vmem:[#allocation3 + $0x27] sm:$0x3] }
 0x3fd   : > { %v4496_v50 = vrot.slane %v4495_v35, 2  ;;  %v4502_v51 = vrot.slane %v4501_v44, 2  ;;  %v4508_v52 = vrot.slane %v4507_v45, 2  ;;  %v4514_v53 = vrot.slane %v4513_v46, 2 }
 0x3fe   : > { %v4479_v54 = vmax.f32 %v4477_v30, %v4478_v39  ;;  %v4485_v55 = vmax.f32 %v4483_v41, %v4484_v47  ;;  %v4491_v56 = vmax.f32 %v4489_v42, %v4490_v48  ;;  %v4520_v57 = vrot.slane %v4519_v49, 2 }
 0x3ff   : > { %v4497_v58 = vmax.f32 %v4495_v35, %v4496_v50  ;;  %v4503_v59 = vmax.f32 %v4501_v44, %v4502_v51  ;;  %v4509_v60 = vmax.f32 %v4507_v45, %v4508_v52  ;;  %v4515_v61 = vmax.f32 %v4513_v46, %v4514_v53 }
 0x400   : > { %v4480_v63 = vrot.slane %v4479_v54, 1  ;;  %v4486_v0 = vrot.slane %v4485_v55, 1  ;;  %v4492_v62 = vrot.slane %v4491_v56, 1  ;;  %v4521_v10 = vmax.f32 %v4519_v49, %v4520_v57 }
 0x401   : > { %v4498_v1 = vrot.slane %v4497_v58, 1  ;;  %v4504_v2 = vrot.slane %v4503_v59, 1  ;;  %v4510_v3 = vrot.slane %v4509_v60, 1  ;;  %v4516_v4 = vrot.slane %v4515_v61, 1 }
 0x402   : > { %v4481_v7 = vmax.f32 %v4479_v54, %v4480_v63  ;;  %v4487_v8 = vmax.f32 %v4485_v55, %v4486_v0  ;;  %v4493_v9 = vmax.f32 %v4491_v56, %v4492_v62  ;;  %v4522_v11 = vrot.slane %v4521_v10, 1 }
 0x403   : > { %v4499_v12 = vmax.f32 %v4497_v58, %v4498_v1  ;;  %v4505_v13 = vmax.f32 %v4503_v59, %v4504_v2  ;;  %v4511_v15 = vmax.f32 %v4509_v60, %v4510_v3  ;;  %v4474_v19 = vsel %vm7306_vm12, %v4462_v5, -inf }
 0x404   : > { %v4548_v16 = vsel %vm331_vm0, %v4487_v8, %v4481_v7  ;;  %v4475_v20 = vsel %vm7306_vm12, %v4463_v6, -inf  ;;  %v4517_v21 = vmax.f32 %v4515_v61, %v4516_v4  ;;  %v4524_v14 = vrot.slane %v4474_v19, 4 }
 0x405   : > { %v4549_v23 = vsel %vm334_vm1, %v4493_v9, %v4548_v16  ;;  %v4530_v24 = vrot.slane %v4475_v20, 4  ;;  %v4523_v25 = vmax.f32 %v4521_v10, %v4522_v11 }
 0x406   : > { %v4550_v27 = vsel %vm337_vm2, %v4499_v12, %v4549_v23  ;;  %v4525_v28 = vmax.f32 %v4474_v19, %v4524_v14 }
 0x407   : > { %v4551_v18 = vsel %vm340_vm3, %v4505_v13, %v4550_v27  ;;  %v4531_v29 = vmax.f32 %v4475_v20, %v4530_v24 }
 0x408   : > { %v4552_v22 = vsel %vm343_vm4, %v4511_v15, %v4551_v18  ;;  %v4526_v33 = vrot.slane %v4525_v28, 2 }
 0x409   : > { %v4553_v32 = vsel %vm346_vm5, %v4517_v21, %v4552_v22  ;;  %v4532_v17 = vrot.slane %v4531_v29, 2 }
 0x40a   : > { %v4554_v36 = vsel %vm349_vm6, %v4523_v25, %v4553_v32  ;;  %v4527_v37 = vmax.f32 %v4525_v28, %v4526_v33 }
 0x40b   : > { %v4558_v26 = vmax.f32 %v4536_v31, %v4554_v36  ;;  %v4533_v38 = vmax.f32 %v4531_v29, %v4532_v17 }
 0x40c   : > { %v4528_v40 = vrot.slane %v4527_v37, 1 }
 0x40d   : > { %4560 = vst [vmem:[#allocation3 + $0x1f] sm:$0xff] %v4558_v26  ;;  %v4534_v30 = vrot.slane %v4533_v38, 1 }
 0x40e   : > { %v4529_v41 = vmax.f32 %v4527_v37, %v4528_v40 }
 0x40f   : > { %v4535_v42 = vmax.f32 %v4533_v38, %v4534_v30 }
 0x411   : > { %v4555_v35 = vsel %vm331_vm0, %v4535_v42, %v4529_v41 }
 0x412   : > { %v4559_v44 = vmax.f32 %v4537_v43, %v4555_v35 }
 0x414   : > { %4561 = vst [vmem:[#allocation3 + $0x27] sm:$0x3] %v4559_v44 }
 0x415 PF: > { %4563 = sbr.rel (%p6517_p8) target bundleno = 1078 (0x436), region = 138  ;;  %vm4564_vm13 = vcmp.ge.s32.totalorder (!%p6517_p8), %v6037_v34, 4  ;;  %vm4565_vm14 = vcmp.lt.s32.totalorder (!%p6517_p8), %v6037_v34, 6  ;;  %v4567_v45 = vld [vmem:[#allocation2 + $0xa0] sm:$0xff] (!%p6517_p8)  ;;  %v4568_v46 = vld [vmem:[#allocation2 + $0xa8] sm:$0xff] (!%p6517_p8)  ;;  %v4569_v39 = vld [vmem:[#allocation2 + $0xb0] sm:$0xff] (!%p6517_p8) }
 0x416   : > { %vm7342_vm15 = vmand (!%p6517_p8), %vm4564_vm13, %vm4565_vm14  ;;  %v4570_v48 = vld [vmem:[#allocation2 + $0xb8] sm:$0xff] (!%p6517_p8)  ;;  %v4571_v49 = vld [vmem:[#allocation2 + $0xc0] sm:$0xff] (!%p6517_p8) }
 0x417   : > { %v4572_v50 = vld [vmem:[#allocation2 + $0xc8] sm:$0xff] (!%p6517_p8)  ;;  %v4573_v51 = vld [vmem:[#allocation2 + $0xd0] sm:$0xff] (!%p6517_p8)  ;;  %v4574_v52 = vld [vmem:[#allocation2 + $0xd8] sm:$0xff] (!%p6517_p8)  ;;  %v4579_v53 = vsel (!%p6517_p8), %vm7342_vm15, %v4567_v45, -inf  ;;  %v4580_v54 = vsel (!%p6517_p8), %vm7342_vm15, %v4568_v46, -inf  ;;  %v4581_v55 = vsel (!%p6517_p8), %vm7342_vm15, %v4569_v39, -inf }
 0x418   : > { %v4582_v56 = vsel (!%p6517_p8), %vm7342_vm15, %v4570_v48, -inf  ;;  %v4583_v57 = vsel (!%p6517_p8), %vm7342_vm15, %v4571_v49, -inf  ;;  %v4584_v58 = vsel (!%p6517_p8), %vm7342_vm15, %v4572_v50, -inf  ;;  %v4585_v59 = vsel (!%p6517_p8), %vm7342_vm15, %v4573_v51, -inf  ;;  %v4575_v40 = vld [vmem:[#allocation2 + $0xe0] sm:$0xff] (!%p6517_p8)  ;;  %v4576_v30 = vld [vmem:[#allocation2 + $0xe8] sm:$0xff] (!%p6517_p8) }
 0x419   : > { %v4586_v60 = vsel (!%p6517_p8), %vm7342_vm15, %v4574_v52, -inf  ;;  %v4589_v61 = vrot.slane (!%p6517_p8), %v4579_v53, 4  ;;  %v4595_v63 = vrot.slane (!%p6517_p8), %v4580_v54, 4  ;;  %v4601_v0 = vrot.slane (!%p6517_p8), %v4581_v55, 4 }
 0x41a   : > { %v4607_v62 = vrot.slane (!%p6517_p8), %v4582_v56, 4  ;;  %v4613_v10 = vrot.slane (!%p6517_p8), %v4583_v57, 4  ;;  %v4619_v1 = vrot.slane (!%p6517_p8), %v4584_v58, 4  ;;  %v4625_v2 = vrot.slane (!%p6517_p8), %v4585_v59, 4 }
 0x41b   : > { %v4590_v3 = vmax.f32 (!%p6517_p8), %v4579_v53, %v4589_v61  ;;  %v4596_v4 = vmax.f32 (!%p6517_p8), %v4580_v54, %v4595_v63  ;;  %v4602_v5 = vmax.f32 (!%p6517_p8), %v4581_v55, %v4601_v0  ;;  %v4631_v6 = vrot.slane (!%p6517_p8), %v4586_v60, 4 }
 0x41c   : > { %v4608_v7 = vmax.f32 %v4582_v56, %v4607_v62  ;;  %v4614_v8 = vmax.f32 %v4583_v57, %v4613_v10  ;;  %v4620_v9 = vmax.f32 %v4584_v58, %v4619_v1  ;;  %v4626_v11 = vmax.f32 %v4585_v59, %v4625_v2  ;;  %v4649_v59 = vld [vmem:[#allocation3 + $0x29] sm:$0xff] }
 0x41d   : > { %v4591_v12 = vrot.slane %v4590_v3, 2  ;;  %v4597_v13 = vrot.slane %v4596_v4, 2  ;;  %v4603_v15 = vrot.slane %v4602_v5, 2  ;;  %v4632_v16 = vmax.f32 %v4586_v60, %v4631_v6  ;;  %v4650_v6 = vld [vmem:[#allocation3 + $0x31] sm:$0x3] }
 0x41e   : > { %v4609_v19 = vrot.slane %v4608_v7, 2  ;;  %v4615_v20 = vrot.slane %v4614_v8, 2  ;;  %v4621_v21 = vrot.slane %v4620_v9, 2  ;;  %v4627_v23 = vrot.slane %v4626_v11, 2 }
 0x41f   : > { %v4592_v14 = vmax.f32 %v4590_v3, %v4591_v12  ;;  %v4598_v24 = vmax.f32 %v4596_v4, %v4597_v13  ;;  %v4604_v25 = vmax.f32 %v4602_v5, %v4603_v15  ;;  %v4633_v27 = vrot.slane %v4632_v16, 2 }
 0x420   : > { %v4610_v18 = vmax.f32 %v4608_v7, %v4609_v19  ;;  %v4616_v28 = vmax.f32 %v4614_v8, %v4615_v20  ;;  %v4622_v29 = vmax.f32 %v4620_v9, %v4621_v21  ;;  %v4628_v31 = vmax.f32 %v4626_v11, %v4627_v23 }
 0x421   : > { %v4593_v22 = vrot.slane %v4592_v14, 1  ;;  %v4599_v32 = vrot.slane %v4598_v24, 1  ;;  %v4605_v33 = vrot.slane %v4604_v25, 1  ;;  %v4634_v17 = vmax.f32 %v4632_v16, %v4633_v27 }
 0x422   : > { %v4611_v36 = vrot.slane %v4610_v18, 1  ;;  %v4617_v26 = vrot.slane %v4616_v28, 1  ;;  %v4623_v37 = vrot.slane %v4622_v29, 1  ;;  %v4629_v38 = vrot.slane %v4628_v31, 1 }
 0x423   : > { %v4594_v41 = vmax.f32 %v4592_v14, %v4593_v22  ;;  %v4600_v42 = vmax.f32 %v4598_v24, %v4599_v32  ;;  %v4606_v43 = vmax.f32 %v4604_v25, %v4605_v33  ;;  %v4635_v35 = vrot.slane %v4634_v17, 1 }
 0x424   : > { %v4612_v44 = vmax.f32 %v4610_v18, %v4611_v36  ;;  %v4618_v45 = vmax.f32 %v4616_v28, %v4617_v26  ;;  %v4624_v46 = vmax.f32 %v4622_v29, %v4623_v37  ;;  %v4587_v48 = vsel %vm7342_vm15, %v4575_v40, -inf }
 0x425   : > { %v4661_v39 = vsel %vm331_vm0, %v4600_v42, %v4594_v41  ;;  %v4588_v49 = vsel %vm7342_vm15, %v4576_v30, -inf  ;;  %v4630_v50 = vmax.f32 %v4628_v31, %v4629_v38  ;;  %v4637_v52 = vrot.slane %v4587_v48, 4 }
 0x426   : > { %v4662_v51 = vsel %vm334_vm1, %v4606_v43, %v4661_v39  ;;  %v4643_v53 = vrot.slane %v4588_v49, 4  ;;  %v4636_v54 = vmax.f32 %v4634_v17, %v4635_v35 }
 0x427   : > { %v4663_v55 = vsel %vm337_vm2, %v4612_v44, %v4662_v51  ;;  %v4638_v57 = vmax.f32 %v4587_v48, %v4637_v52 }
 0x428   : > { %v4664_v56 = vsel %vm340_vm3, %v4618_v45, %v4663_v55  ;;  %v4644_v58 = vmax.f32 %v4588_v49, %v4643_v53 }
 0x429   : > { %v4665_v60 = vsel %vm343_vm4, %v4624_v46, %v4664_v56  ;;  %v4639_v63 = vrot.slane %v4638_v57, 2 }
 0x42a   : > { %v4666_v61 = vsel %vm346_vm5, %v4630_v50, %v4665_v60  ;;  %v4645_v47 = vrot.slane %v4644_v58, 2 }
 0x42b   : > { %v4667_v0 = vsel %vm349_vm6, %v4636_v54, %v4666_v61  ;;  %v4640_v10 = vmax.f32 %v4638_v57, %v4639_v63 }
 0x42c   : > { %v4671_v62 = vmax.f32 %v4649_v59, %v4667_v0  ;;  %v4646_v1 = vmax.f32 %v4644_v58, %v4645_v47 }
 0x42d   : > { %v4641_v2 = vrot.slane %v4640_v10, 1 }
 0x42e   : > { %4673 = vst [vmem:[#allocation3 + $0x29] sm:$0xff] %v4671_v62  ;;  %v4647_v3 = vrot.slane %v4646_v1, 1 }
 0x42f   : > { %v4642_v4 = vmax.f32 %v4640_v10, %v4641_v2 }
 0x430   : > { %v4648_v5 = vmax.f32 %v4646_v1, %v4647_v3 }
 0x432   : > { %v4668_v7 = vsel %vm331_vm0, %v4648_v5, %v4642_v4 }
 0x433   : > { %v4672_v8 = vmax.f32 %v4650_v6, %v4668_v7 }
 0x435   : > { %4674 = vst [vmem:[#allocation3 + $0x31] sm:$0x3] %v4672_v8 }
 0x436 PF: > { %4676 = sbr.rel (%p6653_p2) target bundleno = 1111 (0x457), region = 142  ;;  %vm4677_vm7 = vcmp.ge.s32.totalorder (!%p6653_p2), %v6037_v34, 6  ;;  %vm4678_vm8 = vcmp.lt.s32.totalorder (!%p6653_p2), %v6037_v34, 8  ;;  %v4680_v9 = vld [vmem:[#allocation2 + $0xa0] sm:$0xff] (!%p6653_p2)  ;;  %v4681_v11 = vld [vmem:[#allocation2 + $0xa8] sm:$0xff] (!%p6653_p2)  ;;  %v4682_v12 = vld [vmem:[#allocation2 + $0xb0] sm:$0xff] (!%p6653_p2) }
 0x437   : > { %vm7378_vm9 = vmand (!%p6653_p2), %vm4677_vm7, %vm4678_vm8  ;;  %v4683_v15 = vld [vmem:[#allocation2 + $0xb8] sm:$0xff] (!%p6653_p2)  ;;  %v4684_v16 = vld [vmem:[#allocation2 + $0xc0] sm:$0xff] (!%p6653_p2) }
 0x438   : > { %v4685_v19 = vld [vmem:[#allocation2 + $0xc8] sm:$0xff] (!%p6653_p2)  ;;  %v4686_v20 = vld [vmem:[#allocation2 + $0xd0] sm:$0xff] (!%p6653_p2)  ;;  %v4687_v21 = vld [vmem:[#allocation2 + $0xd8] sm:$0xff] (!%p6653_p2)  ;;  %v4692_v23 = vsel (!%p6653_p2), %vm7378_vm9, %v4680_v9, -inf  ;;  %v4693_v14 = vsel (!%p6653_p2), %vm7378_vm9, %v4681_v11, -inf  ;;  %v4694_v24 = vsel (!%p6653_p2), %vm7378_vm9, %v4682_v12, -inf }
 0x439   : > { %v4695_v25 = vsel (!%p6653_p2), %vm7378_vm9, %v4683_v15, -inf  ;;  %v4696_v27 = vsel (!%p6653_p2), %vm7378_vm9, %v4684_v16, -inf  ;;  %v4697_v18 = vsel (!%p6653_p2), %vm7378_vm9, %v4685_v19, -inf  ;;  %v4698_v28 = vsel (!%p6653_p2), %vm7378_vm9, %v4686_v20, -inf  ;;  %v4688_v2 = vld [vmem:[#allocation2 + $0xe0] sm:$0xff] (!%p6653_p2)  ;;  %v4689_v3 = vld [vmem:[#allocation2 + $0xe8] sm:$0xff] (!%p6653_p2) }
 0x43a   : > { %v4699_v29 = vsel (!%p6653_p2), %vm7378_vm9, %v4687_v21, -inf  ;;  %v4702_v31 = vrot.slane (!%p6653_p2), %v4692_v23, 4  ;;  %v4708_v22 = vrot.slane (!%p6653_p2), %v4693_v14, 4  ;;  %v4714_v32 = vrot.slane (!%p6653_p2), %v4694_v24, 4 }
 0x43b   : > { %v4720_v33 = vrot.slane (!%p6653_p2), %v4695_v25, 4  ;;  %v4726_v17 = vrot.slane (!%p6653_p2), %v4696_v27, 4  ;;  %v4732_v36 = vrot.slane (!%p6653_p2), %v4697_v18, 4  ;;  %v4738_v26 = vrot.slane (!%p6653_p2), %v4698_v28, 4 }
 0x43c   : > { %v4703_v37 = vmax.f32 (!%p6653_p2), %v4692_v23, %v4702_v31  ;;  %v4709_v38 = vmax.f32 (!%p6653_p2), %v4693_v14, %v4708_v22  ;;  %v4715_v40 = vmax.f32 (!%p6653_p2), %v4694_v24, %v4714_v32  ;;  %v4744_v30 = vrot.slane (!%p6653_p2), %v4699_v29, 4 }
 0x43d   : > { %v4721_v41 = vmax.f32 %v4695_v25, %v4720_v33  ;;  %v4727_v42 = vmax.f32 %v4696_v27, %v4726_v17  ;;  %v4733_v43 = vmax.f32 %v4697_v18, %v4732_v36  ;;  %v4739_v35 = vmax.f32 %v4698_v28, %v4738_v26  ;;  %v4762_v28 = vld [vmem:[#allocation3 + $0x33] sm:$0xff] }
 0x43e   : > { %v4704_v44 = vrot.slane %v4703_v37, 2  ;;  %v4710_v45 = vrot.slane %v4709_v38, 2  ;;  %v4716_v46 = vrot.slane %v4715_v40, 2  ;;  %v4745_v39 = vmax.f32 %v4699_v29, %v4744_v30  ;;  %v4763_v30 = vld [vmem:[#allocation3 + $0x3b] sm:$0x3] }
 0x43f   : > { %v4722_v48 = vrot.slane %v4721_v41, 2  ;;  %v4728_v49 = vrot.slane %v4727_v42, 2  ;;  %v4734_v50 = vrot.slane %v4733_v43, 2  ;;  %v4740_v51 = vrot.slane %v4739_v35, 2 }
 0x440   : > { %v4705_v52 = vmax.f32 %v4703_v37, %v4704_v44  ;;  %v4711_v53 = vmax.f32 %v4709_v38, %v4710_v45  ;;  %v4717_v54 = vmax.f32 %v4715_v40, %v4716_v46  ;;  %v4746_v55 = vrot.slane %v4745_v39, 2 }
 0x441   : > { %v4723_v56 = vmax.f32 %v4721_v41, %v4722_v48  ;;  %v4729_v57 = vmax.f32 %v4727_v42, %v4728_v49  ;;  %v4735_v58 = vmax.f32 %v4733_v43, %v4734_v50  ;;  %v4741_v59 = vmax.f32 %v4739_v35, %v4740_v51 }
 0x442   : > { %v4706_v60 = vrot.slane %v4705_v52, 1  ;;  %v4712_v61 = vrot.slane %v4711_v53, 1  ;;  %v4718_v63 = vrot.slane %v4717_v54, 1  ;;  %v4747_v47 = vmax.f32 %v4745_v39, %v4746_v55 }
 0x443   : > { %v4724_v0 = vrot.slane %v4723_v56, 1  ;;  %v4730_v62 = vrot.slane %v4729_v57, 1  ;;  %v4736_v10 = vrot.slane %v4735_v58, 1  ;;  %v4742_v1 = vrot.slane %v4741_v59, 1 }
 0x444   : > { %v4707_v4 = vmax.f32 %v4705_v52, %v4706_v60  ;;  %v4713_v5 = vmax.f32 %v4711_v53, %v4712_v61  ;;  %v4719_v6 = vmax.f32 %v4717_v54, %v4718_v63  ;;  %v4748_v7 = vrot.slane %v4747_v47, 1 }
 0x445   : > { %v4725_v8 = vmax.f32 %v4723_v56, %v4724_v0  ;;  %v4731_v9 = vmax.f32 %v4729_v57, %v4730_v62  ;;  %v4737_v11 = vmax.f32 %v4735_v58, %v4736_v10  ;;  %v4700_v15 = vsel %vm7378_vm9, %v4688_v2, -inf }
 0x446   : > { %v4774_v12 = vsel %vm331_vm0, %v4713_v5, %v4707_v4  ;;  %v4701_v16 = vsel %vm7378_vm9, %v4689_v3, -inf  ;;  %v4743_v19 = vmax.f32 %v4741_v59, %v4742_v1  ;;  %v4750_v21 = vrot.slane %v4700_v15, 4 }
 0x447   : > { %v4775_v20 = vsel %vm334_vm1, %v4719_v6, %v4774_v12  ;;  %v4756_v23 = vrot.slane %v4701_v16, 4  ;;  %v4749_v14 = vmax.f32 %v4747_v47, %v4748_v7 }
 0x448   : > { %v4776_v24 = vsel %vm337_vm2, %v4725_v8, %v4775_v20  ;;  %v4751_v27 = vmax.f32 %v4700_v15, %v4750_v21 }
 0x449   : > { %v4777_v25 = vsel %vm340_vm3, %v4731_v9, %v4776_v24  ;;  %v4757_v18 = vmax.f32 %v4701_v16, %v4756_v23 }
 0x44a   : > { %v4778_v29 = vsel %vm343_vm4, %v4737_v11, %v4777_v25  ;;  %v4752_v22 = vrot.slane %v4751_v27, 2 }
 0x44b   : > { %v4779_v31 = vsel %vm346_vm5, %v4743_v19, %v4778_v29  ;;  %v4758_v13 = vrot.slane %v4757_v18, 2 }
 0x44c   : > { %v4780_v32 = vsel %vm349_vm6, %v4749_v14, %v4779_v31  ;;  %v4753_v17 = vmax.f32 %v4751_v27, %v4752_v22 }
 0x44d   : > { %v4784_v33 = vmax.f32 %v4762_v28, %v4780_v32  ;;  %v4759_v36 = vmax.f32 %v4757_v18, %v4758_v13 }
 0x44e   : > { %v4754_v26 = vrot.slane %v4753_v17, 1 }
 0x44f   : > { %4786 = vst [vmem:[#allocation3 + $0x33] sm:$0xff] %v4784_v33  ;;  %v4760_v37 = vrot.slane %v4759_v36, 1 }
 0x450   : > { %v4755_v38 = vmax.f32 %v4753_v17, %v4754_v26 }
 0x451   : > { %v4761_v40 = vmax.f32 %v4759_v36, %v4760_v37 }
 0x453   : > { %v4781_v41 = vsel %vm331_vm0, %v4761_v40, %v4755_v38 }
 0x454   : > { %v4785_v42 = vmax.f32 %v4763_v30, %v4781_v41 }
 0x456   : > { %4787 = vst [vmem:[#allocation3 + $0x3b] sm:$0x3] %v4785_v42 }
 0x457 PF: > { %4789 = sbr.rel (%p6789_p11) target bundleno = 1144 (0x478), region = 146  ;;  %vm4790_vm10 = vcmp.ge.s32.totalorder (!%p6789_p11), %v6037_v34, 8  ;;  %vm4791_vm11 = vcmp.lt.s32.totalorder (!%p6789_p11), %v6037_v34, 10  ;;  %v4793_v43 = vld [vmem:[#allocation2 + $0xa0] sm:$0xff] (!%p6789_p11)  ;;  %v4794_v35 = vld [vmem:[#allocation2 + $0xa8] sm:$0xff] (!%p6789_p11)  ;;  %v4795_v44 = vld [vmem:[#allocation2 + $0xb0] sm:$0xff] (!%p6789_p11) }
 0x458   : > { %vm7414_vm12 = vmand (!%p6789_p11), %vm4790_vm10, %vm4791_vm11  ;;  %v4796_v46 = vld [vmem:[#allocation2 + $0xb8] sm:$0xff] (!%p6789_p11)  ;;  %v4797_v39 = vld [vmem:[#allocation2 + $0xc0] sm:$0xff] (!%p6789_p11) }
 0x459   : > { %v4798_v48 = vld [vmem:[#allocation2 + $0xc8] sm:$0xff] (!%p6789_p11)  ;;  %v4799_v49 = vld [vmem:[#allocation2 + $0xd0] sm:$0xff] (!%p6789_p11)  ;;  %v4800_v50 = vld [vmem:[#allocation2 + $0xd8] sm:$0xff] (!%p6789_p11)  ;;  %v4805_v51 = vsel (!%p6789_p11), %vm7414_vm12, %v4793_v43, -inf  ;;  %v4806_v52 = vsel (!%p6789_p11), %vm7414_vm12, %v4794_v35, -inf  ;;  %v4807_v53 = vsel (!%p6789_p11), %vm7414_vm12, %v4795_v44, -inf }
 0x45a   : > { %v4808_v54 = vsel (!%p6789_p11), %vm7414_vm12, %v4796_v46, -inf  ;;  %v4809_v55 = vsel (!%p6789_p11), %vm7414_vm12, %v4797_v39, -inf  ;;  %v4810_v56 = vsel (!%p6789_p11), %vm7414_vm12, %v4798_v48, -inf  ;;  %v4811_v57 = vsel (!%p6789_p11), %vm7414_vm12, %v4799_v49, -inf  ;;  %v4801_v26 = vld [vmem:[#allocation2 + $0xe0] sm:$0xff] (!%p6789_p11)  ;;  %v4802_v37 = vld [vmem:[#allocation2 + $0xe8] sm:$0xff] (!%p6789_p11) }
 0x45b   : > { %v4812_v58 = vsel (!%p6789_p11), %vm7414_vm12, %v4800_v50, -inf  ;;  %v4815_v59 = vrot.slane (!%p6789_p11), %v4805_v51, 4  ;;  %v4821_v60 = vrot.slane (!%p6789_p11), %v4806_v52, 4  ;;  %v4827_v61 = vrot.slane (!%p6789_p11), %v4807_v53, 4 }
 0x45c   : > { %v4833_v63 = vrot.slane (!%p6789_p11), %v4808_v54, 4  ;;  %v4839_v47 = vrot.slane (!%p6789_p11), %v4809_v55, 4  ;;  %v4845_v0 = vrot.slane (!%p6789_p11), %v4810_v56, 4  ;;  %v4851_v62 = vrot.slane (!%p6789_p11), %v4811_v57, 4 }
 0x45d   : > { %v4816_v10 = vmax.f32 (!%p6789_p11), %v4805_v51, %v4815_v59  ;;  %v4822_v1 = vmax.f32 (!%p6789_p11), %v4806_v52, %v4821_v60  ;;  %v4828_v2 = vmax.f32 (!%p6789_p11), %v4807_v53, %v4827_v61  ;;  %v4857_v3 = vrot.slane (!%p6789_p11), %v4812_v58, 4 }
 0x45e   : > { %v4834_v4 = vmax.f32 %v4808_v54, %v4833_v63  ;;  %v4840_v5 = vmax.f32 %v4809_v55, %v4839_v47  ;;  %v4846_v6 = vmax.f32 %v4810_v56, %v4845_v0  ;;  %v4852_v7 = vmax.f32 %v4811_v57, %v4851_v62  ;;  %v4875_v57 = vld [vmem:[#allocation3 + $0x3d] sm:$0xff] }
 0x45f   : > { %v4817_v8 = vrot.slane %v4816_v10, 2  ;;  %v4823_v9 = vrot.slane %v4822_v1, 2  ;;  %v4829_v11 = vrot.slane %v4828_v2, 2  ;;  %v4858_v12 = vmax.f32 %v4812_v58, %v4857_v3  ;;  %v4876_v3 = vld [vmem:[#allocation3 + $0x45] sm:$0x3] }
 0x460   : > { %v4835_v15 = vrot.slane %v4834_v4, 2  ;;  %v4841_v16 = vrot.slane %v4840_v5, 2  ;;  %v4847_v19 = vrot.slane %v4846_v6, 2  ;;  %v4853_v20 = vrot.slane %v4852_v7, 2 }
 0x461   : > { %v4818_v21 = vmax.f32 %v4816_v10, %v4817_v8  ;;  %v4824_v23 = vmax.f32 %v4822_v1, %v4823_v9  ;;  %v4830_v14 = vmax.f32 %v4828_v2, %v4829_v11  ;;  %v4859_v24 = vrot.slane %v4858_v12, 2 }
 0x462   : > { %v4836_v25 = vmax.f32 %v4834_v4, %v4835_v15  ;;  %v4842_v27 = vmax.f32 %v4840_v5, %v4841_v16  ;;  %v4848_v18 = vmax.f32 %v4846_v6, %v4847_v19  ;;  %v4854_v28 = vmax.f32 %v4852_v7, %v4853_v20 }
 0x463   : > { %v4819_v29 = vrot.slane %v4818_v21, 1  ;;  %v4825_v31 = vrot.slane %v4824_v23, 1  ;;  %v4831_v22 = vrot.slane %v4830_v14, 1  ;;  %v4860_v13 = vmax.f32 %v4858_v12, %v4859_v24 }
 0x464   : > { %v4837_v32 = vrot.slane %v4836_v25, 1  ;;  %v4843_v33 = vrot.slane %v4842_v27, 1  ;;  %v4849_v17 = vrot.slane %v4848_v18, 1  ;;  %v4855_v36 = vrot.slane %v4854_v28, 1 }
 0x465   : > { %v4820_v38 = vmax.f32 %v4818_v21, %v4819_v29  ;;  %v4826_v40 = vmax.f32 %v4824_v23, %v4825_v31  ;;  %v4832_v30 = vmax.f32 %v4830_v14, %v4831_v22  ;;  %v4861_v41 = vrot.slane %v4860_v13, 1 }
 0x466   : > { %v4838_v42 = vmax.f32 %v4836_v25, %v4837_v32  ;;  %v4844_v43 = vmax.f32 %v4842_v27, %v4843_v33  ;;  %v4850_v35 = vmax.f32 %v4848_v18, %v4849_v17  ;;  %v4813_v46 = vsel %vm7414_vm12, %v4801_v26, -inf }
 0x467   : > { %v4887_v44 = vsel %vm331_vm0, %v4826_v40, %v4820_v38  ;;  %v4814_v39 = vsel %vm7414_vm12, %v4802_v37, -inf  ;;  %v4856_v48 = vmax.f32 %v4854_v28, %v4855_v36  ;;  %v4863_v50 = vrot.slane %v4813_v46, 4 }
 0x468   : > { %v4888_v49 = vsel %vm334_vm1, %v4832_v30, %v4887_v44  ;;  %v4869_v51 = vrot.slane %v4814_v39, 4  ;;  %v4862_v52 = vmax.f32 %v4860_v13, %v4861_v41 }
 0x469   : > { %v4889_v53 = vsel %vm337_vm2, %v4838_v42, %v4888_v49  ;;  %v4864_v55 = vmax.f32 %v4813_v46, %v4863_v50 }
 0x46a   : > { %v4890_v54 = vsel %vm340_vm3, %v4844_v43, %v4889_v53  ;;  %v4870_v56 = vmax.f32 %v4814_v39, %v4869_v51 }
 0x46b   : > { %v4891_v58 = vsel %vm343_vm4, %v4850_v35, %v4890_v54  ;;  %v4865_v60 = vrot.slane %v4864_v55, 2 }
 0x46c   : > { %v4892_v59 = vsel %vm346_vm5, %v4856_v48, %v4891_v58  ;;  %v4871_v45 = vrot.slane %v4870_v56, 2 }
 0x46d   : > { %v4893_v61 = vsel %vm349_vm6, %v4862_v52, %v4892_v59  ;;  %v4866_v47 = vmax.f32 %v4864_v55, %v4865_v60 }
 0x46e   : > { %v4897_v63 = vmax.f32 %v4875_v57, %v4893_v61  ;;  %v4872_v0 = vmax.f32 %v4870_v56, %v4871_v45 }
 0x46f   : > { %v4867_v62 = vrot.slane %v4866_v47, 1 }
 0x470   : > { %4899 = vst [vmem:[#allocation3 + $0x3d] sm:$0xff] %v4897_v63  ;;  %v4873_v10 = vrot.slane %v4872_v0, 1 }
 0x471   : > { %v4868_v1 = vmax.f32 %v4866_v47, %v4867_v62 }
 0x472   : > { %v4874_v2 = vmax.f32 %v4872_v0, %v4873_v10 }
 0x474   : > { %v4894_v4 = vsel %vm331_vm0, %v4874_v2, %v4868_v1 }
 0x475   : > { %v4898_v5 = vmax.f32 %v4876_v3, %v4894_v4 }
 0x477   : > { %4900 = vst [vmem:[#allocation3 + $0x45] sm:$0x3] %v4898_v5 }
 0x478 PF: > { %4902 = sbr.rel (%p6925_p9) target bundleno = 1177 (0x499), region = 150  ;;  %vm4903_vm13 = vcmp.ge.s32.totalorder (!%p6925_p9), %v6037_v34, 10  ;;  %vm4904_vm14 = vcmp.lt.s32.totalorder (!%p6925_p9), %v6037_v34, 12  ;;  %v4906_v6 = vld [vmem:[#allocation2 + $0xa0] sm:$0xff] (!%p6925_p9)  ;;  %v4907_v7 = vld [vmem:[#allocation2 + $0xa8] sm:$0xff] (!%p6925_p9)  ;;  %v4908_v8 = vld [vmem:[#allocation2 + $0xb0] sm:$0xff] (!%p6925_p9) }
 0x479   : > { %vm7450_vm15 = vmand (!%p6925_p9), %vm4903_vm13, %vm4904_vm14  ;;  %v4909_v11 = vld [vmem:[#allocation2 + $0xb8] sm:$0xff] (!%p6925_p9)  ;;  %v4910_v12 = vld [vmem:[#allocation2 + $0xc0] sm:$0xff] (!%p6925_p9) }
 0x47a   : > { %v4911_v15 = vld [vmem:[#allocation2 + $0xc8] sm:$0xff] (!%p6925_p9)  ;;  %v4912_v16 = vld [vmem:[#allocation2 + $0xd0] sm:$0xff] (!%p6925_p9)  ;;  %v4913_v19 = vld [vmem:[#allocation2 + $0xd8] sm:$0xff] (!%p6925_p9)  ;;  %v4918_v20 = vsel (!%p6925_p9), %vm7450_vm15, %v4906_v6, -inf  ;;  %v4919_v21 = vsel (!%p6925_p9), %vm7450_vm15, %v4907_v7, -inf  ;;  %v4920_v23 = vsel (!%p6925_p9), %vm7450_vm15, %v4908_v8, -inf }
 0x47b   : > { %v4921_v14 = vsel (!%p6925_p9), %vm7450_vm15, %v4909_v11, -inf  ;;  %v4922_v24 = vsel (!%p6925_p9), %vm7450_vm15, %v4910_v12, -inf  ;;  %v4923_v25 = vsel (!%p6925_p9), %vm7450_vm15, %v4911_v15, -inf  ;;  %v4924_v27 = vsel (!%p6925_p9), %vm7450_vm15, %v4912_v16, -inf  ;;  %v4914_v62 = vld [vmem:[#allocation2 + $0xe0] sm:$0xff] (!%p6925_p9)  ;;  %v4915_v10 = vld [vmem:[#allocation2 + $0xe8] sm:$0xff] (!%p6925_p9) }
 0x47c   : > { %v4925_v18 = vsel (!%p6925_p9), %vm7450_vm15, %v4913_v19, -inf  ;;  %v4928_v28 = vrot.slane (!%p6925_p9), %v4918_v20, 4  ;;  %v4934_v29 = vrot.slane (!%p6925_p9), %v4919_v21, 4  ;;  %v4940_v31 = vrot.slane (!%p6925_p9), %v4920_v23, 4 }
 0x47d   : > { %v4946_v22 = vrot.slane (!%p6925_p9), %v4921_v14, 4  ;;  %v4952_v13 = vrot.slane (!%p6925_p9), %v4922_v24, 4  ;;  %v4958_v32 = vrot.slane (!%p6925_p9), %v4923_v25, 4  ;;  %v4964_v33 = vrot.slane (!%p6925_p9), %v4924_v27, 4 }
 0x47e   : > { %v4929_v17 = vmax.f32 (!%p6925_p9), %v4918_v20, %v4928_v28  ;;  %v4935_v36 = vmax.f32 (!%p6925_p9), %v4919_v21, %v4934_v29  ;;  %v4941_v26 = vmax.f32 (!%p6925_p9), %v4920_v23, %v4940_v31  ;;  %v4970_v37 = vrot.slane (!%p6925_p9), %v4925_v18, 4 }
 0x47f   : > { %v4947_v38 = vmax.f32 %v4921_v14, %v4946_v22  ;;  %v4953_v40 = vmax.f32 %v4922_v24, %v4952_v13  ;;  %v4959_v30 = vmax.f32 %v4923_v25, %v4958_v32  ;;  %v4965_v41 = vmax.f32 %v4924_v27, %v4964_v33  ;;  %v4988_v27 = vld [vmem:[#allocation3 + $0x47] sm:$0xff] }
 0x480   : > { %v4930_v42 = vrot.slane %v4929_v17, 2  ;;  %v4936_v43 = vrot.slane %v4935_v36, 2  ;;  %v4942_v35 = vrot.slane %v4941_v26, 2  ;;  %v4971_v44 = vmax.f32 %v4925_v18, %v4970_v37  ;;  %v4989_v37 = vld [vmem:[#allocation3 + $0x4f] sm:$0x3] }
 0x481   : > { %v4948_v46 = vrot.slane %v4947_v38, 2  ;;  %v4954_v39 = vrot.slane %v4953_v40, 2  ;;  %v4960_v48 = vrot.slane %v4959_v30, 2  ;;  %v4966_v49 = vrot.slane %v4965_v41, 2 }
 0x482   : > { %v4931_v50 = vmax.f32 %v4929_v17, %v4930_v42  ;;  %v4937_v51 = vmax.f32 %v4935_v36, %v4936_v43  ;;  %v4943_v52 = vmax.f32 %v4941_v26, %v4942_v35  ;;  %v4972_v53 = vrot.slane %v4971_v44, 2 }
 0x483   : > { %v4949_v54 = vmax.f32 %v4947_v38, %v4948_v46  ;;  %v4955_v55 = vmax.f32 %v4953_v40, %v4954_v39  ;;  %v4961_v56 = vmax.f32 %v4959_v30, %v4960_v48  ;;  %v4967_v57 = vmax.f32 %v4965_v41, %v4966_v49 }
 0x484   : > { %v4932_v58 = vrot.slane %v4931_v50, 1  ;;  %v4938_v59 = vrot.slane %v4937_v51, 1  ;;  %v4944_v60 = vrot.slane %v4943_v52, 1  ;;  %v4973_v45 = vmax.f32 %v4971_v44, %v4972_v53 }
 0x485   : > { %v4950_v61 = vrot.slane %v4949_v54, 1  ;;  %v4956_v63 = vrot.slane %v4955_v55, 1  ;;  %v4962_v47 = vrot.slane %v4961_v56, 1  ;;  %v4968_v0 = vrot.slane %v4967_v57, 1 }
 0x486   : > { %v4933_v1 = vmax.f32 %v4931_v50, %v4932_v58  ;;  %v4939_v2 = vmax.f32 %v4937_v51, %v4938_v59  ;;  %v4945_v3 = vmax.f32 %v4943_v52, %v4944_v60  ;;  %v4974_v4 = vrot.slane %v4973_v45, 1 }
 0x487   : > { %v4951_v5 = vmax.f32 %v4949_v54, %v4950_v61  ;;  %v4957_v6 = vmax.f32 %v4955_v55, %v4956_v63  ;;  %v4963_v7 = vmax.f32 %v4961_v56, %v4962_v47  ;;  %v4926_v11 = vsel %vm7450_vm15, %v4914_v62, -inf }
 0x488   : > { %v5000_v8 = vsel %vm331_vm0, %v4939_v2, %v4933_v1  ;;  %v4927_v12 = vsel %vm7450_vm15, %v4915_v10, -inf  ;;  %v4969_v15 = vmax.f32 %v4967_v57, %v4968_v0  ;;  %v4976_v19 = vrot.slane %v4926_v11, 4 }
 0x489   : > { %v5001_v16 = vsel %vm334_vm1, %v4945_v3, %v5000_v8  ;;  %v4982_v20 = vrot.slane %v4927_v12, 4  ;;  %v4975_v21 = vmax.f32 %v4973_v45, %v4974_v4 }
 0x48a   : > { %v5002_v23 = vsel %vm337_vm2, %v4951_v5, %v5001_v16  ;;  %v4977_v24 = vmax.f32 %v4926_v11, %v4976_v19 }
 0x48b   : > { %v5003_v14 = vsel %vm340_vm3, %v4957_v6, %v5002_v23  ;;  %v4983_v25 = vmax.f32 %v4927_v12, %v4982_v20 }
 0x48c   : > { %v5004_v18 = vsel %vm343_vm4, %v4963_v7, %v5003_v14  ;;  %v4978_v29 = vrot.slane %v4977_v24, 2 }
 0x48d   : > { %v5005_v28 = vsel %vm346_vm5, %v4969_v15, %v5004_v18  ;;  %v4984_v9 = vrot.slane %v4983_v25, 2 }
 0x48e   : > { %v5006_v31 = vsel %vm349_vm6, %v4975_v21, %v5005_v28  ;;  %v4979_v13 = vmax.f32 %v4977_v24, %v4978_v29 }
 0x48f   : > { %v5010_v22 = vmax.f32 %v4988_v27, %v5006_v31  ;;  %v4985_v32 = vmax.f32 %v4983_v25, %v4984_v9 }
 0x490   : > { %v4980_v33 = vrot.slane %v4979_v13, 1 }
 0x491   : > { %5012 = vst [vmem:[#allocation3 + $0x47] sm:$0xff] %v5010_v22  ;;  %v4986_v17 = vrot.slane %v4985_v32, 1 }
 0x492   : > { %v4981_v36 = vmax.f32 %v4979_v13, %v4980_v33 }
 0x493   : > { %v4987_v26 = vmax.f32 %v4985_v32, %v4986_v17 }
 0x495   : > { %v5007_v38 = vsel %vm331_vm0, %v4987_v26, %v4981_v36 }
 0x496   : > { %v5011_v40 = vmax.f32 %v4989_v37, %v5007_v38 }
 0x498   : > { %5013 = vst [vmem:[#allocation3 + $0x4f] sm:$0x3] %v5011_v40 }
 0x499 PF: > { %5015 = sbr.rel (%p7061_p5) target bundleno = 1210 (0x4ba), region = 154  ;;  %vm5016_vm7 = vcmp.ge.s32.totalorder (!%p7061_p5), %v6037_v34, 12  ;;  %vm5017_vm8 = vcmp.lt.s32.totalorder (!%p7061_p5), %v6037_v34, 14  ;;  %v5019_v30 = vld [vmem:[#allocation2 + $0xa0] sm:$0xff] (!%p7061_p5)  ;;  %v5020_v41 = vld [vmem:[#allocation2 + $0xa8] sm:$0xff] (!%p7061_p5)  ;;  %v5021_v42 = vld [vmem:[#allocation2 + $0xb0] sm:$0xff] (!%p7061_p5) }
 0x49a   : > { %vm7486_vm9 = vmand (!%p7061_p5), %vm5016_vm7, %vm5017_vm8  ;;  %v5022_v35 = vld [vmem:[#allocation2 + $0xb8] sm:$0xff] (!%p7061_p5)  ;;  %v5023_v44 = vld [vmem:[#allocation2 + $0xc0] sm:$0xff] (!%p7061_p5) }
 0x49b   : > { %v5024_v46 = vld [vmem:[#allocation2 + $0xc8] sm:$0xff] (!%p7061_p5)  ;;  %v5025_v39 = vld [vmem:[#allocation2 + $0xd0] sm:$0xff] (!%p7061_p5)  ;;  %v5026_v48 = vld [vmem:[#allocation2 + $0xd8] sm:$0xff] (!%p7061_p5)  ;;  %v5031_v49 = vsel (!%p7061_p5), %vm7486_vm9, %v5019_v30, -inf  ;;  %v5032_v50 = vsel (!%p7061_p5), %vm7486_vm9, %v5020_v41, -inf  ;;  %v5033_v51 = vsel (!%p7061_p5), %vm7486_vm9, %v5021_v42, -inf }
 0x49c   : > { %v5034_v52 = vsel (!%p7061_p5), %vm7486_vm9, %v5022_v35, -inf  ;;  %v5035_v53 = vsel (!%p7061_p5), %vm7486_vm9, %v5023_v44, -inf  ;;  %v5036_v54 = vsel (!%p7061_p5), %vm7486_vm9, %v5024_v46, -inf  ;;  %v5037_v55 = vsel (!%p7061_p5), %vm7486_vm9, %v5025_v39, -inf  ;;  %v5027_v33 = vld [vmem:[#allocation2 + $0xe0] sm:$0xff] (!%p7061_p5)  ;;  %v5028_v17 = vld [vmem:[#allocation2 + $0xe8] sm:$0xff] (!%p7061_p5) }
 0x49d   : > { %v5038_v56 = vsel (!%p7061_p5), %vm7486_vm9, %v5026_v48, -inf  ;;  %v5041_v57 = vrot.slane (!%p7061_p5), %v5031_v49, 4  ;;  %v5047_v58 = vrot.slane (!%p7061_p5), %v5032_v50, 4  ;;  %v5053_v59 = vrot.slane (!%p7061_p5), %v5033_v51, 4 }
 0x49e   : > { %v5059_v60 = vrot.slane (!%p7061_p5), %v5034_v52, 4  ;;  %v5065_v45 = vrot.slane (!%p7061_p5), %v5035_v53, 4  ;;  %v5071_v61 = vrot.slane (!%p7061_p5), %v5036_v54, 4  ;;  %v5077_v63 = vrot.slane (!%p7061_p5), %v5037_v55, 4 }
 0x49f   : > { %v5042_v47 = vmax.f32 (!%p7061_p5), %v5031_v49, %v5041_v57  ;;  %v5048_v0 = vmax.f32 (!%p7061_p5), %v5032_v50, %v5047_v58  ;;  %v5054_v62 = vmax.f32 (!%p7061_p5), %v5033_v51, %v5053_v59  ;;  %v5083_v10 = vrot.slane (!%p7061_p5), %v5038_v56, 4 }
 0x4a0   : > { %v5060_v1 = vmax.f32 %v5034_v52, %v5059_v60  ;;  %v5066_v2 = vmax.f32 %v5035_v53, %v5065_v45  ;;  %v5072_v3 = vmax.f32 %v5036_v54, %v5071_v61  ;;  %v5078_v4 = vmax.f32 %v5037_v55, %v5077_v63  ;;  %v5101_v55 = vld [vmem:[#allocation3 + $0x51] sm:$0xff] }
 0x4a1   : > { %v5043_v5 = vrot.slane %v5042_v47, 2  ;;  %v5049_v6 = vrot.slane %v5048_v0, 2  ;;  %v5055_v7 = vrot.slane %v5054_v62, 2  ;;  %v5084_v8 = vmax.f32 %v5038_v56, %v5083_v10  ;;  %v5102_v10 = vld [vmem:[#allocation3 + $0x59] sm:$0x3] }
 0x4a2   : > { %v5061_v11 = vrot.slane %v5060_v1, 2  ;;  %v5067_v12 = vrot.slane %v5066_v2, 2  ;;  %v5073_v15 = vrot.slane %v5072_v3, 2  ;;  %v5079_v16 = vrot.slane %v5078_v4, 2 }
 0x4a3   : > { %v5044_v19 = vmax.f32 %v5042_v47, %v5043_v5  ;;  %v5050_v20 = vmax.f32 %v5048_v0, %v5049_v6  ;;  %v5056_v21 = vmax.f32 %v5054_v62, %v5055_v7  ;;  %v5085_v23 = vrot.slane %v5084_v8, 2 }
 0x4a4   : > { %v5062_v14 = vmax.f32 %v5060_v1, %v5061_v11  ;;  %v5068_v24 = vmax.f32 %v5066_v2, %v5067_v12  ;;  %v5074_v25 = vmax.f32 %v5072_v3, %v5073_v15  ;;  %v5080_v27 = vmax.f32 %v5078_v4, %v5079_v16 }
 0x4a5   : > { %v5045_v18 = vrot.slane %v5044_v19, 1  ;;  %v5051_v28 = vrot.slane %v5050_v20, 1  ;;  %v5057_v29 = vrot.slane %v5056_v21, 1  ;;  %v5086_v9 = vmax.f32 %v5084_v8, %v5085_v23 }
 0x4a6   : > { %v5063_v31 = vrot.slane %v5062_v14, 1  ;;  %v5069_v22 = vrot.slane %v5068_v24, 1  ;;  %v5075_v13 = vrot.slane %v5074_v25, 1  ;;  %v5081_v32 = vrot.slane %v5080_v27, 1 }
 0x4a7   : > { %v5046_v36 = vmax.f32 %v5044_v19, %v5045_v18  ;;  %v5052_v26 = vmax.f32 %v5050_v20, %v5051_v28  ;;  %v5058_v37 = vmax.f32 %v5056_v21, %v5057_v29  ;;  %v5087_v38 = vrot.slane %v5086_v9, 1 }
 0x4a8   : > { %v5064_v40 = vmax.f32 %v5062_v14, %v5063_v31  ;;  %v5070_v30 = vmax.f32 %v5068_v24, %v5069_v22  ;;  %v5076_v41 = vmax.f32 %v5074_v25, %v5075_v13  ;;  %v5039_v35 = vsel %vm7486_vm9, %v5027_v33, -inf }
 0x4a9   : > { %v5113_v42 = vsel %vm331_vm0, %v5052_v26, %v5046_v36  ;;  %v5040_v44 = vsel %vm7486_vm9, %v5028_v17, -inf  ;;  %v5082_v46 = vmax.f32 %v5080_v27, %v5081_v32  ;;  %v5089_v48 = vrot.slane %v5039_v35, 4 }
 0x4aa   : > { %v5114_v39 = vsel %vm334_vm1, %v5058_v37, %v5113_v42  ;;  %v5095_v49 = vrot.slane %v5040_v44, 4  ;;  %v5088_v50 = vmax.f32 %v5086_v9, %v5087_v38 }
 0x4ab   : > { %v5115_v51 = vsel %vm337_vm2, %v5064_v40, %v5114_v39  ;;  %v5090_v53 = vmax.f32 %v5039_v35, %v5089_v48 }
 0x4ac   : > { %v5116_v52 = vsel %vm340_vm3, %v5070_v30, %v5115_v51  ;;  %v5096_v54 = vmax.f32 %v5040_v44, %v5095_v49 }
 0x4ad   : > { %v5117_v56 = vsel %vm343_vm4, %v5076_v41, %v5116_v52  ;;  %v5091_v58 = vrot.slane %v5090_v53, 2 }
 0x4ae   : > { %v5118_v57 = vsel %vm346_vm5, %v5082_v46, %v5117_v56  ;;  %v5097_v43 = vrot.slane %v5096_v54, 2 }
 0x4af   : > { %v5119_v59 = vsel %vm349_vm6, %v5088_v50, %v5118_v57  ;;  %v5092_v45 = vmax.f32 %v5090_v53, %v5091_v58 }
 0x4b0   : > { %v5123_v60 = vmax.f32 %v5101_v55, %v5119_v59  ;;  %v5098_v61 = vmax.f32 %v5096_v54, %v5097_v43 }
 0x4b1   : > { %v5093_v63 = vrot.slane %v5092_v45, 1 }
 0x4b2   : > { %5125 = vst [vmem:[#allocation3 + $0x51] sm:$0xff] %v5123_v60  ;;  %v5099_v47 = vrot.slane %v5098_v61, 1 }
 0x4b3   : > { %v5094_v0 = vmax.f32 %v5092_v45, %v5093_v63 }
 0x4b4   : > { %v5100_v62 = vmax.f32 %v5098_v61, %v5099_v47 }
 0x4b6   : > { %v5120_v1 = vsel %vm331_vm0, %v5100_v62, %v5094_v0 }
 0x4b7   : > { %v5124_v2 = vmax.f32 %v5102_v10, %v5120_v1 }
 0x4b9   : > { %5126 = vst [vmem:[#allocation3 + $0x59] sm:$0x3] %v5124_v2 }
 0x4ba PF: > { %5128 = sbr.rel (%p7197_p10) target bundleno = 1243 (0x4db), region = 158  ;;  %vm5129_vm10 = vcmp.ge.s32.totalorder (!%p7197_p10), %v6037_v34, 14  ;;  %vm5130_vm11 = vcmp.lt.s32.totalorder (!%p7197_p10), %v6037_v34, 16  ;;  %v5132_v3 = vld [vmem:[#allocation2 + $0xa0] sm:$0xff] (!%p7197_p10)  ;;  %v5133_v4 = vld [vmem:[#allocation2 + $0xa8] sm:$0xff] (!%p7197_p10)  ;;  %v5134_v5 = vld [vmem:[#allocation2 + $0xb0] sm:$0xff] (!%p7197_p10) }
 0x4bb   : > { %vm7522_vm12 = vmand (!%p7197_p10), %vm5129_vm10, %vm5130_vm11  ;;  %v5135_v7 = vld [vmem:[#allocation2 + $0xb8] sm:$0xff] (!%p7197_p10)  ;;  %v5136_v8 = vld [vmem:[#allocation2 + $0xc0] sm:$0xff] (!%p7197_p10) }
 0x4bc   : > { %v5137_v11 = vld [vmem:[#allocation2 + $0xc8] sm:$0xff] (!%p7197_p10)  ;;  %v5138_v12 = vld [vmem:[#allocation2 + $0xd0] sm:$0xff] (!%p7197_p10)  ;;  %v5139_v15 = vld [vmem:[#allocation2 + $0xd8] sm:$0xff] (!%p7197_p10)  ;;  %v5144_v16 = vsel (!%p7197_p10), %vm7522_vm12, %v5132_v3, -inf  ;;  %v5145_v19 = vsel (!%p7197_p10), %vm7522_vm12, %v5133_v4, -inf  ;;  %v5146_v34 = vsel (!%p7197_p10), %vm7522_vm12, %v5134_v5, -inf }
 0x4bd   : > { %v5147_v20 = vsel (!%p7197_p10), %vm7522_vm12, %v5135_v7, -inf  ;;  %v5148_v21 = vsel (!%p7197_p10), %vm7522_vm12, %v5136_v8, -inf  ;;  %v5149_v23 = vsel (!%p7197_p10), %vm7522_vm12, %v5137_v11, -inf  ;;  %v5150_v14 = vsel (!%p7197_p10), %vm7522_vm12, %v5138_v12, -inf  ;;  %v5140_v61 = vld [vmem:[#allocation2 + $0xe0] sm:$0xff] (!%p7197_p10)  ;;  %v5141_v63 = vld [vmem:[#allocation2 + $0xe8] sm:$0xff] (!%p7197_p10) }
 0x4be   : > { %v5151_v24 = vsel (!%p7197_p10), %vm7522_vm12, %v5139_v15, -inf  ;;  %v5154_v25 = vrot.slane (!%p7197_p10), %v5144_v16, 4  ;;  %v5160_v27 = vrot.slane (!%p7197_p10), %v5145_v19, 4  ;;  %v5166_v18 = vrot.slane (!%p7197_p10), %v5146_v34, 4 }
 0x4bf   : > { %v5172_v28 = vrot.slane (!%p7197_p10), %v5147_v20, 4  ;;  %v5178_v29 = vrot.slane (!%p7197_p10), %v5148_v21, 4  ;;  %v5184_v9 = vrot.slane (!%p7197_p10), %v5149_v23, 4  ;;  %v5190_v31 = vrot.slane (!%p7197_p10), %v5150_v14, 4 }
 0x4c0   : > { %v5155_v22 = vmax.f32 (!%p7197_p10), %v5144_v16, %v5154_v25  ;;  %v5161_v13 = vmax.f32 (!%p7197_p10), %v5145_v19, %v5160_v27  ;;  %v5167_v32 = vmax.f32 (!%p7197_p10), %v5146_v34, %v5166_v18  ;;  %v5196_v33 = vrot.slane (!%p7197_p10), %v5151_v24, 4 }
 0x4c1   : > { %v5173_v17 = vmax.f32 %v5147_v20, %v5172_v28  ;;  %v5179_v36 = vmax.f32 %v5148_v21, %v5178_v29  ;;  %v5185_v26 = vmax.f32 %v5149_v23, %v5184_v9  ;;  %v5191_v37 = vmax.f32 %v5150_v14, %v5190_v31  ;;  %v5214_v23 = vld [vmem:[#allocation3 + $0x5b] sm:$0xff] }
 0x4c2   : > { %v5156_v38 = vrot.slane %v5155_v22, 2  ;;  %v5162_v40 = vrot.slane %v5161_v13, 2  ;;  %v5168_v30 = vrot.slane %v5167_v32, 2  ;;  %v5197_v41 = vmax.f32 %v5151_v24, %v5196_v33 }
 0x4c3   : > { %v5174_v42 = vrot.slane %v5173_v17, 2  ;;  %v5180_v35 = vrot.slane %v5179_v36, 2  ;;  %v5186_v44 = vrot.slane %v5185_v26, 2  ;;  %v5192_v46 = vrot.slane %v5191_v37, 2 }
 0x4c4   : > { %v5157_v39 = vmax.f32 %v5155_v22, %v5156_v38  ;;  %v5163_v48 = vmax.f32 %v5161_v13, %v5162_v40  ;;  %v5169_v49 = vmax.f32 %v5167_v32, %v5168_v30  ;;  %v5198_v50 = vrot.slane %v5197_v41, 2  ;;  %v5215_v32 = vld [vmem:[#allocation3 + $0x63] sm:$0x3] }
 0x4c5   : > { %v5175_v51 = vmax.f32 %v5173_v17, %v5174_v42  ;;  %v5181_v52 = vmax.f32 %v5179_v36, %v5180_v35  ;;  %v5187_v53 = vmax.f32 %v5185_v26, %v5186_v44  ;;  %v5193_v54 = vmax.f32 %v5191_v37, %v5192_v46 }
 0x4c6   : > { %v5158_v55 = vrot.slane %v5157_v39, 1  ;;  %v5164_v56 = vrot.slane %v5163_v48, 1  ;;  %v5170_v57 = vrot.slane %v5169_v49, 1  ;;  %v5199_v58 = vmax.f32 %v5197_v41, %v5198_v50 }
 0x4c7   : > { %v5176_v43 = vrot.slane %v5175_v51, 1  ;;  %v5182_v59 = vrot.slane %v5181_v52, 1  ;;  %v5188_v60 = vrot.slane %v5187_v53, 1  ;;  %v5194_v45 = vrot.slane %v5193_v54, 1 }
 0x4c8   : > { %v5159_v47 = vmax.f32 %v5157_v39, %v5158_v55  ;;  %v5165_v0 = vmax.f32 %v5163_v48, %v5164_v56  ;;  %v5171_v62 = vmax.f32 %v5169_v49, %v5170_v57  ;;  %v5200_v10 = vrot.slane %v5199_v58, 1 }
 0x4c9   : > { %v5177_v1 = vmax.f32 %v5175_v51, %v5176_v43  ;;  %v5183_v2 = vmax.f32 %v5181_v52, %v5182_v59  ;;  %v5189_v3 = vmax.f32 %v5187_v53, %v5188_v60  ;;  %v5152_v5 = vsel %vm7522_vm12, %v5140_v61, -inf }
 0x4ca   : > { %v5226_v4 = vsel %vm331_vm0, %v5165_v0, %v5159_v47  ;;  %v5153_v7 = vsel %vm7522_vm12, %v5141_v63, -inf  ;;  %v5195_v8 = vmax.f32 %v5193_v54, %v5194_v45  ;;  %v5202_v12 = vrot.slane %v5152_v5, 4 }
 0x4cb   : > { %v5227_v11 = vsel %vm334_vm1, %v5171_v62, %v5226_v4  ;;  %v5208_v15 = vrot.slane %v5153_v7, 4  ;;  %v5201_v16 = vmax.f32 %v5199_v58, %v5200_v10 }
 0x4cc   : > { %v5228_v19 = vsel %vm337_vm2, %v5177_v1, %v5227_v11  ;;  %v5203_v20 = vmax.f32 %v5152_v5, %v5202_v12 }
 0x4cd   : > { %v5229_v34 = vsel %vm340_vm3, %v5183_v2, %v5228_v19  ;;  %v5209_v21 = vmax.f32 %v5153_v7, %v5208_v15 }
 0x4ce   : > { %v5230_v14 = vsel %vm343_vm4, %v5189_v3, %v5229_v34  ;;  %v5204_v25 = vrot.slane %v5203_v20, 2 }
 0x4cf   : > { %v5231_v24 = vsel %vm346_vm5, %v5195_v8, %v5230_v14  ;;  %v5210_v6 = vrot.slane %v5209_v21, 2 }
 0x4d0   : > { %v5232_v27 = vsel %vm349_vm6, %v5201_v16, %v5231_v24  ;;  %v5205_v28 = vmax.f32 %v5203_v20, %v5204_v25 }
 0x4d1   : > { %v5236_v18 = vmax.f32 %v5214_v23, %v5232_v27  ;;  %v5211_v29 = vmax.f32 %v5209_v21, %v5210_v6 }
 0x4d2   : > { %v5206_v9 = vrot.slane %v5205_v28, 1 }
 0x4d3   : > { %5238 = vst [vmem:[#allocation3 + $0x5b] sm:$0xff] %v5236_v18  ;;  %v5212_v31 = vrot.slane %v5211_v29, 1 }
 0x4d4   : > { %v5207_v22 = vmax.f32 %v5205_v28, %v5206_v9 }
 0x4d5   : > { %v5213_v13 = vmax.f32 %v5211_v29, %v5212_v31 }
 0x4d7   : > { %v5233_v33 = vsel %vm331_vm0, %v5213_v13, %v5207_v22 }
 0x4d8   : > { %v5237_v17 = vmax.f32 %v5215_v32, %v5233_v33 }
 0x4da   : > { %5239 = vst [vmem:[#allocation3 + $0x63] sm:$0x3] %v5237_v17 }
 0x4db PF: > { %p5540_p6 = scmp.ne.s32.totalorder %s5733_s11, 1 }
 0x4dc   : > { %v5244_v36 = vld [vmem:[#allocation3 + $0x15] sm:$0xff] (!%p5540_p6)  ;;  %v5246_v26 = vld [vmem:[#allocation3 + $0x1f] sm:$0xff] (!%p5540_p6)  ;;  %v5245_v37 = vld [vmem:[#allocation3 + $0x1d] sm:$0x3] (!%p5540_p6)  ;;  %vm5323_vm0 = vcmask (!%p5540_p6), 1043456  }
 0x4dd   : > { %5243 = sbr.rel (%p5540_p6) target bundleno = 1303 (0x517), region = 162  ;;  %v5248_v38 = vmax.f32 (!%p5540_p6), %v5244_v36, %v5246_v26  ;;  %v5247_v40 = vld [vmem:[#allocation3 + $0x27] sm:$0x3] (!%p5540_p6)  ;;  %v5263_v30 = vld [vmem:[#allocation3 + $0x29] sm:$0xff] (!%p5540_p6)  ;;  %v5265_v41 = vld [vmem:[#allocation3 + $0x33] sm:$0xff] (!%p5540_p6) }
 0x4de   : > { %v5249_v42 = vmax.f32 (!%p5540_p6), %v5245_v37, %v5247_v40  ;;  %v5267_v35 = vmax.f32 (!%p5540_p6), %v5263_v30, %v5265_v41  ;;  %v5264_v44 = vld [vmem:[#allocation3 + $0x31] sm:$0x3] (!%p5540_p6)  ;;  %v5266_v46 = vld [vmem:[#allocation3 + $0x3b] sm:$0x3] (!%p5540_p6)  ;;  %v5282_v39 = vld [vmem:[#allocation3 + $0x3d] sm:$0xff] (!%p5540_p6) }
 0x4df   : > { %v5251_v48 = vrot.slane (!%p5540_p6), %v5248_v38, 1  ;;  %v5268_v49 = vmax.f32 (!%p5540_p6), %v5264_v44, %v5266_v46  ;;  %v5284_v50 = vld [vmem:[#allocation3 + $0x47] sm:$0xff] (!%p5540_p6)  ;;  %v5283_v51 = vld [vmem:[#allocation3 + $0x45] sm:$0x3] (!%p5540_p6)  ;;  %v5285_v52 = vld [vmem:[#allocation3 + $0x4f] sm:$0x3] (!%p5540_p6) }
 0x4e0   : > { %v5259_v53 = vrot.slane (!%p5540_p6), %v5249_v42, 1  ;;  %v5270_v54 = vrot.slane (!%p5540_p6), %v5267_v35, 1  ;;  %v5286_v55 = vmax.f32 (!%p5540_p6), %v5282_v39, %v5284_v50  ;;  %v5287_v56 = vmax.f32 (!%p5540_p6), %v5283_v51, %v5285_v52  ;;  %v5301_v57 = vld [vmem:[#allocation3 + $0x51] sm:$0xff] (!%p5540_p6)  ;;  %v5303_v58 = vld [vmem:[#allocation3 + $0x5b] sm:$0xff] (!%p5540_p6)  ;;  %v5302_v43 = vld [vmem:[#allocation3 + $0x59] sm:$0x3] (!%p5540_p6) }
 0x4e1   : > { %v5253_v59 = vmax.f32 (!%p5540_p6), %v5248_v38, %v5251_v48  ;;  %v5278_v60 = vrot.slane (!%p5540_p6), %v5268_v49, 1  ;;  %v5305_v45 = vmax.f32 (!%p5540_p6), %v5301_v57, %v5303_v58  ;;  %v5304_v61 = vld [vmem:[#allocation3 + $0x63] sm:$0x3] (!%p5540_p6)  ;;  %v5337_v63 = vld [vmem:[#allocation3 + $0x18] sm:$0xff] (!%p5540_p6)  ;;  %v5339_v2 = vld [vmem:[#allocation3 + $0x28] sm:$0xff] (!%p5540_p6) }
 0x4e2   : > { %v5338_v47 = vld [vmem:[#allocation3 + $0x20] sm:$0xff] (!%p5540_p6)  ;;  %v5261_v0 = vmax.f32 (!%p5540_p6), %v5249_v42, %v5259_v53  ;;  %v5272_v62 = vmax.f32 (!%p5540_p6), %v5267_v35, %v5270_v54  ;;  %v5289_v10 = vrot.slane (!%p5540_p6), %v5286_v55, 1  ;;  %v5297_v1 = vrot.slane (!%p5540_p6), %v5287_v56, 1  ;;  %5388 = vst [vmem:[%s5925_s2 + $0x18] sm:$0xff] (!%p5540_p6), %v5337_v63  ;;  %v5340_v3 = vld [vmem:[#allocation3 + $0x30] sm:$0xff] (!%p5540_p6)  ;;  %v5341_v4 = vld [vmem:[#allocation3 + $0x38] sm:$0xff] (!%p5540_p6) }
 0x4e3   : > { %5389 = vst [vmem:[%s5925_s2 + $0x20] sm:$0xff] (!%p5540_p6), %v5338_v47  ;;  %5254 = vst [vmem:[#allocation3 + $0x1] sm:$0x1] (!%p5540_p6), %v5253_v59  ;;  %v5280_v5 = vmax.f32 (!%p5540_p6), %v5268_v49, %v5278_v60  ;;  %v5308_v7 = vrot.slane (!%p5540_p6), %v5305_v45, 1  ;;  %v5306_v8 = vmax.f32 (!%p5540_p6), %v5302_v43, %v5304_v61  ;;  %v5342_v11 = vld [vmem:[#allocation3 + $0x40] sm:$0xff] (!%p5540_p6)  ;;  %v5343_v12 = vld [vmem:[#allocation3 + $0x48] sm:$0xff] (!%p5540_p6) }
 0x4e4   : > { %5255 = vst [vmem:[#allocation3] sm:$0x4] %v5253_v59  ;;  %5256 = vst [vmem:[#allocation3 - $0x1] sm:$0x10] %v5253_v59  ;;  %v5344_v15 = vld [vmem:[#allocation3 + $0x50] sm:$0xff]  ;;  %v5291_v16 = vmax.f32 %v5286_v55, %v5289_v10  ;;  %v5299_v19 = vmax.f32 %v5287_v56, %v5297_v1  ;;  %v5345_v34 = vld [vmem:[#allocation3 + $0x58] sm:$0xff] }
 0x4e5   : > { %5257 = vst [vmem:[#allocation3 - $0x2] sm:$0x40] %v5253_v59  ;;  %5390 = vst [vmem:[%s5925_s2 + $0x28] sm:$0xff] %v5339_v2  ;;  %v5346_v20 = vld [vmem:[#allocation3 + $0x60] sm:$0xff]  ;;  %v5347_v21 = vld [vmem:[#allocation3 + $0x68] sm:$0xff]  ;;  %v5310_v23 = vmax.f32 %v5305_v45, %v5308_v7  ;;  %v5316_v14 = vrot.slane %v5306_v8, 1 }
 0x4e6   : > { %5391 = vst [vmem:[%s5925_s2 + $0x30] sm:$0xff] %v5340_v3  ;;  %5392 = vst [vmem:[%s5925_s2 + $0x38] sm:$0xff] %v5341_v4  ;;  %v5348_v24 = vld [vmem:[#allocation3 + $0x70] sm:$0xff]  ;;  %v5349_v25 = vld [vmem:[#allocation3 + $0x78] sm:$0xff] }
 0x4e7   : > { %5262 = vst [vmem:[#allocation3 + $0x5] sm:$0x1] %v5261_v0  ;;  %5273 = vst [vmem:[#allocation3 + $0x6] sm:$0x1] %v5272_v62  ;;  %v5350_v6 = vld [vmem:[#allocation3 + $0x80] sm:$0xff]  ;;  %v5351_v27 = vld [vmem:[#allocation3 + $0x88] sm:$0xff]  ;;  %v5318_v29 = vmax.f32 %v5306_v8, %v5316_v14 }
 0x4e8   : > { %5274 = vst [vmem:[#allocation3 + $0x5] sm:$0x4] %v5272_v62  ;;  %5275 = vst [vmem:[#allocation3 + $0x4] sm:$0x10] %v5272_v62  ;;  %v5352_v18 = vld [vmem:[#allocation3 + $0x90] sm:$0xff]  ;;  %v5353_v28 = vld [vmem:[#allocation3 + $0x98] sm:$0xff] }
 0x4e9   : > { %5276 = vst [vmem:[#allocation3 + $0x3] sm:$0x40] %v5272_v62  ;;  %5393 = vst [vmem:[%s5925_s2 + $0x40] sm:$0xff] %v5342_v11  ;;  %v5354_v9 = vld [vmem:[#allocation3 + $0xa0] sm:$0xff]  ;;  %v5355_v31 = vld [vmem:[#allocation3 + $0xa8] sm:$0xff] }
 0x4ea   : > { %5394 = vst [vmem:[%s5925_s2 + $0x48] sm:$0xff] %v5343_v12  ;;  %5395 = vst [vmem:[%s5925_s2 + $0x50] sm:$0xff] %v5344_v15  ;;  %v5356_v22 = vld [vmem:[#allocation3 + $0xb0] sm:$0xff]  ;;  %v5357_v13 = vld [vmem:[#allocation3 + $0xb8] sm:$0xff] }
 0x4eb   : > { %5281 = vst [vmem:[#allocation3 + $0xa] sm:$0x1] %v5280_v5  ;;  %5396 = vst [vmem:[%s5925_s2 + $0x58] sm:$0xff] %v5345_v34  ;;  %v5358_v32 = vld [vmem:[#allocation3 + $0xc0] sm:$0xff]  ;;  %v5359_v33 = vld [vmem:[#allocation3 + $0xc8] sm:$0xff] }
 0x4ec   : > { %5397 = vst [vmem:[%s5925_s2 + $0x60] sm:$0xff] %v5346_v20  ;;  %5398 = vst [vmem:[%s5925_s2 + $0x68] sm:$0xff] %v5347_v21  ;;  %v5360_v17 = vld [vmem:[#allocation3 + $0xd0] sm:$0xff]  ;;  %v5361_v36 = vld [vmem:[#allocation3 + $0xd8] sm:$0xff] }
 0x4ed   : > { %5292 = vst [vmem:[#allocation3 + $0xb] sm:$0x1] %v5291_v16  ;;  %5293 = vst [vmem:[#allocation3 + $0xa] sm:$0x4] %v5291_v16  ;;  %v5362_v26 = vld [vmem:[#allocation3 + $0xe0] sm:$0xff]  ;;  %v5363_v37 = vld [vmem:[#allocation3 + $0xe8] sm:$0xff] }
 0x4ee   : > { %5294 = vst [vmem:[#allocation3 + $0x9] sm:$0x10] %v5291_v16  ;;  %5295 = vst [vmem:[#allocation3 + $0x8] sm:$0x40] %v5291_v16  ;;  %v5364_v38 = vld [vmem:[#allocation3 + $0xf0] sm:$0xff]  ;;  %v5365_v40 = vld [vmem:[#allocation3 + $0xf8] sm:$0xff] }
 0x4ef   : > { %5300 = vst [vmem:[#allocation3 + $0xf] sm:$0x1] %v5299_v19  ;;  %5399 = vst [vmem:[%s5925_s2 + $0x70] sm:$0xff] %v5348_v24  ;;  %v5320_v30 = vld [vmem:[#allocation3 + $0x1] sm:$0xff]  ;;  %v5368_v35 = vld [vmem:[#allocation3 + $0x110] sm:$0xff] }
 0x4f0   : > { %5400 = vst [vmem:[%s5925_s2 + $0x78] sm:$0xff] %v5349_v25  ;;  %5401 = vst [vmem:[%s5925_s2 + $0x80] sm:$0xff] %v5350_v6  ;;  %v5366_v41 = vld [vmem:[#allocation3 + $0x100] sm:$0xff]  ;;  %v5367_v42 = vld [vmem:[#allocation3 + $0x108] sm:$0xff] }
 0x4f1   : > { %5311 = vst [vmem:[#allocation3 + $0x10] sm:$0x1] %v5310_v23  ;;  %5312 = vst [vmem:[#allocation3 + $0xf] sm:$0x4] %v5310_v23  ;;  %v5369_v44 = vld [vmem:[#allocation3 + $0x118] sm:$0xff]  ;;  %v5370_v46 = vld [vmem:[#allocation3 + $0x120] sm:$0xff] }
 0x4f2   : > { %5313 = vst [vmem:[#allocation3 + $0xe] sm:$0x10] %v5310_v23  ;;  %5314 = vst [vmem:[#allocation3 + $0xd] sm:$0x40] %v5310_v23  ;;  %v5371_v48 = vld [vmem:[#allocation3 + $0x128] sm:$0xff]  ;;  %v5372_v49 = vld [vmem:[#allocation3 + $0x130] sm:$0xff] }
 0x4f3   : > { %5402 = vst [vmem:[%s5925_s2 + $0x88] sm:$0xff] %v5351_v27  ;;  %5403 = vst [vmem:[%s5925_s2 + $0x90] sm:$0xff] %v5352_v18  ;;  %v5373_v51 = vld [vmem:[#allocation3 + $0x138] sm:$0xff]  ;;  %v5374_v52 = vld [vmem:[#allocation3 + $0x140] sm:$0xff] }
 0x4f4   : > { %5404 = vst [vmem:[%s5925_s2 + $0x98] sm:$0xff] %v5353_v28  ;;  %5405 = vst [vmem:[%s5925_s2 + $0xa0] sm:$0xff] %v5354_v9  ;;  %v5375_v54 = vld [vmem:[#allocation3 + $0x148] sm:$0xff]  ;;  %v5376_v55 = vld [vmem:[#allocation3 + $0x150] sm:$0xff] }
 0x4f5   : > { %5406 = vst [vmem:[%s5925_s2 + $0xa8] sm:$0xff] %v5355_v31  ;;  %5407 = vst [vmem:[%s5925_s2 + $0xb0] sm:$0xff] %v5356_v22  ;;  %v5377_v56 = vld [vmem:[#allocation3 + $0x158] sm:$0xff]  ;;  %v5378_v43 = vld [vmem:[#allocation3 + $0x160] sm:$0xff] }
 0x4f6   : > { %5319 = vst [vmem:[#allocation3 + $0x14] sm:$0x1] %v5318_v29  ;;  %5408 = vst [vmem:[%s5925_s2 + $0xb8] sm:$0xff] %v5357_v13  ;;  %v5335_v39 = vld [vmem:[#allocation3 + $0x8] sm:$0xff]  ;;  %v5380_v45 = vld [vmem:[#allocation3 + $0x170] sm:$0xff] }
 0x4f7   : > { %5409 = vst [vmem:[%s5925_s2 + $0xc0] sm:$0xff] %v5358_v32  ;;  %5410 = vst [vmem:[%s5925_s2 + $0xc8] sm:$0xff] %v5359_v33  ;;  %v5379_v60 = vld [vmem:[#allocation3 + $0x168] sm:$0xff]  ;;  %v5381_v61 = vld [vmem:[#allocation3 + $0x178] sm:$0xff] }
 0x4f8   : > { %5411 = vst [vmem:[%s5925_s2 + $0xd0] sm:$0xff] %v5360_v17  ;;  %5412 = vst [vmem:[%s5925_s2 + $0xd8] sm:$0xff] %v5361_v36  ;;  %v5321_v50 = vld [vmem:[#allocation3 + $0x9] sm:$0xff]  ;;  %v5382_v47 = vld [vmem:[#allocation3 + $0x180] sm:$0xff] }
 0x4f9   : > { %5413 = vst [vmem:[%s5925_s2 + $0xe0] sm:$0xff] %v5362_v26  ;;  %5414 = vst [vmem:[%s5925_s2 + $0xe8] sm:$0xff] %v5363_v37  ;;  %v5325_v53 = vmax.f32 %v5320_v30, %v5321_v50  ;;  %v5383_v0 = vld [vmem:[#allocation3 + $0x188] sm:$0xff]  ;;  %v5384_v62 = vld [vmem:[#allocation3 + $0x190] sm:$0x1] }
 0x4fa   : > { %5415 = vst [vmem:[%s5925_s2 + $0xf0] sm:$0xff] %v5364_v38  ;;  %5416 = vst [vmem:[%s5925_s2 + $0xf8] sm:$0xff] %v5365_v40 }
 0x4fb   : > { %5417 = vst [vmem:[%s5925_s2 + $0x100] sm:$0xff] %v5366_v41  ;;  %5418 = vst [vmem:[%s5925_s2 + $0x108] sm:$0xff] %v5367_v42 }
 0x4fc   : > { %5419 = vst [vmem:[%s5925_s2 + $0x110] sm:$0xff] %v5368_v35  ;;  %5420 = vst [vmem:[%s5925_s2 + $0x118] sm:$0xff] %v5369_v44 }
 0x4fd   : > { %5421 = vst [vmem:[%s5925_s2 + $0x120] sm:$0xff] %v5370_v46  ;;  %5386 = vst [vmem:[%s5925_s2 + $0x8] sm:$0xff] %v5335_v39  ;;  %v5336_v57 = vld [vmem:[#allocation3 + $0x10] sm:$0xff] }
 0x4fe   : > { %5422 = vst [vmem:[%s5925_s2 + $0x128] sm:$0xff] %v5371_v48  ;;  %5423 = vst [vmem:[%s5925_s2 + $0x130] sm:$0xff] %v5372_v49  ;;  %v5322_v58 = vld [vmem:[#allocation3 + $0x11] sm:$0xf] }
 0x4ff   : > { %5424 = vst [vmem:[%s5925_s2 + $0x138] sm:$0xff] %v5373_v51  ;;  %5425 = vst [vmem:[%s5925_s2 + $0x140] sm:$0xff] %v5374_v52  ;;  %v5324_v59 = vsel %vm5323_vm0, %v5322_v58, -inf }
 0x500   : > { %5426 = vst [vmem:[%s5925_s2 + $0x148] sm:$0xff] %v5375_v54  ;;  %5427 = vst [vmem:[%s5925_s2 + $0x150] sm:$0xff] %v5376_v55  ;;  %v5326_v63 = vmax.f32 %v5325_v53, %v5324_v59 }
 0x501   : > { %5428 = vst [vmem:[%s5925_s2 + $0x158] sm:$0xff] %v5377_v56  ;;  %5387 = vst [vmem:[%s5925_s2 + $0x10] sm:$0xff] %v5336_v57 }
 0x502   : > { %5429 = vst [vmem:[%s5925_s2 + $0x160] sm:$0xff] %v5378_v43  ;;  %5430 = vst [vmem:[%s5925_s2 + $0x168] sm:$0xff] %v5379_v60  ;;  %v5327_v10 = vrot.slane %v5326_v63, 4 }
 0x503   : > { %5431 = vst [vmem:[%s5925_s2 + $0x170] sm:$0xff] %v5380_v45  ;;  %5432 = vst [vmem:[%s5925_s2 + $0x178] sm:$0xff] %v5381_v61 }
 0x504   : > { %5433 = vst [vmem:[%s5925_s2 + $0x180] sm:$0xff] %v5382_v47  ;;  %5434 = vst [vmem:[%s5925_s2 + $0x188] sm:$0xff] %v5383_v0  ;;  %v5328_v1 = vmax.f32 %v5326_v63, %v5327_v10 }
 0x505   : > { %5435 = vst [vmem:[%s5925_s2 + $0x190] sm:$0x1] %v5384_v62 }
 0x506   : > { %v5329_v2 = vrot.slane %v5328_v1, 2 }
 0x508   : > { %v5330_v3 = vmax.f32 %v5328_v1, %v5329_v2 }
 0x50a   : > { %v5331_v4 = vrot.slane %v5330_v3, 1 }
 0x50c   : > { %v5332_v5 = vmax.f32 %v5330_v3, %v5331_v4 }
 0x50e   : > { %5333 = vst [vmem:[#allocation3] sm:$0x1] %v5332_v5 }
 0x515   : > { %v5334_v7 = vld [vmem:[#allocation3] sm:$0xff] }
 0x516   : > { %5385 = vst [vmem:[%s5925_s2] sm:$0xff] %v5334_v7 }
 0x517 PF: > { %s5541_s11 = sshll.u32 %s5737_s12, 7  ;;  %s5449_s3 = sshll.u32 %s5925_s2, 4  ;;  %s7614_s3 = int_to_ptr.vmem [resolvable:$true] %s5449_s3 }
 0x518   : > { %s7611_s9 = scalar_lea.hbm %s7677_s1, %s5541_s11  ;;  %s7618_s4 = scalar_lea.sflag [#allocation6], %s255_s23 }
 0x519   : > { %s5639_s5 = scalar_lea.vmem %s7614_s3, 6528  ;;  %s5752_s12 = smov [#allocation5]  }
 0x51a   : > { %p5640_p0 = scmp.ne.s32.totalorder %s7614_s3, %s5639_s5  ;;  %s5643_s16 = sshll.u32 %s5752_s12, 4  ;;  %s5644_s16 = int_to_ptr.vmem [resolvable:$false] %s5643_s16 }
 0x51b   : > { %s5645_s17 = scalar_lea.vmem %s5644_s16, 13056  ;;  %p5646_p11 = scmp.lt.s32.totalorder %s7614_s3, %s5644_s16 }
 0x51c   : > { %p5641_p8 = pnand %p5640_p0, %p5838_p7  ;;  %p5647_p9 = scmp.lt.s32.totalorder %s5645_s17, %s5639_s5 }
 0x51e   : > { %p5642_p2 = pneg %p5641_p8  ;;  %p5648_p5 = por %p5647_p9, %p5646_p11 }
 0x520   : > { %p5649_p13 = pnand %p5648_p5, %p5642_p2 }
 0x522   : > { %5652 = shalt.err (!%p5649_p13)
}
 0x523   : > { %s5653_s23 = scalar_lea.hbm %s7611_s9, 6528  ;;  %s5657_s20 = scalar_lea.hbm %s7677_s1, 13056 }
 0x524   : > { %p5654_p1 = scmp.ne.s32.totalorder %s7611_s9, %s5653_s23  ;;  %p5658_p10 = scmp.lt.u32.totalorder %s7611_s9, %s7677_s1 }
 0x525   : > { %p5659_p6 = scmp.lt.u32.totalorder %s5657_s20, %s5653_s23  ;;  %p5661_p8 = scmp.lt.u32.totalorder %s5653_s23, %s7611_s9 }
 0x526   : > { %p5655_p3 = pnand %p5654_p1, %p5838_p7 }
 0x527   : > { %p5660_p0 = por %p5659_p6, %p5658_p10 }
 0x528   : > { %p5656_p4 = pneg %p5655_p3 }
 0x529   : > { %p5662_p2 = por %p5661_p8, %p5660_p0 }
 0x52b   : > { %p5663_p11 = pnand %p5662_p2, %p5656_p4 }
 0x52d   : > { %5666 = shalt.err (!%p5663_p11)
}
 0x52e   : > { %s5753_s11 = smov 128   ;;  %s5754_s26 = smov 256  }
 0x52f   : > { %s5755_s30 = smov 8  }
 0x530   : > { %5548 = dma.vmem_to_hbm [thread:$0]  (%p5838_p7), %s7614_s3, 6528, %s7611_s9, %s7618_s4, %s5753_s11, %s5754_s26, %s5755_s30  }
 0x531 PF: > { %p5554_p9 = scmp.ge.s32.totalorder %s5749_s15, 2  ;;  %s5464_s5 = sand.u32 1, %s5713_s6  }
 0x532   : > { %s5465_s12 = scalar_lea.sflag [#allocation6], %s5464_s5 }
 0x533   : > { %p5551_p5 = pnand %p5554_p9, %p5846_p12 }
 0x535   : > { %5708 = dma.done.wait (!%p5551_p5), %s5465_s12, 6528  }
 0x536   : > { %5710 = vsyncadd (!%p5551_p5), %s5465_s12, 4294960768  ;;  %s14_s15 = sadd.s32 1, %s5749_s15   ;;  %s7735_s6 = smov %s5717_s7 }
 0x537   : > { %p11_p13 = scmp.ge.s32.totalorder %s14_s15, 6   ;;  %s7736_s7 = smov %s5721_s8 }
 0x538   : > { %s7737_s8 = smov %s5851_s28  ;;  %s7738_s9 = smov %s5729_s10 }
 0x539   : > { %s7739_s10 = smov %s5854_s29  ;;  %s7740_s11 = smov %s5741_s13 }
 0x53a   : > { %s7741_s12 = smov %s5745_s14  ;;  %s7742_s13 = smov %s7745_s18 }
 0x53b   : > { %s7743_s14 = smov %s7749_s19  ;;  %13 = sbr.rel (!%p11_p13) target bundleno = 6 (0x6), region = 231 }
 0x542   :  { %5470 = vsyncpa [#allocation6], 1 }
 0x543   :  { %5472 = vsyncpa [#allocation6 + $0x1], 1 }

</bundles_post_ra>
